<compile_context>
chip_gen: v7x
topology: tpu7x:2x2x1
jax: 0.10.0
libtpu: 0.0.40
codegen_flags: <defaults>
</compile_context>

<pallas_src>
import jax
import jax.numpy as jnp
import numpy as np
from jax.experimental import pallas as pl
from jax.experimental.pallas import tpu as pltpu

# ---------------- small NeRF configuration ----------------
D = 8                      # number of pts_linears (torch indices 8..11 assume D=8)
W = 32                     # hidden width (torch default 256; small demo size)
INPUT_CH = 16              # positional-encoding channels (torch default 63)
INPUT_CH_VIEWS = 8         # view-direction channels (torch default 27)
SKIPS = (4,)
USE_VIEWDIRS = True        # TODO(synk): use_viewdirs=False output branch not implemented.
CLASS_DIM = 2
C_DIM = 1                  # NOTE: the torch code has a latent slice-overlap bug for C_dim>1;
                           # keep C_DIM=1 (consistent with the reference implementation).


def build_target_shapes():
    """Shapes of (weight | bias) = (out, in+1) in torch named_parameters order:
    pts_linears[0..7], views_linears[0], feature_linear, alpha_linear, rgb_linear."""
    shapes = [(W, INPUT_CH + 1)]
    for i in range(D - 1):
        if i in SKIPS:
            shapes.append((W, W + INPUT_CH + 1))
        else:
            shapes.append((W, W + 1))
    shapes.append((W // 2, INPUT_CH_VIEWS + W + 1))   # idx 8  : views_linears[0]
    shapes.append((W, W + 1))                         # idx 9  : feature_linear
    shapes.append((1, W + 1))                         # idx 10 : alpha_linear
    shapes.append((3, W // 2 + 1))                    # idx 11 : rgb_linear
    return tuple(shapes)


TARGET_SHAPES = build_target_shapes()
N_LAYERS = len(TARGET_SHAPES)                 # 12
C_SUM = sum(s[0] for s in TARGET_SHAPES)      # sum of output dims (C_shape[0])

ALPHA, FEATURE, RGB = 10, 9, 11
VIEW_LINEAR = (8,)
SKIP_LAYER = 5   # the pts layer that consumes the [pts | h] concatenation (skips=(4,))


# ======================================================================
# Kernel 1: hypernetwork (net_E + per-layer weight-generation linears)
#   Off the hot path (runs once per class). W3 is pre-split per layer in the
#   wrapper so no unaligned lane slicing of the code vector happens in-kernel.
# ======================================================================
def hyper_kernel(*refs):
    # inputs : cls(1,Class_dim), w1t, b1, w2t, b2,
    #          then per layer k: w3t_k (1000,o_k), b3_k (1,o_k),
    #                            wgT_k (o_k, o_k*t_k), bg_k (1, o_k*t_k)
    # outputs: 12 generated flat weight vectors (1, o_k*t_k)
    cls_ref, w1t, b1, w2t, b2 = refs[:5]
    per_layer = refs[5:5 + 4 * N_LAYERS]
    outs = refs[5 + 4 * N_LAYERS:]

    h = jnp.dot(cls_ref[...], w1t[...], preferred_element_type=jnp.float32) + b1[...]
    h = jnp.maximum(h, 0.0)
    h = jnp.dot(h, w2t[...], preferred_element_type=jnp.float32) + b2[...]
    h = jnp.maximum(h, 0.0)                                       # (1, 1000)

    for k in range(N_LAYERS):
        w3t_k, b3_k, wgT_k, bg_k = per_layer[4 * k:4 * k + 4]
        c_k = jnp.dot(h, w3t_k[...], preferred_element_type=jnp.float32) + b3_k[...]
        outs[k][...] = jnp.dot(c_k, wgT_k[...],
                               preferred_element_type=jnp.float32) + bg_k[...]


def run_hypernet(cls_row, net_e, gens):
    W1, b1, W2, b2, W3, b3 = net_e
    inputs = [cls_row, W1.T, b1[None, :], W2.T, b2[None, :]]
    c_idx = 0
    for (o, t), (Wg, bg) in zip(TARGET_SHAPES, gens):
        inputs += [W3.T[:, c_idx:c_idx + o * C_DIM],          # (1000, o)
                   b3[c_idx:c_idx + o * C_DIM][None, :],      # (1, o)
                   Wg.T,                                       # (o, o*t)
                   bg[None, :]]                                # (1, o*t)
        c_idx += o

    in_specs = [pl.BlockSpec(x.shape, lambda i: (0, 0)) for x in inputs]
    out_shape = [jax.ShapeDtypeStruct((1, o * t), jnp.float32) for (o, t) in TARGET_SHAPES]
    out_specs = [pl.BlockSpec((1, o * t), lambda i: (0, 0)) for (o, t) in TARGET_SHAPES]

    return pl.pallas_call(
        hyper_kernel,
        grid=(1,),
        in_specs=in_specs,
        out_specs=out_specs,
        out_shape=out_shape,
        compiler_params=pltpu.CompilerParams(dimension_semantics=("arbitrary",)),
    )(*inputs)


# ======================================================================
# Kernel 2: NeRF functional MLP over the ray batch (hot path)
#   All weights are bf16 (in, out) with separate f32 (1, out) biases; every dot
#   accumulates in f32. Skip / viewdirs concatenations are replaced by sums of
#   two dots; rgb and alpha are fused into one (tn, 4) output write.
# ======================================================================
def nerf_kernel(pts_ref, views_ref,
                w0, b0, w1, b1, w2, b2, w3, b3, w4, b4,
                w5p, w5h, b5,
                w6, b6, w7, b7,
                wfeat, bfeat,
                wv_f, wv_v, bview,
                w_rgb, w_alpha, b_out,
                o_ref):
    def mm(a, w_ref):
        return jnp.dot(a, w_ref[...], preferred_element_type=jnp.float32)

    pts = pts_ref[...]          # bf16 (tn, INPUT_CH)
    views = views_ref[...]      # bf16 (tn, INPUT_CH_VIEWS)

    # pts MLP (layers 0..7), skip after layer 4 handled by splitting layer 5's rows
    h = jnp.maximum(mm(pts, w0) + b0[...], 0.0)
    hb = h.astype(jnp.bfloat16)
    h = jnp.maximum(mm(hb, w1) + b1[...], 0.0); hb = h.astype(jnp.bfloat16)
    h = jnp.maximum(mm(hb, w2) + b2[...], 0.0); hb = h.astype(jnp.bfloat16)
    h = jnp.maximum(mm(hb, w3) + b3[...], 0.0); hb = h.astype(jnp.bfloat16)
    h = jnp.maximum(mm(hb, w4) + b4[...], 0.0); hb = h.astype(jnp.bfloat16)
    # skip layer: torch input is cat([pts, h]) -> dot(pts, W[:16]) + dot(h, W[16:])
    h = jnp.maximum(mm(pts, w5p) + mm(hb, w5h) + b5[...], 0.0); hb = h.astype(jnp.bfloat16)
    h = jnp.maximum(mm(hb, w6) + b6[...], 0.0); hb = h.astype(jnp.bfloat16)
    h = jnp.maximum(mm(hb, w7) + b7[...], 0.0)
    h8b = h.astype(jnp.bfloat16)                                 # (tn, W)

    # viewdirs branch
    feature = mm(h8b, wfeat) + bfeat[...]                        # (tn, W) f32
    featb = feature.astype(jnp.bfloat16)
    # views linear: torch input is cat([feature, views]) -> two dots
    hv = jnp.maximum(mm(featb, wv_f) + mm(views, wv_v) + bview[...], 0.0)
    hvb = hv.astype(jnp.bfloat16)                                # (tn, W//2)

    # fused heads: out[:, 0:3] = rgb(hv), out[:, 3] = alpha(h8) via zero-padded columns
    o_ref[...] = mm(hvb, w_rgb) + mm(h8b, w_alpha) + b_out[...]  # (tn, 4) f32


def run_nerf(x_pts, x_views, weight_args, tn=1024):
    N = x_pts.shape[0]
    if N <= tn:
        tn = N                              # single tile: block dim == full dim, always legal
        n_pad = N
    else:
        assert tn % 8 == 0                  # (8,128) sublane constraint for partial blocks
        n_pad = pl.cdiv(N, tn) * tn
        if n_pad != N:
            x_pts = jnp.pad(x_pts, ((0, n_pad - N), (0, 0)))
            x_views = jnp.pad(x_views, ((0, n_pad - N), (0, 0)))

    in_specs = [
        pl.BlockSpec((tn, INPUT_CH), lambda i: (i, 0)),
        pl.BlockSpec((tn, INPUT_CH_VIEWS), lambda i: (i, 0)),
    ]
    for a in weight_args:                   # weights: same block every step -> stay VMEM-resident
        in_specs.append(pl.BlockSpec(a.shape, lambda i: (0, 0)))

    # TODO(synk): at real HyperNeRF sizes (W=256, input_ch=63, tn>=2048) set
    # vmem_limit_bytes explicitly for v7x's 64 MiB VMEM; trivially fits here.
    out = pl.pallas_call(
        nerf_kernel,
        grid=(n_pad // tn,),
        in_specs=in_specs,
        out_specs=pl.BlockSpec((tn, 4), lambda i: (i, 0)),
        out_shape=jax.ShapeDtypeStruct((n_pad, 4), jnp.float32),
        compiler_params=pltpu.CompilerParams(dimension_semantics=("parallel",)),
    )(x_pts, x_views, *weight_args)
    return out[:N] if n_pad != N else out


# ======================================================================
# Wrapper-side weight plumbing for the NeRF kernel (pure layout, no compute
# hoisting except exact zero-padding of the tiny head weights).
# ======================================================================
def prepare_nerf_weights(gen_wb):
    """gen_wb: list of 12 generated (out, in+1) f32 matrices in torch layout.
    Returns bf16 W^T / f32 bias args in the exact order nerf_kernel expects."""
    wt = [jnp.transpose(wb[:, :-1]) for wb in gen_wb]     # (in, out) f32
    bs = [wb[:, -1][None, :] for wb in gen_wb]            # (1, out) f32
    b16 = lambda a: a.astype(jnp.bfloat16)

    args = []
    for i in range(SKIP_LAYER):                    # layers 0..4
        args += [b16(wt[i]), bs[i]]
    w5 = wt[SKIP_LAYER]                            # (INPUT_CH + W, W), rows [pts | h]
    args += [b16(w5[:INPUT_CH]), b16(w5[INPUT_CH:]), bs[SKIP_LAYER]]
    for i in range(SKIP_LAYER + 1, D):             # layers 6, 7
        args += [b16(wt[i]), bs[i]]
    args += [b16(wt[FEATURE]), bs[FEATURE]]        # feature_linear
    w8 = wt[VIEW_LINEAR[0]]                        # (W + INPUT_CH_VIEWS, W//2), rows [feature | views]
    args += [b16(w8[:W]), b16(w8[W:]), bs[VIEW_LINEAR[0]]]
    # fused rgb/alpha heads -> one (tn, 4) output: [rgb | alpha]
    w_rgb = jnp.concatenate([wt[RGB], jnp.zeros((W // 2, 1), jnp.float32)], axis=1)   # (W//2, 4)
    w_alpha = jnp.concatenate([jnp.zeros((W, 3), jnp.float32), wt[ALPHA]], axis=1)    # (W, 4)
    b_out = jnp.concatenate([bs[RGB], bs[ALPHA]], axis=1)                              # (1, 4)
    args += [b16(w_rgb), b16(w_alpha), b_out]
    return args


# ======================================================================
# Deterministic parameter init (mimics torch nn.Linear uniform init shapes)
# ======================================================================
def linear_params(key, out_f, in_f, scale=1.0):
    k1, k2 = jax.random.split(key)
    bound = scale / np.sqrt(in_f)
    Wm = jax.random.uniform(k1, (out_f, in_f), jnp.float32, -bound, bound)
    bv = jax.random.uniform(k2, (out_f,), jnp.float32, -bound, bound)
    return Wm, bv


def init_params(key):
    keys = jax.random.split(key, 3 + N_LAYERS)
    net_e = []
    net_e += list(linear_params(keys[0], 100, CLASS_DIM))
    net_e += list(linear_params(keys[1], 1000, 100))
    net_e += list(linear_params(keys[2], C_SUM * C_DIM, 1000))
    gens = []
    for k, (o, t) in enumerate(TARGET_SHAPES):
        # slightly larger scale so activations through the 8-layer MLP stay O(1)
        gens.append(linear_params(keys[3 + k], o * t, o * C_DIM, scale=3.0))
    return tuple(net_e), gens


# ======================================================================
# Pure-JAX references
# ======================================================================
def hypernet_ref(cls_vec, net_e, gens):
    """f32 reference for the hypernetwork (mirrors the torch weight generation)."""
    W1, b1, W2, b2, W3, b3 = net_e
    C = jnp.maximum(W1 @ cls_vec + b1, 0.0)
    C = jnp.maximum(W2 @ C + b2, 0.0)
    C = W3 @ C + b3
    weights = []
    c_idx = 0
    for (o, t), (Wg, bg) in zip(TARGET_SHAPES, gens):
        c_sub = C[c_idx:c_idx + o * C_DIM]
        weights.append((Wg @ c_sub + bg).reshape(o, t))
        c_idx += o
    return weights


def nerf_ref_bf16(X, weights):
    """Reference for the NeRF functional MLP with the same bf16-input /
    f32-accumulation numerics as the Pallas kernel (mirrors the torch forward)."""
    def lin(h, wb):
        w = wb[:, :-1].T.astype(jnp.bfloat16)
        return jnp.dot(h.astype(jnp.bfloat16), w,
                       preferred_element_type=jnp.float32) + wb[:, -1]

    pts, views = X[:, :INPUT_CH], X[:, INPUT_CH:]
    h = pts
    for i in range(D):
        h = jnp.maximum(lin(h, weights[i]), 0.0)
        if i in SKIPS:
            h = jnp.concatenate([pts, h], axis=-1)
    alpha = lin(h, weights[ALPHA])
    feature = lin(h, weights[FEATURE])
    h = jnp.concatenate([feature, views], axis=-1)
    for i in VIEW_LINEAR:
        h = jnp.maximum(lin(h, weights[i]), 0.0)
    rgb = lin(h, weights[RGB])
    return jnp.concatenate([rgb, alpha], axis=-1)


# ======================================================================
if __name__ == "__main__":
    key = jax.random.PRNGKey(0)
    kx, kp = jax.random.split(key)

    N = 2048
    X = jax.random.normal(kx, (N, INPUT_CH + INPUT_CH_VIEWS), jnp.float32)
    net_e, gens = init_params(kp)
    cls_vec = jnp.zeros((CLASS_DIM,), jnp.float32).at[0].set(1.0)   # self.Class one-hot

    # TODO(synk): the running-max/min buffers (self.maxes/self.mins, track_values=True)
    # and self.hidden_states bookkeeping are stateful module side-effects that do not
    # influence the returned output; skipped.

    # ---- Pallas hypernetwork: generate the 12 NeRF weight matrices ----
    gen_flat = run_hypernet(cls_vec[None, :], net_e, gens)
    gen_flat = jax.block_until_ready(gen_flat)
    # reshape exactly like torch .view(size) -> (out, in+1)
    gen_wb = [g.reshape(o, t) for g, (o, t) in zip(gen_flat, TARGET_SHAPES)]

    # check hypernet against the f32 reference
    ref_wb = hypernet_ref(cls_vec, net_e, gens)
    for a, b in zip(gen_wb, ref_wb):
        np.testing.assert_allclose(np.asarray(a), np.asarray(b), rtol=5e-4, atol=5e-4)

    # ---- Pallas NeRF functional MLP over the ray batch ----
    weight_args = prepare_nerf_weights(gen_wb)
    x_pts = X[:, :INPUT_CH].astype(jnp.bfloat16)
    x_views = X[:, INPUT_CH:].astype(jnp.bfloat16)
    out = run_nerf(x_pts, x_views, weight_args, tn=1024)
    out = jax.block_until_ready(out)
    assert out.shape == (N, 4)

    # ---- correctness check against the pure-JAX (same-precision) reference ----
    ref = nerf_ref_bf16(X, gen_wb)
    np.testing.assert_allclose(np.asarray(out), np.asarray(ref), rtol=2e-3, atol=2e-3)

    print("KERNEL_OK")
</pallas_src>

<mosaic_0001>
module attributes {stable_mosaic.version = 11 : i64} {
  func.func @hyper_kernel(%arg0: i32, %arg1: memref<1x2xf32, #tpu.memory_space<vmem>>, %arg2: memref<2x100xf32, #tpu.memory_space<vmem>>, %arg3: memref<1x100xf32, #tpu.memory_space<vmem>>, %arg4: memref<100x1000xf32, #tpu.memory_space<vmem>>, %arg5: memref<1x1000xf32, #tpu.memory_space<vmem>>, %arg6: memref<1000x32xf32, #tpu.memory_space<vmem>>, %arg7: memref<1x32xf32, #tpu.memory_space<vmem>>, %arg8: memref<32x544xf32, #tpu.memory_space<vmem>>, %arg9: memref<1x544xf32, #tpu.memory_space<vmem>>, %arg10: memref<1000x32xf32, #tpu.memory_space<vmem>>, %arg11: memref<1x32xf32, #tpu.memory_space<vmem>>, %arg12: memref<32x1056xf32, #tpu.memory_space<vmem>>, %arg13: memref<1x1056xf32, #tpu.memory_space<vmem>>, %arg14: memref<1000x32xf32, #tpu.memory_space<vmem>>, %arg15: memref<1x32xf32, #tpu.memory_space<vmem>>, %arg16: memref<32x1056xf32, #tpu.memory_space<vmem>>, %arg17: memref<1x1056xf32, #tpu.memory_space<vmem>>, %arg18: memref<1000x32xf32, #tpu.memory_space<vmem>>, %arg19: memref<1x32xf32, #tpu.memory_space<vmem>>, %arg20: memref<32x1056xf32, #tpu.memory_space<vmem>>, %arg21: memref<1x1056xf32, #tpu.memory_space<vmem>>, %arg22: memref<1000x32xf32, #tpu.memory_space<vmem>>, %arg23: memref<1x32xf32, #tpu.memory_space<vmem>>, %arg24: memref<32x1056xf32, #tpu.memory_space<vmem>>, %arg25: memref<1x1056xf32, #tpu.memory_space<vmem>>, %arg26: memref<1000x32xf32, #tpu.memory_space<vmem>>, %arg27: memref<1x32xf32, #tpu.memory_space<vmem>>, %arg28: memref<32x1568xf32, #tpu.memory_space<vmem>>, %arg29: memref<1x1568xf32, #tpu.memory_space<vmem>>, %arg30: memref<1000x32xf32, #tpu.memory_space<vmem>>, %arg31: memref<1x32xf32, #tpu.memory_space<vmem>>, %arg32: memref<32x1056xf32, #tpu.memory_space<vmem>>, %arg33: memref<1x1056xf32, #tpu.memory_space<vmem>>, %arg34: memref<1000x32xf32, #tpu.memory_space<vmem>>, %arg35: memref<1x32xf32, #tpu.memory_space<vmem>>, %arg36: memref<32x1056xf32, #tpu.memory_space<vmem>>, %arg37: memref<1x1056xf32, #tpu.memory_space<vmem>>, %arg38: memref<1000x16xf32, #tpu.memory_space<vmem>>, %arg39: memref<1x16xf32, #tpu.memory_space<vmem>>, %arg40: memref<16x656xf32, #tpu.memory_space<vmem>>, %arg41: memref<1x656xf32, #tpu.memory_space<vmem>>, %arg42: memref<1000x32xf32, #tpu.memory_space<vmem>>, %arg43: memref<1x32xf32, #tpu.memory_space<vmem>>, %arg44: memref<32x1056xf32, #tpu.memory_space<vmem>>, %arg45: memref<1x1056xf32, #tpu.memory_space<vmem>>, %arg46: memref<1000x1xf32, #tpu.memory_space<vmem>>, %arg47: memref<1x1xf32, #tpu.memory_space<vmem>>, %arg48: memref<1x33xf32, #tpu.memory_space<vmem>>, %arg49: memref<1x33xf32, #tpu.memory_space<vmem>>, %arg50: memref<1000x3xf32, #tpu.memory_space<vmem>>, %arg51: memref<1x3xf32, #tpu.memory_space<vmem>>, %arg52: memref<3x51xf32, #tpu.memory_space<vmem>>, %arg53: memref<1x51xf32, #tpu.memory_space<vmem>>, %arg54: memref<1x544xf32, #tpu.memory_space<vmem>>, %arg55: memref<1x1056xf32, #tpu.memory_space<vmem>>, %arg56: memref<1x1056xf32, #tpu.memory_space<vmem>>, %arg57: memref<1x1056xf32, #tpu.memory_space<vmem>>, %arg58: memref<1x1056xf32, #tpu.memory_space<vmem>>, %arg59: memref<1x1568xf32, #tpu.memory_space<vmem>>, %arg60: memref<1x1056xf32, #tpu.memory_space<vmem>>, %arg61: memref<1x1056xf32, #tpu.memory_space<vmem>>, %arg62: memref<1x656xf32, #tpu.memory_space<vmem>>, %arg63: memref<1x1056xf32, #tpu.memory_space<vmem>>, %arg64: memref<1x33xf32, #tpu.memory_space<vmem>>, %arg65: memref<1x51xf32, #tpu.memory_space<vmem>>) attributes {dimension_semantics = [#tpu.dimension_semantics<arbitrary>], iteration_bounds = array<i64: 1>, scalar_prefetch = 0 : i64, scratch_operands = 0 : i64, tpu.core_type = #tpu.core_type<tc>, window_params = [{pipeline_mode = #tpu.pipeline_mode<synchronous>, transform_indices = @transform_0, window_bounds = array<i64: 1, 2>}, {pipeline_mode = #tpu.pipeline_mode<synchronous>, transform_indices = @transform_1, window_bounds = array<i64: 2, 100>}, {pipeline_mode = #tpu.pipeline_mode<synchronous>, transform_indices = @transform_2, window_bounds = array<i64: 1, 100>}, {pipeline_mode = #tpu.pipeline_mode<synchronous>, transform_indices = @transform_3, window_bounds = array<i64: 100, 1000>}, {pipeline_mode = #tpu.pipeline_mode<synchronous>, transform_indices = @transform_4, window_bounds = array<i64: 1, 1000>}, {pipeline_mode = #tpu.pipeline_mode<synchronous>, transform_indices = @transform_5, window_bounds = array<i64: 1000, 32>}, {pipeline_mode = #tpu.pipeline_mode<synchronous>, transform_indices = @transform_6, window_bounds = array<i64: 1, 32>}, {pipeline_mode = #tpu.pipeline_mode<synchronous>, transform_indices = @transform_7, window_bounds = array<i64: 32, 544>}, {pipeline_mode = #tpu.pipeline_mode<synchronous>, transform_indices = @transform_8, window_bounds = array<i64: 1, 544>}, {pipeline_mode = #tpu.pipeline_mode<synchronous>, transform_indices = @transform_9, window_bounds = array<i64: 1000, 32>}, {pipeline_mode = #tpu.pipeline_mode<synchronous>, transform_indices = @transform_10, window_bounds = array<i64: 1, 32>}, {pipeline_mode = #tpu.pipeline_mode<synchronous>, transform_indices = @transform_11, window_bounds = array<i64: 32, 1056>}, {pipeline_mode = #tpu.pipeline_mode<synchronous>, transform_indices = @transform_12, window_bounds = array<i64: 1, 1056>}, {pipeline_mode = #tpu.pipeline_mode<synchronous>, transform_indices = @transform_13, window_bounds = array<i64: 1000, 32>}, {pipeline_mode = #tpu.pipeline_mode<synchronous>, transform_indices = @transform_14, window_bounds = array<i64: 1, 32>}, {pipeline_mode = #tpu.pipeline_mode<synchronous>, transform_indices = @transform_15, window_bounds = array<i64: 32, 1056>}, {pipeline_mode = #tpu.pipeline_mode<synchronous>, transform_indices = @transform_16, window_bounds = array<i64: 1, 1056>}, {pipeline_mode = #tpu.pipeline_mode<synchronous>, transform_indices = @transform_17, window_bounds = array<i64: 1000, 32>}, {pipeline_mode = #tpu.pipeline_mode<synchronous>, transform_indices = @transform_18, window_bounds = array<i64: 1, 32>}, {pipeline_mode = #tpu.pipeline_mode<synchronous>, transform_indices = @transform_19, window_bounds = array<i64: 32, 1056>}, {pipeline_mode = #tpu.pipeline_mode<synchronous>, transform_indices = @transform_20, window_bounds = array<i64: 1, 1056>}, {pipeline_mode = #tpu.pipeline_mode<synchronous>, transform_indices = @transform_21, window_bounds = array<i64: 1000, 32>}, {pipeline_mode = #tpu.pipeline_mode<synchronous>, transform_indices = @transform_22, window_bounds = array<i64: 1, 32>}, {pipeline_mode = #tpu.pipeline_mode<synchronous>, transform_indices = @transform_23, window_bounds = array<i64: 32, 1056>}, {pipeline_mode = #tpu.pipeline_mode<synchronous>, transform_indices = @transform_24, window_bounds = array<i64: 1, 1056>}, {pipeline_mode = #tpu.pipeline_mode<synchronous>, transform_indices = @transform_25, window_bounds = array<i64: 1000, 32>}, {pipeline_mode = #tpu.pipeline_mode<synchronous>, transform_indices = @transform_26, window_bounds = array<i64: 1, 32>}, {pipeline_mode = #tpu.pipeline_mode<synchronous>, transform_indices = @transform_27, window_bounds = array<i64: 32, 1568>}, {pipeline_mode = #tpu.pipeline_mode<synchronous>, transform_indices = @transform_28, window_bounds = array<i64: 1, 1568>}, {pipeline_mode = #tpu.pipeline_mode<synchronous>, transform_indices = @transform_29, window_bounds = array<i64: 1000, 32>}, {pipeline_mode = #tpu.pipeline_mode<synchronous>, transform_indices = @transform_30, window_bounds = array<i64: 1, 32>}, {pipeline_mode = #tpu.pipeline_mode<synchronous>, transform_indices = @transform_31, window_bounds = array<i64: 32, 1056>}, {pipeline_mode = #tpu.pipeline_mode<synchronous>, transform_indices = @transform_32, window_bounds = array<i64: 1, 1056>}, {pipeline_mode = #tpu.pipeline_mode<synchronous>, transform_indices = @transform_33, window_bounds = array<i64: 1000, 32>}, {pipeline_mode = #tpu.pipeline_mode<synchronous>, transform_indices = @transform_34, window_bounds = array<i64: 1, 32>}, {pipeline_mode = #tpu.pipeline_mode<synchronous>, transform_indices = @transform_35, window_bounds = array<i64: 32, 1056>}, {pipeline_mode = #tpu.pipeline_mode<synchronous>, transform_indices = @transform_36, window_bounds = array<i64: 1, 1056>}, {pipeline_mode = #tpu.pipeline_mode<synchronous>, transform_indices = @transform_37, window_bounds = array<i64: 1000, 16>}, {pipeline_mode = #tpu.pipeline_mode<synchronous>, transform_indices = @transform_38, window_bounds = array<i64: 1, 16>}, {pipeline_mode = #tpu.pipeline_mode<synchronous>, transform_indices = @transform_39, window_bounds = array<i64: 16, 656>}, {pipeline_mode = #tpu.pipeline_mode<synchronous>, transform_indices = @transform_40, window_bounds = array<i64: 1, 656>}, {pipeline_mode = #tpu.pipeline_mode<synchronous>, transform_indices = @transform_41, window_bounds = array<i64: 1000, 32>}, {pipeline_mode = #tpu.pipeline_mode<synchronous>, transform_indices = @transform_42, window_bounds = array<i64: 1, 32>}, {pipeline_mode = #tpu.pipeline_mode<synchronous>, transform_indices = @transform_43, window_bounds = array<i64: 32, 1056>}, {pipeline_mode = #tpu.pipeline_mode<synchronous>, transform_indices = @transform_44, window_bounds = array<i64: 1, 1056>}, {pipeline_mode = #tpu.pipeline_mode<synchronous>, transform_indices = @transform_45, window_bounds = array<i64: 1000, 1>}, {pipeline_mode = #tpu.pipeline_mode<synchronous>, transform_indices = @transform_46, window_bounds = array<i64: 1, 1>}, {pipeline_mode = #tpu.pipeline_mode<synchronous>, transform_indices = @transform_47, window_bounds = array<i64: 1, 33>}, {pipeline_mode = #tpu.pipeline_mode<synchronous>, transform_indices = @transform_48, window_bounds = array<i64: 1, 33>}, {pipeline_mode = #tpu.pipeline_mode<synchronous>, transform_indices = @transform_49, window_bounds = array<i64: 1000, 3>}, {pipeline_mode = #tpu.pipeline_mode<synchronous>, transform_indices = @transform_50, window_bounds = array<i64: 1, 3>}, {pipeline_mode = #tpu.pipeline_mode<synchronous>, transform_indices = @transform_51, window_bounds = array<i64: 3, 51>}, {pipeline_mode = #tpu.pipeline_mode<synchronous>, transform_indices = @transform_52, window_bounds = array<i64: 1, 51>}, {pipeline_mode = #tpu.pipeline_mode<synchronous>, transform_indices = @transform_53, window_bounds = array<i64: 1, 544>}, {pipeline_mode = #tpu.pipeline_mode<synchronous>, transform_indices = @transform_54, window_bounds = array<i64: 1, 1056>}, {pipeline_mode = #tpu.pipeline_mode<synchronous>, transform_indices = @transform_55, window_bounds = array<i64: 1, 1056>}, {pipeline_mode = #tpu.pipeline_mode<synchronous>, transform_indices = @transform_56, window_bounds = array<i64: 1, 1056>}, {pipeline_mode = #tpu.pipeline_mode<synchronous>, transform_indices = @transform_57, window_bounds = array<i64: 1, 1056>}, {pipeline_mode = #tpu.pipeline_mode<synchronous>, transform_indices = @transform_58, window_bounds = array<i64: 1, 1568>}, {pipeline_mode = #tpu.pipeline_mode<synchronous>, transform_indices = @transform_59, window_bounds = array<i64: 1, 1056>}, {pipeline_mode = #tpu.pipeline_mode<synchronous>, transform_indices = @transform_60, window_bounds = array<i64: 1, 1056>}, {pipeline_mode = #tpu.pipeline_mode<synchronous>, transform_indices = @transform_61, window_bounds = array<i64: 1, 656>}, {pipeline_mode = #tpu.pipeline_mode<synchronous>, transform_indices = @transform_62, window_bounds = array<i64: 1, 1056>}, {pipeline_mode = #tpu.pipeline_mode<synchronous>, transform_indices = @transform_63, window_bounds = array<i64: 1, 33>}, {pipeline_mode = #tpu.pipeline_mode<synchronous>, transform_indices = @transform_64, window_bounds = array<i64: 1, 51>}]} {
    %c0 = arith.constant 0 : index
    %c0_0 = arith.constant 0 : index
    %0 = vector.load %arg1[%c0, %c0_0] : memref<1x2xf32, #tpu.memory_space<vmem>>, vector<1x2xf32>
    %c0_1 = arith.constant 0 : index
    %c0_2 = arith.constant 0 : index
    %1 = vector.load %arg2[%c0_1, %c0_2] : memref<2x100xf32, #tpu.memory_space<vmem>>, vector<2x100xf32>
    %cst = arith.constant dense<0.000000e+00> : vector<1x100xf32>
    %2 = tpu.matmul %0, %1, %cst {dimension_numbers = #tpu.dot_dimension_numbers<[1], [0], [0], [1], [0, 0, 1, 1], [], []>} : vector<1x2xf32>, vector<2x100xf32>, vector<1x100xf32> -> vector<1x100xf32>
    %c0_3 = arith.constant 0 : index
    %c0_4 = arith.constant 0 : index
    %3 = vector.load %arg3[%c0_3, %c0_4] : memref<1x100xf32, #tpu.memory_space<vmem>>, vector<1x100xf32>
    %4 = arith.addf %2, %3 : vector<1x100xf32>
    %cst_5 = arith.constant 0.000000e+00 : f32
    %5 = vector.broadcast %cst_5 : f32 to vector<1x100xf32>
    %6 = arith.maximumf %4, %5 : vector<1x100xf32>
    %c0_6 = arith.constant 0 : index
    %c0_7 = arith.constant 0 : index
    %7 = vector.load %arg4[%c0_6, %c0_7] : memref<100x1000xf32, #tpu.memory_space<vmem>>, vector<100x1000xf32>
    %cst_8 = arith.constant dense<0.000000e+00> : vector<1x1000xf32>
    %8 = tpu.matmul %6, %7, %cst_8 {dimension_numbers = #tpu.dot_dimension_numbers<[1], [0], [0], [1], [0, 0, 1, 1], [], []>} : vector<1x100xf32>, vector<100x1000xf32>, vector<1x1000xf32> -> vector<1x1000xf32>
    %c0_9 = arith.constant 0 : index
    %c0_10 = arith.constant 0 : index
    %9 = vector.load %arg5[%c0_9, %c0_10] : memref<1x1000xf32, #tpu.memory_space<vmem>>, vector<1x1000xf32>
    %10 = arith.addf %8, %9 : vector<1x1000xf32>
    %cst_11 = arith.constant 0.000000e+00 : f32
    %11 = vector.broadcast %cst_11 : f32 to vector<1x1000xf32>
    %12 = arith.maximumf %10, %11 : vector<1x1000xf32>
    %c0_12 = arith.constant 0 : index
    %c0_13 = arith.constant 0 : index
    %13 = vector.load %arg6[%c0_12, %c0_13] : memref<1000x32xf32, #tpu.memory_space<vmem>>, vector<1000x32xf32>
    %cst_14 = arith.constant dense<0.000000e+00> : vector<1x32xf32>
    %14 = tpu.matmul %12, %13, %cst_14 {dimension_numbers = #tpu.dot_dimension_numbers<[1], [0], [0], [1], [0, 0, 1, 1], [], []>} : vector<1x1000xf32>, vector<1000x32xf32>, vector<1x32xf32> -> vector<1x32xf32>
    %c0_15 = arith.constant 0 : index
    %c0_16 = arith.constant 0 : index
    %15 = vector.load %arg7[%c0_15, %c0_16] : memref<1x32xf32, #tpu.memory_space<vmem>>, vector<1x32xf32>
    %16 = arith.addf %14, %15 : vector<1x32xf32>
    %c0_17 = arith.constant 0 : index
    %c0_18 = arith.constant 0 : index
    %17 = vector.load %arg8[%c0_17, %c0_18] : memref<32x544xf32, #tpu.memory_space<vmem>>, vector<32x544xf32>
    %cst_19 = arith.constant dense<0.000000e+00> : vector<1x544xf32>
    %18 = tpu.matmul %16, %17, %cst_19 {dimension_numbers = #tpu.dot_dimension_numbers<[1], [0], [0], [1], [0, 0, 1, 1], [], []>} : vector<1x32xf32>, vector<32x544xf32>, vector<1x544xf32> -> vector<1x544xf32>
    %c0_20 = arith.constant 0 : index
    %c0_21 = arith.constant 0 : index
    %19 = vector.load %arg9[%c0_20, %c0_21] : memref<1x544xf32, #tpu.memory_space<vmem>>, vector<1x544xf32>
    %20 = arith.addf %18, %19 : vector<1x544xf32>
    %c0_22 = arith.constant 0 : index
    %c0_23 = arith.constant 0 : index
    %21 = vector.load %arg54[%c0_22, %c0_23] : memref<1x544xf32, #tpu.memory_space<vmem>>, vector<1x544xf32>
    tpu.vector_store %arg54[%c0_22, %c0_23], %20 {strides = array<i32>} : memref<1x544xf32, #tpu.memory_space<vmem>>, vector<1x544xf32>,
    %c0_24 = arith.constant 0 : index
    %c0_25 = arith.constant 0 : index
    %22 = vector.load %arg10[%c0_24, %c0_25] : memref<1000x32xf32, #tpu.memory_space<vmem>>, vector<1000x32xf32>
    %cst_26 = arith.constant dense<0.000000e+00> : vector<1x32xf32>
    %23 = tpu.matmul %12, %22, %cst_26 {dimension_numbers = #tpu.dot_dimension_numbers<[1], [0], [0], [1], [0, 0, 1, 1], [], []>} : vector<1x1000xf32>, vector<1000x32xf32>, vector<1x32xf32> -> vector<1x32xf32>
    %c0_27 = arith.constant 0 : index
    %c0_28 = arith.constant 0 : index
    %24 = vector.load %arg11[%c0_27, %c0_28] : memref<1x32xf32, #tpu.memory_space<vmem>>, vector<1x32xf32>
    %25 = arith.addf %23, %24 : vector<1x32xf32>
    %c0_29 = arith.constant 0 : index
    %c0_30 = arith.constant 0 : index
    %26 = vector.load %arg12[%c0_29, %c0_30] : memref<32x1056xf32, #tpu.memory_space<vmem>>, vector<32x1056xf32>
    %cst_31 = arith.constant dense<0.000000e+00> : vector<1x1056xf32>
    %27 = tpu.matmul %25, %26, %cst_31 {dimension_numbers = #tpu.dot_dimension_numbers<[1], [0], [0], [1], [0, 0, 1, 1], [], []>} : vector<1x32xf32>, vector<32x1056xf32>, vector<1x1056xf32> -> vector<1x1056xf32>
    %c0_32 = arith.constant 0 : index
    %c0_33 = arith.constant 0 : index
    %28 = vector.load %arg13[%c0_32, %c0_33] : memref<1x1056xf32, #tpu.memory_space<vmem>>, vector<1x1056xf32>
    %29 = arith.addf %27, %28 : vector<1x1056xf32>
    %c0_34 = arith.constant 0 : index
    %c0_35 = arith.constant 0 : index
    %30 = vector.load %arg55[%c0_34, %c0_35] : memref<1x1056xf32, #tpu.memory_space<vmem>>, vector<1x1056xf32>
    tpu.vector_store %arg55[%c0_34, %c0_35], %29 {strides = array<i32>} : memref<1x1056xf32, #tpu.memory_space<vmem>>, vector<1x1056xf32>,
    %c0_36 = arith.constant 0 : index
    %c0_37 = arith.constant 0 : index
    %31 = vector.load %arg14[%c0_36, %c0_37] : memref<1000x32xf32, #tpu.memory_space<vmem>>, vector<1000x32xf32>
    %cst_38 = arith.constant dense<0.000000e+00> : vector<1x32xf32>
    %32 = tpu.matmul %12, %31, %cst_38 {dimension_numbers = #tpu.dot_dimension_numbers<[1], [0], [0], [1], [0, 0, 1, 1], [], []>} : vector<1x1000xf32>, vector<1000x32xf32>, vector<1x32xf32> -> vector<1x32xf32>
    %c0_39 = arith.constant 0 : index
    %c0_40 = arith.constant 0 : index
    %33 = vector.load %arg15[%c0_39, %c0_40] : memref<1x32xf32, #tpu.memory_space<vmem>>, vector<1x32xf32>
    %34 = arith.addf %32, %33 : vector<1x32xf32>
    %c0_41 = arith.constant 0 : index
    %c0_42 = arith.constant 0 : index
    %35 = vector.load %arg16[%c0_41, %c0_42] : memref<32x1056xf32, #tpu.memory_space<vmem>>, vector<32x1056xf32>
    %cst_43 = arith.constant dense<0.000000e+00> : vector<1x1056xf32>
    %36 = tpu.matmul %34, %35, %cst_43 {dimension_numbers = #tpu.dot_dimension_numbers<[1], [0], [0], [1], [0, 0, 1, 1], [], []>} : vector<1x32xf32>, vector<32x1056xf32>, vector<1x1056xf32> -> vector<1x1056xf32>
    %c0_44 = arith.constant 0 : index
    %c0_45 = arith.constant 0 : index
    %37 = vector.load %arg17[%c0_44, %c0_45] : memref<1x1056xf32, #tpu.memory_space<vmem>>, vector<1x1056xf32>
    %38 = arith.addf %36, %37 : vector<1x1056xf32>
    %c0_46 = arith.constant 0 : index
    %c0_47 = arith.constant 0 : index
    %39 = vector.load %arg56[%c0_46, %c0_47] : memref<1x1056xf32, #tpu.memory_space<vmem>>, vector<1x1056xf32>
    tpu.vector_store %arg56[%c0_46, %c0_47], %38 {strides = array<i32>} : memref<1x1056xf32, #tpu.memory_space<vmem>>, vector<1x1056xf32>,
    %c0_48 = arith.constant 0 : index
    %c0_49 = arith.constant 0 : index
    %40 = vector.load %arg18[%c0_48, %c0_49] : memref<1000x32xf32, #tpu.memory_space<vmem>>, vector<1000x32xf32>
    %cst_50 = arith.constant dense<0.000000e+00> : vector<1x32xf32>
    %41 = tpu.matmul %12, %40, %cst_50 {dimension_numbers = #tpu.dot_dimension_numbers<[1], [0], [0], [1], [0, 0, 1, 1], [], []>} : vector<1x1000xf32>, vector<1000x32xf32>, vector<1x32xf32> -> vector<1x32xf32>
    %c0_51 = arith.constant 0 : index
    %c0_52 = arith.constant 0 : index
    %42 = vector.load %arg19[%c0_51, %c0_52] : memref<1x32xf32, #tpu.memory_space<vmem>>, vector<1x32xf32>
    %43 = arith.addf %41, %42 : vector<1x32xf32>
    %c0_53 = arith.constant 0 : index
    %c0_54 = arith.constant 0 : index
    %44 = vector.load %arg20[%c0_53, %c0_54] : memref<32x1056xf32, #tpu.memory_space<vmem>>, vector<32x1056xf32>
    %cst_55 = arith.constant dense<0.000000e+00> : vector<1x1056xf32>
    %45 = tpu.matmul %43, %44, %cst_55 {dimension_numbers = #tpu.dot_dimension_numbers<[1], [0], [0], [1], [0, 0, 1, 1], [], []>} : vector<1x32xf32>, vector<32x1056xf32>, vector<1x1056xf32> -> vector<1x1056xf32>
    %c0_56 = arith.constant 0 : index
    %c0_57 = arith.constant 0 : index
    %46 = vector.load %arg21[%c0_56, %c0_57] : memref<1x1056xf32, #tpu.memory_space<vmem>>, vector<1x1056xf32>
    %47 = arith.addf %45, %46 : vector<1x1056xf32>
    %c0_58 = arith.constant 0 : index
    %c0_59 = arith.constant 0 : index
    %48 = vector.load %arg57[%c0_58, %c0_59] : memref<1x1056xf32, #tpu.memory_space<vmem>>, vector<1x1056xf32>
    tpu.vector_store %arg57[%c0_58, %c0_59], %47 {strides = array<i32>} : memref<1x1056xf32, #tpu.memory_space<vmem>>, vector<1x1056xf32>,
    %c0_60 = arith.constant 0 : index
    %c0_61 = arith.constant 0 : index
    %49 = vector.load %arg22[%c0_60, %c0_61] : memref<1000x32xf32, #tpu.memory_space<vmem>>, vector<1000x32xf32>
    %cst_62 = arith.constant dense<0.000000e+00> : vector<1x32xf32>
    %50 = tpu.matmul %12, %49, %cst_62 {dimension_numbers = #tpu.dot_dimension_numbers<[1], [0], [0], [1], [0, 0, 1, 1], [], []>} : vector<1x1000xf32>, vector<1000x32xf32>, vector<1x32xf32> -> vector<1x32xf32>
    %c0_63 = arith.constant 0 : index
    %c0_64 = arith.constant 0 : index
    %51 = vector.load %arg23[%c0_63, %c0_64] : memref<1x32xf32, #tpu.memory_space<vmem>>, vector<1x32xf32>
    %52 = arith.addf %50, %51 : vector<1x32xf32>
    %c0_65 = arith.constant 0 : index
    %c0_66 = arith.constant 0 : index
    %53 = vector.load %arg24[%c0_65, %c0_66] : memref<32x1056xf32, #tpu.memory_space<vmem>>, vector<32x1056xf32>
    %cst_67 = arith.constant dense<0.000000e+00> : vector<1x1056xf32>
    %54 = tpu.matmul %52, %53, %cst_67 {dimension_numbers = #tpu.dot_dimension_numbers<[1], [0], [0], [1], [0, 0, 1, 1], [], []>} : vector<1x32xf32>, vector<32x1056xf32>, vector<1x1056xf32> -> vector<1x1056xf32>
    %c0_68 = arith.constant 0 : index
    %c0_69 = arith.constant 0 : index
    %55 = vector.load %arg25[%c0_68, %c0_69] : memref<1x1056xf32, #tpu.memory_space<vmem>>, vector<1x1056xf32>
    %56 = arith.addf %54, %55 : vector<1x1056xf32>
    %c0_70 = arith.constant 0 : index
    %c0_71 = arith.constant 0 : index
    %57 = vector.load %arg58[%c0_70, %c0_71] : memref<1x1056xf32, #tpu.memory_space<vmem>>, vector<1x1056xf32>
    tpu.vector_store %arg58[%c0_70, %c0_71], %56 {strides = array<i32>} : memref<1x1056xf32, #tpu.memory_space<vmem>>, vector<1x1056xf32>,
    %c0_72 = arith.constant 0 : index
    %c0_73 = arith.constant 0 : index
    %58 = vector.load %arg26[%c0_72, %c0_73] : memref<1000x32xf32, #tpu.memory_space<vmem>>, vector<1000x32xf32>
    %cst_74 = arith.constant dense<0.000000e+00> : vector<1x32xf32>
    %59 = tpu.matmul %12, %58, %cst_74 {dimension_numbers = #tpu.dot_dimension_numbers<[1], [0], [0], [1], [0, 0, 1, 1], [], []>} : vector<1x1000xf32>, vector<1000x32xf32>, vector<1x32xf32> -> vector<1x32xf32>
    %c0_75 = arith.constant 0 : index
    %c0_76 = arith.constant 0 : index
    %60 = vector.load %arg27[%c0_75, %c0_76] : memref<1x32xf32, #tpu.memory_space<vmem>>, vector<1x32xf32>
    %61 = arith.addf %59, %60 : vector<1x32xf32>
    %c0_77 = arith.constant 0 : index
    %c0_78 = arith.constant 0 : index
    %62 = vector.load %arg28[%c0_77, %c0_78] : memref<32x1568xf32, #tpu.memory_space<vmem>>, vector<32x1568xf32>
    %cst_79 = arith.constant dense<0.000000e+00> : vector<1x1568xf32>
    %63 = tpu.matmul %61, %62, %cst_79 {dimension_numbers = #tpu.dot_dimension_numbers<[1], [0], [0], [1], [0, 0, 1, 1], [], []>} : vector<1x32xf32>, vector<32x1568xf32>, vector<1x1568xf32> -> vector<1x1568xf32>
    %c0_80 = arith.constant 0 : index
    %c0_81 = arith.constant 0 : index
    %64 = vector.load %arg29[%c0_80, %c0_81] : memref<1x1568xf32, #tpu.memory_space<vmem>>, vector<1x1568xf32>
    %65 = arith.addf %63, %64 : vector<1x1568xf32>
    %c0_82 = arith.constant 0 : index
    %c0_83 = arith.constant 0 : index
    %66 = vector.load %arg59[%c0_82, %c0_83] : memref<1x1568xf32, #tpu.memory_space<vmem>>, vector<1x1568xf32>
    tpu.vector_store %arg59[%c0_82, %c0_83], %65 {strides = array<i32>} : memref<1x1568xf32, #tpu.memory_space<vmem>>, vector<1x1568xf32>,
    %c0_84 = arith.constant 0 : index
    %c0_85 = arith.constant 0 : index
    %67 = vector.load %arg30[%c0_84, %c0_85] : memref<1000x32xf32, #tpu.memory_space<vmem>>, vector<1000x32xf32>
    %cst_86 = arith.constant dense<0.000000e+00> : vector<1x32xf32>
    %68 = tpu.matmul %12, %67, %cst_86 {dimension_numbers = #tpu.dot_dimension_numbers<[1], [0], [0], [1], [0, 0, 1, 1], [], []>} : vector<1x1000xf32>, vector<1000x32xf32>, vector<1x32xf32> -> vector<1x32xf32>
    %c0_87 = arith.constant 0 : index
    %c0_88 = arith.constant 0 : index
    %69 = vector.load %arg31[%c0_87, %c0_88] : memref<1x32xf32, #tpu.memory_space<vmem>>, vector<1x32xf32>
    %70 = arith.addf %68, %69 : vector<1x32xf32>
    %c0_89 = arith.constant 0 : index
    %c0_90 = arith.constant 0 : index
    %71 = vector.load %arg32[%c0_89, %c0_90] : memref<32x1056xf32, #tpu.memory_space<vmem>>, vector<32x1056xf32>
    %cst_91 = arith.constant dense<0.000000e+00> : vector<1x1056xf32>
    %72 = tpu.matmul %70, %71, %cst_91 {dimension_numbers = #tpu.dot_dimension_numbers<[1], [0], [0], [1], [0, 0, 1, 1], [], []>} : vector<1x32xf32>, vector<32x1056xf32>, vector<1x1056xf32> -> vector<1x1056xf32>
    %c0_92 = arith.constant 0 : index
    %c0_93 = arith.constant 0 : index
    %73 = vector.load %arg33[%c0_92, %c0_93] : memref<1x1056xf32, #tpu.memory_space<vmem>>, vector<1x1056xf32>
    %74 = arith.addf %72, %73 : vector<1x1056xf32>
    %c0_94 = arith.constant 0 : index
    %c0_95 = arith.constant 0 : index
    %75 = vector.load %arg60[%c0_94, %c0_95] : memref<1x1056xf32, #tpu.memory_space<vmem>>, vector<1x1056xf32>
    tpu.vector_store %arg60[%c0_94, %c0_95], %74 {strides = array<i32>} : memref<1x1056xf32, #tpu.memory_space<vmem>>, vector<1x1056xf32>,
    %c0_96 = arith.constant 0 : index
    %c0_97 = arith.constant 0 : index
    %76 = vector.load %arg34[%c0_96, %c0_97] : memref<1000x32xf32, #tpu.memory_space<vmem>>, vector<1000x32xf32>
    %cst_98 = arith.constant dense<0.000000e+00> : vector<1x32xf32>
    %77 = tpu.matmul %12, %76, %cst_98 {dimension_numbers = #tpu.dot_dimension_numbers<[1], [0], [0], [1], [0, 0, 1, 1], [], []>} : vector<1x1000xf32>, vector<1000x32xf32>, vector<1x32xf32> -> vector<1x32xf32>
    %c0_99 = arith.constant 0 : index
    %c0_100 = arith.constant 0 : index
    %78 = vector.load %arg35[%c0_99, %c0_100] : memref<1x32xf32, #tpu.memory_space<vmem>>, vector<1x32xf32>
    %79 = arith.addf %77, %78 : vector<1x32xf32>
    %c0_101 = arith.constant 0 : index
    %c0_102 = arith.constant 0 : index
    %80 = vector.load %arg36[%c0_101, %c0_102] : memref<32x1056xf32, #tpu.memory_space<vmem>>, vector<32x1056xf32>
    %cst_103 = arith.constant dense<0.000000e+00> : vector<1x1056xf32>
    %81 = tpu.matmul %79, %80, %cst_103 {dimension_numbers = #tpu.dot_dimension_numbers<[1], [0], [0], [1], [0, 0, 1, 1], [], []>} : vector<1x32xf32>, vector<32x1056xf32>, vector<1x1056xf32> -> vector<1x1056xf32>
    %c0_104 = arith.constant 0 : index
    %c0_105 = arith.constant 0 : index
    %82 = vector.load %arg37[%c0_104, %c0_105] : memref<1x1056xf32, #tpu.memory_space<vmem>>, vector<1x1056xf32>
    %83 = arith.addf %81, %82 : vector<1x1056xf32>
    %c0_106 = arith.constant 0 : index
    %c0_107 = arith.constant 0 : index
    %84 = vector.load %arg61[%c0_106, %c0_107] : memref<1x1056xf32, #tpu.memory_space<vmem>>, vector<1x1056xf32>
    tpu.vector_store %arg61[%c0_106, %c0_107], %83 {strides = array<i32>} : memref<1x1056xf32, #tpu.memory_space<vmem>>, vector<1x1056xf32>,
    %c0_108 = arith.constant 0 : index
    %c0_109 = arith.constant 0 : index
    %85 = vector.load %arg38[%c0_108, %c0_109] : memref<1000x16xf32, #tpu.memory_space<vmem>>, vector<1000x16xf32>
    %cst_110 = arith.constant dense<0.000000e+00> : vector<1x16xf32>
    %86 = tpu.matmul %12, %85, %cst_110 {dimension_numbers = #tpu.dot_dimension_numbers<[1], [0], [0], [1], [0, 0, 1, 1], [], []>} : vector<1x1000xf32>, vector<1000x16xf32>, vector<1x16xf32> -> vector<1x16xf32>
    %c0_111 = arith.constant 0 : index
    %c0_112 = arith.constant 0 : index
    %87 = vector.load %arg39[%c0_111, %c0_112] : memref<1x16xf32, #tpu.memory_space<vmem>>, vector<1x16xf32>
    %88 = arith.addf %86, %87 : vector<1x16xf32>
    %c0_113 = arith.constant 0 : index
    %c0_114 = arith.constant 0 : index
    %89 = vector.load %arg40[%c0_113, %c0_114] : memref<16x656xf32, #tpu.memory_space<vmem>>, vector<16x656xf32>
    %cst_115 = arith.constant dense<0.000000e+00> : vector<1x656xf32>
    %90 = tpu.matmul %88, %89, %cst_115 {dimension_numbers = #tpu.dot_dimension_numbers<[1], [0], [0], [1], [0, 0, 1, 1], [], []>} : vector<1x16xf32>, vector<16x656xf32>, vector<1x656xf32> -> vector<1x656xf32>
    %c0_116 = arith.constant 0 : index
    %c0_117 = arith.constant 0 : index
    %91 = vector.load %arg41[%c0_116, %c0_117] : memref<1x656xf32, #tpu.memory_space<vmem>>, vector<1x656xf32>
    %92 = arith.addf %90, %91 : vector<1x656xf32>
    %c0_118 = arith.constant 0 : index
    %c0_119 = arith.constant 0 : index
    %93 = vector.load %arg62[%c0_118, %c0_119] : memref<1x656xf32, #tpu.memory_space<vmem>>, vector<1x656xf32>
    tpu.vector_store %arg62[%c0_118, %c0_119], %92 {strides = array<i32>} : memref<1x656xf32, #tpu.memory_space<vmem>>, vector<1x656xf32>,
    %c0_120 = arith.constant 0 : index
    %c0_121 = arith.constant 0 : index
    %94 = vector.load %arg42[%c0_120, %c0_121] : memref<1000x32xf32, #tpu.memory_space<vmem>>, vector<1000x32xf32>
    %cst_122 = arith.constant dense<0.000000e+00> : vector<1x32xf32>
    %95 = tpu.matmul %12, %94, %cst_122 {dimension_numbers = #tpu.dot_dimension_numbers<[1], [0], [0], [1], [0, 0, 1, 1], [], []>} : vector<1x1000xf32>, vector<1000x32xf32>, vector<1x32xf32> -> vector<1x32xf32>
    %c0_123 = arith.constant 0 : index
    %c0_124 = arith.constant 0 : index
    %96 = vector.load %arg43[%c0_123, %c0_124] : memref<1x32xf32, #tpu.memory_space<vmem>>, vector<1x32xf32>
    %97 = arith.addf %95, %96 : vector<1x32xf32>
    %c0_125 = arith.constant 0 : index
    %c0_126 = arith.constant 0 : index
    %98 = vector.load %arg44[%c0_125, %c0_126] : memref<32x1056xf32, #tpu.memory_space<vmem>>, vector<32x1056xf32>
    %cst_127 = arith.constant dense<0.000000e+00> : vector<1x1056xf32>
    %99 = tpu.matmul %97, %98, %cst_127 {dimension_numbers = #tpu.dot_dimension_numbers<[1], [0], [0], [1], [0, 0, 1, 1], [], []>} : vector<1x32xf32>, vector<32x1056xf32>, vector<1x1056xf32> -> vector<1x1056xf32>
    %c0_128 = arith.constant 0 : index
    %c0_129 = arith.constant 0 : index
    %100 = vector.load %arg45[%c0_128, %c0_129] : memref<1x1056xf32, #tpu.memory_space<vmem>>, vector<1x1056xf32>
    %101 = arith.addf %99, %100 : vector<1x1056xf32>
    %c0_130 = arith.constant 0 : index
    %c0_131 = arith.constant 0 : index
    %102 = vector.load %arg63[%c0_130, %c0_131] : memref<1x1056xf32, #tpu.memory_space<vmem>>, vector<1x1056xf32>
    tpu.vector_store %arg63[%c0_130, %c0_131], %101 {strides = array<i32>} : memref<1x1056xf32, #tpu.memory_space<vmem>>, vector<1x1056xf32>,
    %c0_132 = arith.constant 0 : index
    %c0_133 = arith.constant 0 : index
    %103 = vector.load %arg46[%c0_132, %c0_133] : memref<1000x1xf32, #tpu.memory_space<vmem>>, vector<1000x1xf32>
    %cst_134 = arith.constant dense<0.000000e+00> : vector<1x1xf32>
    %104 = tpu.matmul %12, %103, %cst_134 {dimension_numbers = #tpu.dot_dimension_numbers<[1], [0], [0], [1], [0, 0, 1, 1], [], []>} : vector<1x1000xf32>, vector<1000x1xf32>, vector<1x1xf32> -> vector<1x1xf32>
    %c0_135 = arith.constant 0 : index
    %c0_136 = arith.constant 0 : index
    %105 = vector.load %arg47[%c0_135, %c0_136] : memref<1x1xf32, #tpu.memory_space<vmem>>, vector<1x1xf32>
    %106 = arith.addf %104, %105 : vector<1x1xf32>
    %c0_137 = arith.constant 0 : index
    %c0_138 = arith.constant 0 : index
    %107 = vector.load %arg48[%c0_137, %c0_138] : memref<1x33xf32, #tpu.memory_space<vmem>>, vector<1x33xf32>
    %cst_139 = arith.constant dense<0.000000e+00> : vector<1x33xf32>
    %108 = tpu.matmul %106, %107, %cst_139 {dimension_numbers = #tpu.dot_dimension_numbers<[1], [0], [0], [1], [0, 0, 1, 1], [], []>} : vector<1x1xf32>, vector<1x33xf32>, vector<1x33xf32> -> vector<1x33xf32>
    %c0_140 = arith.constant 0 : index
    %c0_141 = arith.constant 0 : index
    %109 = vector.load %arg49[%c0_140, %c0_141] : memref<1x33xf32, #tpu.memory_space<vmem>>, vector<1x33xf32>
    %110 = arith.addf %108, %109 : vector<1x33xf32>
    %c0_142 = arith.constant 0 : index
    %c0_143 = arith.constant 0 : index
    %111 = vector.load %arg64[%c0_142, %c0_143] : memref<1x33xf32, #tpu.memory_space<vmem>>, vector<1x33xf32>
    tpu.vector_store %arg64[%c0_142, %c0_143], %110 {strides = array<i32>} : memref<1x33xf32, #tpu.memory_space<vmem>>, vector<1x33xf32>,
    %c0_144 = arith.constant 0 : index
    %c0_145 = arith.constant 0 : index
    %112 = vector.load %arg50[%c0_144, %c0_145] : memref<1000x3xf32, #tpu.memory_space<vmem>>, vector<1000x3xf32>
    %cst_146 = arith.constant dense<0.000000e+00> : vector<1x3xf32>
    %113 = tpu.matmul %12, %112, %cst_146 {dimension_numbers = #tpu.dot_dimension_numbers<[1], [0], [0], [1], [0, 0, 1, 1], [], []>} : vector<1x1000xf32>, vector<1000x3xf32>, vector<1x3xf32> -> vector<1x3xf32>
    %c0_147 = arith.constant 0 : index
    %c0_148 = arith.constant 0 : index
    %114 = vector.load %arg51[%c0_147, %c0_148] : memref<1x3xf32, #tpu.memory_space<vmem>>, vector<1x3xf32>
    %115 = arith.addf %113, %114 : vector<1x3xf32>
    %c0_149 = arith.constant 0 : index
    %c0_150 = arith.constant 0 : index
    %116 = vector.load %arg52[%c0_149, %c0_150] : memref<3x51xf32, #tpu.memory_space<vmem>>, vector<3x51xf32>
    %cst_151 = arith.constant dense<0.000000e+00> : vector<1x51xf32>
    %117 = tpu.matmul %115, %116, %cst_151 {dimension_numbers = #tpu.dot_dimension_numbers<[1], [0], [0], [1], [0, 0, 1, 1], [], []>} : vector<1x3xf32>, vector<3x51xf32>, vector<1x51xf32> -> vector<1x51xf32>
    %c0_152 = arith.constant 0 : index
    %c0_153 = arith.constant 0 : index
    %118 = vector.load %arg53[%c0_152, %c0_153] : memref<1x51xf32, #tpu.memory_space<vmem>>, vector<1x51xf32>
    %119 = arith.addf %117, %118 : vector<1x51xf32>
    %c0_154 = arith.constant 0 : index
    %c0_155 = arith.constant 0 : index
    %120 = vector.load %arg65[%c0_154, %c0_155] : memref<1x51xf32, #tpu.memory_space<vmem>>, vector<1x51xf32>
    tpu.vector_store %arg65[%c0_154, %c0_155], %119 {strides = array<i32>} : memref<1x51xf32, #tpu.memory_space<vmem>>, vector<1x51xf32>,
    return
  }
  func.func @transform_0(%arg0: i32) -> (i32, i32) {
    %c0_i32 = arith.constant 0 : i32
    %c0_i32_0 = arith.constant 0 : i32
    %c0_i32_1 = arith.constant 0 : i32
    return %c0_i32, %c0_i32_0 : i32, i32
  }
  func.func @transform_1(%arg0: i32) -> (i32, i32) {
    %c0_i32 = arith.constant 0 : i32
    %c0_i32_0 = arith.constant 0 : i32
    %c0_i32_1 = arith.constant 0 : i32
    return %c0_i32, %c0_i32_0 : i32, i32
  }
  func.func @transform_2(%arg0: i32) -> (i32, i32) {
    %c0_i32 = arith.constant 0 : i32
    %c0_i32_0 = arith.constant 0 : i32
    %c0_i32_1 = arith.constant 0 : i32
    return %c0_i32, %c0_i32_0 : i32, i32
  }
  func.func @transform_3(%arg0: i32) -> (i32, i32) {
    %c0_i32 = arith.constant 0 : i32
    %c0_i32_0 = arith.constant 0 : i32
    %c0_i32_1 = arith.constant 0 : i32
    return %c0_i32, %c0_i32_0 : i32, i32
  }
  func.func @transform_4(%arg0: i32) -> (i32, i32) {
    %c0_i32 = arith.constant 0 : i32
    %c0_i32_0 = arith.constant 0 : i32
    %c0_i32_1 = arith.constant 0 : i32
    return %c0_i32, %c0_i32_0 : i32, i32
  }
  func.func @transform_5(%arg0: i32) -> (i32, i32) {
    %c0_i32 = arith.constant 0 : i32
    %c0_i32_0 = arith.constant 0 : i32
    %c0_i32_1 = arith.constant 0 : i32
    return %c0_i32, %c0_i32_0 : i32, i32
  }
  func.func @transform_6(%arg0: i32) -> (i32, i32) {
    %c0_i32 = arith.constant 0 : i32
    %c0_i32_0 = arith.constant 0 : i32
    %c0_i32_1 = arith.constant 0 : i32
    return %c0_i32, %c0_i32_0 : i32, i32
  }
  func.func @transform_7(%arg0: i32) -> (i32, i32) {
    %c0_i32 = arith.constant 0 : i32
    %c0_i32_0 = arith.constant 0 : i32
    %c0_i32_1 = arith.constant 0 : i32
    return %c0_i32, %c0_i32_0 : i32, i32
  }
  func.func @transform_8(%arg0: i32) -> (i32, i32) {
    %c0_i32 = arith.constant 0 : i32
    %c0_i32_0 = arith.constant 0 : i32
    %c0_i32_1 = arith.constant 0 : i32
    return %c0_i32, %c0_i32_0 : i32, i32
  }
  func.func @transform_9(%arg0: i32) -> (i32, i32) {
    %c0_i32 = arith.constant 0 : i32
    %c0_i32_0 = arith.constant 0 : i32
    %c0_i32_1 = arith.constant 0 : i32
    return %c0_i32, %c0_i32_0 : i32, i32
  }
  func.func @transform_10(%arg0: i32) -> (i32, i32) {
    %c0_i32 = arith.constant 0 : i32
    %c0_i32_0 = arith.constant 0 : i32
    %c0_i32_1 = arith.constant 0 : i32
    return %c0_i32, %c0_i32_0 : i32, i32
  }
  func.func @transform_11(%arg0: i32) -> (i32, i32) {
    %c0_i32 = arith.constant 0 : i32
    %c0_i32_0 = arith.constant 0 : i32
    %c0_i32_1 = arith.constant 0 : i32
    return %c0_i32, %c0_i32_0 : i32, i32
  }
  func.func @transform_12(%arg0: i32) -> (i32, i32) {
    %c0_i32 = arith.constant 0 : i32
    %c0_i32_0 = arith.constant 0 : i32
    %c0_i32_1 = arith.constant 0 : i32
    return %c0_i32, %c0_i32_0 : i32, i32
  }
  func.func @transform_13(%arg0: i32) -> (i32, i32) {
    %c0_i32 = arith.constant 0 : i32
    %c0_i32_0 = arith.constant 0 : i32
    %c0_i32_1 = arith.constant 0 : i32
    return %c0_i32, %c0_i32_0 : i32, i32
  }
  func.func @transform_14(%arg0: i32) -> (i32, i32) {
    %c0_i32 = arith.constant 0 : i32
    %c0_i32_0 = arith.constant 0 : i32
    %c0_i32_1 = arith.constant 0 : i32
    return %c0_i32, %c0_i32_0 : i32, i32
  }
  func.func @transform_15(%arg0: i32) -> (i32, i32) {
    %c0_i32 = arith.constant 0 : i32
    %c0_i32_0 = arith.constant 0 : i32
    %c0_i32_1 = arith.constant 0 : i32
    return %c0_i32, %c0_i32_0 : i32, i32
  }
  func.func @transform_16(%arg0: i32) -> (i32, i32) {
    %c0_i32 = arith.constant 0 : i32
    %c0_i32_0 = arith.constant 0 : i32
    %c0_i32_1 = arith.constant 0 : i32
    return %c0_i32, %c0_i32_0 : i32, i32
  }
  func.func @transform_17(%arg0: i32) -> (i32, i32) {
    %c0_i32 = arith.constant 0 : i32
    %c0_i32_0 = arith.constant 0 : i32
    %c0_i32_1 = arith.constant 0 : i32
    return %c0_i32, %c0_i32_0 : i32, i32
  }
  func.func @transform_18(%arg0: i32) -> (i32, i32) {
    %c0_i32 = arith.constant 0 : i32
    %c0_i32_0 = arith.constant 0 : i32
    %c0_i32_1 = arith.constant 0 : i32
    return %c0_i32, %c0_i32_0 : i32, i32
  }
  func.func @transform_19(%arg0: i32) -> (i32, i32) {
    %c0_i32 = arith.constant 0 : i32
    %c0_i32_0 = arith.constant 0 : i32
    %c0_i32_1 = arith.constant 0 : i32
    return %c0_i32, %c0_i32_0 : i32, i32
  }
  func.func @transform_20(%arg0: i32) -> (i32, i32) {
    %c0_i32 = arith.constant 0 : i32
    %c0_i32_0 = arith.constant 0 : i32
    %c0_i32_1 = arith.constant 0 : i32
    return %c0_i32, %c0_i32_0 : i32, i32
  }
  func.func @transform_21(%arg0: i32) -> (i32, i32) {
    %c0_i32 = arith.constant 0 : i32
    %c0_i32_0 = arith.constant 0 : i32
    %c0_i32_1 = arith.constant 0 : i32
    return %c0_i32, %c0_i32_0 : i32, i32
  }
  func.func @transform_22(%arg0: i32) -> (i32, i32) {
    %c0_i32 = arith.constant 0 : i32
    %c0_i32_0 = arith.constant 0 : i32
    %c0_i32_1 = arith.constant 0 : i32
    return %c0_i32, %c0_i32_0 : i32, i32
  }
  func.func @transform_23(%arg0: i32) -> (i32, i32) {
    %c0_i32 = arith.constant 0 : i32
    %c0_i32_0 = arith.constant 0 : i32
    %c0_i32_1 = arith.constant 0 : i32
    return %c0_i32, %c0_i32_0 : i32, i32
  }
  func.func @transform_24(%arg0: i32) -> (i32, i32) {
    %c0_i32 = arith.constant 0 : i32
    %c0_i32_0 = arith.constant 0 : i32
    %c0_i32_1 = arith.constant 0 : i32
    return %c0_i32, %c0_i32_0 : i32, i32
  }
  func.func @transform_25(%arg0: i32) -> (i32, i32) {
    %c0_i32 = arith.constant 0 : i32
    %c0_i32_0 = arith.constant 0 : i32
    %c0_i32_1 = arith.constant 0 : i32
    return %c0_i32, %c0_i32_0 : i32, i32
  }
  func.func @transform_26(%arg0: i32) -> (i32, i32) {
    %c0_i32 = arith.constant 0 : i32
    %c0_i32_0 = arith.constant 0 : i32
    %c0_i32_1 = arith.constant 0 : i32
    return %c0_i32, %c0_i32_0 : i32, i32
  }
  func.func @transform_27(%arg0: i32) -> (i32, i32) {
    %c0_i32 = arith.constant 0 : i32
    %c0_i32_0 = arith.constant 0 : i32
    %c0_i32_1 = arith.constant 0 : i32
    return %c0_i32, %c0_i32_0 : i32, i32
  }
  func.func @transform_28(%arg0: i32) -> (i32, i32) {
    %c0_i32 = arith.constant 0 : i32
    %c0_i32_0 = arith.constant 0 : i32
    %c0_i32_1 = arith.constant 0 : i32
    return %c0_i32, %c0_i32_0 : i32, i32
  }
  func.func @transform_29(%arg0: i32) -> (i32, i32) {
    %c0_i32 = arith.constant 0 : i32
    %c0_i32_0 = arith.constant 0 : i32
    %c0_i32_1 = arith.constant 0 : i32
    return %c0_i32, %c0_i32_0 : i32, i32
  }
  func.func @transform_30(%arg0: i32) -> (i32, i32) {
    %c0_i32 = arith.constant 0 : i32
    %c0_i32_0 = arith.constant 0 : i32
    %c0_i32_1 = arith.constant 0 : i32
    return %c0_i32, %c0_i32_0 : i32, i32
  }
  func.func @transform_31(%arg0: i32) -> (i32, i32) {
    %c0_i32 = arith.constant 0 : i32
    %c0_i32_0 = arith.constant 0 : i32
    %c0_i32_1 = arith.constant 0 : i32
    return %c0_i32, %c0_i32_0 : i32, i32
  }
  func.func @transform_32(%arg0: i32) -> (i32, i32) {
    %c0_i32 = arith.constant 0 : i32
    %c0_i32_0 = arith.constant 0 : i32
    %c0_i32_1 = arith.constant 0 : i32
    return %c0_i32, %c0_i32_0 : i32, i32
  }
  func.func @transform_33(%arg0: i32) -> (i32, i32) {
    %c0_i32 = arith.constant 0 : i32
    %c0_i32_0 = arith.constant 0 : i32
    %c0_i32_1 = arith.constant 0 : i32
    return %c0_i32, %c0_i32_0 : i32, i32
  }
  func.func @transform_34(%arg0: i32) -> (i32, i32) {
    %c0_i32 = arith.constant 0 : i32
    %c0_i32_0 = arith.constant 0 : i32
    %c0_i32_1 = arith.constant 0 : i32
    return %c0_i32, %c0_i32_0 : i32, i32
  }
  func.func @transform_35(%arg0: i32) -> (i32, i32) {
    %c0_i32 = arith.constant 0 : i32
    %c0_i32_0 = arith.constant 0 : i32
    %c0_i32_1 = arith.constant 0 : i32
    return %c0_i32, %c0_i32_0 : i32, i32
  }
  func.func @transform_36(%arg0: i32) -> (i32, i32) {
    %c0_i32 = arith.constant 0 : i32
    %c0_i32_0 = arith.constant 0 : i32
    %c0_i32_1 = arith.constant 0 : i32
    return %c0_i32, %c0_i32_0 : i32, i32
  }
  func.func @transform_37(%arg0: i32) -> (i32, i32) {
    %c0_i32 = arith.constant 0 : i32
    %c0_i32_0 = arith.constant 0 : i32
    %c0_i32_1 = arith.constant 0 : i32
    return %c0_i32, %c0_i32_0 : i32, i32
  }
  func.func @transform_38(%arg0: i32) -> (i32, i32) {
    %c0_i32 = arith.constant 0 : i32
    %c0_i32_0 = arith.constant 0 : i32
    %c0_i32_1 = arith.constant 0 : i32
    return %c0_i32, %c0_i32_0 : i32, i32
  }
  func.func @transform_39(%arg0: i32) -> (i32, i32) {
    %c0_i32 = arith.constant 0 : i32
    %c0_i32_0 = arith.constant 0 : i32
    %c0_i32_1 = arith.constant 0 : i32
    return %c0_i32, %c0_i32_0 : i32, i32
  }
  func.func @transform_40(%arg0: i32) -> (i32, i32) {
    %c0_i32 = arith.constant 0 : i32
    %c0_i32_0 = arith.constant 0 : i32
    %c0_i32_1 = arith.constant 0 : i32
    return %c0_i32, %c0_i32_0 : i32, i32
  }
  func.func @transform_41(%arg0: i32) -> (i32, i32) {
    %c0_i32 = arith.constant 0 : i32
    %c0_i32_0 = arith.constant 0 : i32
    %c0_i32_1 = arith.constant 0 : i32
    return %c0_i32, %c0_i32_0 : i32, i32
  }
  func.func @transform_42(%arg0: i32) -> (i32, i32) {
    %c0_i32 = arith.constant 0 : i32
    %c0_i32_0 = arith.constant 0 : i32
    %c0_i32_1 = arith.constant 0 : i32
    return %c0_i32, %c0_i32_0 : i32, i32
  }
  func.func @transform_43(%arg0: i32) -> (i32, i32) {
    %c0_i32 = arith.constant 0 : i32
    %c0_i32_0 = arith.constant 0 : i32
    %c0_i32_1 = arith.constant 0 : i32
    return %c0_i32, %c0_i32_0 : i32, i32
  }
  func.func @transform_44(%arg0: i32) -> (i32, i32) {
    %c0_i32 = arith.constant 0 : i32
    %c0_i32_0 = arith.constant 0 : i32
    %c0_i32_1 = arith.constant 0 : i32
    return %c0_i32, %c0_i32_0 : i32, i32
  }
  func.func @transform_45(%arg0: i32) -> (i32, i32) {
    %c0_i32 = arith.constant 0 : i32
    %c0_i32_0 = arith.constant 0 : i32
    %c0_i32_1 = arith.constant 0 : i32
    return %c0_i32, %c0_i32_0 : i32, i32
  }
  func.func @transform_46(%arg0: i32) -> (i32, i32) {
    %c0_i32 = arith.constant 0 : i32
    %c0_i32_0 = arith.constant 0 : i32
    %c0_i32_1 = arith.constant 0 : i32
    return %c0_i32, %c0_i32_0 : i32, i32
  }
  func.func @transform_47(%arg0: i32) -> (i32, i32) {
    %c0_i32 = arith.constant 0 : i32
    %c0_i32_0 = arith.constant 0 : i32
    %c0_i32_1 = arith.constant 0 : i32
    return %c0_i32, %c0_i32_0 : i32, i32
  }
  func.func @transform_48(%arg0: i32) -> (i32, i32) {
    %c0_i32 = arith.constant 0 : i32
    %c0_i32_0 = arith.constant 0 : i32
    %c0_i32_1 = arith.constant 0 : i32
    return %c0_i32, %c0_i32_0 : i32, i32
  }
  func.func @transform_49(%arg0: i32) -> (i32, i32) {
    %c0_i32 = arith.constant 0 : i32
    %c0_i32_0 = arith.constant 0 : i32
    %c0_i32_1 = arith.constant 0 : i32
    return %c0_i32, %c0_i32_0 : i32, i32
  }
  func.func @transform_50(%arg0: i32) -> (i32, i32) {
    %c0_i32 = arith.constant 0 : i32
    %c0_i32_0 = arith.constant 0 : i32
    %c0_i32_1 = arith.constant 0 : i32
    return %c0_i32, %c0_i32_0 : i32, i32
  }
  func.func @transform_51(%arg0: i32) -> (i32, i32) {
    %c0_i32 = arith.constant 0 : i32
    %c0_i32_0 = arith.constant 0 : i32
    %c0_i32_1 = arith.constant 0 : i32
    return %c0_i32, %c0_i32_0 : i32, i32
  }
  func.func @transform_52(%arg0: i32) -> (i32, i32) {
    %c0_i32 = arith.constant 0 : i32
    %c0_i32_0 = arith.constant 0 : i32
    %c0_i32_1 = arith.constant 0 : i32
    return %c0_i32, %c0_i32_0 : i32, i32
  }
  func.func @transform_53(%arg0: i32) -> (i32, i32) {
    %c0_i32 = arith.constant 0 : i32
    %c0_i32_0 = arith.constant 0 : i32
    %c0_i32_1 = arith.constant 0 : i32
    return %c0_i32, %c0_i32_0 : i32, i32
  }
  func.func @transform_54(%arg0: i32) -> (i32, i32) {
    %c0_i32 = arith.constant 0 : i32
    %c0_i32_0 = arith.constant 0 : i32
    %c0_i32_1 = arith.constant 0 : i32
    return %c0_i32, %c0_i32_0 : i32, i32
  }
  func.func @transform_55(%arg0: i32) -> (i32, i32) {
    %c0_i32 = arith.constant 0 : i32
    %c0_i32_0 = arith.constant 0 : i32
    %c0_i32_1 = arith.constant 0 : i32
    return %c0_i32, %c0_i32_0 : i32, i32
  }
  func.func @transform_56(%arg0: i32) -> (i32, i32) {
    %c0_i32 = arith.constant 0 : i32
    %c0_i32_0 = arith.constant 0 : i32
    %c0_i32_1 = arith.constant 0 : i32
    return %c0_i32, %c0_i32_0 : i32, i32
  }
  func.func @transform_57(%arg0: i32) -> (i32, i32) {
    %c0_i32 = arith.constant 0 : i32
    %c0_i32_0 = arith.constant 0 : i32
    %c0_i32_1 = arith.constant 0 : i32
    return %c0_i32, %c0_i32_0 : i32, i32
  }
  func.func @transform_58(%arg0: i32) -> (i32, i32) {
    %c0_i32 = arith.constant 0 : i32
    %c0_i32_0 = arith.constant 0 : i32
    %c0_i32_1 = arith.constant 0 : i32
    return %c0_i32, %c0_i32_0 : i32, i32
  }
  func.func @transform_59(%arg0: i32) -> (i32, i32) {
    %c0_i32 = arith.constant 0 : i32
    %c0_i32_0 = arith.constant 0 : i32
    %c0_i32_1 = arith.constant 0 : i32
    return %c0_i32, %c0_i32_0 : i32, i32
  }
  func.func @transform_60(%arg0: i32) -> (i32, i32) {
    %c0_i32 = arith.constant 0 : i32
    %c0_i32_0 = arith.constant 0 : i32
    %c0_i32_1 = arith.constant 0 : i32
    return %c0_i32, %c0_i32_0 : i32, i32
  }
  func.func @transform_61(%arg0: i32) -> (i32, i32) {
    %c0_i32 = arith.constant 0 : i32
    %c0_i32_0 = arith.constant 0 : i32
    %c0_i32_1 = arith.constant 0 : i32
    return %c0_i32, %c0_i32_0 : i32, i32
  }
  func.func @transform_62(%arg0: i32) -> (i32, i32) {
    %c0_i32 = arith.constant 0 : i32
    %c0_i32_0 = arith.constant 0 : i32
    %c0_i32_1 = arith.constant 0 : i32
    return %c0_i32, %c0_i32_0 : i32, i32
  }
  func.func @transform_63(%arg0: i32) -> (i32, i32) {
    %c0_i32 = arith.constant 0 : i32
    %c0_i32_0 = arith.constant 0 : i32
    %c0_i32_1 = arith.constant 0 : i32
    return %c0_i32, %c0_i32_0 : i32, i32
  }
  func.func @transform_64(%arg0: i32) -> (i32, i32) {
    %c0_i32 = arith.constant 0 : i32
    %c0_i32_0 = arith.constant 0 : i32
    %c0_i32_1 = arith.constant 0 : i32
    return %c0_i32, %c0_i32_0 : i32, i32
  }
}

</mosaic_0001>

<bundles_post_ra>
// kernel: tpu_custom_call.1
= control target key start
LH: loop header
LB: loop body
LE: loop exit
PB: predicated region body
PF: predicated region fallthrough
CT: control target
= control target key end

     0   :  { %s15199_s6 = smov 1   ;;  %s15200_s10 = smov 2   ;;  %s18473_s0 = inlined_call_operand.smem [shape: u32[65], index: -1, kind: input, shape index: {}] }
   0x1   :  { %s15292_s5 = sld [smem:[%s18473_s0]]   ;;  %s15201_s14 = smov 3  }
   0x2   :  { %s15297_s9 = sld [smem:[%s18473_s0 + %s15199_s6]]   ;;  %s15202_s18 = smov 4  }
   0x3   :  { %s15302_s13 = sld [smem:[%s18473_s0 + %s15200_s10]]   ;;  %s15203_s22 = smov 5  }
   0x4   :  { %s15307_s17 = sld [smem:[%s18473_s0 + %s15201_s14]]   ;;  %s15204_s26 = smov 6  }
   0x5   :  { %s15312_s21 = sld [smem:[%s18473_s0 + %s15202_s18]]   ;;  %s15205_s30 = smov 7  }
   0x6   :  { %s15317_s25 = sld [smem:[%s18473_s0 + %s15203_s22]]   ;;  %s15206_s4 = smov 8  }
   0x7   :  { %s15322_s29 = sld [smem:[%s18473_s0 + %s15204_s26]]   ;;  %s15207_s10 = smov 9  }
   0x8   :  { %s15327_s3 = sld [smem:[%s18473_s0 + %s15205_s30]]   ;;  %s15208_s15 = smov 10  }
   0x9   :  { %s15332_s8 = sld [smem:[%s18473_s0 + %s15206_s4]]   ;;  %s15209_s20 = smov 11  }
   0xa   :  { %s15337_s14 = sld [smem:[%s18473_s0 + %s15207_s10]]   ;;  %s15210_s26 = smov 12  }
   0xb   :  { %s15342_s19 = sld [smem:[%s18473_s0 + %s15208_s15]]   ;;  %s15211_s1 = smov 13  }
   0xc   :  { %s15347_s24 = sld [smem:[%s18473_s0 + %s15209_s20]]   ;;  %s15212_s7 = smov 14  }
   0xd   :  { %s15352_s30 = sld [smem:[%s18473_s0 + %s15210_s26]]   ;;  %s15213_s15 = smov 15  }
   0xe   :  { %s15357_s6 = sld [smem:[%s18473_s0 + %s15211_s1]]   ;;  %s15214_s22 = smov 16  }
   0xf   :  { %18509 = sst [smem:[#allocation40_spill]] %s15332_s8  ;;  %s15215_s28 = smov 17  }
  0x10   :  { %s15362_s12 = sld [smem:[%s18473_s0 + %s15212_s7]]   ;;  %s15216_s7 = smov 18  }
  0x11   :  { %18510 = sst [smem:[#allocation41_spill]] %s15342_s19  ;;  %s15245_s16 = smov 47  }
  0x12   :  { %18511 = sst [smem:[#allocation42_spill]] %s15347_s24  ;;  %s15246_s23 = smov 48  }
  0x13   :  { %18512 = sst [smem:[#allocation43_spill]] %s15352_s30  ;;  %s15247_s1 = smov 49  }
  0x14   :  { %18513 = sst [smem:[#allocation44_spill]] %s15357_s6  ;;  %s15248_s10 = smov 50  }
  0x15   :  { %s15367_s20 = sld [smem:[%s18473_s0 + %s15213_s15]]   ;;  %s15217_s15 = smov 19  }
  0x16   :  { %18514 = sst [smem:[#allocation45_spill]] %s15362_s12 }
  0x17   :  { %s15372_s27 = sld [smem:[%s18473_s0 + %s15214_s22]]   ;;  %s15218_s22 = smov 20  }
  0x18   :  { %s15377_s4 = sld [smem:[%s18473_s0 + %s15215_s28]]   ;;  %s15219_s28 = smov 21  }
  0x19   :  { %s15382_s12 = sld [smem:[%s18473_s0 + %s15216_s7]]   ;;  %s15220_s7 = smov 22  }
  0x1a   :  { %s15387_s30 = sld [smem:[%s18473_s0 + %s15217_s15]]   ;;  %s15221_s15 = smov 23  }
  0x1b   :  { %18515 = sst [smem:[#allocation46_spill]] %s15367_s20 }
  0x1c   :  { %s15540_s19 = sld [smem:[%s18473_s0 + %s15248_s10]]   ;;  %s15252_s10 = smov 54  }
  0x1d   :  { %18516 = sst [smem:[#allocation47_spill]] %s15372_s27 }
  0x1e   :  { %18517 = sst [smem:[#allocation48_spill]] %s15377_s4 }
  0x1f   :  { %18518 = sst [smem:[#allocation49_spill]] %s15382_s12 }
  0x20   :  { %18519 = sst [smem:[#allocation50_spill]] %s15387_s30 }
  0x21   :  { %s15392_s27 = sld [smem:[%s18473_s0 + %s15218_s22]]   ;;  %s15222_s22 = smov 24  }
  0x22   :  { %s15397_s4 = sld [smem:[%s18473_s0 + %s15219_s28]]   ;;  %s15223_s28 = smov 25  }
  0x23   :  { %s15402_s12 = sld [smem:[%s18473_s0 + %s15220_s7]]   ;;  %s15224_s7 = smov 26  }
  0x24   :  { %s15407_s30 = sld [smem:[%s18473_s0 + %s15221_s15]]   ;;  %s15225_s15 = smov 27  }
  0x27   :  { %18520 = sst [smem:[#allocation51_spill]] %s15392_s27 }
  0x28   :  { %18521 = sst [smem:[#allocation52_spill]] %s15397_s4 }
  0x29   :  { %18522 = sst [smem:[#allocation53_spill]] %s15402_s12 }
  0x2a   :  { %18523 = sst [smem:[#allocation54_spill]] %s15407_s30 }
  0x2b   :  { %s15412_s27 = sld [smem:[%s18473_s0 + %s15222_s22]]   ;;  %s15226_s22 = smov 28  }
  0x2c   :  { %s15417_s4 = sld [smem:[%s18473_s0 + %s15223_s28]]   ;;  %s15227_s28 = smov 29  }
  0x2d   :  { %s15422_s12 = sld [smem:[%s18473_s0 + %s15224_s7]]   ;;  %s15228_s7 = smov 30  }
  0x2e   :  { %s15427_s30 = sld [smem:[%s18473_s0 + %s15225_s15]]   ;;  %s15229_s15 = smov 31  }
  0x31   :  { %18524 = sst [smem:[#allocation55_spill]] %s15412_s27 }
  0x32   :  { %18525 = sst [smem:[#allocation56_spill]] %s15417_s4 }
  0x33   :  { %18526 = sst [smem:[#allocation57_spill]] %s15422_s12 }
  0x34   :  { %18527 = sst [smem:[#allocation58_spill]] %s15427_s30 }
  0x35   :  { %s15432_s27 = sld [smem:[%s18473_s0 + %s15226_s22]]   ;;  %s15230_s22 = smov 32  }
  0x36   :  { %s15437_s4 = sld [smem:[%s18473_s0 + %s15227_s28]]   ;;  %s15231_s28 = smov 33  }
  0x37   :  { %s15442_s12 = sld [smem:[%s18473_s0 + %s15228_s7]]   ;;  %s15232_s7 = smov 34  }
  0x38   :  { %s15447_s30 = sld [smem:[%s18473_s0 + %s15229_s15]]   ;;  %s15233_s15 = smov 35  }
  0x3b   :  { %18528 = sst [smem:[#allocation59_spill]] %s15432_s27 }
  0x3c   :  { %18529 = sst [smem:[#allocation60_spill]] %s15437_s4 }
  0x3d   :  { %18530 = sst [smem:[#allocation61_spill]] %s15442_s12 }
  0x3e   :  { %18531 = sst [smem:[#allocation62_spill]] %s15447_s30 }
  0x3f   :  { %s15452_s27 = sld [smem:[%s18473_s0 + %s15230_s22]]   ;;  %s15234_s22 = smov 36  }
  0x40   :  { %s15457_s4 = sld [smem:[%s18473_s0 + %s15231_s28]]   ;;  %s15235_s28 = smov 37  }
  0x41   :  { %s15462_s12 = sld [smem:[%s18473_s0 + %s15232_s7]]   ;;  %s15236_s7 = smov 38  }
  0x42   :  { %s15467_s30 = sld [smem:[%s18473_s0 + %s15233_s15]]   ;;  %s15237_s15 = smov 39  }
  0x45   :  { %18532 = sst [smem:[#allocation63_spill]] %s15452_s27 }
  0x46   :  { %18533 = sst [smem:[#allocation64_spill]] %s15457_s4 }
  0x47   :  { %18534 = sst [smem:[#allocation65_spill]] %s15462_s12 }
  0x48   :  { %18535 = sst [smem:[#allocation66_spill]] %s15467_s30 }
  0x49   :  { %s15472_s27 = sld [smem:[%s18473_s0 + %s15234_s22]]   ;;  %s15238_s22 = smov 40  }
  0x4a   :  { %s15477_s4 = sld [smem:[%s18473_s0 + %s15235_s28]]   ;;  %s15239_s28 = smov 41  }
  0x4b   :  { %s15482_s12 = sld [smem:[%s18473_s0 + %s15236_s7]]   ;;  %s15240_s7 = smov 42  }
  0x4c   :  { %s15487_s30 = sld [smem:[%s18473_s0 + %s15237_s15]]   ;;  %s15241_s15 = smov 43  }
  0x4f   :  { %18536 = sst [smem:[#allocation67_spill]] %s15472_s27 }
  0x50   :  { %18537 = sst [smem:[#allocation68_spill]] %s15477_s4 }
  0x51   :  { %18538 = sst [smem:[#allocation69_spill]] %s15482_s12 }
  0x52   :  { %18539 = sst [smem:[#allocation70_spill]] %s15487_s30 }
  0x53   :  { %s15492_s27 = sld [smem:[%s18473_s0 + %s15238_s22]]   ;;  %s15242_s22 = smov 44  }
  0x54   :  { %s15497_s4 = sld [smem:[%s18473_s0 + %s15239_s28]]   ;;  %s15243_s28 = smov 45  }
  0x55   :  { %s15502_s12 = sld [smem:[%s18473_s0 + %s15240_s7]]   ;;  %s15244_s7 = smov 46  }
  0x56   :  { %s15507_s30 = sld [smem:[%s18473_s0 + %s15241_s15]]   ;;  %s15253_s15 = smov 55  }
  0x57   :  { %s11085_s20 = sld [smem:[%s18473_s0 + %s15244_s7]]  }
  0x59   :  { %18540 = sst [smem:[#allocation71_spill]] %s15492_s27 }
  0x5a   :  { %18541 = sst [smem:[#allocation72_spill]] %s15497_s4 }
  0x5b   :  { %s15512_s27 = sld [smem:[%s18473_s0 + %s15242_s22]]  }
  0x5c   :  { %18542 = sst [smem:[#allocation73_spill]] %s15507_s30 }
  0x5d   :  { %s15517_s4 = sld [smem:[%s18473_s0 + %s15243_s28]]   ;;  %v135_v0 = vstv %s11085_s20  ;;  %s15254_s20 = smov 56  }
  0x5e   :  { %s15525_s30 = sld [smem:[%s18473_s0 + %s15245_s16]]   ;;  %s15249_s16 = smov 51   ;;  %136 = vst [vmem:[#allocation2] sm:$0x1] %v135_v0 }
  0x5f   :  { %s15545_s8 = sld [smem:[%s18473_s0 + %s15249_s16]]  }
  0x60   :  { %s15560_s16 = sld [smem:[%s18473_s0 + %s15252_s10]]  }
  0x61   :  { %18543 = sst [smem:[#allocation74_spill]] %s15512_s27 }
  0x62   :  { %s15530_s27 = sld [smem:[%s18473_s0 + %s15246_s23]]   ;;  %s15250_s23 = smov 52  }
  0x63   :  { %18544 = sst [smem:[#allocation75_spill]] %s15517_s4 }
  0x64   :  { %s15535_s4 = sld [smem:[%s18473_s0 + %s15247_s1]]   ;;  %s15251_s1 = smov 53  }
  0x65   :  { %18546 = sst [smem:[#allocation77_spill]] %s15545_s8  ;;  %s15257_s8 = smov 59  }
  0x66   :  { %s15550_s6 = sld [smem:[%s18473_s0 + %s15250_s23]]  }
  0x67   :  { %s15555_s7 = sld [smem:[%s18473_s0 + %s15251_s1]]   ;;  %s15255_s1 = smov 57  }
  0x68   :  { %18548 = sst [smem:[#allocation79_spill]] %s15560_s16 }
  0x69   :  { %s15565_s23 = sld [smem:[%s18473_s0 + %s15253_s15]]  }
  0x6a   :  { %18545 = sst [smem:[#allocation76_spill]] %s15535_s4  ;;  %s15256_s4 = smov 58  }
  0x6b   :  { %s15570_s28 = sld [smem:[%s18473_s0 + %s15254_s20]]   ;;  %s15258_s20 = smov 60  }
  0x6c   :  { %s15575_s24 = sld [smem:[%s18473_s0 + %s15255_s1]]  }
  0x6d   :  { %18547 = sst [smem:[#allocation78_spill]] %s15555_s7  ;;  %s15259_s7 = smov 61  }
  0x6e   :  { %s15580_s16 = sld [smem:[%s18473_s0 + %s15256_s4]]   ;;  %s15260_s4 = smov 62  }
  0x6f   :  { %18549 = sst [smem:[#allocation80_spill]] %s15565_s23 }
  0x70   :  { %s15585_s23 = sld [smem:[%s18473_s0 + %s15257_s8]]   ;;  %s15261_s8 = smov 63  }
  0x71   :  { %18550 = sst [smem:[#allocation81_spill]] %s15570_s28 }
  0x72   :  { %18551 = sst [smem:[#allocation82_spill]] %s15575_s24 }
  0x73   :  { %s15590_s28 = sld [smem:[%s18473_s0 + %s15258_s20]]   ;;  %s15262_s20 = smov 64  }
  0x74   :  { %18552 = sst [smem:[#allocation83_spill]] %s15580_s16 }
  0x75   :  { %s15595_s24 = sld [smem:[%s18473_s0 + %s15259_s7]]  }
  0x76   :  { %18553 = sst [smem:[#allocation84_spill]] %s15585_s23 }
  0x77   :  { %s15600_s16 = sld [smem:[%s18473_s0 + %s15260_s4]]  }
  0x78   :  { %s15605_s23 = sld [smem:[%s18473_s0 + %s15261_s8]]  }
  0x79   :  { %18554 = sst [smem:[#allocation85_spill]] %s15590_s28 }
  0x7a   :  { %s15610_s28 = sld [smem:[%s18473_s0 + %s15262_s20]]  }
  0x7b   :  { %137 = vsyncpa [#allocation4], 0 }
  0x7c   :  { %138 = vsyncpa [#allocation7], 0 }
  0x7d   :  { %139 = vsyncpa [#allocation10], 0 }
  0x7e   :  { %140 = vsyncpa [#allocation5], 0 }
  0x7f   :  { %141 = vsyncpa [#allocation14], 0 }
  0x80   :  { %142 = vsyncpa [#allocation17], 0 }
  0x81   :  { %143 = vsyncpa [#allocation20], 0 }
  0x82   :  { %144 = vsyncpa [#allocation23], 0 }
  0x83   :  { %145 = vsyncpa [#allocation26], 0 }
  0x84   :  { %146 = vsyncpa [#allocation29], 0  ;;  %s15263_s7 = smov [#allocation6]   ;;  %s15264_s2 = smov [#allocation9]  }
  0x85   :  { %s255_s1 = sshll.u32 %s15263_s7, 4  ;;  %s277_s4 = sshll.u32 %s15264_s2, 4  ;;  %s256_s1 = int_to_ptr.vmem [resolvable:$true] %s255_s1  ;;  %s278_s4 = int_to_ptr.vmem [resolvable:$true] %s277_s4 }
  0x86   :  { %s14805_s0 = scalar_lea.hbm %s15525_s30, 16 }
  0x87   :  { %p14806_p0 = scmp.ne.s32.totalorder %s15525_s30, %s14805_s0  ;;  %p14809_p1 = scmp.lt.u32.totalorder %s14805_s0, %s15525_s30 }
  0x89   :  { %p14811_p2 = pnand %p14809_p1, %p14806_p0 }
  0x8b   :  { %14814 = shalt.err (!%p14811_p2)
}
  0x8c   :  { %s14815_s10 = scalar_lea.vmem %s256_s1, 16  ;;  %s14819_s11 = scalar_lea.vmem %s256_s1, 32 }
  0x8d   :  { %p14816_p3 = scmp.ne.s32.totalorder %s256_s1, %s14815_s10  ;;  %p14820_p4 = scmp.lt.s32.totalorder %s256_s1, %s256_s1 }
  0x8e   :  { %p14821_p5 = scmp.lt.s32.totalorder %s14819_s11, %s14815_s10 }
  0x90   :  { %p14822_p6 = por %p14821_p5, %p14820_p4 }
  0x92   :  { %p14823_p7 = pnand %p14822_p6, %p14816_p3 }
  0x94   :  { %14826 = shalt.err (!%p14823_p7)
}
  0x95   :  { %258 = dma.hbm_to_vmem [thread:$0]  %s15525_s30, 16, %s256_s1, [#allocation7]  }
  0x96   :  { %s14827_s8 = scalar_lea.hbm %s15540_s19, 16 }
  0x97   :  { %p14828_p8 = scmp.ne.s32.totalorder %s15540_s19, %s14827_s8  ;;  %p14831_p9 = scmp.lt.u32.totalorder %s14827_s8, %s15540_s19 }
  0x99   :  { %p14833_p10 = pnand %p14831_p9, %p14828_p8 }
  0x9b   :  { %14836 = shalt.err (!%p14833_p10)
}
  0x9c   :  { %s14837_s15 = scalar_lea.vmem %s278_s4, 16  ;;  %s14841_s18 = scalar_lea.vmem %s278_s4, 32 }
  0x9d   :  { %p14838_p11 = scmp.ne.s32.totalorder %s278_s4, %s14837_s15  ;;  %p14842_p12 = scmp.lt.s32.totalorder %s278_s4, %s278_s4 }
  0x9e   :  { %p14843_p13 = scmp.lt.s32.totalorder %s14841_s18, %s14837_s15 }
  0xa0   :  { %p14844_p0 = por %p14843_p13, %p14842_p12 }
  0xa2   :  { %p14845_p1 = pnand %p14844_p0, %p14838_p11 }
  0xa4   :  { %14848 = shalt.err (!%p14845_p1)
}
  0xa5   :  { %280 = dma.hbm_to_vmem [thread:$0]  %s15540_s19, 16, %s278_s4, [#allocation10]  }
  0xa6   :  { %s15265_s20 = smov [#allocation3]   ;;  %s15266_s22 = smov [#allocation8]  }
  0xa7   :  { %s237_s30 = sshll.u32 %s15265_s20, 4  ;;  %s265_s26 = sshll.u32 %s15266_s22, 4  ;;  %s238_s30 = int_to_ptr.vmem [resolvable:$true] %s237_s30  ;;  %s266_s26 = int_to_ptr.vmem [resolvable:$true] %s265_s26 }
  0xa8   :  { %s14849_s7 = scalar_lea.hbm %s15502_s12, 16 }
  0xa9   :  { %p14850_p2 = scmp.ne.s32.totalorder %s15502_s12, %s14849_s7  ;;  %p14853_p3 = scmp.lt.u32.totalorder %s14849_s7, %s15502_s12 }
  0xab   :  { %p14855_p4 = pnand %p14853_p3, %p14850_p2 }
  0xad   :  { %14858 = shalt.err (!%p14855_p4)
}
  0xae   :  { %s14859_s1 = scalar_lea.vmem %s238_s30, 16  ;;  %s14863_s2 = scalar_lea.vmem %s238_s30, 32 }
  0xaf   :  { %p14860_p5 = scmp.ne.s32.totalorder %s238_s30, %s14859_s1  ;;  %p14864_p6 = scmp.lt.s32.totalorder %s238_s30, %s238_s30 }
  0xb0   :  { %p14865_p7 = scmp.lt.s32.totalorder %s14863_s2, %s14859_s1 }
  0xb2   :  { %p14866_p8 = por %p14865_p7, %p14864_p6 }
  0xb4   :  { %p14867_p9 = pnand %p14866_p8, %p14860_p5 }
  0xb6   :  { %14870 = shalt.err (!%p14867_p9)
}
  0xb7   :  { %240 = dma.hbm_to_vmem [thread:$0]  %s15502_s12, 16, %s238_s30, [#allocation4]  }
  0xb8   :  { %s14871_s19 = scalar_lea.hbm %s15530_s27, 16 }
  0xb9   :  { %p14872_p10 = scmp.ne.s32.totalorder %s15530_s27, %s14871_s19  ;;  %p14875_p11 = scmp.lt.u32.totalorder %s14871_s19, %s15530_s27 }
  0xbb   :  { %p14877_p12 = pnand %p14875_p11, %p14872_p10 }
  0xbd   :  { %14880 = shalt.err (!%p14877_p12)
}
  0xbe   :  { %s14881_s4 = scalar_lea.vmem %s266_s26, 16  ;;  %s14885_s0 = scalar_lea.vmem %s266_s26, 32 }
  0xbf   :  { %p14882_p13 = scmp.ne.s32.totalorder %s266_s26, %s14881_s4  ;;  %p14886_p0 = scmp.lt.s32.totalorder %s266_s26, %s266_s26 }
  0xc0   :  { %p14887_p1 = scmp.lt.s32.totalorder %s14885_s0, %s14881_s4 }
  0xc2   :  { %p14888_p2 = por %p14887_p1, %p14886_p0 }
  0xc4   :  { %p14889_p3 = pnand %p14888_p2, %p14882_p13 }
  0xc6   :  { %14892 = shalt.err (!%p14889_p3)
}
  0xc7   :  { %268 = dma.hbm_to_vmem [thread:$0]  %s15530_s27, 16, %s266_s26, [#allocation7]  }
  0xc8   :  { %s15267_s10 = smov [#allocation11]   ;;  %s14893_s11 = scalar_lea.hbm %s15550_s6, 16 }
  0xc9   :  { %s289_s12 = sshll.u32 %s15267_s10, 4  ;;  %p14894_p4 = scmp.ne.s32.totalorder %s15550_s6, %s14893_s11  ;;  %s290_s12 = int_to_ptr.vmem [resolvable:$true] %s289_s12 }
  0xca   :  { %p14897_p5 = scmp.lt.u32.totalorder %s14893_s11, %s15550_s6 }
  0xcc   :  { %p14899_p6 = pnand %p14897_p5, %p14894_p4 }
  0xce   :  { %14902 = shalt.err (!%p14899_p6)
}
  0xcf   :  { %s14903_s8 = scalar_lea.vmem %s290_s12, 16  ;;  %s14907_s15 = scalar_lea.vmem %s290_s12, 32 }
  0xd0   :  { %p14904_p7 = scmp.ne.s32.totalorder %s290_s12, %s14903_s8  ;;  %p14908_p8 = scmp.lt.s32.totalorder %s290_s12, %s290_s12 }
  0xd1   :  { %p14909_p9 = scmp.lt.s32.totalorder %s14907_s15, %s14903_s8 }
  0xd3   :  { %p14910_p10 = por %p14909_p9, %p14908_p8 }
  0xd5   :  { %p14911_p11 = pnand %p14910_p10, %p14904_p7 }
  0xd7   :  { %14914 = shalt.err (!%p14911_p11)
}
  0xd8   :  { %292 = dma.hbm_to_vmem [thread:$0]  %s15550_s6, 16, %s290_s12, [#allocation10]  }
  0xd9   :  { %15179 = dma.done.wait [#allocation4], 16  }
  0xda   :  { %15180 = vsyncadd [#allocation4], 4294967280 }
  0xdb   :  { %15181 = dma.done.wait [#allocation7], 32  }
  0xdc   :  { %15182 = vsyncadd [#allocation7], 4294967264 }
  0xdd   :  { %15183 = dma.done.wait [#allocation10], 32  }
  0xde   :  { %15184 = vsyncadd [#allocation10], 4294967264  ;;  %v15268_v1 = vmov 0.0   ;;  %vm15269_vm0 = vmmov 0   ;;  %vm315_vm1 = vcmask 1041408   ;;  %vm311_vm2 = vcmask 15360  }
  0xdf   :  { %12500 = vmatprep.subr.mxu0 %v15268_v1  ;;  %12502 = vmatprep.mubr.msk.f32.mxu0 %vm15269_vm0, %v15268_v1  ;;  %v309_v2 = vld [vmem:[%s15297_s9] sm:$0x3]  ;;  %v391_v4 = vld [vmem:[%s15307_s17 + $0x8] sm:$0xff]  ;;  %vm540_vm3 = vcmask 1043456   ;;  %vm536_vm4 = vcmask 818176   ;;  %vm983_vm5 = vcmask 850944  }
  0xe0   :  { %771 = vmatprep.mubr.f32.mxu1 %v15268_v1  ;;  %v308_v3 = vld [vmem:[%s15292_s5] sm:$0x1]  ;;  %12501 = vmatpush3.msk.msra.mxu0 %vm315_vm1, %v309_v2  ;;  %v399_v5 = vld [vmem:[%s15307_s17 + $0x48] sm:$0xff]  ;;  %vm1314_vm6 = vcmask 261120   ;;  %s18555_s5 = sld [smem:[#allocation42_spill]]  ;;  %s18556_s9 = sld [smem:[#allocation44_spill]] }
  0xe1   :  { %v390_v6 = vld [vmem:[%s15307_s17] sm:$0xff]  ;;  %12503 = vmatmul.mubr.msk.f32.vlgmr.msra.gmra.mrb[0].mxu0 %vm311_vm2, %v308_v3  ;;  %v12614_v8 = vpack.c.bf16 %v399_v5, %v391_v4  ;;  %v395_v10 = vld [vmem:[%s15307_s17 + $0x28] sm:$0xff]  ;;  %s18568_s6 = sld [smem:[#allocation50_spill]]  ;;  %s18569_s27 = sld [smem:[#allocation47_spill]]  ;;  %vm8707_vm9 = vcmask 130048   ;;  %vm10310_vm11 = vcmask 1040384  }
  0xe2   :  { %v398_v7 = vld [vmem:[%s15307_s17 + $0x40] sm:$0xff]  ;;  %v403_v11 = vld [vmem:[%s15307_s17 + $0x68] sm:$0xff]  ;;  %629 = vmatprep.mubr.f32.mxu0 %v15268_v1  ;;  %s18570_s18 = sld [smem:[#allocation49_spill]]  ;;  %s18571_s20 = sld [smem:[#allocation56_spill]]  ;;  %vm10306_vm12 = vcmask 7168   ;;  %vm10798_vm13 = vcmask 1042432  }
  0xe3   :  { %v12616_v9 = vpack.c.bf16 %v398_v7, %v390_v6  ;;  %v394_v12 = vld [vmem:[%s15307_s17 + $0x20] sm:$0xff]  ;;  %v12662_v13 = vpack.c.bf16 %v403_v11, %v395_v10  ;;  %v407_v15 = vld [vmem:[%s15307_s17 + $0x88] sm:$0xff]  ;;  %12615 = vmatprep.subr.bf16.mxu0 %v12614_v8  ;;  %s18572_s30 = sld [smem:[#allocation54_spill]]  ;;  %s18573_s22 = sld [smem:[#allocation51_spill]]  ;;  %vm10384_vm14 = vcmask 262144   ;;  %vm10794_vm15 = vcmask 23552  }
  0xe4   :  { %v402_v14 = vld [vmem:[%s15307_s17 + $0x60] sm:$0xff]  ;;  %v415_v16 = vld [vmem:[%s15307_s17 + $0xc8] sm:$0xff]  ;;  %s18574_s26 = sld [smem:[#allocation53_spill]]  ;;  %s18575_s7 = sld [smem:[#allocation58_spill]] }
  0xe5   :  { %v12664_v17 = vpack.c.bf16 %v402_v14, %v394_v12  ;;  %v12618_v18 = vpack.c.bf16 %v415_v16, %v407_v15  ;;  %v406_v19 = vld [vmem:[%s15307_s17 + $0x80] sm:$0xff]  ;;  %v411_v21 = vld [vmem:[%s15307_s17 + $0xa8] sm:$0xff]  ;;  %12617 = vmatpush1.bf16.msra.mxu0 %v12616_v9  ;;  %12663 = vmatprep.subr.bf16.mxu1 %v12662_v13  ;;  %v393_v14 = vld [vmem:[%s15307_s17 + $0x18] sm:$0xff]  ;;  %s18576_s1 = sld [smem:[#allocation60_spill]]  ;;  %s18577_s2 = sld [smem:[#allocation55_spill]] }
  0xe6   :  { %v414_v20 = vld [vmem:[%s15307_s17 + $0xc0] sm:$0xff]  ;;  %v419_v23 = vld [vmem:[%s15307_s17 + $0xe8] sm:$0xff]  ;;  %v401_v15 = vld [vmem:[%s15307_s17 + $0x58] sm:$0xff]  ;;  %s18578_s19 = sld [smem:[#allocation57_spill]]  ;;  %s18579_s4 = sld [smem:[#allocation64_spill]] }
  0xe7   :  { %v12620_v22 = vpack.c.bf16 %v414_v20, %v406_v19  ;;  %v410_v24 = vld [vmem:[%s15307_s17 + $0xa0] sm:$0xff]  ;;  %12665 = vmatpush1.bf16.msra.mxu1 %v12664_v17  ;;  %12619 = vmatprep.subr.bf16.mxu0 %v12618_v18  ;;  %v12666_v26 = vpack.c.bf16 %v419_v23, %v411_v21  ;;  %v423_v28 = vld [vmem:[%s15307_s17 + $0x108] sm:$0xff]  ;;  %v12638_v18 = vpack.c.bf16 %v401_v15, %v393_v14  ;;  %v481_v15 = vld [vmem:[%s15307_s17 + $0x2d8] sm:$0xff]  ;;  %s18580_s0 = sld [smem:[#allocation62_spill]]  ;;  %s18581_s10 = sld [smem:[#allocation59_spill]] }
  0xe8   :  { %v418_v25 = vld [vmem:[%s15307_s17 + $0xe0] sm:$0xff]  ;;  %v431_v29 = vld [vmem:[%s15307_s17 + $0x148] sm:$0xff]  ;;  %s18582_s12 = sld [smem:[#allocation61_spill]]  ;;  %s18583_s11 = sld [smem:[#allocation68_spill]] }
  0xe9   :  { %v12668_v27 = vpack.c.bf16 %v418_v25, %v410_v24  ;;  %v422_v30 = vld [vmem:[%s15307_s17 + $0x100] sm:$0xff]  ;;  %v12622_v31 = vpack.c.bf16 %v431_v29, %v423_v28  ;;  %v427_v33 = vld [vmem:[%s15307_s17 + $0x128] sm:$0xff]  ;;  %12667 = vmatprep.subr.bf16.mxu1 %v12666_v26  ;;  %12621 = vmatpush1.bf16.msra.mxu0 %v12620_v22  ;;  %v392_v24 = vld [vmem:[%s15307_s17 + $0x10] sm:$0xff]  ;;  %s18584_s8 = sld [smem:[#allocation66_spill]]  ;;  %s18585_s15 = sld [smem:[#allocation63_spill]] }
  0xea   :  { %v430_v32 = vld [vmem:[%s15307_s17 + $0x140] sm:$0xff]  ;;  %v435_v34 = vld [vmem:[%s15307_s17 + $0x168] sm:$0xff]  ;;  %v400_v25 = vld [vmem:[%s15307_s17 + $0x50] sm:$0xff] }
  0xeb   :  { %v12670_v35 = vpack.c.bf16 %v435_v34, %v427_v33  ;;  %v426_v36 = vld [vmem:[%s15307_s17 + $0x120] sm:$0xff]  ;;  %v439_v38 = vld [vmem:[%s15307_s17 + $0x188] sm:$0xff]  ;;  %v12624_v39 = vpack.c.bf16 %v430_v32, %v422_v30  ;;  %12669 = vmatpush1.bf16.msra.mxu1 %v12668_v27  ;;  %12623 = vmatprep.subr.bf16.mxu0 %v12622_v31  ;;  %v409_v26 = vld [vmem:[%s15307_s17 + $0x98] sm:$0xff] }
  0xec   :  { %v434_v37 = vld [vmem:[%s15307_s17 + $0x160] sm:$0xff]  ;;  %v447_v40 = vld [vmem:[%s15307_s17 + $0x1c8] sm:$0xff]  ;;  %v417_v28 = vld [vmem:[%s15307_s17 + $0xd8] sm:$0xff] }
  0xed   :  { %v438_v41 = vld [vmem:[%s15307_s17 + $0x180] sm:$0xff]  ;;  %v12672_v43 = vpack.c.bf16 %v434_v37, %v426_v36  ;;  %v12626_v44 = vpack.c.bf16 %v447_v40, %v439_v38  ;;  %v443_v45 = vld [vmem:[%s15307_s17 + $0x1a8] sm:$0xff]  ;;  %12671 = vmatprep.subr.bf16.mxu1 %v12670_v35  ;;  %12625 = vmatpush1.bf16.msra.mxu0 %v12624_v39  ;;  %v875_v33 = vld [vmem:[%s15317_s25 + $0x90] sm:$0xff]  ;;  %v12640_v35 = vpack.c.bf16 %v400_v25, %v392_v24 }
  0xee   :  { %v446_v42 = vld [vmem:[%s15307_s17 + $0x1c0] sm:$0xff]  ;;  %v451_v46 = vld [vmem:[%s15307_s17 + $0x1e8] sm:$0xff]  ;;  %v876_v34 = vld [vmem:[%s15317_s25 + $0x98] sm:$0xff]  ;;  %v12642_v37 = vpack.c.bf16 %v417_v28, %v409_v26 }
  0xef   :  { %v442_v47 = vld [vmem:[%s15307_s17 + $0x1a0] sm:$0xff]  ;;  %v12674_v48 = vpack.c.bf16 %v451_v46, %v443_v45  ;;  %v455_v50 = vld [vmem:[%s15307_s17 + $0x208] sm:$0xff]  ;;  %v12628_v53 = vpack.c.bf16 %v446_v42, %v438_v41  ;;  %12673 = vmatpush1.bf16.msra.mxu1 %v12672_v43  ;;  %12627 = vmatprep.subr.bf16.mxu0 %v12626_v44  ;;  %v408_v38 = vld [vmem:[%s15307_s17 + $0x90] sm:$0xff]  ;;  %v12714_v43 = vpack.c.bf16 %v876_v34, %v875_v33 }
  0xf0   :  { %v450_v49 = vld [vmem:[%s15307_s17 + $0x1e0] sm:$0xff]  ;;  %v463_v51 = vld [vmem:[%s15307_s17 + $0x248] sm:$0xff]  ;;  %v416_v39 = vld [vmem:[%s15307_s17 + $0xd0] sm:$0xff] }
  0xf1   :  { %v459_v52 = vld [vmem:[%s15307_s17 + $0x228] sm:$0xff]  ;;  %v12676_v55 = vpack.c.bf16 %v450_v49, %v442_v47  ;;  %v12630_v56 = vpack.c.bf16 %v463_v51, %v455_v50  ;;  %v454_v57 = vld [vmem:[%s15307_s17 + $0x200] sm:$0xff]  ;;  %12675 = vmatprep.subr.bf16.mxu1 %v12674_v48  ;;  %12629 = vmatpush1.bf16.msra.mxu0 %v12628_v53  ;;  %v425_v40 = vld [vmem:[%s15307_s17 + $0x118] sm:$0xff]  ;;  %v12644_v48 = vpack.c.bf16 %v416_v39, %v408_v38 }
  0xf2   :  { %v467_v54 = vld [vmem:[%s15307_s17 + $0x268] sm:$0xff]  ;;  %v462_v58 = vld [vmem:[%s15307_s17 + $0x240] sm:$0xff]  ;;  %v433_v42 = vld [vmem:[%s15307_s17 + $0x158] sm:$0xff] }
  0xf3   :  { %v458_v59 = vld [vmem:[%s15307_s17 + $0x220] sm:$0xff]  ;;  %v12678_v60 = vpack.c.bf16 %v467_v54, %v459_v52  ;;  %v471_v62 = vld [vmem:[%s15307_s17 + $0x288] sm:$0xff]  ;;  %v12632_v3 = vpack.c.bf16 %v462_v58, %v454_v57  ;;  %12677 = vmatpush1.bf16.msra.mxu1 %v12676_v55  ;;  %12631 = vmatprep.subr.bf16.mxu0 %v12630_v56  ;;  %v859_v44 = vld [vmem:[%s15317_s25 + $0x10] sm:$0xff]  ;;  %v12646_v49 = vpack.c.bf16 %v433_v42, %v425_v40 }
  0xf4   :  { %v466_v61 = vld [vmem:[%s15307_s17 + $0x260] sm:$0xff]  ;;  %v479_v63 = vld [vmem:[%s15307_s17 + $0x2c8] sm:$0xff]  ;;  %v860_v45 = vld [vmem:[%s15317_s25 + $0x18] sm:$0xff] }
  0xf5   :  { %v475_v0 = vld [vmem:[%s15307_s17 + $0x2a8] sm:$0xff]  ;;  %v12680_v4 = vpack.c.bf16 %v466_v61, %v458_v59  ;;  %v12634_v5 = vpack.c.bf16 %v479_v63, %v471_v62  ;;  %v470_v6 = vld [vmem:[%s15307_s17 + $0x280] sm:$0xff]  ;;  %12679 = vmatprep.subr.bf16.mxu1 %v12678_v60  ;;  %12633 = vmatpush1.bf16.msra.mxu0 %v12632_v3  ;;  %v424_v50 = vld [vmem:[%s15307_s17 + $0x110] sm:$0xff]  ;;  %v12716_v53 = vpack.c.bf16 %v860_v45, %v859_v44 }
  0xf6   :  { %v483_v2 = vld [vmem:[%s15307_s17 + $0x2e8] sm:$0xff]  ;;  %v478_v7 = vld [vmem:[%s15307_s17 + $0x2c0] sm:$0xff]  ;;  %v432_v51 = vld [vmem:[%s15307_s17 + $0x150] sm:$0xff] }
  0xf7   :  { %v12682_v8 = vpack.c.bf16 %v483_v2, %v475_v0  ;;  %v12636_v9 = vpack.c.bf16 %v478_v7, %v470_v6  ;;  %12681 = vmatpush1.bf16.msra.mxu1 %v12680_v4  ;;  %12635 = vmatprep.subr.bf16.mxu0 %v12634_v5  ;;  %v474_v10 = vld [vmem:[%s15307_s17 + $0x2a0] sm:$0xff]  ;;  %v487_v13 = vld [vmem:[%s15307_s17 + $0x308] sm:$0xf]  ;;  %v441_v52 = vld [vmem:[%s15307_s17 + $0x198] sm:$0xff]  ;;  %v12648_v60 = vpack.c.bf16 %v432_v51, %v424_v50 }
  0xf8   :  { %v482_v11 = vld [vmem:[%s15307_s17 + $0x2e0] sm:$0xff]  ;;  %v491_v17 = vld [vmem:[%s15307_s17 + $0x328] sm:$0xf]  ;;  %v449_v54 = vld [vmem:[%s15307_s17 + $0x1d8] sm:$0xff] }
  0xf9   :  { %12683 = vmatprep.subr.bf16.mxu1 %v12682_v8  ;;  %12637 = vmatpush1.bf16.msra.mxu0 %v12636_v9  ;;  %v12684_v12 = vpack.c.bf16 %v482_v11, %v474_v10  ;;  %v486_v16 = vld [vmem:[%s15307_s17 + $0x300] sm:$0xf]  ;;  %v874_v21 = vld [vmem:[%s15317_s25 + $0x88] sm:$0xff]  ;;  %v879_v58 = vld [vmem:[%s15317_s25 + $0xb0] sm:$0xff]  ;;  %v12650_v61 = vpack.c.bf16 %v449_v54, %v441_v52 }
  0xfa   :  { %11106 = vmatprep.subr.msk.mxu0 %vm540_vm3, %v487_v13  ;;  %v490_v19 = vld [vmem:[%s15307_s17 + $0x320] sm:$0xf]  ;;  %v858_v30 = vld [vmem:[%s15317_s25 + $0x8] sm:$0xff]  ;;  %v880_v59 = vld [vmem:[%s15317_s25 + $0xb8] sm:$0xff] }
  0xfb   :  { %12685 = vmatpush1.bf16.msra.mxu1 %v12684_v12  ;;  %v873_v20 = vld [vmem:[%s15317_s25 + $0x80] sm:$0xff]  ;;  %v878_v47 = vld [vmem:[%s15317_s25 + $0xa8] sm:$0xff]  ;;  %v440_v62 = vld [vmem:[%s15307_s17 + $0x190] sm:$0xff]  ;;  %v12722_v4 = vpack.c.bf16 %v880_v59, %v879_v58 }
  0xfc   :  { %11112 = vmatprep.subr.msk.mxu1 %vm540_vm3, %v491_v17  ;;  %v12710_v22 = vpack.c.bf16 %v874_v21, %v873_v20  ;;  %v310_v23 = vld [vmem:[%s15302_s13] sm:$0x1]  ;;  %v862_v57 = vld [vmem:[%s15317_s25 + $0x28] sm:$0xff]  ;;  %v448_v63 = vld [vmem:[%s15307_s17 + $0x1d0] sm:$0xff]  ;;  %s18557_s13 = sld [smem:[#allocation40_spill]] }
  0xfd   :  { %11107 = vmatpush1.msk.msra.mxu0 %vm540_vm3, %v486_v16  ;;  %v857_v29 = vld [vmem:[%s15317_s25] sm:$0xff]  ;;  %v457_v0 = vld [vmem:[%s15307_s17 + $0x218] sm:$0xff]  ;;  %v863_v5 = vld [vmem:[%s15317_s25 + $0x30] sm:$0xff]  ;;  %v12652_v9 = vpack.c.bf16 %v448_v63, %v440_v62 }
  0xfe   :  { %12639 = vmatprep.subr.bf16.mxu0 %v12638_v18  ;;  %v12712_v41 = vpack.c.bf16 %v858_v30, %v857_v29  ;;  %v877_v46 = vld [vmem:[%s15317_s25 + $0xa0] sm:$0xff]  ;;  %v465_v3 = vld [vmem:[%s15307_s17 + $0x258] sm:$0xff]  ;;  %v882_v8 = vld [vmem:[%s15317_s25 + $0xc8] sm:$0xff] }
  0xff   :  { %11113 = vmatpush1.msk.msra.mxu1 %vm540_vm3, %v490_v19  ;;  %v12718_v55 = vpack.c.bf16 %v878_v47, %v877_v46  ;;  %v861_v56 = vld [vmem:[%s15317_s25 + $0x20] sm:$0xff]  ;;  %v864_v6 = vld [vmem:[%s15317_s25 + $0x38] sm:$0xff]  ;;  %v12654_v10 = vpack.c.bf16 %v465_v3, %v457_v0  ;;  %v456_v11 = vld [vmem:[%s15307_s17 + $0x210] sm:$0xff] }
 0x100   :  { %12711 = vmatprep.subr.bf16.mxu1 %v12710_v22  ;;  %v12720_v2 = vpack.c.bf16 %v862_v57, %v861_v56  ;;  %v881_v7 = vld [vmem:[%s15317_s25 + $0xc0] sm:$0xff]  ;;  %v464_v12 = vld [vmem:[%s15307_s17 + $0x250] sm:$0xff]  ;;  %v473_v13 = vld [vmem:[%s15307_s17 + $0x298] sm:$0xff]  ;;  %v12724_v14 = vpack.c.bf16 %v864_v6, %v863_v5 }
 0x101   :  { %v12726_v16 = vpack.c.bf16 %v882_v8, %v881_v7  ;;  %v865_v17 = vld [vmem:[%s15317_s25 + $0x40] sm:$0xff]  ;;  %v866_v18 = vld [vmem:[%s15317_s25 + $0x48] sm:$0xff]  ;;  %v883_v19 = vld [vmem:[%s15317_s25 + $0xd0] sm:$0xff]  ;;  %v12656_v21 = vpack.c.bf16 %v464_v12, %v456_v11  ;;  %v12658_v22 = vpack.c.bf16 %v481_v15, %v473_v13 }
 0x102   :  { %v884_v20 = vld [vmem:[%s15317_s25 + $0xd8] sm:$0xff]  ;;  %v480_v24 = vld [vmem:[%s15307_s17 + $0x2d0] sm:$0xff]  ;;  %v12728_v25 = vpack.c.bf16 %v866_v18, %v865_v17  ;;  %v885_v29 = vld [vmem:[%s15317_s25 + $0xe0] sm:$0xff] }
 0x103   :  { %v12730_v26 = vpack.c.bf16 %v884_v20, %v883_v19  ;;  %v868_v28 = vld [vmem:[%s15317_s25 + $0x58] sm:$0xff]  ;;  %v886_v30 = vld [vmem:[%s15317_s25 + $0xe8] sm:$0xff]  ;;  %v396_v38 = vld [vmem:[%s15307_s17 + $0x30] sm:$0xff] }
 0x104   :  { %v489_v33 = vld [vmem:[%s15307_s17 + $0x318] sm:$0xf]  ;;  %v404_v39 = vld [vmem:[%s15307_s17 + $0x70] sm:$0xff]  ;;  %v869_v42 = vld [vmem:[%s15317_s25 + $0x60] sm:$0xff] }
 0x105   :  { %v397_v34 = vld [vmem:[%s15307_s17 + $0x38] sm:$0xff]  ;;  %v488_v44 = vld [vmem:[%s15307_s17 + $0x310] sm:$0xf]  ;;  %v12688_v46 = vpack.c.bf16 %v404_v39, %v396_v38  ;;  %v906_v15 = vld [vmem:[%s15317_s25 + $0x188] sm:$0xff] }
 0x106   :  { %v413_v40 = vld [vmem:[%s15307_s17 + $0xb8] sm:$0xff]  ;;  %v436_v56 = vld [vmem:[%s15307_s17 + $0x170] sm:$0xff]  ;;  %v889_v18 = vld [vmem:[%s15317_s25 + $0x100] sm:$0xff] }
 0x107   :  { %v429_v51 = vld [vmem:[%s15307_s17 + $0x138] sm:$0xff]  ;;  %v452_v62 = vld [vmem:[%s15307_s17 + $0x1f0] sm:$0xff]  ;;  %v890_v19 = vld [vmem:[%s15317_s25 + $0x108] sm:$0xff] }
 0x108   :  { %v437_v52 = vld [vmem:[%s15307_s17 + $0x178] sm:$0xff]  ;;  %v468_v5 = vld [vmem:[%s15307_s17 + $0x270] sm:$0xff]  ;;  %v12744_v20 = vpack.c.bf16 %v890_v19, %v889_v18  ;;  %v893_v39 = vld [vmem:[%s15317_s25 + $0x120] sm:$0xff] }
 0x109   :  { %v12694_v54 = vpack.c.bf16 %v437_v52, %v429_v51  ;;  %v445_v57 = vld [vmem:[%s15307_s17 + $0x1b8] sm:$0xff]  ;;  %v484_v11 = vld [vmem:[%s15307_s17 + $0x2f0] sm:$0xff]  ;;  %v897_v51 = vld [vmem:[%s15317_s25 + $0x140] sm:$0xff] }
 0x10a   :  { %v453_v58 = vld [vmem:[%s15307_s17 + $0x1f8] sm:$0xff]  ;;  %v898_v52 = vld [vmem:[%s15317_s25 + $0x148] sm:$0xff] }
 0x10b   :  { %v461_v63 = vld [vmem:[%s15307_s17 + $0x238] sm:$0xff] }
 0x10c   :  { %v469_v0 = vld [vmem:[%s15307_s17 + $0x278] sm:$0xff] }
 0x10d   :  { %v12702_v3 = vpack.c.bf16 %v469_v0, %v461_v63  ;;  %v477_v6 = vld [vmem:[%s15307_s17 + $0x2b8] sm:$0xff]  ;;  %v901_v63 = vld [vmem:[%s15317_s25 + $0x160] sm:$0xff]  ;;  %v902_v0 = vld [vmem:[%s15317_s25 + $0x168] sm:$0xff] }
 0x10e   :  { %v485_v7 = vld [vmem:[%s15307_s17 + $0x2f8] sm:$0xff] }
 0x10f   :  { %v493_v13 = vld [vmem:[%s15307_s17 + $0x338] sm:$0xf] }
 0x1b4   :  { %v385_v27 = vpop.f32.mrb[0].mxu0 }
 0x1b5   :  { %v386_v31 = vadd.f32 %v385_v27, %v310_v23  ;;  %v12504_v32 = vpop.f32.mrb[1].mxu0  ;;  %v472_v23 = vld [vmem:[%s15307_s17 + $0x290] sm:$0xff] }
 0x1b6   :  { %v867_v27 = vld [vmem:[%s15317_s25 + $0x50] sm:$0xff] }
 0x1b7   :  { %v15708_v36 = vmax.f32 %v386_v31, 0.0  ;;  %v12660_v31 = vpack.c.bf16 %v480_v24, %v472_v23  ;;  %v12732_v32 = vpack.c.bf16 %v868_v28, %v867_v27  ;;  %v871_v24 = vld [vmem:[%s15317_s25 + $0x70] sm:$0xff]  ;;  %v908_v28 = vld [vmem:[%s15317_s25 + $0x198] sm:$0xff] }
 0x1b9   :  { %11108 = vmatmul.mubr.msk.f32.vlgmr.msra.gmra.mrb[2].mxu0 %vm536_vm4, %v15708_v36  ;;  %11114 = vmatmul.mubr.msk.f32.vlgmr.msra.gmra.mrb[0].mxu1 %vm536_vm4, %v15708_v36 }
 0x1ba   :  { %12641 = vmatpush1.bf16.msra.mxu0 %v12640_v35  ;;  %700 = vmatprep.mubr.f32.mxu0 %v15268_v1  ;;  %v405_v35 = vld [vmem:[%s15307_s17 + $0x78] sm:$0xff] }
 0x1bb   :  { %12643 = vmatprep.subr.bf16.mxu0 %v12642_v37  ;;  %12713 = vmatpush3.bf16.msra.mxu1 %v12712_v41  ;;  %v12734_v37 = vpack.c.bf16 %v886_v30, %v885_v29  ;;  %v421_v41 = vld [vmem:[%s15307_s17 + $0xf8] sm:$0xff]  ;;  %v12686_v45 = vpack.c.bf16 %v405_v35, %v397_v34  ;;  %v909_v35 = vld [vmem:[%s15317_s25 + $0x1a0] sm:$0xff] }
 0x1bc   :  { %12715 = vmatprep.subr.bf16.mxu1 %v12714_v43  ;;  %v870_v43 = vld [vmem:[%s15317_s25 + $0x68] sm:$0xff]  ;;  %v12690_v47 = vpack.c.bf16 %v421_v41, %v413_v40  ;;  %v892_v29 = vld [vmem:[%s15317_s25 + $0x118] sm:$0xff] }
 0x1bd   :  { %v12736_v50 = vpack.c.bf16 %v870_v43, %v869_v42  ;;  %v894_v40 = vld [vmem:[%s15317_s25 + $0x128] sm:$0xff]  ;;  %v911_v42 = vld [vmem:[%s15317_s25 + $0x1b0] sm:$0xff]  ;;  %v912_v43 = vld [vmem:[%s15317_s25 + $0x1b8] sm:$0xff] }
 0x1be   :  { %12645 = vmatpush1.bf16.msra.mxu0 %v12644_v48  ;;  %v412_v48 = vld [vmem:[%s15307_s17 + $0xb0] sm:$0xff]  ;;  %v12752_v41 = vpack.c.bf16 %v894_v40, %v893_v39 }
 0x1bf   :  { %12647 = vmatprep.subr.bf16.mxu0 %v12646_v49  ;;  %12717 = vmatpush3.bf16.msra.mxu1 %v12716_v53  ;;  %v420_v49 = vld [vmem:[%s15307_s17 + $0xf0] sm:$0xff] }
 0x1c0   :  { %12719 = vmatprep.subr.bf16.mxu1 %v12718_v55  ;;  %v12692_v53 = vpack.c.bf16 %v420_v49, %v412_v48  ;;  %v428_v55 = vld [vmem:[%s15307_s17 + $0x130] sm:$0xff]  ;;  %v913_v48 = vld [vmem:[%s15317_s25 + $0x1c0] sm:$0xff]  ;;  %v914_v49 = vld [vmem:[%s15317_s25 + $0x1c8] sm:$0xff] }
 0x1c1   :  { %v12696_v59 = vpack.c.bf16 %v436_v56, %v428_v55  ;;  %v916_v55 = vld [vmem:[%s15317_s25 + $0x1d8] sm:$0xff] }
 0x1c2   :  { %12649 = vmatpush1.bf16.msra.mxu0 %v12648_v60  ;;  %v12698_v60 = vpack.c.bf16 %v453_v58, %v445_v57  ;;  %v899_v57 = vld [vmem:[%s15317_s25 + $0x150] sm:$0xff]  ;;  %v900_v58 = vld [vmem:[%s15317_s25 + $0x158] sm:$0xff] }
 0x1c3   :  { %12651 = vmatprep.subr.bf16.mxu0 %v12650_v61  ;;  %12721 = vmatpush3.bf16.msra.mxu1 %v12720_v2  ;;  %v444_v61 = vld [vmem:[%s15307_s17 + $0x1b0] sm:$0xff] }
 0x1c4   :  { %12723 = vmatprep.subr.bf16.mxu1 %v12722_v4  ;;  %v12700_v2 = vpack.c.bf16 %v452_v62, %v444_v61  ;;  %v460_v4 = vld [vmem:[%s15307_s17 + $0x230] sm:$0xff]  ;;  %v918_v61 = vld [vmem:[%s15317_s25 + $0x1e8] sm:$0xff] }
 0x1c5   :  { %v12704_v8 = vpack.c.bf16 %v468_v5, %v460_v4  ;;  %v920_v4 = vld [vmem:[%s15317_s25 + $0x1f8] sm:$0xff] }
 0x1c6   :  { %12653 = vmatpush1.bf16.msra.mxu0 %v12652_v9  ;;  %v12706_v9 = vpack.c.bf16 %v485_v7, %v477_v6  ;;  %v903_v6 = vld [vmem:[%s15317_s25 + $0x170] sm:$0xff]  ;;  %v904_v7 = vld [vmem:[%s15317_s25 + $0x178] sm:$0xff] }
 0x1c7   :  { %12655 = vmatprep.subr.bf16.mxu0 %v12654_v10  ;;  %12725 = vmatpush3.bf16.msra.mxu1 %v12724_v14  ;;  %v476_v10 = vld [vmem:[%s15307_s17 + $0x2b0] sm:$0xff]  ;;  %v905_v14 = vld [vmem:[%s15317_s25 + $0x180] sm:$0xff] }
 0x1c8   :  { %12727 = vmatprep.subr.bf16.mxu1 %v12726_v16  ;;  %v12708_v12 = vpack.c.bf16 %v484_v11, %v476_v10  ;;  %v492_v16 = vld [vmem:[%s15307_s17 + $0x330] sm:$0xf]  ;;  %v12742_v17 = vpack.c.bf16 %v906_v15, %v905_v14  ;;  %v496_v10 = vlaneseq  ;;  %s18558_s17 = sld [smem:[#allocation41_spill]] }
 0x1ca   :  { %12657 = vmatpush1.bf16.msra.mxu0 %v12656_v21  ;;  %v887_v21 = vld [vmem:[%s15317_s25 + $0xf0] sm:$0xff]  ;;  %v15832_v11 = vshrl.u32 %v496_v10, 7  ;;  %vm16197_vm7 = vcmp.lt.s32.totalorder %v496_v10, 544  ;;  %vm16417_vm8 = vcmp.lt.s32.totalorder %v496_v10, 32  ;;  %vm8971_vm10 = vcmp.lt.s32.totalorder %v496_v10, 656 }
 0x1cb   :  { %12659 = vmatprep.subr.bf16.mxu0 %v12658_v22  ;;  %12729 = vmatpush3.bf16.msra.mxu1 %v12728_v25  ;;  %v888_v22 = vld [vmem:[%s15317_s25 + $0xf8] sm:$0xff] }
 0x1cc   :  { %12731 = vmatprep.subr.bf16.mxu1 %v12730_v26  ;;  %v12738_v23 = vpack.c.bf16 %v888_v22, %v887_v21  ;;  %v872_v25 = vld [vmem:[%s15317_s25 + $0x78] sm:$0xff]  ;;  %v907_v26 = vld [vmem:[%s15317_s25 + $0x190] sm:$0xff]  ;;  %v15841_v14 = vsub.s32 1, %v15832_v11  ;;  %v15844_v15 = vsub.s32 5, %v15832_v11 }
 0x1cd   :  { %v12740_v27 = vpack.c.bf16 %v872_v25, %v871_v24  ;;  %v12746_v30 = vpack.c.bf16 %v908_v28, %v907_v26  ;;  %v921_v24 = vld [vmem:[%s15317_s25 + $0x200] sm:$0xff]  ;;  %v922_v25 = vld [vmem:[%s15317_s25 + $0x208] sm:$0xff]  ;;  %v939_v28 = vld [vmem:[%s15317_s25 + $0x290] sm:$0xff] }
 0x1ce   :  { %12661 = vmatpush1.bf16.msra.mxu0 %v12660_v31 }
 0x1cf   :  { %11109 = vmatprep.subr.msk.mxu0 %vm540_vm3, %v489_v33  ;;  %12733 = vmatpush3.bf16.msra.mxu1 %v12732_v32  ;;  %v937_v32 = vld [vmem:[%s15317_s25 + $0x280] sm:$0xff]  ;;  %v938_v33 = vld [vmem:[%s15317_s25 + $0x288] sm:$0xff] }
 0x1d0   :  { %12735 = vmatprep.subr.bf16.mxu1 %v12734_v37  ;;  %v12774_v34 = vpack.c.bf16 %v938_v33, %v937_v32  ;;  %v910_v37 = vld [vmem:[%s15317_s25 + $0x1a8] sm:$0xff]  ;;  %v923_v33 = vld [vmem:[%s15317_s25 + $0x210] sm:$0xff] }
 0x1d1   :  { %v12750_v38 = vpack.c.bf16 %v910_v37, %v909_v35  ;;  %v941_v37 = vld [vmem:[%s15317_s25 + $0x2a0] sm:$0xff] }
 0x1d2   :  { %11110 = vmatpush1.msk.msra.mxu0 %vm540_vm3, %v488_v44  ;;  %v12754_v44 = vpack.c.bf16 %v912_v43, %v911_v42  ;;  %v926_v42 = vld [vmem:[%s15317_s25 + $0x228] sm:$0xff]  ;;  %v943_v43 = vld [vmem:[%s15317_s25 + $0x2b0] sm:$0xff] }
 0x1d3   :  { %11111 = vmatmul.mubr.msk.f32.vlgmr.msra.gmra.mrb[4].mxu0 %vm536_vm4, %v15708_v36  ;;  %12687 = vmatprep.subr.bf16.mxu0 %v12686_v45  ;;  %v895_v45 = vld [vmem:[%s15317_s25 + $0x130] sm:$0xff] }
 0x1d4   :  { %12689 = vmatpush1.bf16.msra.mxu0 %v12688_v46  ;;  %842 = vmatprep.mubr.f32.mxu0 %v15268_v1  ;;  %v896_v46 = vld [vmem:[%s15317_s25 + $0x138] sm:$0xff] }
 0x1d5   :  { %12691 = vmatprep.subr.bf16.mxu0 %v12690_v47  ;;  %12737 = vmatpush3.bf16.msra.mxu1 %v12736_v50  ;;  %v12756_v47 = vpack.c.bf16 %v896_v46, %v895_v45  ;;  %v12758_v50 = vpack.c.bf16 %v914_v49, %v913_v48  ;;  %v928_v48 = vld [vmem:[%s15317_s25 + $0x238] sm:$0xff]  ;;  %v945_v49 = vld [vmem:[%s15317_s25 + $0x2c0] sm:$0xff] }
 0x1d6   :  { %12739 = vmatprep.subr.bf16.mxu1 %v12738_v23 }
 0x1d8   :  { %12693 = vmatpush1.bf16.msra.mxu0 %v12692_v53  ;;  %v12760_v53 = vpack.c.bf16 %v898_v52, %v897_v51 }
 0x1d9   :  { %12695 = vmatprep.subr.bf16.mxu0 %v12694_v54  ;;  %12741 = vmatpush3.bf16.msra.mxu1 %v12740_v27  ;;  %v915_v54 = vld [vmem:[%s15317_s25 + $0x1d0] sm:$0xff] }
 0x1da   :  { %12775 = vmatprep.subr.bf16.mxu1 %v12774_v34  ;;  %v12762_v56 = vpack.c.bf16 %v916_v55, %v915_v54  ;;  %v924_v34 = vld [vmem:[%s15317_s25 + $0x218] sm:$0xff]  ;;  %v930_v54 = vld [vmem:[%s15317_s25 + $0x248] sm:$0xff]  ;;  %v947_v55 = vld [vmem:[%s15317_s25 + $0x2d0] sm:$0xff] }
 0x1db   :  { %v12780_v39 = vpack.c.bf16 %v924_v34, %v923_v33  ;;  %v955_v34 = vld [vmem:[%s15317_s25 + $0x310] sm:$0xff] }
 0x1dc   :  { %12697 = vmatpush1.bf16.msra.mxu0 %v12696_v59  ;;  %v12764_v59 = vpack.c.bf16 %v900_v58, %v899_v57  ;;  %v15884_v57 = vsub.s32 2, %v15832_v11 }
 0x1dd   :  { %12699 = vmatprep.subr.bf16.mxu0 %v12698_v60  ;;  %v917_v60 = vld [vmem:[%s15317_s25 + $0x1e0] sm:$0xff] }
 0x1de   :  { %v12766_v62 = vpack.c.bf16 %v918_v61, %v917_v60  ;;  %v931_v61 = vld [vmem:[%s15317_s25 + $0x250] sm:$0xff] }
 0x1e0   :  { %12701 = vmatpush1.bf16.msra.mxu0 %v12700_v2  ;;  %v12768_v2 = vpack.c.bf16 %v902_v0, %v901_v63  ;;  %v949_v63 = vld [vmem:[%s15317_s25 + $0x2e0] sm:$0xff]  ;;  %v950_v0 = vld [vmem:[%s15317_s25 + $0x2e8] sm:$0xff] }
 0x1e1   :  { %12703 = vmatprep.subr.bf16.mxu0 %v12702_v3  ;;  %v919_v3 = vld [vmem:[%s15317_s25 + $0x1f0] sm:$0xff] }
 0x1e2   :  { %v12770_v5 = vpack.c.bf16 %v920_v4, %v919_v3 }
 0x1e4   :  { %12705 = vmatpush1.bf16.msra.mxu0 %v12704_v8  ;;  %v12772_v8 = vpack.c.bf16 %v904_v7, %v903_v6  ;;  %v12798_v6 = vpack.c.bf16 %v950_v0, %v949_v63  ;;  %v933_v7 = vld [vmem:[%s15317_s25 + $0x260] sm:$0xff]  ;;  %v967_v63 = vld [vmem:[%s15317_s25 + $0x370] sm:$0xff]  ;;  %v968_v0 = vld [vmem:[%s15317_s25 + $0x378] sm:$0xff] }
 0x1e5   :  { %12707 = vmatprep.subr.bf16.mxu0 %v12706_v9  ;;  %v15270_v9 = vmov 0.0|0.0  }
 0x1e8   :  { %12709 = vmatpush1.bf16.msra.mxu0 %v12708_v12  ;;  %v15835_v12 = vsub.s32 0, %v15832_v11 }
 0x1e9   :  { %11115 = vmatprep.subr.msk.mxu0 %vm540_vm3, %v493_v13  ;;  %v15838_v13 = vld [vmem:[%s15312_s21] sm:$0xff]  ;;  %s18561_s21 = sld [smem:[#allocation46_spill]] }
 0x1ea   :  { %v519_v18 = vrot.slane %v15838_v13, %v15844_v15 }
 0x1ec   :  { %11116 = vmatpush1.msk.msra.mxu0 %vm540_vm3, %v492_v16  ;;  %v499_v16 = vrot.slane %v15838_v13, %v15835_v12 }
 0x1ed   :  { %11117 = vmatmul.mubr.msk.f32.vlgmr.msra.gmra.mrb[6].mxu0 %vm536_vm4, %v15708_v36  ;;  %12743 = vmatprep.subr.bf16.mxu0 %v12742_v17  ;;  %v891_v36 = vld [vmem:[%s15317_s25 + $0x110] sm:$0xff]  ;;  %v503_v17 = vrot.slane %v15838_v13, %v15841_v14 }
 0x1ee   :  { %12745 = vmatpush3.bf16.msra.mxu0 %v12744_v20  ;;  %v12748_v31 = vpack.c.bf16 %v892_v29, %v891_v36  ;;  %v940_v36 = vld [vmem:[%s15317_s25 + $0x298] sm:$0xff] }
 0x1ef   :  { %12747 = vmatprep.subr.bf16.mxu0 %v12746_v30  ;;  %v12776_v30 = vpack.c.bf16 %v922_v25, %v921_v24  ;;  %v12778_v32 = vpack.c.bf16 %v940_v36, %v939_v28  ;;  %v935_v28 = vld [vmem:[%s15317_s25 + $0x270] sm:$0xff]  ;;  %v936_v36 = vld [vmem:[%s15317_s25 + $0x278] sm:$0xff] }
 0x1f2   :  { %12749 = vmatpush3.bf16.msra.mxu0 %v12748_v31 }
 0x1f3   :  { %12751 = vmatprep.subr.bf16.mxu0 %v12750_v38  ;;  %v942_v38 = vld [vmem:[%s15317_s25 + $0x2a8] sm:$0xff] }
 0x1f4   :  { %v12782_v40 = vpack.c.bf16 %v942_v38, %v941_v37  ;;  %v956_v37 = vld [vmem:[%s15317_s25 + $0x318] sm:$0xff]  ;;  %v12804_v38 = vpack.c.bf16 %v936_v36, %v935_v28  ;;  %v979_v36 = vld [vmem:[%s15317_s25 + $0x3d0] sm:$0xff] }
 0x1f6   :  { %12753 = vmatpush3.bf16.msra.mxu0 %v12752_v41  ;;  %v925_v41 = vld [vmem:[%s15317_s25 + $0x220] sm:$0xff] }
 0x1f7   :  { %12755 = vmatprep.subr.bf16.mxu0 %v12754_v44  ;;  %v944_v44 = vld [vmem:[%s15317_s25 + $0x2b8] sm:$0xff]  ;;  %v12784_v45 = vpack.c.bf16 %v926_v42, %v925_v41  ;;  %v957_v41 = vld [vmem:[%s15317_s25 + $0x320] sm:$0xff]  ;;  %v958_v42 = vld [vmem:[%s15317_s25 + $0x328] sm:$0xff] }
 0x1f8   :  { %v12786_v46 = vpack.c.bf16 %v944_v44, %v943_v43  ;;  %v12813_v44 = vpack.c.bf16 %v958_v42, %v957_v41  ;;  %v1612_v41 = vld [vmem:[%s15337_s14 + $0x100] sm:$0xff]  ;;  %v1613_v42 = vld [vmem:[%s15337_s14 + $0x108] sm:$0xff] }
 0x1fa   :  { %12757 = vmatpush3.bf16.msra.mxu0 %v12756_v47  ;;  %v927_v47 = vld [vmem:[%s15317_s25 + $0x230] sm:$0xff] }
 0x1fb   :  { %12759 = vmatprep.subr.bf16.mxu0 %v12758_v50  ;;  %v946_v50 = vld [vmem:[%s15317_s25 + $0x2c8] sm:$0xff]  ;;  %v12788_v51 = vpack.c.bf16 %v928_v48, %v927_v47  ;;  %v961_v47 = vld [vmem:[%s15317_s25 + $0x340] sm:$0xff] }
 0x1fc   :  { %v12790_v52 = vpack.c.bf16 %v946_v50, %v945_v49  ;;  %v962_v48 = vld [vmem:[%s15317_s25 + $0x348] sm:$0xff]  ;;  %v15933_v50 = vsub.s32 7, %v15832_v11 }
 0x1fd   :  { %v12819_v49 = vpack.c.bf16 %v962_v48, %v961_v47 }
 0x1fe   :  { %12761 = vmatpush3.bf16.msra.mxu0 %v12760_v53  ;;  %v929_v53 = vld [vmem:[%s15317_s25 + $0x240] sm:$0xff] }
 0x1ff   :  { %12763 = vmatprep.subr.bf16.mxu0 %v12762_v56  ;;  %v948_v56 = vld [vmem:[%s15317_s25 + $0x2d8] sm:$0xff]  ;;  %v12792_v58 = vpack.c.bf16 %v930_v54, %v929_v53  ;;  %v527_v53 = vrot.slane %v15838_v13, %v15933_v50 }
 0x200   :  { %v12794_v60 = vpack.c.bf16 %v948_v56, %v947_v55  ;;  %v965_v55 = vld [vmem:[%s15317_s25 + $0x360] sm:$0xff]  ;;  %v966_v56 = vld [vmem:[%s15317_s25 + $0x368] sm:$0xff] }
 0x202   :  { %12765 = vmatpush3.bf16.msra.mxu0 %v12764_v59  ;;  %v15887_v59 = vsub.s32 3, %v15832_v11 }
 0x203   :  { %12767 = vmatprep.subr.bf16.mxu0 %v12766_v62  ;;  %v932_v62 = vld [vmem:[%s15317_s25 + $0x258] sm:$0xff] }
 0x204   :  { %v511_v3 = vrot.slane %v15838_v13, %v15887_v59  ;;  %v12796_v4 = vpack.c.bf16 %v932_v62, %v931_v61  ;;  %v12825_v62 = vpack.c.bf16 %v966_v56, %v965_v55  ;;  %v1616_v56 = vld [vmem:[%s15337_s14 + $0x120] sm:$0xff] }
 0x206   :  { %12769 = vmatpush3.bf16.msra.mxu0 %v12768_v2  ;;  %v507_v2 = vrot.slane %v15838_v13, %v15884_v57 }
 0x207   :  { %12771 = vmatprep.subr.bf16.mxu0 %v12770_v5  ;;  %v15898_v5 = vsub.s32 4, %v15832_v11 }
 0x20a   :  { %12773 = vmatpush3.bf16.msra.mxu0 %v12772_v8  ;;  %v934_v8 = vld [vmem:[%s15317_s25 + $0x268] sm:$0xff] }
 0x20b   :  { %12806 = vmatprep.subr.bf16.mxu0 %v15270_v9  ;;  %v12800_v25 = vpack.c.bf16 %v934_v8, %v933_v7  ;;  %v971_v8 = vld [vmem:[%s15317_s25 + $0x390] sm:$0xff] }
 0x28c   :  { %v631_v19 = vpop.f32.mrb[2].mxu0  ;;  %v15852_v20 = vpop.f32.mrb[0].mxu1 }
 0x28d   :  { %v632_v21 = vadd.f32 %v631_v19, %v499_v16  ;;  %v633_v22 = vpop.f32.mrb[3].mxu0  ;;  %v775_v23 = vpop.f32.mrb[1].mxu1 }
 0x28e   :  { %v634_v26 = vadd.f32 %v633_v22, %v503_v17  ;;  %v776_v27 = vadd.f32 %v775_v23, %v519_v18  ;;  %v951_v17 = vld [vmem:[%s15317_s25 + $0x2f0] sm:$0xff]  ;;  %v952_v18 = vld [vmem:[%s15317_s25 + $0x2f8] sm:$0xff]  ;;  %v953_v22 = vld [vmem:[%s15317_s25 + $0x300] sm:$0xff] }
 0x28f   :  { %v15860_v31 = vmax.f32 %v632_v21, 0.0  ;;  %v954_v23 = vld [vmem:[%s15317_s25 + $0x308] sm:$0xff] }
 0x290   :  { %v15858_v29 = vmax.f32 %v634_v26, 0.0  ;;  %v15864_v35 = vmax.f32 %v776_v27, 0.0  ;;  %v515_v26 = vrot.slane %v15838_v13, %v15898_v5  ;;  %v12802_v27 = vpack.c.bf16 %v952_v18, %v951_v17  ;;  %v973_v18 = vld [vmem:[%s15317_s25 + $0x3a0] sm:$0xff] }
 0x292   :  { %1051 = vmatprep.mubr.f32.mxu1 %v15858_v29 }
 0x293   :  { %1052 = vmatmul.mubr.f32.vlgmr.msra.gmra.mrb[2].mxu1 %v15860_v31 }
 0x294   :  { %12777 = vmatpush3.bf16.msra.mxu1 %v12776_v30  ;;  %1191 = vmatprep.mubr.f32.mxu1 %v15864_v35 }
 0x295   :  { %12779 = vmatprep.subr.bf16.mxu1 %v12778_v32  ;;  %v12807_v32 = vpack.c.bf16 %v954_v23, %v953_v22  ;;  %v975_v22 = vld [vmem:[%s15317_s25 + $0x3b0] sm:$0xff]  ;;  %v976_v23 = vld [vmem:[%s15317_s25 + $0x3b8] sm:$0xff] }
 0x298   :  { %12781 = vmatpush3.bf16.msra.mxu1 %v12780_v39  ;;  %v774_v39 = vadd.f32 %v15852_v20, %v515_v26  ;;  %v959_v20 = vld [vmem:[%s15317_s25 + $0x330] sm:$0xff]  ;;  %v978_v26 = vld [vmem:[%s15317_s25 + $0x3c8] sm:$0xff] }
 0x299   :  { %12783 = vmatprep.subr.bf16.mxu1 %v12782_v40  ;;  %v12810_v40 = vpack.c.bf16 %v956_v37, %v955_v34 }
 0x29a   :  { %v15922_v43 = vmax.f32 %v774_v39, 0.0  ;;  %v1629_v39 = vld [vmem:[%s15337_s14 + $0x188] sm:$0xff] }
 0x29c   :  { %12785 = vmatpush3.bf16.msra.mxu1 %v12784_v45  ;;  %v960_v45 = vld [vmem:[%s15317_s25 + $0x338] sm:$0xff] }
 0x29d   :  { %12787 = vmatprep.subr.bf16.mxu1 %v12786_v46  ;;  %v12816_v46 = vpack.c.bf16 %v960_v45, %v959_v20  ;;  %v1631_v20 = vld [vmem:[%s15337_s14 + $0x198] sm:$0xff]  ;;  %v981_v45 = vld [vmem:[%s15317_s25 + $0x3e0] sm:$0xff] }
 0x2a0   :  { %12789 = vmatpush3.bf16.msra.mxu1 %v12788_v51  ;;  %v963_v51 = vld [vmem:[%s15317_s25 + $0x350] sm:$0xff] }
 0x2a1   :  { %12791 = vmatprep.subr.bf16.mxu1 %v12790_v52  ;;  %v964_v52 = vld [vmem:[%s15317_s25 + $0x358] sm:$0xff] }
 0x2a2   :  { %v12822_v54 = vpack.c.bf16 %v964_v52, %v963_v51  ;;  %v1615_v51 = vld [vmem:[%s15337_s14 + $0x118] sm:$0xff]  ;;  %v1632_v52 = vld [vmem:[%s15337_s14 + $0x1a0] sm:$0xff] }
 0x2a4   :  { %12793 = vmatpush3.bf16.msra.mxu1 %v12792_v58 }
 0x2a5   :  { %12795 = vmatprep.subr.bf16.mxu1 %v12794_v60 }
 0x2a6   :  { %v702_v16 = vpop.f32.mrb[4].mxu0 }
 0x2a7   :  { %v703_v19 = vadd.f32 %v702_v16, %v507_v2  ;;  %v704_v21 = vpop.f32.mrb[5].mxu0  ;;  %v972_v16 = vld [vmem:[%s15317_s25 + $0x398] sm:$0xff] }
 0x2a8   :  { %v705_v24 = vadd.f32 %v704_v21, %v511_v3  ;;  %12797 = vmatpush3.bf16.msra.mxu1 %v12796_v4  ;;  %v12828_v3 = vpack.c.bf16 %v968_v0, %v967_v63  ;;  %v969_v4 = vld [vmem:[%s15317_s25 + $0x380] sm:$0xff]  ;;  %v12834_v17 = vpack.c.bf16 %v972_v16, %v971_v8  ;;  %v1618_v0 = vld [vmem:[%s15337_s14 + $0x130] sm:$0xff] }
 0x2a9   :  { %12799 = vmatprep.subr.bf16.mxu1 %v12798_v6  ;;  %v15912_v33 = vmax.f32 %v703_v19, 0.0  ;;  %v970_v6 = vld [vmem:[%s15317_s25 + $0x388] sm:$0xff]  ;;  %v1620_v16 = vld [vmem:[%s15337_s14 + $0x140] sm:$0xff] }
 0x2aa   :  { %v15910_v30 = vmax.f32 %v705_v24, 0.0  ;;  %v12831_v7 = vpack.c.bf16 %v970_v6, %v969_v4  ;;  %v974_v19 = vld [vmem:[%s15317_s25 + $0x3a8] sm:$0xff]  ;;  %v12840_v24 = vpack.c.bf16 %v976_v23, %v975_v22  ;;  %v1636_v4 = vld [vmem:[%s15337_s14 + $0x1c0] sm:$0xff]  ;;  %v1622_v23 = vld [vmem:[%s15337_s14 + $0x150] sm:$0xff] }
 0x2ab   :  { %v12837_v21 = vpack.c.bf16 %v974_v19, %v973_v18  ;;  %v1637_v6 = vld [vmem:[%s15337_s14 + $0x1c8] sm:$0xff]  ;;  %v1638_v18 = vld [vmem:[%s15337_s14 + $0x1d0] sm:$0xff]  ;;  %v1639_v19 = vld [vmem:[%s15337_s14 + $0x1d8] sm:$0xff] }
 0x2ac   :  { %1121 = vmatprep.mubr.f32.mxu0 %v15910_v30  ;;  %12801 = vmatpush3.bf16.msra.mxu1 %v12800_v25  ;;  %v977_v25 = vld [vmem:[%s15317_s25 + $0x3c0] sm:$0xff]  ;;  %v12918_v8 = vpack.c.bf16 %v1637_v6, %v1636_v4  ;;  %v12922_v22 = vpack.c.bf16 %v1639_v19, %v1638_v18  ;;  %v1685_v18 = vld [vmem:[%s15337_s14 + $0x348] sm:$0xff] }
 0x2ad   :  { %1122 = vmatmul.mubr.f32.vlgmr.msra.gmra.mrb[8].mxu0 %v15912_v33  ;;  %12803 = vmatprep.subr.bf16.mxu1 %v12802_v27  ;;  %v15966_v27 = vsub.s32 6, %v15832_v11  ;;  %v12843_v28 = vpack.c.bf16 %v978_v26, %v977_v25  ;;  %v1640_v25 = vld [vmem:[%s15337_s14 + $0x1e0] sm:$0xff]  ;;  %v1641_v26 = vld [vmem:[%s15337_s14 + $0x1e8] sm:$0xff] }
 0x2ae   :  { %12808 = vmatpush1.bf16.msra.mxu0 %v12807_v32  ;;  %v980_v32 = vld [vmem:[%s15317_s25 + $0x3d8] sm:$0xff]  ;;  %s18562_s25 = sld [smem:[#allocation48_spill]] }
 0x2af   :  { %12809 = vmatprep.subr.bf16.mxu0 %v15270_v9  ;;  %v523_v34 = vrot.slane %v15838_v13, %v15966_v27  ;;  %v12846_v37 = vpack.c.bf16 %v980_v32, %v979_v36  ;;  %v12926_v36 = vpack.c.bf16 %v1641_v26, %v1640_v25  ;;  %v1624_v32 = vld [vmem:[%s15337_s14 + $0x160] sm:$0xff]  ;;  %v1689_v25 = vld [vmem:[%s15337_s14 + $0x368] sm:$0xff] }
 0x2b0   :  { %12805 = vmatpush3.bf16.msra.mxu1 %v12804_v38  ;;  %v1628_v38 = vld [vmem:[%s15337_s14 + $0x180] sm:$0xff] }
 0x2b1   :  { %v12902_v13 = vpack.c.bf16 %v1629_v39, %v1628_v38  ;;  %v1643_v38 = vld [vmem:[%s15337_s14 + $0x1f8] sm:$0xff] }
 0x2b2   :  { %12811 = vmatpush1.bf16.msra.mxu0 %v12810_v40 }
 0x2b3   :  { %1192 = vmatmul.mubr.f32.vlgmr.msra.gmra.mrb[4].mxu1 %v15922_v43  ;;  %12812 = vmatprep.subr.bf16.mxu0 %v15270_v9 }
 0x2b4   :  { %1382 = vmatprep.mubr.f32.mxu1 %v15268_v1 }
 0x2b6   :  { %12814 = vmatpush1.bf16.msra.mxu0 %v12813_v44  ;;  %v1630_v44 = vld [vmem:[%s15337_s14 + $0x190] sm:$0xff] }
 0x2b7   :  { %12815 = vmatprep.subr.bf16.mxu0 %v15270_v9  ;;  %v12906_v48 = vpack.c.bf16 %v1631_v20, %v1630_v44  ;;  %v1676_v20 = vld [vmem:[%s15337_s14 + $0x300] sm:$0xff] }
 0x2ba   :  { %12817 = vmatpush1.bf16.msra.mxu0 %v12816_v46  ;;  %v12904_v46 = vpack.c.bf16 %v1613_v42, %v1612_v41  ;;  %v1626_v41 = vld [vmem:[%s15337_s14 + $0x170] sm:$0xff]  ;;  %v1627_v42 = vld [vmem:[%s15337_s14 + $0x178] sm:$0xff] }
 0x2bb   :  { %12818 = vmatprep.subr.bf16.mxu0 %v15270_v9  ;;  %v12932_v44 = vpack.c.bf16 %v1627_v42, %v1626_v41  ;;  %v1696_v42 = vld [vmem:[%s15337_s14 + $0x3a0] sm:$0xff] }
 0x2be   :  { %12820 = vmatpush1.bf16.msra.mxu0 %v12819_v49  ;;  %v1614_v49 = vld [vmem:[%s15337_s14 + $0x110] sm:$0xff] }
 0x2bf   :  { %12821 = vmatprep.subr.bf16.mxu0 %v15270_v9 }
 0x2c0   :  { %v844_v58 = vpop.f32.mrb[6].mxu0 }
 0x2c1   :  { %v846_v60 = vpop.f32.mrb[7].mxu0  ;;  %v845_v40 = vadd.f32 %v844_v58, %v523_v34  ;;  %v1617_v58 = vld [vmem:[%s15337_s14 + $0x128] sm:$0xff] }
 0x2c2   :  { %v847_v61 = vadd.f32 %v846_v60, %v527_v53  ;;  %12823 = vmatpush1.bf16.msra.mxu0 %v12822_v54  ;;  %v1633_v53 = vld [vmem:[%s15337_s14 + $0x1a8] sm:$0xff]  ;;  %v12908_v54 = vpack.c.bf16 %v1615_v51, %v1614_v49  ;;  %v1634_v60 = vld [vmem:[%s15337_s14 + $0x1b0] sm:$0xff]  ;;  %v1680_v49 = vld [vmem:[%s15337_s14 + $0x320] sm:$0xff] }
 0x2c3   :  { %12824 = vmatprep.subr.bf16.mxu0 %v15270_v9  ;;  %v15982_v47 = vmax.f32 %v845_v40, 0.0  ;;  %v12910_v55 = vpack.c.bf16 %v1633_v53, %v1632_v52  ;;  %v1625_v34 = vld [vmem:[%s15337_s14 + $0x168] sm:$0xff] }
 0x2c4   :  { %v15946_v2 = vmax.f32 %v847_v61, 0.0  ;;  %v1635_v61 = vld [vmem:[%s15337_s14 + $0x1b8] sm:$0xff]  ;;  %v12928_v39 = vpack.c.bf16 %v1625_v34, %v1624_v32  ;;  %v1681_v51 = vld [vmem:[%s15337_s14 + $0x328] sm:$0xff]  ;;  %v1692_v34 = vld [vmem:[%s15337_s14 + $0x380] sm:$0xff] }
 0x2c5   :  { %v12914_v63 = vpack.c.bf16 %v1635_v61, %v1634_v60  ;;  %v1268_v53 = vld [vmem:[%s15327_s3 + $0x8] sm:$0xff]  ;;  %v1278_v60 = vld [vmem:[%s15327_s3 + $0x58] sm:$0xff]  ;;  %v1283_v61 = vld [vmem:[%s15327_s3 + $0x80] sm:$0xff]  ;;  %v12973_v4 = vpack.c.bf16 %v1681_v51, %v1680_v49 }
 0x2c6   :  { %12826 = vmatpush1.bf16.msra.mxu0 %v12825_v62  ;;  %11118 = vmatprep.mubr.msk.f32.mxu0 %vm983_vm5, %v15946_v2  ;;  %v12912_v62 = vpack.c.bf16 %v1617_v58, %v1616_v56  ;;  %v1272_v58 = vld [vmem:[%s15327_s3 + $0x28] sm:$0xff] }
 0x2c7   :  { %12827 = vmatprep.subr.bf16.mxu0 %v15270_v9  ;;  %v1701_v49 = vld [vmem:[%s15337_s14 + $0x3c8] sm:$0xff] }
 0x2ca   :  { %12829 = vmatpush1.bf16.msra.mxu0 %v12828_v3  ;;  %v1619_v3 = vld [vmem:[%s15337_s14 + $0x138] sm:$0xff] }
 0x2cb   :  { %12830 = vmatprep.subr.bf16.mxu0 %v15270_v9 }
 0x2ce   :  { %12832 = vmatpush1.bf16.msra.mxu0 %v12831_v7  ;;  %v12916_v7 = vpack.c.bf16 %v1619_v3, %v1618_v0  ;;  %v1277_v0 = vld [vmem:[%s15327_s3 + $0x50] sm:$0xff]  ;;  %v1282_v3 = vld [vmem:[%s15327_s3 + $0x78] sm:$0xff] }
 0x2cf   :  { %12833 = vmatprep.subr.bf16.mxu0 %v15270_v9  ;;  %v12854_v6 = vpack.c.bf16 %v1282_v3, %v1277_v0  ;;  %v982_v0 = vld [vmem:[%s15322_s29] sm:$0x1]  ;;  %s18563_s29 = sld [smem:[#allocation43_spill]] }
 0x2d2   :  { %12835 = vmatpush1.bf16.msra.mxu0 %v12834_v17  ;;  %v1621_v17 = vld [vmem:[%s15337_s14 + $0x148] sm:$0xff] }
 0x2d3   :  { %12836 = vmatprep.subr.bf16.mxu0 %v15270_v9 }
 0x2d6   :  { %12838 = vmatpush1.bf16.msra.mxu0 %v12837_v21  ;;  %v12920_v21 = vpack.c.bf16 %v1621_v17, %v1620_v16  ;;  %v1684_v17 = vld [vmem:[%s15337_s14 + $0x340] sm:$0xff] }
 0x2d7   :  { %12839 = vmatprep.subr.bf16.mxu0 %v15270_v9  ;;  %v12979_v19 = vpack.c.bf16 %v1685_v18, %v1684_v17 }
 0x2da   :  { %12841 = vmatpush1.bf16.msra.mxu0 %v12840_v24  ;;  %v1623_v24 = vld [vmem:[%s15337_s14 + $0x158] sm:$0xff] }
 0x2db   :  { %12842 = vmatprep.subr.bf16.mxu0 %v15270_v9 }
 0x2de   :  { %12844 = vmatpush1.bf16.msra.mxu0 %v12843_v28  ;;  %v12924_v28 = vpack.c.bf16 %v1623_v24, %v1622_v23  ;;  %v1688_v24 = vld [vmem:[%s15337_s14 + $0x360] sm:$0xff] }
 0x2df   :  { %12845 = vmatprep.subr.bf16.mxu0 %v15270_v9  ;;  %v12985_v26 = vpack.c.bf16 %v1689_v25, %v1688_v24  ;;  %v1285_v24 = vld [vmem:[%s15327_s3 + $0x90] sm:$0xff] }
 0x2e2   :  { %12847 = vmatpush1.bf16.msra.mxu0 %v12846_v37  ;;  %v1642_v37 = vld [vmem:[%s15337_s14 + $0x1f0] sm:$0xff] }
 0x2e3   :  { %1253 = vmatprep.subr.mxu0 %v15268_v1  ;;  %v12930_v40 = vpack.c.bf16 %v1643_v38, %v1642_v37  ;;  %v1693_v37 = vld [vmem:[%s15337_s14 + $0x388] sm:$0xff] }
 0x2e4   :  { %v12991_v38 = vpack.c.bf16 %v1693_v37, %v1692_v34  ;;  %v1279_v34 = vld [vmem:[%s15327_s3 + $0x60] sm:$0xff]  ;;  %v1284_v37 = vld [vmem:[%s15327_s3 + $0x88] sm:$0xff] }
 0x2e6   :  { %1254 = vmatpush1.msra.mxu0 %v981_v45  ;;  %v1677_v45 = vld [vmem:[%s15337_s14 + $0x308] sm:$0xff] }
 0x2e7   :  { %1262 = vmatmul.mubr.f32.vlgmr.msra.gmra.mrb[10].mxu0 %v15982_v47  ;;  %12903 = vmatprep.subr.bf16.mxu0 %v12902_v13  ;;  %v12967_v13 = vpack.c.bf16 %v1677_v45, %v1676_v20  ;;  %v1698_v45 = vld [vmem:[%s15337_s14 + $0x3b0] sm:$0xff] }
 0x2e8   :  { %12905 = vmatpush3.bf16.msra.mxu0 %v12904_v46  ;;  %1840 = vmatprep.mubr.f32.mxu0 %v15910_v30  ;;  %v1678_v46 = vld [vmem:[%s15337_s14 + $0x310] sm:$0xff] }
 0x2e9   :  { %12907 = vmatprep.subr.bf16.mxu0 %v12906_v48  ;;  %v1679_v48 = vld [vmem:[%s15337_s14 + $0x318] sm:$0xff] }
 0x2ea   :  { %v12970_v52 = vpack.c.bf16 %v1679_v48, %v1678_v46  ;;  %v1700_v48 = vld [vmem:[%s15337_s14 + $0x3c0] sm:$0xff] }
 0x2eb   :  { %v13003_v51 = vpack.c.bf16 %v1701_v49, %v1700_v48  ;;  %v1580_v48 = vld [vmem:[%s15337_s14] sm:$0xff]  ;;  %v1581_v49 = vld [vmem:[%s15337_s14 + $0x8] sm:$0xff] }
 0x2ec   :  { %12909 = vmatpush3.bf16.msra.mxu0 %v12908_v54  ;;  %v1273_v54 = vld [vmem:[%s15327_s3 + $0x30] sm:$0xff] }
 0x2ed   :  { %12911 = vmatprep.subr.bf16.mxu0 %v12910_v55  ;;  %v1267_v55 = vld [vmem:[%s15327_s3] sm:$0xff]  ;;  %v12848_v56 = vpack.c.bf16 %v1273_v54, %v1268_v53  ;;  %v1703_v53 = vld [vmem:[%s15337_s14 + $0x3d8] sm:$0xff] }
 0x2ef   :  { %12849 = vmatprep.subr.bf16.mxu1 %v12848_v56  ;;  %v1275_v56 = vld [vmem:[%s15327_s3 + $0x40] sm:$0xff] }
 0x2f0   :  { %12913 = vmatpush3.bf16.msra.mxu0 %v12912_v62  ;;  %v12850_v62 = vpack.c.bf16 %v1272_v58, %v1267_v55  ;;  %v1270_v55 = vld [vmem:[%s15327_s3 + $0x18] sm:$0xff] }
 0x2f1   :  { %12915 = vmatprep.subr.bf16.mxu0 %v12914_v63  ;;  %v12852_v63 = vpack.c.bf16 %v1283_v61, %v1278_v60  ;;  %v12856_v58 = vpack.c.bf16 %v1275_v56, %v1270_v55  ;;  %v1704_v60 = vld [vmem:[%s15337_s14 + $0x3e0] sm:$0xff]  ;;  %v1582_v55 = vld [vmem:[%s15337_s14 + $0x10] sm:$0xff]  ;;  %v1583_v56 = vld [vmem:[%s15337_s14 + $0x18] sm:$0xff] }
 0x2f2   :  { %12851 = vmatpush1.bf16.msra.mxu1 %v12850_v62 }
 0x2f3   :  { %12853 = vmatprep.subr.bf16.mxu1 %v12852_v63 }
 0x2f4   :  { %12917 = vmatpush3.bf16.msra.mxu0 %v12916_v7  ;;  %v1682_v7 = vld [vmem:[%s15337_s14 + $0x330] sm:$0xff] }
 0x2f5   :  { %12919 = vmatprep.subr.bf16.mxu0 %v12918_v8  ;;  %v1683_v8 = vld [vmem:[%s15337_s14 + $0x338] sm:$0xff] }
 0x2f6   :  { %v12976_v16 = vpack.c.bf16 %v1683_v8, %v1682_v7  ;;  %12855 = vmatpush1.bf16.msra.mxu1 %v12854_v6 }
 0x2f7   :  { %12857 = vmatprep.subr.bf16.mxu1 %v12856_v58  ;;  %v1600_v58 = vld [vmem:[%s15337_s14 + $0xa0] sm:$0xff] }
 0x2f8   :  { %12921 = vmatpush3.bf16.msra.mxu0 %v12920_v21  ;;  %v1686_v21 = vld [vmem:[%s15337_s14 + $0x350] sm:$0xff] }
 0x2f9   :  { %12923 = vmatprep.subr.bf16.mxu0 %v12922_v22  ;;  %v1687_v22 = vld [vmem:[%s15337_s14 + $0x358] sm:$0xff] }
 0x2fa   :  { %v12982_v23 = vpack.c.bf16 %v1687_v22, %v1686_v21  ;;  %v1269_v21 = vld [vmem:[%s15327_s3 + $0x10] sm:$0xff]  ;;  %v1274_v22 = vld [vmem:[%s15327_s3 + $0x38] sm:$0xff] }
 0x2fc   :  { %12925 = vmatpush3.bf16.msra.mxu0 %v12924_v28  ;;  %v1690_v28 = vld [vmem:[%s15337_s14 + $0x370] sm:$0xff] }
 0x2fd   :  { %12927 = vmatprep.subr.bf16.mxu0 %v12926_v36  ;;  %v1691_v36 = vld [vmem:[%s15337_s14 + $0x378] sm:$0xff] }
 0x2fe   :  { %v12988_v32 = vpack.c.bf16 %v1691_v36, %v1690_v28 }
 0x300   :  { %12929 = vmatpush3.bf16.msra.mxu0 %v12928_v39  ;;  %v1694_v39 = vld [vmem:[%s15337_s14 + $0x390] sm:$0xff] }
 0x301   :  { %12931 = vmatprep.subr.bf16.mxu0 %v12930_v40  ;;  %v1695_v40 = vld [vmem:[%s15337_s14 + $0x398] sm:$0xff] }
 0x302   :  { %v12994_v41 = vpack.c.bf16 %v1695_v40, %v1694_v39  ;;  %v1271_v39 = vld [vmem:[%s15327_s3 + $0x20] sm:$0xff]  ;;  %v1276_v40 = vld [vmem:[%s15327_s3 + $0x48] sm:$0xff] }
 0x304   :  { %12933 = vmatpush3.bf16.msra.mxu0 %v12932_v44  ;;  %v1697_v44 = vld [vmem:[%s15337_s14 + $0x3a8] sm:$0xff] }
 0x305   :  { %12966 = vmatprep.subr.bf16.mxu0 %v15270_v9  ;;  %v12997_v20 = vpack.c.bf16 %v1697_v44, %v1696_v42  ;;  %v1281_v42 = vld [vmem:[%s15327_s3 + $0x70] sm:$0xff]  ;;  %v1286_v44 = vld [vmem:[%s15327_s3 + $0x98] sm:$0xff] }
 0x307   :  { %1841 = vmatmul.mubr.f32.vlgmr.msra.gmra.mrb[12].mxu0 %v15912_v33 }
 0x308   :  { %12968 = vmatpush1.bf16.msra.mxu0 %v12967_v13  ;;  %11122 = vmatprep.mubr.msk.f32.mxu0 %vm983_vm5, %v15946_v2  ;;  %v1699_v13 = vld [vmem:[%s15337_s14 + $0x3b8] sm:$0xff] }
 0x309   :  { %12969 = vmatprep.subr.bf16.mxu0 %v15270_v9  ;;  %v13000_v46 = vpack.c.bf16 %v1699_v13, %v1698_v45  ;;  %v1597_v45 = vld [vmem:[%s15337_s14 + $0x88] sm:$0xff]  ;;  %v12868_v13 = vpack.c.bf16 %v1286_v44, %v1281_v42  ;;  %v1592_v44 = vld [vmem:[%s15337_s14 + $0x60] sm:$0xff] }
 0x30c   :  { %12971 = vmatpush1.bf16.msra.mxu0 %v12970_v52  ;;  %v1702_v52 = vld [vmem:[%s15337_s14 + $0x3d0] sm:$0xff] }
 0x30d   :  { %12972 = vmatprep.subr.bf16.mxu0 %v15270_v9  ;;  %v13006_v54 = vpack.c.bf16 %v1703_v53, %v1702_v52  ;;  %v1599_v52 = vld [vmem:[%s15337_s14 + $0x98] sm:$0xff]  ;;  %v12872_v53 = vpack.c.bf16 %v1581_v49, %v1580_v48  ;;  %v1594_v49 = vld [vmem:[%s15337_s14 + $0x70] sm:$0xff] }
 0x310   :  { %12974 = vmatpush1.bf16.msra.mxu0 %v12973_v4 }
 0x311   :  { %12975 = vmatprep.subr.bf16.mxu0 %v15270_v9 }
 0x314   :  { %12977 = vmatpush1.bf16.msra.mxu0 %v12976_v16 }
 0x315   :  { %12978 = vmatprep.subr.bf16.mxu0 %v15270_v9 }
 0x318   :  { %12980 = vmatpush1.bf16.msra.mxu0 %v12979_v19 }
 0x319   :  { %12981 = vmatprep.subr.bf16.mxu0 %v15270_v9 }
 0x31c   :  { %12983 = vmatpush1.bf16.msra.mxu0 %v12982_v23  ;;  %v1280_v23 = vld [vmem:[%s15327_s3 + $0x68] sm:$0xff]  ;;  %s18566_s3 = sld [smem:[#allocation45_spill]] }
 0x31d   :  { %12984 = vmatprep.subr.bf16.mxu0 %v15270_v9 }
 0x320   :  { %12986 = vmatpush1.bf16.msra.mxu0 %v12985_v26  ;;  %v12858_v26 = vpack.c.bf16 %v1274_v22, %v1269_v21  ;;  %v1588_v22 = vld [vmem:[%s15337_s14 + $0x40] sm:$0xff] }
 0x321   :  { %12987 = vmatprep.subr.bf16.mxu0 %v15270_v9 }
 0x324   :  { %12989 = vmatpush1.bf16.msra.mxu0 %v12988_v32  ;;  %v12860_v32 = vpack.c.bf16 %v1285_v24, %v1280_v23  ;;  %v1589_v23 = vld [vmem:[%s15337_s14 + $0x48] sm:$0xff]  ;;  %v1606_v24 = vld [vmem:[%s15337_s14 + $0xd0] sm:$0xff] }
 0x325   :  { %12990 = vmatprep.subr.bf16.mxu0 %v15270_v9 }
 0x328   :  { %12992 = vmatpush1.bf16.msra.mxu0 %v12991_v38  ;;  %v12862_v38 = vpack.c.bf16 %v1284_v37, %v1279_v34  ;;  %v1590_v34 = vld [vmem:[%s15337_s14 + $0x50] sm:$0xff]  ;;  %v1591_v37 = vld [vmem:[%s15337_s14 + $0x58] sm:$0xff] }
 0x329   :  { %12993 = vmatprep.subr.bf16.mxu0 %v15270_v9 }
 0x32c   :  { %12995 = vmatpush1.bf16.msra.mxu0 %v12994_v41  ;;  %v12865_v41 = vpack.c.bf16 %v1276_v40, %v1271_v39  ;;  %v1608_v39 = vld [vmem:[%s15337_s14 + $0xe0] sm:$0xff]  ;;  %v1609_v40 = vld [vmem:[%s15337_s14 + $0xe8] sm:$0xff] }
 0x32d   :  { %12996 = vmatprep.subr.bf16.mxu0 %v15270_v9  ;;  %v12894_v42 = vpack.c.bf16 %v1609_v40, %v1608_v39  ;;  %v1671_v39 = vld [vmem:[%s15337_s14 + $0x2d8] sm:$0xff] }
 0x330   :  { %12998 = vmatpush1.bf16.msra.mxu0 %v12997_v20  ;;  %v1596_v20 = vld [vmem:[%s15337_s14 + $0x80] sm:$0xff] }
 0x331   :  { %12999 = vmatprep.subr.bf16.mxu0 %v15270_v9 }
 0x334   :  { %13001 = vmatpush1.bf16.msra.mxu0 %v13000_v46  ;;  %v12870_v46 = vpack.c.bf16 %v1597_v45, %v1596_v20  ;;  %v1593_v20 = vld [vmem:[%s15337_s14 + $0x68] sm:$0xff]  ;;  %v1610_v45 = vld [vmem:[%s15337_s14 + $0xf0] sm:$0xff] }
 0x335   :  { %13002 = vmatprep.subr.bf16.mxu0 %v15270_v9 }
 0x338   :  { %13004 = vmatpush1.bf16.msra.mxu0 %v13003_v51  ;;  %v1598_v51 = vld [vmem:[%s15337_s14 + $0x90] sm:$0xff] }
 0x339   :  { %13005 = vmatprep.subr.bf16.mxu0 %v15270_v9 }
 0x33c   :  { %13007 = vmatpush1.bf16.msra.mxu0 %v13006_v54  ;;  %v12874_v54 = vpack.c.bf16 %v1599_v52, %v1598_v51  ;;  %v1595_v51 = vld [vmem:[%s15337_s14 + $0x78] sm:$0xff]  ;;  %v1660_v52 = vld [vmem:[%s15337_s14 + $0x280] sm:$0xff] }
 0x33d   :  { %1972 = vmatprep.subr.mxu0 %v15268_v1 }
 0x340   :  { %1973 = vmatpush1.msra.mxu0 %v1704_v60  ;;  %v1601_v60 = vld [vmem:[%s15337_s14 + $0xa8] sm:$0xff] }
 0x341   :  { %1981 = vmatmul.mubr.f32.vlgmr.msra.gmra.mrb[14].mxu0 %v15982_v47  ;;  %13040 = vmatprep.subr.bf16.mxu0 %v15270_v9 }
 0x342   :  { %12524 = vmatprep.mubr.msk.f32.mxu0 %vm15269_vm0, %v15268_v1 }
 0x366   :  { %v11223_v61 = vpop.f32.mrb[2].mxu1 }
 0x367   :  { %v11224_v62 = vpop.f32.mrb[3].mxu1 }
 0x368   :  { %v11225_v63 = vadd.f32 %v11224_v62, %v11223_v61  ;;  %v12876_v61 = vpack.c.bf16 %v1583_v56, %v1582_v55  ;;  %v12878_v62 = vpack.c.bf16 %v1601_v60, %v1600_v58  ;;  %v1644_v56 = vld [vmem:[%s15337_s14 + $0x200] sm:$0xff]  ;;  %v1645_v58 = vld [vmem:[%s15337_s14 + $0x208] sm:$0xff]  ;;  %v1662_v60 = vld [vmem:[%s15337_s14 + $0x290] sm:$0xff] }
 0x36a   :  { %v1054_v6 = vadd.f32 %v11225_v63, %v982_v0  ;;  %v1584_v63 = vld [vmem:[%s15337_s14 + $0x20] sm:$0xff]  ;;  %v1585_v0 = vld [vmem:[%s15337_s14 + $0x28] sm:$0xff] }
 0x380   :  { %v11258_v3 = vpop.f32.mrb[8].mxu0 }
 0x381   :  { %v11259_v4 = vpop.f32.mrb[9].mxu0 }
 0x382   :  { %v11260_v7 = vadd.f32 %v11259_v4, %v11258_v3  ;;  %v1602_v3 = vld [vmem:[%s15337_s14 + $0xb0] sm:$0xff]  ;;  %v1603_v4 = vld [vmem:[%s15337_s14 + $0xb8] sm:$0xff] }
 0x384   :  { %v1124_v8 = vadd.f32 %v11260_v7, %v1054_v6  ;;  %v12880_v6 = vpack.c.bf16 %v1585_v0, %v1584_v63  ;;  %v12882_v7 = vpack.c.bf16 %v1603_v4, %v1602_v3  ;;  %v1646_v0 = vld [vmem:[%s15337_s14 + $0x210] sm:$0xff]  ;;  %v1647_v3 = vld [vmem:[%s15337_s14 + $0x218] sm:$0xff]  ;;  %v1664_v4 = vld [vmem:[%s15337_s14 + $0x2a0] sm:$0xff] }
 0x386   :  { %v11293_v16 = vpop.f32.mrb[4].mxu1 }
 0x387   :  { %v11294_v17 = vpop.f32.mrb[5].mxu1 }
 0x388   :  { %v11295_v18 = vadd.f32 %v11294_v17, %v11293_v16  ;;  %v1587_v16 = vld [vmem:[%s15337_s14 + $0x38] sm:$0xff]  ;;  %v1604_v17 = vld [vmem:[%s15337_s14 + $0xc0] sm:$0xff] }
 0x38a   :  { %v1194_v19 = vadd.f32 %v11295_v18, %v1124_v8  ;;  %v1586_v8 = vld [vmem:[%s15337_s14 + $0x30] sm:$0xff]  ;;  %v1605_v18 = vld [vmem:[%s15337_s14 + $0xc8] sm:$0xff] }
 0x38b   :  { %v12886_v21 = vpack.c.bf16 %v1605_v18, %v1604_v17  ;;  %v1649_v17 = vld [vmem:[%s15337_s14 + $0x228] sm:$0xff]  ;;  %v1666_v18 = vld [vmem:[%s15337_s14 + $0x2b0] sm:$0xff] }
 0x3ba   :  { %v1263_v25 = vpop.f32.mrb[10].mxu0 }
 0x3bb   :  { %v1264_v28 = vadd.f32 %v1263_v25, %v1194_v19  ;;  %v1265_v36 = vpop.f32.mrb[11].mxu0  ;;  %v12884_v19 = vpack.c.bf16 %v1587_v16, %v1586_v8  ;;  %v1607_v25 = vld [vmem:[%s15337_s14 + $0xd8] sm:$0xff]  ;;  %v1648_v16 = vld [vmem:[%s15337_s14 + $0x220] sm:$0xff] }
 0x3bd   :  { %11119 = vmatmul.mubr.msk.f32.vlgmr.msra.gmra.mrb[6].mxu1 %vm1314_vm6, %v1264_v28 }
 0x3be   :  { %12859 = vmatpush1.bf16.msra.mxu1 %v12858_v26  ;;  %1453 = vmatprep.mubr.f32.mxu1 %v15268_v1 }
 0x3bf   :  { %12861 = vmatprep.subr.bf16.mxu1 %v12860_v32  ;;  %v12890_v32 = vpack.c.bf16 %v1607_v25, %v1606_v24  ;;  %v1651_v24 = vld [vmem:[%s15337_s14 + $0x238] sm:$0xff]  ;;  %v1668_v25 = vld [vmem:[%s15337_s14 + $0x2c0] sm:$0xff] }
 0x3c2   :  { %12863 = vmatpush1.bf16.msra.mxu1 %v12862_v38 }
 0x3c3   :  { %12864 = vmatprep.subr.bf16.mxu1 %v15270_v9 }
 0x3c5   :  { %11120 = vmatmul.mubr.msk.f32.vlgmr.msra.gmra.mrb[8].mxu1 %vm1314_vm6, %v1264_v28 }
 0x3c6   :  { %12866 = vmatpush3.bf16.msra.mxu1 %v12865_v41  ;;  %12513 = vmatprep.mubr.msk.f32.mxu1 %vm15269_vm0, %v15268_v1  ;;  %v12892_v41 = vpack.c.bf16 %v1591_v37, %v1590_v34  ;;  %v1653_v34 = vld [vmem:[%s15337_s14 + $0x248] sm:$0xff]  ;;  %v1670_v37 = vld [vmem:[%s15337_s14 + $0x2d0] sm:$0xff] }
 0x3c7   :  { %12867 = vmatprep.subr.bf16.mxu1 %v15270_v9 }
 0x3ca   :  { %12869 = vmatpush3.bf16.msra.mxu1 %v12868_v13  ;;  %v1611_v13 = vld [vmem:[%s15337_s14 + $0xf8] sm:$0xff] }
 0x3cb   :  { %12871 = vmatprep.subr.bf16.mxu1 %v12870_v46  ;;  %v12896_v46 = vpack.c.bf16 %v1593_v20, %v1592_v44  ;;  %v12898_v48 = vpack.c.bf16 %v1611_v13, %v1610_v45  ;;  %v1655_v44 = vld [vmem:[%s15337_s14 + $0x258] sm:$0xff]  ;;  %v1672_v20 = vld [vmem:[%s15337_s14 + $0x2e0] sm:$0xff]  ;;  %v1673_v45 = vld [vmem:[%s15337_s14 + $0x2e8] sm:$0xff] }
 0x3cd   :  { %12514 = vmatmul.mubr.msk.f32.vlgmr.msra.gmra.mrb[10].mxu1 %vm1314_vm6, %v1264_v28  ;;  %v12888_v28 = vpack.c.bf16 %v1589_v23, %v1588_v22  ;;  %v1650_v23 = vld [vmem:[%s15337_s14 + $0x230] sm:$0xff] }
 0x3ce   :  { %12873 = vmatpush3.bf16.msra.mxu1 %v12872_v53  ;;  %1770 = vmatprep.mubr.f32.mxu1 %v15858_v29  ;;  %v1661_v53 = vld [vmem:[%s15337_s14 + $0x288] sm:$0xff] }
 0x3cf   :  { %12875 = vmatprep.subr.bf16.mxu1 %v12874_v54  ;;  %v12900_v54 = vpack.c.bf16 %v1595_v51, %v1594_v49  ;;  %v12934_v55 = vpack.c.bf16 %v1661_v53, %v1660_v52  ;;  %v1657_v49 = vld [vmem:[%s15337_s14 + $0x268] sm:$0xff]  ;;  %v1674_v51 = vld [vmem:[%s15337_s14 + $0x2f0] sm:$0xff]  ;;  %v1675_v52 = vld [vmem:[%s15337_s14 + $0x2f8] sm:$0xff] }
 0x3d2   :  { %12877 = vmatpush3.bf16.msra.mxu1 %v12876_v61  ;;  %v1663_v61 = vld [vmem:[%s15337_s14 + $0x298] sm:$0xff] }
 0x3d3   :  { %12879 = vmatprep.subr.bf16.mxu1 %v12878_v62  ;;  %v12936_v62 = vpack.c.bf16 %v1645_v58, %v1644_v56  ;;  %v12938_v63 = vpack.c.bf16 %v1663_v61, %v1662_v60  ;;  %v1659_v56 = vld [vmem:[%s15337_s14 + $0x278] sm:$0xff] }
 0x3d6   :  { %12881 = vmatpush3.bf16.msra.mxu1 %v12880_v6  ;;  %v1665_v6 = vld [vmem:[%s15337_s14 + $0x2a8] sm:$0xff] }
 0x3d7   :  { %12883 = vmatprep.subr.bf16.mxu1 %v12882_v7  ;;  %v12940_v7 = vpack.c.bf16 %v1647_v3, %v1646_v0  ;;  %v12942_v8 = vpack.c.bf16 %v1665_v6, %v1664_v4  ;;  %v1986_v3 = vld [vmem:[%s18555_s5] sm:$0xff]  ;;  %v1995_v4 = vld [vmem:[%s18555_s5 + $0x48] sm:$0xff] }
 0x3d8   :  { %v1994_v6 = vld [vmem:[%s18555_s5 + $0x40] sm:$0xff] }
 0x3da   :  { %12885 = vmatpush3.bf16.msra.mxu1 %v12884_v19  ;;  %v11368_v26 = vpop.f32.mrb[12].mxu0  ;;  %v1667_v19 = vld [vmem:[%s15337_s14 + $0x2b8] sm:$0xff] }
 0x3db   :  { %v11369_v36 = vpop.f32.mrb[13].mxu0  ;;  %12887 = vmatprep.subr.bf16.mxu1 %v12886_v21  ;;  %v12944_v21 = vpack.c.bf16 %v1649_v17, %v1648_v16  ;;  %v12946_v22 = vpack.c.bf16 %v1667_v19, %v1666_v18  ;;  %v2005_v17 = vld [vmem:[%s18555_s5 + $0x98] sm:$0xff]  ;;  %v2014_v18 = vld [vmem:[%s18555_s5 + $0xe0] sm:$0xff] }
 0x3dc   :  { %v16117_v38 = vadd.f32 %v11369_v36, %v11368_v26  ;;  %v1669_v26 = vld [vmem:[%s15337_s14 + $0x2c8] sm:$0xff]  ;;  %v13012_v19 = vpack.c.bf16 %v2014_v18, %v2005_v17 }
 0x3dd   :  { %v12950_v36 = vpack.c.bf16 %v1669_v26, %v1668_v25  ;;  %v2021_v25 = vld [vmem:[%s18555_s5 + $0x118] sm:$0xff] }
 0x3de   :  { %12889 = vmatpush3.bf16.msra.mxu1 %v12888_v28  ;;  %v12948_v28 = vpack.c.bf16 %v1651_v24, %v1650_v23  ;;  %v2012_v23 = vld [vmem:[%s18555_s5 + $0xd0] sm:$0xff] }
 0x3df   :  { %12891 = vmatprep.subr.bf16.mxu1 %v12890_v32  ;;  %v1652_v32 = vld [vmem:[%s15337_s14 + $0x240] sm:$0xff]  ;;  %v13044_v26 = vpack.c.bf16 %v2021_v25, %v2012_v23 }
 0x3e0   :  { %v12952_v40 = vpack.c.bf16 %v1653_v34, %v1652_v32  ;;  %v2554_v32 = vld [vmem:[%s18556_s9 + $0x180] sm:$0xff] }
 0x3e2   :  { %12893 = vmatpush3.bf16.msra.mxu1 %v12892_v41  ;;  %v12954_v41 = vpack.c.bf16 %v1671_v39, %v1670_v37  ;;  %v2555_v37 = vld [vmem:[%s18556_s9 + $0x188] sm:$0xff] }
 0x3e3   :  { %12895 = vmatprep.subr.bf16.mxu1 %v12894_v42  ;;  %v1654_v42 = vld [vmem:[%s15337_s14 + $0x250] sm:$0xff]  ;;  %v13078_v39 = vpack.c.bf16 %v2555_v37, %v2554_v32  ;;  %v1997_v37 = vld [vmem:[%s18555_s5 + $0x58] sm:$0xff] }
 0x3e4   :  { %v12956_v13 = vpack.c.bf16 %v1655_v44, %v1654_v42  ;;  %v1988_v32 = vld [vmem:[%s18555_s5 + $0x10] sm:$0xff] }
 0x3e6   :  { %12897 = vmatpush3.bf16.msra.mxu1 %v12896_v46  ;;  %v12958_v46 = vpack.c.bf16 %v1673_v45, %v1672_v20 }
 0x3e7   :  { %12899 = vmatprep.subr.bf16.mxu1 %v12898_v48  ;;  %v1656_v48 = vld [vmem:[%s15337_s14 + $0x260] sm:$0xff] }
 0x3e8   :  { %v12960_v53 = vpack.c.bf16 %v1657_v49, %v1656_v48 }
 0x3ea   :  { %12901 = vmatpush3.bf16.msra.mxu1 %v12900_v54  ;;  %v12962_v54 = vpack.c.bf16 %v1675_v52, %v1674_v51 }
 0x3eb   :  { %12935 = vmatprep.subr.bf16.mxu1 %v12934_v55  ;;  %v1658_v55 = vld [vmem:[%s15337_s14 + $0x270] sm:$0xff]  ;;  %s18567_s14 = sld [smem:[#allocation52_spill]] }
 0x3ec   :  { %v12964_v58 = vpack.c.bf16 %v1659_v56, %v1658_v55 }
 0x3ed   :  { %1771 = vmatmul.mubr.f32.vlgmr.msra.gmra.mrb[12].mxu1 %v15860_v31 }
 0x3ee   :  { %12937 = vmatpush3.bf16.msra.mxu1 %v12936_v62  ;;  %1910 = vmatprep.mubr.f32.mxu1 %v15864_v35  ;;  %v1987_v62 = vld [vmem:[%s18555_s5 + $0x8] sm:$0xff] }
 0x3ef   :  { %12939 = vmatprep.subr.bf16.mxu1 %v12938_v63  ;;  %v1996_v63 = vld [vmem:[%s18555_s5 + $0x50] sm:$0xff] }
 0x3f0   :  { %v13008_v0 = vpack.c.bf16 %v1996_v63, %v1987_v62 }
 0x3f2   :  { %12941 = vmatpush3.bf16.msra.mxu1 %v12940_v7  ;;  %v13010_v7 = vpack.c.bf16 %v1995_v4, %v1986_v3 }
 0x3f3   :  { %12943 = vmatprep.subr.bf16.mxu1 %v12942_v8  ;;  %v2003_v8 = vld [vmem:[%s18555_s5 + $0x88] sm:$0xff] }
 0x3f4   :  { %v13041_v16 = vpack.c.bf16 %v2003_v8, %v1994_v6 }
 0x3f6   :  { %12945 = vmatpush3.bf16.msra.mxu1 %v12944_v21  ;;  %13042 = vmatpush3.bf16.msra.mxu0 %v13041_v16  ;;  %v2004_v21 = vld [vmem:[%s18555_s5 + $0x90] sm:$0xff] }
 0x3f7   :  { %12947 = vmatprep.subr.bf16.mxu1 %v12946_v22  ;;  %v2013_v22 = vld [vmem:[%s18555_s5 + $0xd8] sm:$0xff]  ;;  %13043 = vmatprep.subr.bf16.mxu0 %v15270_v9 }
 0x3f8   :  { %v13014_v24 = vpack.c.bf16 %v2013_v22, %v2004_v21  ;;  %v1705_v22 = vld [vmem:[%s18558_s17] sm:$0x1]  ;;  %s18589_s17 = sld [smem:[#allocation67_spill]] }
 0x3fa   :  { %12949 = vmatpush3.bf16.msra.mxu1 %v12948_v28  ;;  %v1989_v28 = vld [vmem:[%s18555_s5 + $0x18] sm:$0xff]  ;;  %13045 = vmatpush3.bf16.msra.mxu0 %v13044_v26 }
 0x3fb   :  { %12951 = vmatprep.subr.bf16.mxu1 %v12950_v36  ;;  %v1998_v36 = vld [vmem:[%s18555_s5 + $0x60] sm:$0xff]  ;;  %13079 = vmatprep.subr.bf16.mxu0 %v13078_v39 }
 0x3fc   :  { %v13016_v34 = vpack.c.bf16 %v1998_v36, %v1989_v28  ;;  %v2538_v39 = vld [vmem:[%s18556_s9 + $0x100] sm:$0xff] }
 0x3fe   :  { %12953 = vmatpush3.bf16.msra.mxu1 %v12952_v40  ;;  %v1287_v40 = vld [vmem:[%s18557_s13] sm:$0x1f]  ;;  %s18588_s13 = sld [smem:[#allocation70_spill]] }
 0x3ff   :  { %12955 = vmatprep.subr.bf16.mxu1 %v12954_v41  ;;  %v1292_v41 = vrot.slane %v1287_v40, %v15835_v12  ;;  %v1296_v42 = vrot.slane %v1287_v40, %v15841_v14  ;;  %v1300_v51 = vrot.slane %v1287_v40, %v15884_v57  ;;  %v1308_v63 = vrot.slane %v1287_v40, %v15898_v5 }
 0x402   :  { %12957 = vmatpush3.bf16.msra.mxu1 %v12956_v13  ;;  %v15271_v13 = vmov 1966171168  }
 0x403   :  { %12959 = vmatprep.subr.bf16.mxu1 %v12958_v46  ;;  %v1538_v46 = vunpack.c.l.s4 %v15271_v13 }
 0x405   :  { %v1539_v52 = vunpack.c.0.s8 %v1538_v46  ;;  %v2006_v46 = vld [vmem:[%s18555_s5 + $0xa0] sm:$0xff] }
 0x406   :  { %12961 = vmatpush3.bf16.msra.mxu1 %v12960_v53  ;;  %v1304_v53 = vrot.slane %v1287_v40, %v15887_v59  ;;  %v2539_v40 = vld [vmem:[%s18556_s9 + $0x108] sm:$0xff] }
 0x407   :  { %12963 = vmatprep.subr.bf16.mxu1 %v12962_v54  ;;  %v13080_v13 = vpack.c.bf16 %v2539_v40, %v2538_v39  ;;  %v2563_v39 = vld [vmem:[%s18556_s9 + $0x1c8] sm:$0xff] }
 0x40a   :  { %12965 = vmatpush3.bf16.msra.mxu1 %v12964_v58  ;;  %v16188_v58 = vsub.s32 %v1539_v52, %v15832_v11  ;;  %v2540_v52 = vld [vmem:[%s18556_s9 + $0x110] sm:$0xff] }
 0x40b   :  { %13009 = vmatprep.subr.bf16.mxu1 %v13008_v0 }
 0x40d   :  { %1911 = vmatmul.mubr.f32.vlgmr.msra.gmra.mrb[14].mxu1 %v15922_v43 }
 0x40e   :  { %2138 = vmatprep.mubr.f32.mxu1 %v15268_v1  ;;  %13011 = vmatpush1.bf16.msra.mxu1 %v13010_v7 }
 0x40f   :  { %13013 = vmatprep.subr.bf16.mxu1 %v13012_v19 }
 0x412   :  { %13015 = vmatpush1.bf16.msra.mxu1 %v13014_v24 }
 0x413   :  { %13017 = vmatprep.subr.bf16.mxu1 %v13016_v34 }
 0x414   :  { %v16163_v60 = vpop.f32.mrb[14].mxu0 }
 0x415   :  { %v1984_v61 = vpop.f32.mrb[15].mxu0 }
 0x490   :  { %v1384_v44 = vpop.f32.mrb[6].mxu1 }
 0x491   :  { %v1385_v20 = vadd.f32 %v1384_v44, %v1292_v41  ;;  %v1386_v45 = vpop.f32.mrb[7].mxu1  ;;  %v2007_v41 = vld [vmem:[%s18555_s5 + $0xa8] sm:$0xff] }
 0x492   :  { %v1387_v48 = vadd.f32 %v1386_v45, %v1296_v42  ;;  %v2016_v42 = vld [vmem:[%s18555_s5 + $0xf0] sm:$0xff]  ;;  %v2557_v45 = vld [vmem:[%s18556_s9 + $0x198] sm:$0xff] }
 0x494   :  { %v1535_v49 = vcombine.low %v1385_v20, %v1387_v48  ;;  %v2556_v20 = vld [vmem:[%s18556_s9 + $0x190] sm:$0xff]  ;;  %v2015_v48 = vld [vmem:[%s18555_s5 + $0xe8] sm:$0xff] }
 0x496   :  { %v1543_v0 = vrot.slane %v1535_v49, %v16188_v58 }
 0x498   :  { %v1455_v54 = vpop.f32.mrb[8].mxu1 }
 0x499   :  { %v1456_v55 = vadd.f32 %v1455_v54, %v1300_v51  ;;  %v1457_v56 = vpop.f32.mrb[9].mxu1  ;;  %v13020_v51 = vpack.c.bf16 %v2016_v42, %v2007_v41  ;;  %v1991_v54 = vld [vmem:[%s18555_s5 + $0x28] sm:$0xff]  ;;  %v1992_v42 = vld [vmem:[%s18555_s5 + $0x30] sm:$0xff] }
 0x49a   :  { %v1458_v61 = vadd.f32 %v1457_v56, %v1304_v53  ;;  %v2541_v53 = vld [vmem:[%s18556_s9 + $0x118] sm:$0xff]  ;;  %v2000_v56 = vld [vmem:[%s18555_s5 + $0x70] sm:$0xff] }
 0x49c   :  { %v1536_v62 = vcombine.low %v1456_v55, %v1458_v61  ;;  %v13082_v55 = vpack.c.bf16 %v2557_v45, %v2556_v20  ;;  %v2558_v61 = vld [vmem:[%s18556_s9 + $0x1a0] sm:$0xff] }
 0x49e   :  { %v1550_v3 = vrot.slane %v1536_v62, %v16188_v58  ;;  %v2559_v62 = vld [vmem:[%s18556_s9 + $0x1a8] sm:$0xff] }
 0x4a0   :  { %v1558_v4 = vcombine.low %v1543_v0, %v1550_v3  ;;  %v1526_v6 = vpop.f32.mrb[10].mxu1  ;;  %v1990_v0 = vld [vmem:[%s18555_s5 + $0x20] sm:$0xff]  ;;  %v1999_v3 = vld [vmem:[%s18555_s5 + $0x68] sm:$0xff] }
 0x4a1   :  { %v1527_v7 = vadd.f32 %v1526_v6, %v1308_v63  ;;  %v12515_v8 = vpop.f32.mrb[11].mxu1  ;;  %v13084_v63 = vpack.c.bf16 %v2541_v53, %v2540_v52  ;;  %v13086_v6 = vpack.c.bf16 %v2559_v62, %v2558_v61  ;;  %v2565_v52 = vld [vmem:[%s18556_s9 + $0x1d8] sm:$0xff] }
 0x4a2   :  { %v1565_v17 = vrot.slane %v1558_v4, %v16188_v58  ;;  %v13024_v4 = vpack.c.bf16 %v2000_v56, %v1991_v54  ;;  %v2543_v8 = vld [vmem:[%s18556_s9 + $0x128] sm:$0xff] }
 0x4a3   :  { %v1557_v16 = vrot.slane %v1527_v7, %v16188_v58  ;;  %v2542_v7 = vld [vmem:[%s18556_s9 + $0x120] sm:$0xff]  ;;  %v2019_v56 = vld [vmem:[%s18555_s5 + $0x108] sm:$0xff] }
 0x4a5   :  { %v1572_v11 = vrot.slane %v1557_v16, %v16188_v58  ;;  %v2009_v16 = vld [vmem:[%s18555_s5 + $0xb8] sm:$0xff] }
 0x4a7   :  { %v1573_v19 = vcombine.low %v1565_v17, %v1572_v11  ;;  %v2018_v11 = vld [vmem:[%s18555_s5 + $0x100] sm:$0xff]  ;;  %v2560_v17 = vld [vmem:[%s18556_s9 + $0x1b0] sm:$0xff] }
 0x4a9   :  { %1579 = vst.msk [vmem:[#allocation12] sm:$0x1f] %vm16197_vm7, %v1573_v19  ;;  %v2561_v19 = vld [vmem:[%s18556_s9 + $0x1b8] sm:$0xff] }
 0x4c0   :  { %v11333_v21 = vpop.f32.mrb[12].mxu1 }
 0x4c1   :  { %v11334_v23 = vpop.f32.mrb[13].mxu1 }
 0x4c2   :  { %v11335_v24 = vadd.f32 %v11334_v23, %v11333_v21  ;;  %v13026_v21 = vpack.c.bf16 %v1999_v3, %v1990_v0  ;;  %v2008_v23 = vld [vmem:[%s18555_s5 + $0xb0] sm:$0xff]  ;;  %v2522_v0 = vld [vmem:[%s18556_s9 + $0x80] sm:$0xff]  ;;  %v2523_v3 = vld [vmem:[%s18556_s9 + $0x88] sm:$0xff] }
 0x4c4   :  { %v1773_v25 = vadd.f32 %v11335_v24, %v1705_v22  ;;  %v13088_v22 = vpack.c.bf16 %v2543_v8, %v2542_v7  ;;  %v2017_v24 = vld [vmem:[%s18555_s5 + $0xf8] sm:$0xff] }
 0x4c5   :  { %v13030_v40 = vpack.c.bf16 %v2017_v24, %v2008_v23  ;;  %v2524_v23 = vld [vmem:[%s18556_s9 + $0x90] sm:$0xff]  ;;  %v2525_v24 = vld [vmem:[%s18556_s9 + $0x98] sm:$0xff] }
 0x4c6   :  { %v1843_v26 = vadd.f32 %v16117_v38, %v1773_v25  ;;  %v13018_v38 = vpack.c.bf16 %v1997_v37, %v1988_v32  ;;  %v13028_v25 = vpack.c.bf16 %v2018_v11, %v2009_v16  ;;  %v1993_v32 = vld [vmem:[%s18555_s5 + $0x38] sm:$0xff]  ;;  %v2562_v37 = vld [vmem:[%s18556_s9 + $0x1c0] sm:$0xff]  ;;  %v13046_v16 = vpack.c.bf16 %v2523_v3, %v2522_v0  ;;  %v2531_v0 = vld [vmem:[%s18556_s9 + $0xc8] sm:$0xff] }
 0x4c7   :  { %v13094_v45 = vpack.c.bf16 %v2563_v39, %v2562_v37  ;;  %v2509_v37 = vld [vmem:[%s18556_s9 + $0x18] sm:$0xff]  ;;  %v2552_v39 = vld [vmem:[%s18556_s9 + $0x170] sm:$0xff] }
 0x4e0   :  { %v11403_v28 = vpop.f32.mrb[14].mxu1 }
 0x4e1   :  { %v11404_v36 = vpop.f32.mrb[15].mxu1 }
 0x4e2   :  { %v11405_v34 = vadd.f32 %v11404_v36, %v11403_v28  ;;  %v2544_v28 = vld [vmem:[%s18556_s9 + $0x130] sm:$0xff]  ;;  %v2545_v36 = vld [vmem:[%s18556_s9 + $0x138] sm:$0xff] }
 0x4e3   :  { %v13092_v41 = vpack.c.bf16 %v2545_v36, %v2544_v28 }
 0x4e4   :  { %v1913_v44 = vadd.f32 %v11405_v34, %v1843_v26  ;;  %v13090_v26 = vpack.c.bf16 %v2561_v19, %v2560_v17  ;;  %v2002_v34 = vld [vmem:[%s18555_s5 + $0x80] sm:$0xff]  ;;  %v2507_v19 = vld [vmem:[%s18556_s9 + $0x8] sm:$0xff] }
 0x4e5   :  { %v13032_v20 = vpack.c.bf16 %v2002_v34, %v1993_v32  ;;  %v2506_v17 = vld [vmem:[%s18556_s9] sm:$0xff]  ;;  %v13050_v32 = vpack.c.bf16 %v2525_v24, %v2524_v23  ;;  %v2508_v34 = vld [vmem:[%s18556_s9 + $0x10] sm:$0xff] }
 0x4e6   :  { %v16216_v49 = vadd.f32 %v16163_v60, %v1913_v44  ;;  %v13022_v60 = vpack.c.bf16 %v2015_v48, %v2006_v46  ;;  %v2001_v44 = vld [vmem:[%s18555_s5 + $0x78] sm:$0xff]  ;;  %v2011_v46 = vld [vmem:[%s18555_s5 + $0xc8] sm:$0xff]  ;;  %v2020_v48 = vld [vmem:[%s18555_s5 + $0x110] sm:$0xff]  ;;  %v13048_v28 = vpack.c.bf16 %v2507_v19, %v2506_v17 }
 0x4e7   :  { %v13034_v53 = vpack.c.bf16 %v2001_v44, %v1992_v42  ;;  %v13036_v61 = vpack.c.bf16 %v2020_v48, %v2011_v46  ;;  %v2526_v42 = vld [vmem:[%s18556_s9 + $0xa0] sm:$0xff]  ;;  %v2527_v44 = vld [vmem:[%s18556_s9 + $0xa8] sm:$0xff]  ;;  %v2532_v17 = vld [vmem:[%s18556_s9 + $0xd0] sm:$0xff] }
 0x4e8   :  { %11124 = vmatmul.mubr.msk.f32.vlgmr.msra.gmra.mrb[16].mxu1 %vm1314_vm6, %v16216_v49  ;;  %12525 = vmatmul.mubr.msk.f32.vlgmr.msra.gmra.mrb[16].mxu0 %vm1314_vm6, %v16216_v49  ;;  %v2511_v46 = vld [vmem:[%s18556_s9 + $0x28] sm:$0xff]  ;;  %v2602_v48 = vld [vmem:[%s18556_s9 + $0x300] sm:$0xff]  ;;  %v2533_v19 = vld [vmem:[%s18556_s9 + $0xd8] sm:$0xff] }
 0x4e9   :  { %13019 = vmatpush1.bf16.msra.mxu1 %v13018_v38  ;;  %13081 = vmatpush3.bf16.msra.mxu0 %v13080_v13  ;;  %v2546_v38 = vld [vmem:[%s18556_s9 + $0x140] sm:$0xff]  ;;  %v2547_v13 = vld [vmem:[%s18556_s9 + $0x148] sm:$0xff]  ;;  %v13066_v23 = vpack.c.bf16 %v2533_v19, %v2532_v17  ;;  %v2516_v24 = vld [vmem:[%s18556_s9 + $0x50] sm:$0xff] }
 0x4ea   :  { %2766 = vmatprep.mubr.f32.mxu0 %v15910_v30  ;;  %13021 = vmatprep.subr.bf16.mxu1 %v13020_v51  ;;  %v2564_v51 = vld [vmem:[%s18556_s9 + $0x1d0] sm:$0xff]  ;;  %v13096_v54 = vpack.c.bf16 %v2547_v13, %v2546_v38  ;;  %v13054_v38 = vpack.c.bf16 %v2527_v44, %v2526_v42  ;;  %v2510_v13 = vld [vmem:[%s18556_s9 + $0x20] sm:$0xff]  ;;  %v2611_v44 = vld [vmem:[%s18556_s9 + $0x348] sm:$0xff] }
 0x4eb   :  { %13083 = vmatprep.subr.bf16.mxu0 %v13082_v55  ;;  %2209 = vmatprep.mubr.f32.mxu1 %v15268_v1  ;;  %v2010_v55 = vld [vmem:[%s18555_s5 + $0xc0] sm:$0xff]  ;;  %v13098_v62 = vpack.c.bf16 %v2565_v52, %v2564_v51  ;;  %v2603_v51 = vld [vmem:[%s18556_s9 + $0x308] sm:$0xff]  ;;  %v2529_v52 = vld [vmem:[%s18556_s9 + $0xb8] sm:$0xff]  ;;  %s18586_s5 = sld [smem:[#allocation65_spill]] }
 0x4ec   :  { %v13038_v7 = vpack.c.bf16 %v2019_v56, %v2010_v55  ;;  %v2512_v55 = vld [vmem:[%s18556_s9 + $0x30] sm:$0xff]  ;;  %v2513_v56 = vld [vmem:[%s18556_s9 + $0x38] sm:$0xff]  ;;  %v2610_v42 = vld [vmem:[%s18556_s9 + $0x340] sm:$0xff] }
 0x4ed   :  { %13023 = vmatpush1.bf16.msra.mxu1 %v13022_v60  ;;  %13085 = vmatpush3.bf16.msra.mxu0 %v13084_v63  ;;  %v2548_v60 = vld [vmem:[%s18556_s9 + $0x150] sm:$0xff]  ;;  %v2549_v63 = vld [vmem:[%s18556_s9 + $0x158] sm:$0xff]  ;;  %v13060_v3 = vpack.c.bf16 %v2513_v56, %v2512_v55 }
 0x4ee   :  { %13025 = vmatprep.subr.bf16.mxu1 %v13024_v4  ;;  %13087 = vmatprep.subr.bf16.mxu0 %v13086_v6  ;;  %v2566_v4 = vld [vmem:[%s18556_s9 + $0x1e0] sm:$0xff]  ;;  %v2567_v6 = vld [vmem:[%s18556_s9 + $0x1e8] sm:$0xff]  ;;  %v13100_v8 = vpack.c.bf16 %v2549_v63, %v2548_v60  ;;  %v2605_v60 = vld [vmem:[%s18556_s9 + $0x318] sm:$0xff] }
 0x4ef   :  { %v13102_v11 = vpack.c.bf16 %v2567_v6, %v2566_v4  ;;  %v2530_v63 = vld [vmem:[%s18556_s9 + $0xc0] sm:$0xff]  ;;  %v2616_v17 = vld [vmem:[%s18556_s9 + $0x370] sm:$0xff]  ;;  %v2617_v19 = vld [vmem:[%s18556_s9 + $0x378] sm:$0xff] }
 0x4f0   :  { %11125 = vmatmul.mubr.msk.f32.vlgmr.msra.gmra.mrb[18].mxu1 %vm1314_vm6, %v16216_v49  ;;  %v13062_v6 = vpack.c.bf16 %v2531_v0, %v2530_v63  ;;  %v2614_v63 = vld [vmem:[%s18556_s9 + $0x360] sm:$0xff]  ;;  %v2615_v0 = vld [vmem:[%s18556_s9 + $0x368] sm:$0xff] }
 0x4f1   :  { %13027 = vmatpush1.bf16.msra.mxu1 %v13026_v21  ;;  %13089 = vmatpush3.bf16.msra.mxu0 %v13088_v22  ;;  %v2550_v21 = vld [vmem:[%s18556_s9 + $0x160] sm:$0xff]  ;;  %v2551_v22 = vld [vmem:[%s18556_s9 + $0x168] sm:$0xff] }
 0x4f2   :  { %13029 = vmatprep.subr.bf16.mxu1 %v13028_v25  ;;  %13091 = vmatprep.subr.bf16.mxu0 %v13090_v26  ;;  %v2568_v25 = vld [vmem:[%s18556_s9 + $0x1f0] sm:$0xff]  ;;  %v2569_v26 = vld [vmem:[%s18556_s9 + $0x1f8] sm:$0xff]  ;;  %v13104_v36 = vpack.c.bf16 %v2551_v22, %v2550_v21 }
 0x4f3   :  { %2280 = vmatprep.mubr.f32.mxu1 %v15268_v1 }
 0x4f5   :  { %13031 = vmatpush1.bf16.msra.mxu1 %v13030_v40  ;;  %13093 = vmatpush3.bf16.msra.mxu0 %v13092_v41  ;;  %v13106_v40 = vpack.c.bf16 %v2569_v26, %v2568_v25  ;;  %v2553_v41 = vld [vmem:[%s18556_s9 + $0x178] sm:$0xff]  ;;  %v2608_v26 = vld [vmem:[%s18556_s9 + $0x330] sm:$0xff] }
 0x4f6   :  { %13033 = vmatprep.subr.bf16.mxu1 %v13032_v20  ;;  %13095 = vmatprep.subr.bf16.mxu0 %v13094_v45  ;;  %v13052_v20 = vpack.c.bf16 %v2509_v37, %v2508_v34  ;;  %v13108_v45 = vpack.c.bf16 %v2553_v41, %v2552_v39  ;;  %v2517_v25 = vld [vmem:[%s18556_s9 + $0x58] sm:$0xff]  ;;  %v2519_v41 = vld [vmem:[%s18556_s9 + $0x68] sm:$0xff] }
 0x4f7   :  { %v13068_v34 = vpack.c.bf16 %v2517_v25, %v2516_v24  ;;  %v13164_v24 = vpack.c.bf16 %v2617_v19, %v2616_v17  ;;  %v2582_v17 = vld [vmem:[%s18556_s9 + $0x260] sm:$0xff]  ;;  %v2583_v19 = vld [vmem:[%s18556_s9 + $0x268] sm:$0xff] }
 0x4f8   :  { %11126 = vmatmul.mubr.msk.f32.vlgmr.msra.gmra.mrb[20].mxu1 %vm1314_vm6, %v16216_v49 }
 0x4f9   :  { %13035 = vmatpush1.bf16.msra.mxu1 %v13034_v53  ;;  %13097 = vmatpush3.bf16.msra.mxu0 %v13096_v54  ;;  %v13056_v53 = vpack.c.bf16 %v2511_v46, %v2510_v13  ;;  %v13143_v54 = vpack.c.bf16 %v2603_v51, %v2602_v48  ;;  %v13155_v13 = vpack.c.bf16 %v2611_v44, %v2610_v42  ;;  %v2520_v48 = vld [vmem:[%s18556_s9 + $0x70] sm:$0xff]  ;;  %v2521_v51 = vld [vmem:[%s18556_s9 + $0x78] sm:$0xff] }
 0x4fa   :  { %13037 = vmatprep.subr.bf16.mxu1 %v13036_v61  ;;  %13099 = vmatprep.subr.bf16.mxu0 %v13098_v62  ;;  %v2604_v61 = vld [vmem:[%s18556_s9 + $0x310] sm:$0xff]  ;;  %v13076_v55 = vpack.c.bf16 %v2521_v51, %v2520_v48  ;;  %v2577_v44 = vld [vmem:[%s18556_s9 + $0x238] sm:$0xff] }
 0x4fb   :  { %2351 = vmatprep.mubr.f32.mxu1 %v15268_v1  ;;  %v13146_v4 = vpack.c.bf16 %v2605_v60, %v2604_v61  ;;  %v2571_v60 = vld [vmem:[%s18556_s9 + $0x208] sm:$0xff]  ;;  %v2576_v42 = vld [vmem:[%s18556_s9 + $0x230] sm:$0xff] }
 0x4fd   :  { %13039 = vmatpush1.bf16.msra.mxu1 %v13038_v7  ;;  %13101 = vmatpush3.bf16.msra.mxu0 %v13100_v8  ;;  %v2514_v7 = vld [vmem:[%s18556_s9 + $0x40] sm:$0xff]  ;;  %v2515_v8 = vld [vmem:[%s18556_s9 + $0x48] sm:$0xff] }
 0x4fe   :  { %13047 = vmatprep.subr.bf16.mxu1 %v13046_v16  ;;  %13103 = vmatprep.subr.bf16.mxu0 %v13102_v11  ;;  %v2606_v16 = vld [vmem:[%s18556_s9 + $0x320] sm:$0xff]  ;;  %v2607_v11 = vld [vmem:[%s18556_s9 + $0x328] sm:$0xff]  ;;  %v13064_v21 = vpack.c.bf16 %v2515_v8, %v2514_v7  ;;  %v13161_v7 = vpack.c.bf16 %v2615_v0, %v2614_v63  ;;  %v2580_v63 = vld [vmem:[%s18556_s9 + $0x250] sm:$0xff] }
 0x4ff   :  { %v13149_v22 = vpack.c.bf16 %v2607_v11, %v2606_v16  ;;  %v2572_v16 = vld [vmem:[%s18556_s9 + $0x210] sm:$0xff]  ;;  %v2573_v11 = vld [vmem:[%s18556_s9 + $0x218] sm:$0xff] }
 0x500   :  { %11127 = vmatmul.mubr.msk.f32.vlgmr.msra.gmra.mrb[22].mxu1 %vm1314_vm6, %v16216_v49  ;;  %v2528_v49 = vld [vmem:[%s18556_s9 + $0xb0] sm:$0xff]  ;;  %v2581_v0 = vld [vmem:[%s18556_s9 + $0x258] sm:$0xff] }
 0x501   :  { %13049 = vmatpush3.bf16.msra.mxu1 %v13048_v28  ;;  %2696 = vmatprep.mubr.f32.mxu1 %v15858_v29  ;;  %v13058_v62 = vpack.c.bf16 %v2529_v52, %v2528_v49  ;;  %v2609_v28 = vld [vmem:[%s18556_s9 + $0x338] sm:$0xff]  ;;  %v2612_v49 = vld [vmem:[%s18556_s9 + $0x350] sm:$0xff] }
 0x502   :  { %13105 = vmatpush3.bf16.msra.mxu0 %v13104_v36  ;;  %13051 = vmatprep.subr.bf16.mxu1 %v13050_v32  ;;  %v2534_v36 = vld [vmem:[%s18556_s9 + $0xe0] sm:$0xff]  ;;  %v2535_v32 = vld [vmem:[%s18556_s9 + $0xe8] sm:$0xff]  ;;  %v13152_v37 = vpack.c.bf16 %v2609_v28, %v2608_v26  ;;  %v2613_v52 = vld [vmem:[%s18556_s9 + $0x358] sm:$0xff] }
 0x503   :  { %13107 = vmatprep.subr.bf16.mxu0 %v13106_v40  ;;  %v13070_v39 = vpack.c.bf16 %v2535_v32, %v2534_v36  ;;  %v2518_v40 = vld [vmem:[%s18556_s9 + $0x60] sm:$0xff]  ;;  %v13158_v56 = vpack.c.bf16 %v2613_v52, %v2612_v49  ;;  %v2575_v28 = vld [vmem:[%s18556_s9 + $0x228] sm:$0xff] }
 0x504   :  { %v2574_v26 = vld [vmem:[%s18556_s9 + $0x220] sm:$0xff]  ;;  %v2619_v32 = vld [vmem:[%s18556_s9 + $0x388] sm:$0xff] }
 0x505   :  { %13053 = vmatpush3.bf16.msra.mxu1 %v13052_v20  ;;  %v2536_v20 = vld [vmem:[%s18556_s9 + $0xf0] sm:$0xff]  ;;  %v2618_v36 = vld [vmem:[%s18556_s9 + $0x380] sm:$0xff]  ;;  %v2579_v52 = vld [vmem:[%s18556_s9 + $0x248] sm:$0xff] }
 0x506   :  { %13109 = vmatpush3.bf16.msra.mxu0 %v13108_v45  ;;  %13055 = vmatprep.subr.bf16.mxu1 %v13054_v38  ;;  %v2537_v45 = vld [vmem:[%s18556_s9 + $0xf8] sm:$0xff]  ;;  %v13072_v38 = vpack.c.bf16 %v2519_v41, %v2518_v40  ;;  %v13167_v40 = vpack.c.bf16 %v2619_v32, %v2618_v36  ;;  %v2578_v49 = vld [vmem:[%s18556_s9 + $0x240] sm:$0xff]  ;;  %v2584_v36 = vld [vmem:[%s18556_s9 + $0x270] sm:$0xff] }
 0x507   :  { %13142 = vmatprep.subr.bf16.mxu0 %v15270_v9  ;;  %v13074_v46 = vpack.c.bf16 %v2537_v45, %v2536_v20  ;;  %v2620_v20 = vld [vmem:[%s18556_s9 + $0x390] sm:$0xff]  ;;  %v2621_v45 = vld [vmem:[%s18556_s9 + $0x398] sm:$0xff] }
 0x508   :  { %v13170_v48 = vpack.c.bf16 %v2621_v45, %v2620_v20  ;;  %v2585_v32 = vld [vmem:[%s18556_s9 + $0x278] sm:$0xff]  ;;  %v2912_v45 = vld [vmem:[%s18561_s21] sm:$0xff] }
 0x509   :  { %2767 = vmatmul.mubr.f32.vlgmr.msra.gmra.mrb[18].mxu0 %v15912_v33  ;;  %13057 = vmatpush3.bf16.msra.mxu1 %v13056_v53  ;;  %v2586_v53 = vld [vmem:[%s18556_s9 + $0x280] sm:$0xff] }
 0x50a   :  { %13144 = vmatpush1.bf16.msra.mxu0 %v13143_v54  ;;  %11129 = vmatprep.mubr.msk.f32.mxu0 %vm983_vm5, %v15946_v2  ;;  %v2587_v54 = vld [vmem:[%s18556_s9 + $0x288] sm:$0xff] }
 0x50b   :  { %13059 = vmatprep.subr.bf16.mxu1 %v13058_v62  ;;  %13145 = vmatprep.subr.bf16.mxu0 %v15270_v9  ;;  %v13110_v61 = vpack.c.bf16 %v2587_v54, %v2586_v53  ;;  %v2570_v62 = vld [vmem:[%s18556_s9 + $0x200] sm:$0xff]  ;;  %v2623_v54 = vld [vmem:[%s18556_s9 + $0x3a8] sm:$0xff] }
 0x50c   :  { %v2622_v53 = vld [vmem:[%s18556_s9 + $0x3a0] sm:$0xff] }
 0x50d   :  { %13061 = vmatpush3.bf16.msra.mxu1 %v13060_v3  ;;  %v2588_v3 = vld [vmem:[%s18556_s9 + $0x290] sm:$0xff] }
 0x50e   :  { %13147 = vmatpush1.bf16.msra.mxu0 %v13146_v4  ;;  %13063 = vmatprep.subr.bf16.mxu1 %v13062_v6  ;;  %v2589_v4 = vld [vmem:[%s18556_s9 + $0x298] sm:$0xff]  ;;  %v13112_v6 = vpack.c.bf16 %v2571_v60, %v2570_v62  ;;  %v13173_v62 = vpack.c.bf16 %v2623_v54, %v2622_v53  ;;  %v2930_v54 = vld [vmem:[%s18561_s21 + $0x90] sm:$0xff] }
 0x50f   :  { %13148 = vmatprep.subr.bf16.mxu0 %v15270_v9  ;;  %v13114_v8 = vpack.c.bf16 %v2589_v4, %v2588_v3  ;;  %v2624_v3 = vld [vmem:[%s18556_s9 + $0x3b0] sm:$0xff]  ;;  %v2625_v4 = vld [vmem:[%s18556_s9 + $0x3b8] sm:$0xff] }
 0x511   :  { %13065 = vmatpush3.bf16.msra.mxu1 %v13064_v21  ;;  %v2590_v21 = vld [vmem:[%s18556_s9 + $0x2a0] sm:$0xff] }
 0x512   :  { %13150 = vmatpush1.bf16.msra.mxu0 %v13149_v22  ;;  %13067 = vmatprep.subr.bf16.mxu1 %v13066_v23  ;;  %v2591_v22 = vld [vmem:[%s18556_s9 + $0x2a8] sm:$0xff]  ;;  %v13116_v23 = vpack.c.bf16 %v2573_v11, %v2572_v16  ;;  %v13176_v16 = vpack.c.bf16 %v2625_v4, %v2624_v3  ;;  %v3478_v3 = vld [vmem:[%s18562_s25 + $0x180] sm:$0xff] }
 0x513   :  { %13151 = vmatprep.subr.bf16.mxu0 %v15270_v9  ;;  %v13118_v25 = vpack.c.bf16 %v2591_v22, %v2590_v21  ;;  %v2626_v21 = vld [vmem:[%s18556_s9 + $0x3c0] sm:$0xff]  ;;  %v2627_v22 = vld [vmem:[%s18556_s9 + $0x3c8] sm:$0xff] }
 0x515   :  { %13069 = vmatpush3.bf16.msra.mxu1 %v13068_v34  ;;  %v2592_v34 = vld [vmem:[%s18556_s9 + $0x2b0] sm:$0xff] }
 0x516   :  { %13153 = vmatpush1.bf16.msra.mxu0 %v13152_v37  ;;  %13071 = vmatprep.subr.bf16.mxu1 %v13070_v39  ;;  %v2593_v37 = vld [vmem:[%s18556_s9 + $0x2b8] sm:$0xff]  ;;  %v13120_v39 = vpack.c.bf16 %v2575_v28, %v2574_v26  ;;  %v13179_v26 = vpack.c.bf16 %v2627_v22, %v2626_v21 }
 0x517   :  { %13154 = vmatprep.subr.bf16.mxu0 %v15270_v9  ;;  %v13122_v41 = vpack.c.bf16 %v2593_v37, %v2592_v34  ;;  %v2628_v34 = vld [vmem:[%s18556_s9 + $0x3d0] sm:$0xff]  ;;  %v2629_v37 = vld [vmem:[%s18556_s9 + $0x3d8] sm:$0xff] }
 0x519   :  { %13073 = vmatpush3.bf16.msra.mxu1 %v13072_v38  ;;  %v2594_v38 = vld [vmem:[%s18556_s9 + $0x2c0] sm:$0xff] }
 0x51a   :  { %13156 = vmatpush1.bf16.msra.mxu0 %v13155_v13  ;;  %13075 = vmatprep.subr.bf16.mxu1 %v13074_v46  ;;  %v2595_v13 = vld [vmem:[%s18556_s9 + $0x2c8] sm:$0xff]  ;;  %v13124_v46 = vpack.c.bf16 %v2577_v44, %v2576_v42  ;;  %v2922_v44 = vld [vmem:[%s18561_s21 + $0x50] sm:$0xff] }
 0x51b   :  { %13157 = vmatprep.subr.bf16.mxu0 %v15270_v9  ;;  %v13126_v51 = vpack.c.bf16 %v2595_v13, %v2594_v38  ;;  %v2913_v42 = vld [vmem:[%s18561_s21 + $0x8] sm:$0xff]  ;;  %v2920_v13 = vld [vmem:[%s18561_s21 + $0x40] sm:$0xff] }
 0x51c   :  { %v13184_v20 = vpack.c.bf16 %v2922_v44, %v2913_v42  ;;  %v2921_v38 = vld [vmem:[%s18561_s21 + $0x48] sm:$0xff] }
 0x51d   :  { %13077 = vmatpush3.bf16.msra.mxu1 %v13076_v55  ;;  %v2596_v55 = vld [vmem:[%s18556_s9 + $0x2d0] sm:$0xff] }
 0x51e   :  { %13159 = vmatpush1.bf16.msra.mxu0 %v13158_v56  ;;  %13111 = vmatprep.subr.bf16.mxu1 %v13110_v61  ;;  %v2597_v56 = vld [vmem:[%s18556_s9 + $0x2d8] sm:$0xff]  ;;  %v13128_v61 = vpack.c.bf16 %v2579_v52, %v2578_v49  ;;  %v2940_v52 = vld [vmem:[%s18561_s21 + $0xe0] sm:$0xff] }
 0x51f   :  { %13160 = vmatprep.subr.bf16.mxu0 %v15270_v9  ;;  %v13130_v60 = vpack.c.bf16 %v2597_v56, %v2596_v55  ;;  %v2931_v49 = vld [vmem:[%s18561_s21 + $0x98] sm:$0xff]  ;;  %v2938_v56 = vld [vmem:[%s18561_s21 + $0xd0] sm:$0xff] }
 0x520   :  { %2697 = vmatmul.mubr.f32.vlgmr.msra.gmra.mrb[24].mxu1 %v15860_v31  ;;  %v13188_v53 = vpack.c.bf16 %v2940_v52, %v2931_v49  ;;  %v2939_v55 = vld [vmem:[%s18561_s21 + $0xd8] sm:$0xff] }
 0x521   :  { %13113 = vmatpush3.bf16.msra.mxu1 %v13112_v6  ;;  %2836 = vmatprep.mubr.f32.mxu1 %v15864_v35  ;;  %v2598_v6 = vld [vmem:[%s18556_s9 + $0x2e0] sm:$0xff] }
 0x522   :  { %13162 = vmatpush1.bf16.msra.mxu0 %v13161_v7  ;;  %13115 = vmatprep.subr.bf16.mxu1 %v13114_v8  ;;  %v2599_v7 = vld [vmem:[%s18556_s9 + $0x2e8] sm:$0xff]  ;;  %v13132_v8 = vpack.c.bf16 %v2581_v0, %v2580_v63  ;;  %v2915_v63 = vld [vmem:[%s18561_s21 + $0x18] sm:$0xff]  ;;  %v2924_v0 = vld [vmem:[%s18561_s21 + $0x60] sm:$0xff] }
 0x523   :  { %13163 = vmatprep.subr.bf16.mxu0 %v15270_v9  ;;  %v13134_v11 = vpack.c.bf16 %v2599_v7, %v2598_v6  ;;  %v13192_v4 = vpack.c.bf16 %v2924_v0, %v2915_v63  ;;  %v3479_v6 = vld [vmem:[%s18562_s25 + $0x188] sm:$0xff] }
 0x524   :  { %v13254_v7 = vpack.c.bf16 %v3479_v6, %v3478_v3 }
 0x525   :  { %13117 = vmatpush3.bf16.msra.mxu1 %v13116_v23  ;;  %v2600_v23 = vld [vmem:[%s18556_s9 + $0x2f0] sm:$0xff] }
 0x526   :  { %13165 = vmatpush1.bf16.msra.mxu0 %v13164_v24  ;;  %13119 = vmatprep.subr.bf16.mxu1 %v13118_v25  ;;  %v2601_v24 = vld [vmem:[%s18556_s9 + $0x2f8] sm:$0xff]  ;;  %v13136_v25 = vpack.c.bf16 %v2583_v19, %v2582_v17 }
 0x527   :  { %13166 = vmatprep.subr.bf16.mxu0 %v15270_v9  ;;  %v13138_v28 = vpack.c.bf16 %v2601_v24, %v2600_v23 }
 0x529   :  { %13121 = vmatpush3.bf16.msra.mxu1 %v13120_v39  ;;  %v13140_v39 = vpack.c.bf16 %v2585_v32, %v2584_v36 }
 0x52a   :  { %13168 = vmatpush1.bf16.msra.mxu0 %v13167_v40  ;;  %13123 = vmatprep.subr.bf16.mxu1 %v13122_v41  ;;  %v13182_v40 = vpack.c.bf16 %v2629_v37, %v2628_v34  ;;  %v2630_v41 = vld [vmem:[%s18556_s9 + $0x3e0] sm:$0xff]  ;;  %s18587_s9 = sld [smem:[#allocation72_spill]] }
 0x52b   :  { %13169 = vmatprep.subr.bf16.mxu0 %v15270_v9 }
 0x52d   :  { %13125 = vmatpush3.bf16.msra.mxu1 %v13124_v46  ;;  %v13186_v46 = vpack.c.bf16 %v2921_v38, %v2912_v45 }
 0x52e   :  { %13171 = vmatpush1.bf16.msra.mxu0 %v13170_v48  ;;  %13127 = vmatprep.subr.bf16.mxu1 %v13126_v51  ;;  %v2929_v48 = vld [vmem:[%s18561_s21 + $0x88] sm:$0xff] }
 0x52f   :  { %13172 = vmatprep.subr.bf16.mxu0 %v15270_v9  ;;  %v13217_v51 = vpack.c.bf16 %v2929_v48, %v2920_v13 }
 0x531   :  { %13129 = vmatpush3.bf16.msra.mxu1 %v13128_v61  ;;  %v13190_v61 = vpack.c.bf16 %v2939_v55, %v2930_v54 }
 0x532   :  { %13174 = vmatpush1.bf16.msra.mxu0 %v13173_v62  ;;  %13131 = vmatprep.subr.bf16.mxu1 %v13130_v60  ;;  %v2947_v62 = vld [vmem:[%s18561_s21 + $0x118] sm:$0xff] }
 0x533   :  { %13175 = vmatprep.subr.bf16.mxu0 %v15270_v9  ;;  %v13220_v60 = vpack.c.bf16 %v2947_v62, %v2938_v56 }
 0x535   :  { %13133 = vmatpush3.bf16.msra.mxu1 %v13132_v8  ;;  %v2022_v8 = vld [vmem:[%s18563_s29] sm:$0xff] }
 0x536   :  { %13177 = vmatpush1.bf16.msra.mxu0 %v13176_v16  ;;  %13135 = vmatprep.subr.bf16.mxu1 %v13134_v11  ;;  %v2029_v16 = vrot.slane %v2022_v8, %v15835_v12  ;;  %v11123_v11 = vld [vmem:[%s18563_s29 + $0x8] ss:$0 sm:$0xff]  ;;  %v2033_v17 = vrot.slane %v2022_v8, %v15841_v14  ;;  %v2037_v37 = vrot.slane %v2022_v8, %v15884_v57  ;;  %s18592_s29 = sld [smem:[#allocation76_spill]] }
 0x537   :  { %13178 = vmatprep.subr.bf16.mxu0 %v15270_v9  ;;  %v2045_v45 = vrot.slane %v2022_v8, %v15898_v5  ;;  %v2053_v55 = vrot.slane %v2022_v8, %v15966_v27  ;;  %v2057_v56 = vrot.slane %v2022_v8, %v15933_v50 }
 0x539   :  { %13137 = vmatpush3.bf16.msra.mxu1 %v13136_v25 }
 0x53a   :  { %13180 = vmatpush1.bf16.msra.mxu0 %v13179_v26  ;;  %13139 = vmatprep.subr.bf16.mxu1 %v13138_v28 }
 0x53b   :  { %13181 = vmatprep.subr.bf16.mxu0 %v15270_v9 }
 0x53d   :  { %13141 = vmatpush3.bf16.msra.mxu1 %v13140_v39  ;;  %v2041_v39 = vrot.slane %v2022_v8, %v15887_v59 }
 0x53e   :  { %13183 = vmatpush1.bf16.msra.mxu0 %v13182_v40  ;;  %13185 = vmatprep.subr.bf16.mxu1 %v13184_v20 }
 0x53f   :  { %2898 = vmatprep.subr.mxu0 %v15268_v1 }
 0x540   :  { %2837 = vmatmul.mubr.f32.vlgmr.msra.gmra.mrb[26].mxu1 %v15922_v43 }
 0x541   :  { %3064 = vmatprep.mubr.f32.mxu1 %v15268_v1  ;;  %13187 = vmatpush1.bf16.msra.mxu1 %v13186_v46  ;;  %v2049_v46 = vrot.slane %v2022_v8, %v15844_v15 }
 0x542   :  { %2899 = vmatpush1.msra.mxu0 %v2630_v41  ;;  %13189 = vmatprep.subr.bf16.mxu1 %v13188_v53 }
 0x543   :  { %2907 = vmatmul.mubr.f32.vlgmr.msra.gmra.mrb[20].mxu0 %v15982_v47  ;;  %13216 = vmatprep.subr.bf16.mxu0 %v15270_v9 }
 0x544   :  { %12535 = vmatprep.mubr.msk.f32.mxu0 %vm15269_vm0, %v15268_v1  ;;  %13218 = vmatpush3.bf16.msra.mxu0 %v13217_v51 }
 0x545   :  { %13219 = vmatprep.subr.bf16.mxu0 %v15270_v9  ;;  %13191 = vmatpush1.bf16.msra.mxu1 %v13190_v61 }
 0x546   :  { %13193 = vmatprep.subr.bf16.mxu1 %v13192_v4 }
 0x548   :  { %13221 = vmatpush3.bf16.msra.mxu0 %v13220_v60 }
 0x549   :  { %13255 = vmatprep.subr.bf16.mxu0 %v13254_v7 }
 0x5bb   :  { %v2140_v19 = vpop.f32.mrb[16].mxu1  ;;  %v2424_v21 = vpop.f32.mrb[16].mxu0 }
 0x5bc   :  { %v2141_v22 = vadd.f32 %v2140_v19, %v2029_v16  ;;  %v2425_v23 = vadd.f32 %v11123_v11, %v2424_v21  ;;  %v2142_v24 = vpop.f32.mrb[17].mxu1  ;;  %v12526_v25 = vpop.f32.mrb[17].mxu0 }
 0x5bd   :  { %v2143_v26 = vadd.f32 %v2142_v24, %v2033_v17 }
 0x5be   :  { %v2492_v28 = vrot.slane %v2425_v23, %v16188_v58 }
 0x5bf   :  { %v2437_v36 = vcombine.low %v2141_v22, %v2143_v26  ;;  %v2631_v22 = vld [vmem:[%s18566_s3] sm:$0x1]  ;;  %s18593_s3 = sld [smem:[#allocation73_spill]] }
 0x5c0   :  { %v2499_v34 = vrot.slane %v2492_v28, %v16188_v58 }
 0x5c1   :  { %v2447_v38 = vrot.slane %v2437_v36, %v16188_v58 }
 0x5c2   :  { %2505 = vst.msk [vmem:[#allocation13 + $0x8] sm:$0x1] %vm16417_vm8, %v2499_v34  ;;  %v2914_v34 = vld [vmem:[%s18561_s21 + $0x10] sm:$0xff] }
 0x5c3   :  { %v2211_v40 = vpop.f32.mrb[18].mxu1 }
 0x5c4   :  { %v2212_v41 = vadd.f32 %v2211_v40, %v2037_v37  ;;  %v2213_v42 = vpop.f32.mrb[19].mxu1  ;;  %v3462_v40 = vld [vmem:[%s18562_s25 + $0x100] sm:$0xff] }
 0x5c5   :  { %v2214_v44 = vadd.f32 %v2213_v42, %v2041_v39  ;;  %v2923_v39 = vld [vmem:[%s18561_s21 + $0x58] sm:$0xff] }
 0x5c7   :  { %v2438_v20 = vcombine.low %v2212_v41, %v2214_v44  ;;  %v3463_v41 = vld [vmem:[%s18562_s25 + $0x108] sm:$0xff] }
 0x5c8   :  { %v2933_v44 = vld [vmem:[%s18561_s21 + $0xa8] sm:$0xff] }
 0x5c9   :  { %v2454_v13 = vrot.slane %v2438_v20, %v16188_v58  ;;  %v2942_v20 = vld [vmem:[%s18561_s21 + $0xf0] sm:$0xff] }
 0x5cb   :  { %v2469_v48 = vcombine.low %v2447_v38, %v2454_v13  ;;  %v2282_v51 = vpop.f32.mrb[20].mxu1  ;;  %v3480_v13 = vld [vmem:[%s18562_s25 + $0x190] sm:$0xff] }
 0x5cc   :  { %v2283_v49 = vadd.f32 %v2282_v51, %v2045_v45  ;;  %v2284_v52 = vpop.f32.mrb[21].mxu1  ;;  %v13256_v51 = vpack.c.bf16 %v3463_v41, %v3462_v40  ;;  %v2919_v40 = vld [vmem:[%s18561_s21 + $0x38] sm:$0xff]  ;;  %v2928_v41 = vld [vmem:[%s18561_s21 + $0x80] sm:$0xff] }
 0x5cd   :  { %v2285_v53 = vadd.f32 %v2284_v52, %v2049_v46  ;;  %v2477_v11 = vrot.slane %v2469_v48, %v16188_v58  ;;  %v3481_v46 = vld [vmem:[%s18562_s25 + $0x198] sm:$0xff]  ;;  %v13194_v48 = vpack.c.bf16 %v2923_v39, %v2914_v34  ;;  %v2941_v52 = vld [vmem:[%s18561_s21 + $0xe8] sm:$0xff] }
 0x5ce   :  { %v3469_v39 = vld [vmem:[%s18562_s25 + $0x138] sm:$0xff] }
 0x5cf   :  { %v2439_v54 = vcombine.low %v2283_v49, %v2285_v53  ;;  %v2932_v49 = vld [vmem:[%s18561_s21 + $0xa0] sm:$0xff] }
 0x5d1   :  { %v2461_v3 = vrot.slane %v2439_v54, %v16188_v58  ;;  %v13196_v54 = vpack.c.bf16 %v2942_v20, %v2933_v44  ;;  %v3487_v44 = vld [vmem:[%s18562_s25 + $0x1c8] sm:$0xff] }
 0x5d3   :  { %v2353_v61 = vpop.f32.mrb[22].mxu1 }
 0x5d4   :  { %v2354_v62 = vadd.f32 %v2353_v61, %v2053_v55  ;;  %v2355_v60 = vpop.f32.mrb[23].mxu1  ;;  %v3464_v55 = vld [vmem:[%s18562_s25 + $0x110] sm:$0xff]  ;;  %v2917_v61 = vld [vmem:[%s18561_s21 + $0x28] sm:$0xff] }
 0x5d5   :  { %v2356_v63 = vadd.f32 %v2355_v60, %v2057_v56  ;;  %v3465_v56 = vld [vmem:[%s18562_s25 + $0x118] sm:$0xff]  ;;  %v2926_v60 = vld [vmem:[%s18561_s21 + $0x70] sm:$0xff] }
 0x5d7   :  { %v2440_v0 = vcombine.low %v2354_v62, %v2356_v63  ;;  %v13258_v62 = vpack.c.bf16 %v3481_v46, %v3480_v13  ;;  %v3482_v63 = vld [vmem:[%s18562_s25 + $0x1a0] sm:$0xff]  ;;  %v2927_v13 = vld [vmem:[%s18561_s21 + $0x78] sm:$0xff]  ;;  %v13208_v46 = vpack.c.bf16 %v2928_v41, %v2919_v40 }
 0x5d9   :  { %v2468_v4 = vrot.slane %v2440_v0, %v16188_v58  ;;  %v3483_v0 = vld [vmem:[%s18562_s25 + $0x1a8] sm:$0xff] }
 0x5db   :  { %v2470_v6 = vcombine.low %v2461_v3, %v2468_v4  ;;  %v13198_v3 = vpack.c.bf16 %v2941_v52, %v2932_v49  ;;  %v13260_v4 = vpack.c.bf16 %v3465_v56, %v3464_v55  ;;  %v3471_v49 = vld [vmem:[%s18562_s25 + $0x148] sm:$0xff]  ;;  %v3488_v55 = vld [vmem:[%s18562_s25 + $0x1d0] sm:$0xff]  ;;  %v3489_v56 = vld [vmem:[%s18562_s25 + $0x1d8] sm:$0xff] }
 0x5dc   :  { %v11478_v7 = vpop.f32.mrb[18].mxu0  ;;  %v2937_v52 = vld [vmem:[%s18561_s21 + $0xc8] sm:$0xff] }
 0x5dd   :  { %v11479_v16 = vpop.f32.mrb[19].mxu0  ;;  %v2484_v8 = vrot.slane %v2470_v6, %v16188_v58  ;;  %v2916_v6 = vld [vmem:[%s18561_s21 + $0x20] sm:$0xff] }
 0x5de   :  { %v11480_v17 = vadd.f32 %v11479_v16, %v11478_v7  ;;  %v2925_v7 = vld [vmem:[%s18561_s21 + $0x68] sm:$0xff]  ;;  %v13200_v16 = vpack.c.bf16 %v2926_v60, %v2917_v61  ;;  %v2936_v60 = vld [vmem:[%s18561_s21 + $0xc0] sm:$0xff] }
 0x5df   :  { %v2485_v19 = vcombine.low %v2477_v11, %v2484_v8  ;;  %v13262_v11 = vpack.c.bf16 %v3483_v0, %v3482_v63  ;;  %v3466_v8 = vld [vmem:[%s18562_s25 + $0x120] sm:$0xff]  ;;  %v2945_v63 = vld [vmem:[%s18561_s21 + $0x108] sm:$0xff] }
 0x5e1   :  { %2502 = vst [vmem:[#allocation13] sm:$0xff] %v2485_v19  ;;  %v2935_v19 = vld [vmem:[%s18561_s21 + $0xb8] sm:$0xff] }
 0x5f3   :  { %v11443_v21 = vpop.f32.mrb[24].mxu1 }
 0x5f4   :  { %v11444_v23 = vpop.f32.mrb[25].mxu1 }
 0x5f5   :  { %v11445_v24 = vadd.f32 %v11444_v23, %v11443_v21  ;;  %v2944_v21 = vld [vmem:[%s18561_s21 + $0x100] sm:$0xff]  ;;  %v3485_v23 = vld [vmem:[%s18562_s25 + $0x1b8] sm:$0xff] }
 0x5f7   :  { %v2699_v25 = vadd.f32 %v11445_v24, %v2631_v22  ;;  %v3484_v22 = vld [vmem:[%s18562_s25 + $0x1b0] sm:$0xff]  ;;  %v13202_v24 = vpack.c.bf16 %v2925_v7, %v2916_v6  ;;  %v3473_v6 = vld [vmem:[%s18562_s25 + $0x158] sm:$0xff]  ;;  %v3446_v7 = vld [vmem:[%s18562_s25 + $0x80] sm:$0xff] }
 0x5f8   :  { %v13266_v34 = vpack.c.bf16 %v3485_v23, %v3484_v22  ;;  %v3430_v23 = vld [vmem:[%s18562_s25] sm:$0xff] }
 0x5f9   :  { %v2769_v26 = vadd.f32 %v11480_v17, %v2699_v25  ;;  %v3467_v17 = vld [vmem:[%s18562_s25 + $0x128] sm:$0xff] }
 0x5fa   :  { %v13264_v25 = vpack.c.bf16 %v3467_v17, %v3466_v8  ;;  %v3491_v8 = vld [vmem:[%s18562_s25 + $0x1e8] sm:$0xff]  ;;  %v13214_v17 = vpack.c.bf16 %v2945_v63, %v2936_v60  ;;  %v3436_v63 = vld [vmem:[%s18562_s25 + $0x30] sm:$0xff] }
 0x613   :  { %v11513_v28 = vpop.f32.mrb[26].mxu1 }
 0x614   :  { %v11514_v36 = vpop.f32.mrb[27].mxu1 }
 0x615   :  { %v11515_v37 = vadd.f32 %v11514_v36, %v11513_v28  ;;  %v2943_v28 = vld [vmem:[%s18561_s21 + $0xf8] sm:$0xff]  ;;  %v13204_v36 = vpack.c.bf16 %v2944_v21, %v2935_v19 }
 0x616   :  { %v2908_v42 = vpop.f32.mrb[20].mxu0 }
 0x617   :  { %v2839_v45 = vadd.f32 %v11515_v37, %v2769_v26  ;;  %v2910_v38 = vpop.f32.mrb[21].mxu0  ;;  %v2934_v26 = vld [vmem:[%s18561_s21 + $0xb0] sm:$0xff] }
 0x618   :  { %v3468_v37 = vld [vmem:[%s18562_s25 + $0x130] sm:$0xff]  ;;  %v13206_v20 = vpack.c.bf16 %v2943_v28, %v2934_v26  ;;  %v3475_v26 = vld [vmem:[%s18562_s25 + $0x168] sm:$0xff] }
 0x619   :  { %v16447_v53 = vadd.f32 %v2908_v42, %v2839_v45  ;;  %v3486_v42 = vld [vmem:[%s18562_s25 + $0x1c0] sm:$0xff]  ;;  %v13268_v45 = vpack.c.bf16 %v3469_v39, %v3468_v37  ;;  %v2918_v38 = vld [vmem:[%s18561_s21 + $0x30] sm:$0xff]  ;;  %v3493_v37 = vld [vmem:[%s18562_s25 + $0x1f8] sm:$0xff] }
 0x61a   :  { %v13210_v61 = vpack.c.bf16 %v2927_v13, %v2918_v38  ;;  %v3448_v28 = vld [vmem:[%s18562_s25 + $0x90] sm:$0xff]  ;;  %v3477_v38 = vld [vmem:[%s18562_s25 + $0x178] sm:$0xff]  ;;  %v3450_v13 = vld [vmem:[%s18562_s25 + $0xa0] sm:$0xff] }
 0x61b   :  { %11131 = vmatmul.mubr.msk.f32.vlgmr.msra.gmra.mrb[28].mxu1 %vm1314_vm6, %v16447_v53  ;;  %12536 = vmatmul.mubr.msk.f32.vlgmr.msra.gmra.mrb[22].mxu0 %vm1314_vm6, %v16447_v53 }
 0x61c   :  { %13195 = vmatpush1.bf16.msra.mxu1 %v13194_v48  ;;  %13257 = vmatpush3.bf16.msra.mxu0 %v13256_v51  ;;  %v13270_v48 = vpack.c.bf16 %v3487_v44, %v3486_v42  ;;  %v3470_v51 = vld [vmem:[%s18562_s25 + $0x140] sm:$0xff]  ;;  %v3432_v42 = vld [vmem:[%s18562_s25 + $0x10] sm:$0xff]  ;;  %v3433_v44 = vld [vmem:[%s18562_s25 + $0x18] sm:$0xff] }
 0x61d   :  { %3690 = vmatprep.mubr.f32.mxu0 %v15910_v30  ;;  %13197 = vmatprep.subr.bf16.mxu1 %v13196_v54  ;;  %v2946_v54 = vld [vmem:[%s18561_s21 + $0x110] sm:$0xff]  ;;  %s18590_s21 = sld [smem:[#allocation75_spill]] }
 0x61e   :  { %13259 = vmatprep.subr.bf16.mxu0 %v13258_v62  ;;  %3135 = vmatprep.mubr.f32.mxu1 %v15268_v1  ;;  %v13272_v62 = vpack.c.bf16 %v3471_v49, %v3470_v51  ;;  %v13212_v0 = vpack.c.bf16 %v2946_v54, %v2937_v52  ;;  %v3434_v52 = vld [vmem:[%s18562_s25 + $0x20] sm:$0xff]  ;;  %v3435_v54 = vld [vmem:[%s18562_s25 + $0x28] sm:$0xff] }
 0x620   :  { %13199 = vmatpush1.bf16.msra.mxu1 %v13198_v3  ;;  %13261 = vmatpush3.bf16.msra.mxu0 %v13260_v4  ;;  %v13274_v3 = vpack.c.bf16 %v3489_v56, %v3488_v55  ;;  %v3472_v4 = vld [vmem:[%s18562_s25 + $0x150] sm:$0xff]  ;;  %v3526_v55 = vld [vmem:[%s18562_s25 + $0x300] sm:$0xff]  ;;  %v3527_v56 = vld [vmem:[%s18562_s25 + $0x308] sm:$0xff] }
 0x621   :  { %13201 = vmatprep.subr.bf16.mxu1 %v13200_v16  ;;  %13263 = vmatprep.subr.bf16.mxu0 %v13262_v11  ;;  %v3447_v16 = vld [vmem:[%s18562_s25 + $0x88] sm:$0xff]  ;;  %v3490_v11 = vld [vmem:[%s18562_s25 + $0x1e0] sm:$0xff]  ;;  %v13276_v19 = vpack.c.bf16 %v3473_v6, %v3472_v4  ;;  %v13319_v60 = vpack.c.bf16 %v3527_v56, %v3526_v55  ;;  %v3529_v6 = vld [vmem:[%s18562_s25 + $0x318] sm:$0xff] }
 0x622   :  { %v13222_v21 = vpack.c.bf16 %v3447_v16, %v3446_v7  ;;  %v13278_v22 = vpack.c.bf16 %v3491_v8, %v3490_v11  ;;  %v3454_v7 = vld [vmem:[%s18562_s25 + $0xc0] sm:$0xff]  ;;  %v3455_v16 = vld [vmem:[%s18562_s25 + $0xc8] sm:$0xff]  ;;  %v3444_v56 = vld [vmem:[%s18562_s25 + $0x70] sm:$0xff] }
 0x623   :  { %11132 = vmatmul.mubr.msk.f32.vlgmr.msra.gmra.mrb[30].mxu1 %vm1314_vm6, %v16447_v53 }
 0x624   :  { %13203 = vmatpush1.bf16.msra.mxu1 %v13202_v24  ;;  %13265 = vmatpush3.bf16.msra.mxu0 %v13264_v25  ;;  %v3431_v24 = vld [vmem:[%s18562_s25 + $0x8] sm:$0xff]  ;;  %v3474_v25 = vld [vmem:[%s18562_s25 + $0x160] sm:$0xff] }
 0x625   :  { %13205 = vmatprep.subr.bf16.mxu1 %v13204_v36  ;;  %13267 = vmatprep.subr.bf16.mxu0 %v13266_v34  ;;  %v3449_v36 = vld [vmem:[%s18562_s25 + $0x98] sm:$0xff]  ;;  %v3492_v34 = vld [vmem:[%s18562_s25 + $0x1f0] sm:$0xff]  ;;  %v13224_v39 = vpack.c.bf16 %v3431_v24, %v3430_v23  ;;  %v13280_v40 = vpack.c.bf16 %v3475_v26, %v3474_v25  ;;  %v3531_v23 = vld [vmem:[%s18562_s25 + $0x328] sm:$0xff] }
 0x626   :  { %3206 = vmatprep.mubr.f32.mxu1 %v15268_v1  ;;  %v13226_v41 = vpack.c.bf16 %v3449_v36, %v3448_v28  ;;  %v3456_v24 = vld [vmem:[%s18562_s25 + $0xd0] sm:$0xff]  ;;  %v3457_v25 = vld [vmem:[%s18562_s25 + $0xd8] sm:$0xff] }
 0x627   :  { %v13242_v36 = vpack.c.bf16 %v3457_v25, %v3456_v24  ;;  %v3497_v24 = vld [vmem:[%s18562_s25 + $0x218] sm:$0xff]  ;;  %v3540_v25 = vld [vmem:[%s18562_s25 + $0x370] sm:$0xff] }
 0x628   :  { %13207 = vmatpush1.bf16.msra.mxu1 %v13206_v20  ;;  %13269 = vmatpush3.bf16.msra.mxu0 %v13268_v45  ;;  %v3476_v20 = vld [vmem:[%s18562_s25 + $0x170] sm:$0xff]  ;;  %v13282_v45 = vpack.c.bf16 %v3493_v37, %v3492_v34  ;;  %v3441_v37 = vld [vmem:[%s18562_s25 + $0x58] sm:$0xff] }
 0x629   :  { %13209 = vmatprep.subr.bf16.mxu1 %v13208_v46  ;;  %13271 = vmatprep.subr.bf16.mxu0 %v13270_v48  ;;  %v3451_v46 = vld [vmem:[%s18562_s25 + $0xa8] sm:$0xff]  ;;  %v13228_v48 = vpack.c.bf16 %v3433_v44, %v3432_v42  ;;  %v13284_v51 = vpack.c.bf16 %v3477_v38, %v3476_v20  ;;  %v3440_v34 = vld [vmem:[%s18562_s25 + $0x50] sm:$0xff]  ;;  %v3442_v38 = vld [vmem:[%s18562_s25 + $0x60] sm:$0xff] }
 0x62a   :  { %v13230_v49 = vpack.c.bf16 %v3451_v46, %v3450_v13  ;;  %v3459_v42 = vld [vmem:[%s18562_s25 + $0xe8] sm:$0xff]  ;;  %v13244_v44 = vpack.c.bf16 %v3441_v37, %v3440_v34  ;;  %v3534_v46 = vld [vmem:[%s18562_s25 + $0x340] sm:$0xff] }
 0x62b   :  { %11133 = vmatmul.mubr.msk.f32.vlgmr.msra.gmra.mrb[32].mxu1 %vm1314_vm6, %v16447_v53  ;;  %v3443_v13 = vld [vmem:[%s18562_s25 + $0x68] sm:$0xff] }
 0x62c   :  { %13211 = vmatpush1.bf16.msra.mxu1 %v13210_v61  ;;  %13273 = vmatpush3.bf16.msra.mxu0 %v13272_v62  ;;  %v3453_v61 = vld [vmem:[%s18562_s25 + $0xb8] sm:$0xff]  ;;  %v13232_v62 = vpack.c.bf16 %v3435_v54, %v3434_v52  ;;  %v13248_v52 = vpack.c.bf16 %v3443_v13, %v3442_v38 }
 0x62d   :  { %13213 = vmatprep.subr.bf16.mxu1 %v13212_v0  ;;  %13275 = vmatprep.subr.bf16.mxu0 %v13274_v3  ;;  %v3437_v0 = vld [vmem:[%s18562_s25 + $0x38] sm:$0xff]  ;;  %v3528_v3 = vld [vmem:[%s18562_s25 + $0x310] sm:$0xff] }
 0x62e   :  { %3277 = vmatprep.mubr.f32.mxu1 %v15268_v1  ;;  %v13236_v11 = vpack.c.bf16 %v3437_v0, %v3436_v63  ;;  %v13322_v8 = vpack.c.bf16 %v3529_v6, %v3528_v3  ;;  %v3511_v63 = vld [vmem:[%s18562_s25 + $0x288] sm:$0xff]  ;;  %v3494_v6 = vld [vmem:[%s18562_s25 + $0x200] sm:$0xff] }
 0x630   :  { %13215 = vmatpush1.bf16.msra.mxu1 %v13214_v17  ;;  %13277 = vmatpush3.bf16.msra.mxu0 %v13276_v19  ;;  %v13238_v17 = vpack.c.bf16 %v3455_v16, %v3454_v7  ;;  %v3438_v19 = vld [vmem:[%s18562_s25 + $0x40] sm:$0xff]  ;;  %v3495_v7 = vld [vmem:[%s18562_s25 + $0x208] sm:$0xff] }
 0x631   :  { %13223 = vmatprep.subr.bf16.mxu1 %v13222_v21  ;;  %13279 = vmatprep.subr.bf16.mxu0 %v13278_v22  ;;  %v3439_v21 = vld [vmem:[%s18562_s25 + $0x48] sm:$0xff]  ;;  %v3530_v22 = vld [vmem:[%s18562_s25 + $0x320] sm:$0xff] }
 0x632   :  { %v13240_v26 = vpack.c.bf16 %v3439_v21, %v3438_v19  ;;  %v13325_v28 = vpack.c.bf16 %v3531_v23, %v3530_v22  ;;  %v3538_v16 = vld [vmem:[%s18562_s25 + $0x360] sm:$0xff]  ;;  %v13288_v19 = vpack.c.bf16 %v3495_v7, %v3494_v6  ;;  %v3496_v23 = vld [vmem:[%s18562_s25 + $0x210] sm:$0xff] }
 0x633   :  { %11134 = vmatmul.mubr.msk.f32.vlgmr.msra.gmra.mrb[34].mxu1 %vm1314_vm6, %v16447_v53  ;;  %v3452_v53 = vld [vmem:[%s18562_s25 + $0xb0] sm:$0xff]  ;;  %v13292_v34 = vpack.c.bf16 %v3497_v24, %v3496_v23 }
 0x634   :  { %13225 = vmatpush3.bf16.msra.mxu1 %v13224_v39  ;;  %3620 = vmatprep.mubr.f32.mxu1 %v15858_v29  ;;  %v13234_v4 = vpack.c.bf16 %v3453_v61, %v3452_v53  ;;  %v3532_v39 = vld [vmem:[%s18562_s25 + $0x330] sm:$0xff]  ;;  %v3445_v53 = vld [vmem:[%s18562_s25 + $0x78] sm:$0xff] }
 0x635   :  { %13281 = vmatpush3.bf16.msra.mxu0 %v13280_v40  ;;  %13227 = vmatprep.subr.bf16.mxu1 %v13226_v41  ;;  %v3533_v40 = vld [vmem:[%s18562_s25 + $0x338] sm:$0xff]  ;;  %v3458_v41 = vld [vmem:[%s18562_s25 + $0xe0] sm:$0xff]  ;;  %v3536_v61 = vld [vmem:[%s18562_s25 + $0x350] sm:$0xff]  ;;  %v13252_v0 = vpack.c.bf16 %v3445_v53, %v3444_v56 }
 0x636   :  { %13283 = vmatprep.subr.bf16.mxu0 %v13282_v45  ;;  %v13328_v20 = vpack.c.bf16 %v3533_v40, %v3532_v39  ;;  %v13246_v45 = vpack.c.bf16 %v3459_v42, %v3458_v41  ;;  %v3498_v40 = vld [vmem:[%s18562_s25 + $0x220] sm:$0xff]  ;;  %v3499_v41 = vld [vmem:[%s18562_s25 + $0x228] sm:$0xff] }
 0x637   :  { %v3542_v42 = vld [vmem:[%s18562_s25 + $0x380] sm:$0xff]  ;;  %v13296_v38 = vpack.c.bf16 %v3499_v41, %v3498_v40 }
 0x638   :  { %13229 = vmatpush3.bf16.msra.mxu1 %v13228_v48  ;;  %v3535_v48 = vld [vmem:[%s18562_s25 + $0x348] sm:$0xff] }
 0x639   :  { %13285 = vmatpush3.bf16.msra.mxu0 %v13284_v51  ;;  %13231 = vmatprep.subr.bf16.mxu1 %v13230_v49  ;;  %v3460_v51 = vld [vmem:[%s18562_s25 + $0xf0] sm:$0xff]  ;;  %v3461_v49 = vld [vmem:[%s18562_s25 + $0xf8] sm:$0xff]  ;;  %v13331_v54 = vpack.c.bf16 %v3535_v48, %v3534_v46 }
 0x63a   :  { %13318 = vmatprep.subr.bf16.mxu0 %v15270_v9  ;;  %v13250_v55 = vpack.c.bf16 %v3461_v49, %v3460_v51  ;;  %v3500_v48 = vld [vmem:[%s18562_s25 + $0x230] sm:$0xff]  ;;  %v3501_v51 = vld [vmem:[%s18562_s25 + $0x238] sm:$0xff] }
 0x63b   :  { %v3544_v49 = vld [vmem:[%s18562_s25 + $0x390] sm:$0xff]  ;;  %v13300_v56 = vpack.c.bf16 %v3501_v51, %v3500_v48  ;;  %v4370_v48 = vld [vmem:[%s18567_s14 + $0x80] sm:$0xff]  ;;  %v4371_v51 = vld [vmem:[%s18567_s14 + $0x88] sm:$0xff] }
 0x63c   :  { %3691 = vmatmul.mubr.f32.vlgmr.msra.gmra.mrb[24].mxu0 %v15912_v33  ;;  %13233 = vmatpush3.bf16.msra.mxu1 %v13232_v62  ;;  %v3537_v62 = vld [vmem:[%s18562_s25 + $0x358] sm:$0xff] }
 0x63d   :  { %13320 = vmatpush1.bf16.msra.mxu0 %v13319_v60  ;;  %11136 = vmatprep.mubr.msk.f32.mxu0 %vm983_vm5, %v15946_v2  ;;  %v3510_v60 = vld [vmem:[%s18562_s25 + $0x280] sm:$0xff]  ;;  %v13334_v3 = vpack.c.bf16 %v3537_v62, %v3536_v61 }
 0x63e   :  { %13235 = vmatprep.subr.bf16.mxu1 %v13234_v4  ;;  %13321 = vmatprep.subr.bf16.mxu0 %v15270_v9  ;;  %v13286_v4 = vpack.c.bf16 %v3511_v63, %v3510_v60  ;;  %v3502_v62 = vld [vmem:[%s18562_s25 + $0x240] sm:$0xff]  ;;  %v3503_v60 = vld [vmem:[%s18562_s25 + $0x248] sm:$0xff] }
 0x63f   :  { %v3546_v63 = vld [vmem:[%s18562_s25 + $0x3a0] sm:$0xff]  ;;  %v13304_v6 = vpack.c.bf16 %v3503_v60, %v3502_v62  ;;  %v4356_v60 = vld [vmem:[%s18567_s14 + $0x10] sm:$0xff] }
 0x640   :  { %13237 = vmatpush3.bf16.msra.mxu1 %v13236_v11  ;;  %v3539_v11 = vld [vmem:[%s18562_s25 + $0x368] sm:$0xff] }
 0x641   :  { %13323 = vmatpush1.bf16.msra.mxu0 %v13322_v8  ;;  %13239 = vmatprep.subr.bf16.mxu1 %v13238_v17  ;;  %v3512_v8 = vld [vmem:[%s18562_s25 + $0x290] sm:$0xff]  ;;  %v3513_v17 = vld [vmem:[%s18562_s25 + $0x298] sm:$0xff]  ;;  %v13337_v21 = vpack.c.bf16 %v3539_v11, %v3538_v16 }
 0x642   :  { %13324 = vmatprep.subr.bf16.mxu0 %v15270_v9  ;;  %v13290_v22 = vpack.c.bf16 %v3513_v17, %v3512_v8  ;;  %v3504_v11 = vld [vmem:[%s18562_s25 + $0x250] sm:$0xff]  ;;  %v3505_v8 = vld [vmem:[%s18562_s25 + $0x258] sm:$0xff] }
 0x643   :  { %v3548_v17 = vld [vmem:[%s18562_s25 + $0x3b0] sm:$0xff]  ;;  %v13308_v23 = vpack.c.bf16 %v3505_v8, %v3504_v11  ;;  %v4377_v8 = vld [vmem:[%s18567_s14 + $0xb8] sm:$0xff] }
 0x644   :  { %13241 = vmatpush3.bf16.msra.mxu1 %v13240_v26  ;;  %v3541_v26 = vld [vmem:[%s18562_s25 + $0x378] sm:$0xff]  ;;  %v4376_v11 = vld [vmem:[%s18567_s14 + $0xb0] sm:$0xff] }
 0x645   :  { %13326 = vmatpush1.bf16.msra.mxu0 %v13325_v28  ;;  %13243 = vmatprep.subr.bf16.mxu1 %v13242_v36  ;;  %v3514_v28 = vld [vmem:[%s18562_s25 + $0x2a0] sm:$0xff]  ;;  %v3515_v36 = vld [vmem:[%s18562_s25 + $0x2a8] sm:$0xff]  ;;  %v13340_v37 = vpack.c.bf16 %v3541_v26, %v3540_v25 }
 0x646   :  { %13327 = vmatprep.subr.bf16.mxu0 %v15270_v9  ;;  %v13294_v39 = vpack.c.bf16 %v3515_v36, %v3514_v28  ;;  %v3506_v26 = vld [vmem:[%s18562_s25 + $0x260] sm:$0xff]  ;;  %v3507_v28 = vld [vmem:[%s18562_s25 + $0x268] sm:$0xff] }
 0x647   :  { %v3550_v36 = vld [vmem:[%s18562_s25 + $0x3c0] sm:$0xff]  ;;  %v13312_v40 = vpack.c.bf16 %v3507_v28, %v3506_v26 }
 0x648   :  { %13245 = vmatpush3.bf16.msra.mxu1 %v13244_v44  ;;  %v3543_v44 = vld [vmem:[%s18562_s25 + $0x388] sm:$0xff]  ;;  %v4362_v28 = vld [vmem:[%s18567_s14 + $0x40] sm:$0xff] }
 0x649   :  { %13329 = vmatpush1.bf16.msra.mxu0 %v13328_v20  ;;  %13247 = vmatprep.subr.bf16.mxu1 %v13246_v45  ;;  %v3516_v20 = vld [vmem:[%s18562_s25 + $0x2b0] sm:$0xff]  ;;  %v3517_v45 = vld [vmem:[%s18562_s25 + $0x2b8] sm:$0xff]  ;;  %v13343_v13 = vpack.c.bf16 %v3543_v44, %v3542_v42 }
 0x64a   :  { %13330 = vmatprep.subr.bf16.mxu0 %v15270_v9  ;;  %v13298_v46 = vpack.c.bf16 %v3517_v45, %v3516_v20  ;;  %v3508_v44 = vld [vmem:[%s18562_s25 + $0x270] sm:$0xff]  ;;  %v3509_v20 = vld [vmem:[%s18562_s25 + $0x278] sm:$0xff] }
 0x64b   :  { %v3552_v45 = vld [vmem:[%s18562_s25 + $0x3d0] sm:$0xff] }
 0x64c   :  { %13249 = vmatpush3.bf16.msra.mxu1 %v13248_v52  ;;  %v3545_v52 = vld [vmem:[%s18562_s25 + $0x398] sm:$0xff] }
 0x64d   :  { %13332 = vmatpush1.bf16.msra.mxu0 %v13331_v54  ;;  %13251 = vmatprep.subr.bf16.mxu1 %v13250_v55  ;;  %v3518_v54 = vld [vmem:[%s18562_s25 + $0x2c0] sm:$0xff]  ;;  %v3519_v55 = vld [vmem:[%s18562_s25 + $0x2c8] sm:$0xff]  ;;  %v13346_v53 = vpack.c.bf16 %v3545_v52, %v3544_v49 }
 0x64e   :  { %13333 = vmatprep.subr.bf16.mxu0 %v15270_v9  ;;  %v13302_v61 = vpack.c.bf16 %v3519_v55, %v3518_v54  ;;  %v4354_v49 = vld [vmem:[%s18567_s14] sm:$0xff]  ;;  %v4355_v52 = vld [vmem:[%s18567_s14 + $0x8] sm:$0xff]  ;;  %v4372_v54 = vld [vmem:[%s18567_s14 + $0x90] sm:$0xff] }
 0x64f   :  { %v4373_v55 = vld [vmem:[%s18567_s14 + $0x98] sm:$0xff] }
 0x650   :  { %13253 = vmatpush3.bf16.msra.mxu1 %v13252_v0  ;;  %v3547_v0 = vld [vmem:[%s18562_s25 + $0x3a8] sm:$0xff]  ;;  %v13402_v62 = vpack.c.bf16 %v4373_v55, %v4372_v54  ;;  %v4368_v54 = vld [vmem:[%s18567_s14 + $0x70] sm:$0xff]  ;;  %v4369_v55 = vld [vmem:[%s18567_s14 + $0x78] sm:$0xff] }
 0x651   :  { %13335 = vmatpush1.bf16.msra.mxu0 %v13334_v3  ;;  %13287 = vmatprep.subr.bf16.mxu1 %v13286_v4  ;;  %v3520_v3 = vld [vmem:[%s18562_s25 + $0x2d0] sm:$0xff]  ;;  %v3521_v4 = vld [vmem:[%s18562_s25 + $0x2d8] sm:$0xff]  ;;  %v13349_v7 = vpack.c.bf16 %v3547_v0, %v3546_v63  ;;  %v4374_v0 = vld [vmem:[%s18567_s14 + $0xa0] sm:$0xff] }
 0x652   :  { %13336 = vmatprep.subr.bf16.mxu0 %v15270_v9  ;;  %v13306_v16 = vpack.c.bf16 %v3521_v4, %v3520_v3  ;;  %v4357_v63 = vld [vmem:[%s18567_s14 + $0x18] sm:$0xff]  ;;  %v4375_v3 = vld [vmem:[%s18567_s14 + $0xa8] sm:$0xff] }
 0x653   :  { %3621 = vmatmul.mubr.f32.vlgmr.msra.gmra.mrb[36].mxu1 %v15860_v31  ;;  %v13404_v4 = vpack.c.bf16 %v4357_v63, %v4356_v60  ;;  %v4418_v60 = vld [vmem:[%s18567_s14 + $0x200] sm:$0xff]  ;;  %v4419_v63 = vld [vmem:[%s18567_s14 + $0x208] sm:$0xff] }
 0x654   :  { %13289 = vmatpush3.bf16.msra.mxu1 %v13288_v19  ;;  %3760 = vmatprep.mubr.f32.mxu1 %v15864_v35  ;;  %v3549_v19 = vld [vmem:[%s18562_s25 + $0x3b8] sm:$0xff] }
 0x655   :  { %13338 = vmatpush1.bf16.msra.mxu0 %v13337_v21  ;;  %13291 = vmatprep.subr.bf16.mxu1 %v13290_v22  ;;  %v3522_v21 = vld [vmem:[%s18562_s25 + $0x2e0] sm:$0xff]  ;;  %v3523_v22 = vld [vmem:[%s18562_s25 + $0x2e8] sm:$0xff]  ;;  %v13352_v24 = vpack.c.bf16 %v3549_v19, %v3548_v17  ;;  %v13410_v19 = vpack.c.bf16 %v4377_v8, %v4376_v11 }
 0x656   :  { %13339 = vmatprep.subr.bf16.mxu0 %v15270_v9  ;;  %v13310_v25 = vpack.c.bf16 %v3523_v22, %v3522_v21  ;;  %v4360_v21 = vld [vmem:[%s18567_s14 + $0x30] sm:$0xff]  ;;  %v4361_v22 = vld [vmem:[%s18567_s14 + $0x38] sm:$0xff]  ;;  %v4438_v11 = vld [vmem:[%s18567_s14 + $0x2a0] sm:$0xff] }
 0x657   :  { %v4439_v8 = vld [vmem:[%s18567_s14 + $0x2a8] sm:$0xff] }
 0x658   :  { %13293 = vmatpush3.bf16.msra.mxu1 %v13292_v34  ;;  %v3551_v34 = vld [vmem:[%s18562_s25 + $0x3c8] sm:$0xff] }
 0x659   :  { %13341 = vmatpush1.bf16.msra.mxu0 %v13340_v37  ;;  %13295 = vmatprep.subr.bf16.mxu1 %v13294_v39  ;;  %v3524_v37 = vld [vmem:[%s18562_s25 + $0x2f0] sm:$0xff]  ;;  %v3525_v39 = vld [vmem:[%s18562_s25 + $0x2f8] sm:$0xff]  ;;  %v13355_v41 = vpack.c.bf16 %v3551_v34, %v3550_v36  ;;  %v4363_v36 = vld [vmem:[%s18567_s14 + $0x48] sm:$0xff] }
 0x65a   :  { %13342 = vmatprep.subr.bf16.mxu0 %v15270_v9  ;;  %v13314_v42 = vpack.c.bf16 %v3525_v39, %v3524_v37  ;;  %v4380_v34 = vld [vmem:[%s18567_s14 + $0xd0] sm:$0xff]  ;;  %v4381_v37 = vld [vmem:[%s18567_s14 + $0xd8] sm:$0xff]  ;;  %v13416_v39 = vpack.c.bf16 %v4363_v36, %v4362_v28 }
 0x65b   :  { %v4424_v28 = vld [vmem:[%s18567_s14 + $0x230] sm:$0xff]  ;;  %v4425_v36 = vld [vmem:[%s18567_s14 + $0x238] sm:$0xff] }
 0x65c   :  { %13297 = vmatpush3.bf16.msra.mxu1 %v13296_v38  ;;  %v3553_v38 = vld [vmem:[%s18562_s25 + $0x3d8] sm:$0xff] }
 0x65d   :  { %13344 = vmatpush1.bf16.msra.mxu0 %v13343_v13  ;;  %13299 = vmatprep.subr.bf16.mxu1 %v13298_v46  ;;  %v13316_v13 = vpack.c.bf16 %v3509_v20, %v3508_v44  ;;  %v13358_v46 = vpack.c.bf16 %v3553_v38, %v3552_v45  ;;  %v4382_v44 = vld [vmem:[%s18567_s14 + $0xe0] sm:$0xff]  ;;  %v4383_v20 = vld [vmem:[%s18567_s14 + $0xe8] sm:$0xff] }
 0x65e   :  { %13345 = vmatprep.subr.bf16.mxu0 %v15270_v9  ;;  %v13422_v38 = vpack.c.bf16 %v4383_v20, %v4382_v44  ;;  %v4444_v44 = vld [vmem:[%s18567_s14 + $0x2d0] sm:$0xff]  ;;  %v4445_v20 = vld [vmem:[%s18567_s14 + $0x2d8] sm:$0xff] }
 0x660   :  { %13301 = vmatpush3.bf16.msra.mxu1 %v13300_v56  ;;  %v3554_v56 = vld [vmem:[%s18562_s25 + $0x3e0] sm:$0xff]  ;;  %s18591_s25 = sld [smem:[#allocation69_spill]] }
 0x661   :  { %13347 = vmatpush1.bf16.msra.mxu0 %v13346_v53  ;;  %13303 = vmatprep.subr.bf16.mxu1 %v13302_v61  ;;  %v13398_v53 = vpack.c.bf16 %v4371_v51, %v4370_v48  ;;  %v13400_v61 = vpack.c.bf16 %v4355_v52, %v4354_v49  ;;  %v4384_v48 = vld [vmem:[%s18567_s14 + $0xf0] sm:$0xff]  ;;  %v4385_v51 = vld [vmem:[%s18567_s14 + $0xf8] sm:$0xff] }
 0x662   :  { %13348 = vmatprep.subr.bf16.mxu0 %v15270_v9  ;;  %v13426_v52 = vpack.c.bf16 %v4385_v51, %v4384_v48  ;;  %v4446_v48 = vld [vmem:[%s18567_s14 + $0x2e0] sm:$0xff]  ;;  %v4447_v51 = vld [vmem:[%s18567_s14 + $0x2e8] sm:$0xff] }
 0x664   :  { %13305 = vmatpush3.bf16.msra.mxu1 %v13304_v6  ;;  %v13406_v6 = vpack.c.bf16 %v4375_v3, %v4374_v0  ;;  %v4436_v0 = vld [vmem:[%s18567_s14 + $0x290] sm:$0xff]  ;;  %v4437_v3 = vld [vmem:[%s18567_s14 + $0x298] sm:$0xff] }
 0x665   :  { %13350 = vmatpush1.bf16.msra.mxu0 %v13349_v7  ;;  %13307 = vmatprep.subr.bf16.mxu1 %v13306_v16  ;;  %v4358_v7 = vld [vmem:[%s18567_s14 + $0x20] sm:$0xff]  ;;  %v4359_v16 = vld [vmem:[%s18567_s14 + $0x28] sm:$0xff] }
 0x666   :  { %13351 = vmatprep.subr.bf16.mxu0 %v15270_v9  ;;  %v13408_v17 = vpack.c.bf16 %v4359_v16, %v4358_v7  ;;  %v4420_v7 = vld [vmem:[%s18567_s14 + $0x210] sm:$0xff]  ;;  %v4421_v16 = vld [vmem:[%s18567_s14 + $0x218] sm:$0xff] }
 0x668   :  { %13309 = vmatpush3.bf16.msra.mxu1 %v13308_v23  ;;  %v4378_v23 = vld [vmem:[%s18567_s14 + $0xc0] sm:$0xff] }
 0x669   :  { %13353 = vmatpush1.bf16.msra.mxu0 %v13352_v24  ;;  %13311 = vmatprep.subr.bf16.mxu1 %v13310_v25  ;;  %v4379_v24 = vld [vmem:[%s18567_s14 + $0xc8] sm:$0xff]  ;;  %v13412_v25 = vpack.c.bf16 %v4361_v22, %v4360_v21  ;;  %v4422_v21 = vld [vmem:[%s18567_s14 + $0x220] sm:$0xff] }
 0x66a   :  { %13354 = vmatprep.subr.bf16.mxu0 %v15270_v9  ;;  %v13414_v26 = vpack.c.bf16 %v4379_v24, %v4378_v23  ;;  %v4423_v22 = vld [vmem:[%s18567_s14 + $0x228] sm:$0xff]  ;;  %v4440_v23 = vld [vmem:[%s18567_s14 + $0x2b0] sm:$0xff]  ;;  %v4441_v24 = vld [vmem:[%s18567_s14 + $0x2b8] sm:$0xff] }
 0x66c   :  { %13313 = vmatpush3.bf16.msra.mxu1 %v13312_v40  ;;  %v13418_v40 = vpack.c.bf16 %v4381_v37, %v4380_v34  ;;  %v4442_v34 = vld [vmem:[%s18567_s14 + $0x2c0] sm:$0xff]  ;;  %v4443_v37 = vld [vmem:[%s18567_s14 + $0x2c8] sm:$0xff] }
 0x66d   :  { %13356 = vmatpush1.bf16.msra.mxu0 %v13355_v41  ;;  %13315 = vmatprep.subr.bf16.mxu1 %v13314_v42  ;;  %v4364_v41 = vld [vmem:[%s18567_s14 + $0x50] sm:$0xff]  ;;  %v4365_v42 = vld [vmem:[%s18567_s14 + $0x58] sm:$0xff] }
 0x66e   :  { %13357 = vmatprep.subr.bf16.mxu0 %v15270_v9  ;;  %v13420_v45 = vpack.c.bf16 %v4365_v42, %v4364_v41  ;;  %v4426_v41 = vld [vmem:[%s18567_s14 + $0x240] sm:$0xff]  ;;  %v4427_v42 = vld [vmem:[%s18567_s14 + $0x248] sm:$0xff] }
 0x670   :  { %13317 = vmatpush3.bf16.msra.mxu1 %v13316_v13  ;;  %v4366_v13 = vld [vmem:[%s18567_s14 + $0x60] sm:$0xff] }
 0x671   :  { %13359 = vmatpush1.bf16.msra.mxu0 %v13358_v46  ;;  %v4367_v46 = vld [vmem:[%s18567_s14 + $0x68] sm:$0xff] }
 0x672   :  { %3822 = vmatprep.subr.mxu0 %v15268_v1  ;;  %v13424_v49 = vpack.c.bf16 %v4367_v46, %v4366_v13  ;;  %v4428_v13 = vld [vmem:[%s18567_s14 + $0x250] sm:$0xff]  ;;  %v4429_v46 = vld [vmem:[%s18567_s14 + $0x258] sm:$0xff] }
 0x673   :  { %3761 = vmatmul.mubr.f32.vlgmr.msra.gmra.mrb[38].mxu1 %v15922_v43 }
 0x674   :  { %3988 = vmatprep.mubr.f32.mxu1 %v15268_v1 }
 0x675   :  { %3823 = vmatpush1.msra.mxu0 %v3554_v56  ;;  %v4434_v56 = vld [vmem:[%s18567_s14 + $0x280] sm:$0xff] }
 0x676   :  { %3831 = vmatmul.mubr.f32.vlgmr.msra.gmra.mrb[26].mxu0 %v15982_v47  ;;  %13399 = vmatprep.subr.bf16.mxu0 %v13398_v53  ;;  %v4435_v53 = vld [vmem:[%s18567_s14 + $0x288] sm:$0xff] }
 0x677   :  { %13401 = vmatpush3.bf16.msra.mxu0 %v13400_v61  ;;  %4544 = vmatprep.mubr.f32.mxu0 %v15858_v29  ;;  %v13428_v61 = vpack.c.bf16 %v4369_v55, %v4368_v54  ;;  %v4430_v54 = vld [vmem:[%s18567_s14 + $0x260] sm:$0xff]  ;;  %v4431_v55 = vld [vmem:[%s18567_s14 + $0x268] sm:$0xff] }
 0x678   :  { %13403 = vmatprep.subr.bf16.mxu0 %v13402_v62  ;;  %v13462_v62 = vpack.c.bf16 %v4435_v53, %v4434_v56  ;;  %v4448_v56 = vld [vmem:[%s18567_s14 + $0x2f0] sm:$0xff]  ;;  %v4449_v53 = vld [vmem:[%s18567_s14 + $0x2f8] sm:$0xff] }
 0x67b   :  { %13405 = vmatpush3.bf16.msra.mxu0 %v13404_v4  ;;  %v13464_v4 = vpack.c.bf16 %v4419_v63, %v4418_v60  ;;  %v13488_v60 = vpack.c.bf16 %v4431_v55, %v4430_v54 }
 0x67c   :  { %13407 = vmatprep.subr.bf16.mxu0 %v13406_v6  ;;  %v13466_v6 = vpack.c.bf16 %v4437_v3, %v4436_v0  ;;  %v13490_v0 = vpack.c.bf16 %v4449_v53, %v4448_v56  ;;  %v4432_v3 = vld [vmem:[%s18567_s14 + $0x270] sm:$0xff] }
 0x67f   :  { %13409 = vmatpush3.bf16.msra.mxu0 %v13408_v17  ;;  %v13468_v17 = vpack.c.bf16 %v4421_v16, %v4420_v7  ;;  %v3836_v7 = vld [vmem:[%s18568_s6] sm:$0xff]  ;;  %v3845_v16 = vld [vmem:[%s18568_s6 + $0x48] sm:$0xff] }
 0x680   :  { %13411 = vmatprep.subr.bf16.mxu0 %v13410_v19  ;;  %v13470_v19 = vpack.c.bf16 %v4439_v8, %v4438_v11  ;;  %v13362_v11 = vpack.c.bf16 %v3845_v16, %v3836_v7  ;;  %v3855_v8 = vld [vmem:[%s18568_s6 + $0x98] sm:$0xff] }
 0x683   :  { %13413 = vmatpush3.bf16.msra.mxu0 %v13412_v25  ;;  %v13472_v25 = vpack.c.bf16 %v4423_v22, %v4422_v21  ;;  %v3854_v21 = vld [vmem:[%s18568_s6 + $0x90] sm:$0xff]  ;;  %v3863_v22 = vld [vmem:[%s18568_s6 + $0xd8] sm:$0xff] }
 0x684   :  { %13415 = vmatprep.subr.bf16.mxu0 %v13414_v26  ;;  %v13474_v26 = vpack.c.bf16 %v4441_v24, %v4440_v23  ;;  %v13366_v23 = vpack.c.bf16 %v3863_v22, %v3854_v21  ;;  %v3839_v24 = vld [vmem:[%s18568_s6 + $0x18] sm:$0xff] }
 0x687   :  { %13417 = vmatpush3.bf16.msra.mxu0 %v13416_v39  ;;  %v13476_v39 = vpack.c.bf16 %v4425_v36, %v4424_v28  ;;  %v2948_v28 = vld [vmem:[%s18569_s27] sm:$0xff] }
 0x688   :  { %13419 = vmatprep.subr.bf16.mxu0 %v13418_v40  ;;  %v13478_v40 = vpack.c.bf16 %v4443_v37, %v4442_v34  ;;  %v2955_v36 = vrot.slane %v2948_v28, %v15835_v12  ;;  %v11130_v34 = vld [vmem:[%s18569_s27 + $0x8] ss:$0 sm:$0xff]  ;;  %v2959_v37 = vrot.slane %v2948_v28, %v15841_v14  ;;  %v2971_v53 = vrot.slane %v2948_v28, %v15898_v5  ;;  %s18596_s27 = sld [smem:[#allocation77_spill]] }
 0x689   :  { %v2979_v16 = vrot.slane %v2948_v28, %v15966_v27 }
 0x68b   :  { %13421 = vmatpush3.bf16.msra.mxu0 %v13420_v45  ;;  %v13480_v45 = vpack.c.bf16 %v4427_v42, %v4426_v41 }
 0x68c   :  { %13423 = vmatprep.subr.bf16.mxu0 %v13422_v38  ;;  %v13482_v38 = vpack.c.bf16 %v4445_v20, %v4444_v44 }
 0x68f   :  { %13425 = vmatpush3.bf16.msra.mxu0 %v13424_v49  ;;  %v13484_v49 = vpack.c.bf16 %v4429_v46, %v4428_v13 }
 0x690   :  { %13427 = vmatprep.subr.bf16.mxu0 %v13426_v52  ;;  %v13486_v52 = vpack.c.bf16 %v4447_v51, %v4446_v48  ;;  %v2963_v48 = vrot.slane %v2948_v28, %v15884_v57  ;;  %v2967_v51 = vrot.slane %v2948_v28, %v15887_v59 }
 0x693   :  { %13429 = vmatpush3.bf16.msra.mxu0 %v13428_v61  ;;  %v3837_v61 = vld [vmem:[%s18568_s6 + $0x8] sm:$0xff] }
 0x694   :  { %13463 = vmatprep.subr.bf16.mxu0 %v13462_v62  ;;  %v3846_v62 = vld [vmem:[%s18568_s6 + $0x50] sm:$0xff] }
 0x695   :  { %v13360_v63 = vpack.c.bf16 %v3846_v62, %v3837_v61 }
 0x696   :  { %4545 = vmatmul.mubr.f32.vlgmr.msra.gmra.mrb[28].mxu0 %v15860_v31 }
 0x697   :  { %13465 = vmatpush3.bf16.msra.mxu0 %v13464_v4  ;;  %4684 = vmatprep.mubr.f32.mxu0 %v15864_v35  ;;  %v4433_v4 = vld [vmem:[%s18567_s14 + $0x278] sm:$0xff] }
 0x698   :  { %13467 = vmatprep.subr.bf16.mxu0 %v13466_v6  ;;  %13361 = vmatprep.subr.bf16.mxu1 %v13360_v63  ;;  %v13492_v6 = vpack.c.bf16 %v4433_v4, %v4432_v3 }
 0x699   :  { %13363 = vmatpush1.bf16.msra.mxu1 %v13362_v11  ;;  %v2983_v11 = vrot.slane %v2948_v28, %v15933_v50 }
 0x69b   :  { %13469 = vmatpush3.bf16.msra.mxu0 %v13468_v17  ;;  %v3864_v17 = vld [vmem:[%s18568_s6 + $0xe0] sm:$0xff] }
 0x69c   :  { %13471 = vmatprep.subr.bf16.mxu0 %v13470_v19  ;;  %v13364_v19 = vpack.c.bf16 %v3864_v17, %v3855_v8 }
 0x69e   :  { %13365 = vmatprep.subr.bf16.mxu1 %v13364_v19 }
 0x69f   :  { %13473 = vmatpush3.bf16.msra.mxu0 %v13472_v25  ;;  %13367 = vmatpush1.bf16.msra.mxu1 %v13366_v23  ;;  %v3848_v25 = vld [vmem:[%s18568_s6 + $0x60] sm:$0xff] }
 0x6a0   :  { %13475 = vmatprep.subr.bf16.mxu0 %v13474_v26  ;;  %v13368_v26 = vpack.c.bf16 %v3848_v25, %v3839_v24 }
 0x6a2   :  { %13369 = vmatprep.subr.bf16.mxu1 %v13368_v26 }
 0x6a3   :  { %13477 = vmatpush3.bf16.msra.mxu0 %v13476_v39 }
 0x6a4   :  { %13479 = vmatprep.subr.bf16.mxu0 %v13478_v40 }
 0x6a7   :  { %13481 = vmatpush3.bf16.msra.mxu0 %v13480_v45 }
 0x6a8   :  { %13483 = vmatprep.subr.bf16.mxu0 %v13482_v38 }
 0x6ab   :  { %13485 = vmatpush3.bf16.msra.mxu0 %v13484_v49 }
 0x6ac   :  { %13487 = vmatprep.subr.bf16.mxu0 %v13486_v52 }
 0x6af   :  { %13489 = vmatpush3.bf16.msra.mxu0 %v13488_v60  ;;  %v2975_v60 = vrot.slane %v2948_v28, %v15844_v15 }
 0x6b0   :  { %13491 = vmatprep.subr.bf16.mxu0 %v13490_v0 }
 0x6b3   :  { %13493 = vmatpush3.bf16.msra.mxu0 %v13492_v6 }
 0x6b6   :  { %4685 = vmatmul.mubr.f32.vlgmr.msra.gmra.mrb[30].mxu0 %v15922_v43 }
 0x6b7   :  { %4912 = vmatprep.mubr.f32.mxu0 %v15268_v1 }
 0x6ee   :  { %v3066_v39 = vpop.f32.mrb[28].mxu1  ;;  %v3350_v40 = vpop.f32.mrb[22].mxu0 }
 0x6ef   :  { %v3067_v41 = vadd.f32 %v3066_v39, %v2955_v36  ;;  %v3351_v42 = vadd.f32 %v11130_v34, %v3350_v40  ;;  %v3068_v44 = vpop.f32.mrb[29].mxu1  ;;  %v12537_v20 = vpop.f32.mrb[23].mxu0 }
 0x6f0   :  { %v3069_v45 = vadd.f32 %v3068_v44, %v2959_v37 }
 0x6f1   :  { %v3418_v38 = vrot.slane %v3351_v42, %v16188_v58 }
 0x6f2   :  { %v3363_v13 = vcombine.low %v3067_v41, %v3069_v45  ;;  %v3555_v41 = vld [vmem:[%s18570_s18] sm:$0x1]  ;;  %s15272_s18 = smov [#allocation13]  }
 0x6f3   :  { %v3425_v46 = vrot.slane %v3418_v38, %v16188_v58 }
 0x6f4   :  { %v3373_v61 = vrot.slane %v3363_v13, %v16188_v58 }
 0x6f5   :  { %3429 = vst.msk [vmem:[#allocation15 + $0x8] sm:$0x1] %vm16417_vm8, %v3425_v46 }
 0x6f6   :  { %v3137_v49 = vpop.f32.mrb[30].mxu1 }
 0x6f7   :  { %v3138_v52 = vadd.f32 %v3137_v49, %v2963_v48  ;;  %v3139_v54 = vpop.f32.mrb[31].mxu1  ;;  %v3838_v48 = vld [vmem:[%s18568_s6 + $0x10] sm:$0xff] }
 0x6f8   :  { %v3140_v55 = vadd.f32 %v3139_v54, %v2967_v51  ;;  %v3847_v51 = vld [vmem:[%s18568_s6 + $0x58] sm:$0xff]  ;;  %v3866_v54 = vld [vmem:[%s18568_s6 + $0xf0] sm:$0xff] }
 0x6fa   :  { %v3364_v56 = vcombine.low %v3138_v52, %v3140_v55  ;;  %v3857_v52 = vld [vmem:[%s18568_s6 + $0xa8] sm:$0xff] }
 0x6fc   :  { %v3380_v62 = vrot.slane %v3364_v56, %v16188_v58 }
 0x6fe   :  { %v3395_v63 = vcombine.low %v3373_v61, %v3380_v62  ;;  %v3208_v0 = vpop.f32.mrb[32].mxu1  ;;  %v13372_v62 = vpack.c.bf16 %v3866_v54, %v3857_v52  ;;  %v4386_v54 = vld [vmem:[%s18567_s14 + $0x100] sm:$0xff] }
 0x6ff   :  { %v3209_v3 = vadd.f32 %v3208_v0, %v2971_v53  ;;  %v3210_v4 = vpop.f32.mrb[33].mxu1  ;;  %v13370_v53 = vpack.c.bf16 %v3847_v51, %v3838_v48  ;;  %v3841_v0 = vld [vmem:[%s18568_s6 + $0x28] sm:$0xff]  ;;  %v4402_v48 = vld [vmem:[%s18567_s14 + $0x180] sm:$0xff] }
 0x700   :  { %v3211_v6 = vadd.f32 %v3210_v4, %v2975_v60  ;;  %v3403_v36 = vrot.slane %v3395_v63, %v16188_v58  ;;  %v3856_v60 = vld [vmem:[%s18568_s6 + $0xa0] sm:$0xff]  ;;  %v3865_v63 = vld [vmem:[%s18568_s6 + $0xe8] sm:$0xff] }
 0x701   :  { %v13374_v4 = vpack.c.bf16 %v3865_v63, %v3856_v60  ;;  %v4403_v51 = vld [vmem:[%s18567_s14 + $0x188] sm:$0xff] }
 0x702   :  { %v3365_v7 = vcombine.low %v3209_v3, %v3211_v6  ;;  %v3850_v3 = vld [vmem:[%s18568_s6 + $0x70] sm:$0xff]  ;;  %v13430_v52 = vpack.c.bf16 %v4403_v51, %v4402_v48  ;;  %v4398_v51 = vld [vmem:[%s18567_s14 + $0x160] sm:$0xff] }
 0x703   :  { %v13376_v6 = vpack.c.bf16 %v3850_v3, %v3841_v0 }
 0x704   :  { %v3387_v23 = vrot.slane %v3365_v7, %v16188_v58  ;;  %v3840_v7 = vld [vmem:[%s18568_s6 + $0x20] sm:$0xff] }
 0x706   :  { %v3279_v8 = vpop.f32.mrb[34].mxu1 }
 0x707   :  { %v3280_v17 = vadd.f32 %v3279_v8, %v2979_v16  ;;  %v3281_v19 = vpop.f32.mrb[35].mxu1  ;;  %v3849_v16 = vld [vmem:[%s18568_s6 + $0x68] sm:$0xff]  ;;  %v3868_v8 = vld [vmem:[%s18568_s6 + $0x100] sm:$0xff] }
 0x708   :  { %v3282_v21 = vadd.f32 %v3281_v19, %v2983_v11  ;;  %v3859_v11 = vld [vmem:[%s18568_s6 + $0xb8] sm:$0xff] }
 0x709   :  { %v13380_v19 = vpack.c.bf16 %v3868_v8, %v3859_v11 }
 0x70a   :  { %v3366_v22 = vcombine.low %v3280_v17, %v3282_v21  ;;  %v13378_v17 = vpack.c.bf16 %v3849_v16, %v3840_v7  ;;  %v3858_v21 = vld [vmem:[%s18568_s6 + $0xb0] sm:$0xff]  ;;  %v4406_v7 = vld [vmem:[%s18567_s14 + $0x1a0] sm:$0xff]  ;;  %v4407_v16 = vld [vmem:[%s18567_s14 + $0x1a8] sm:$0xff] }
 0x70b   :  { %v13438_v8 = vpack.c.bf16 %v4407_v16, %v4406_v7 }
 0x70c   :  { %v3394_v24 = vrot.slane %v3366_v22, %v16188_v58  ;;  %v3867_v22 = vld [vmem:[%s18568_s6 + $0xf8] sm:$0xff] }
 0x70e   :  { %v3396_v25 = vcombine.low %v3387_v23, %v3394_v24  ;;  %v3843_v23 = vld [vmem:[%s18568_s6 + $0x38] sm:$0xff]  ;;  %v3852_v24 = vld [vmem:[%s18568_s6 + $0x80] sm:$0xff] }
 0x70f   :  { %v11588_v26 = vpop.f32.mrb[24].mxu0 }
 0x710   :  { %v3410_v34 = vrot.slane %v3396_v25, %v16188_v58  ;;  %v11589_v37 = vpop.f32.mrb[25].mxu0  ;;  %v13382_v25 = vpack.c.bf16 %v3867_v22, %v3858_v21  ;;  %v4408_v21 = vld [vmem:[%s18567_s14 + $0x1b0] sm:$0xff]  ;;  %v4409_v22 = vld [vmem:[%s18567_s14 + $0x1b8] sm:$0xff] }
 0x711   :  { %v11590_v28 = vadd.f32 %v11589_v37, %v11588_v26  ;;  %v13384_v26 = vpack.c.bf16 %v3852_v24, %v3843_v23  ;;  %v3861_v37 = vld [vmem:[%s18568_s6 + $0xc8] sm:$0xff]  ;;  %v4392_v24 = vld [vmem:[%s18567_s14 + $0x130] sm:$0xff] }
 0x712   :  { %v3411_v39 = vcombine.low %v3403_v36, %v3410_v34  ;;  %v3842_v36 = vld [vmem:[%s18568_s6 + $0x30] sm:$0xff]  ;;  %v3851_v34 = vld [vmem:[%s18568_s6 + $0x78] sm:$0xff] }
 0x714   :  { %3428 = vst [vmem:[#allocation15] sm:$0xff] %v3411_v39  ;;  %v13386_v39 = vpack.c.bf16 %v3851_v34, %v3842_v36  ;;  %v4411_v36 = vld [vmem:[%s18567_s14 + $0x1c8] sm:$0xff] }
 0x726   :  { %v11553_v40 = vpop.f32.mrb[36].mxu1 }
 0x727   :  { %v11554_v42 = vpop.f32.mrb[37].mxu1 }
 0x728   :  { %v11555_v44 = vadd.f32 %v11554_v42, %v11553_v40  ;;  %v3869_v42 = vld [vmem:[%s18568_s6 + $0x108] sm:$0xff] }
 0x72a   :  { %v3623_v20 = vadd.f32 %v11555_v44, %v3555_v41  ;;  %v3860_v41 = vld [vmem:[%s18568_s6 + $0xc0] sm:$0xff] }
 0x72b   :  { %v13390_v44 = vpack.c.bf16 %v3869_v42, %v3860_v41  ;;  %v4413_v41 = vld [vmem:[%s18567_s14 + $0x1d8] sm:$0xff] }
 0x72c   :  { %v3693_v45 = vadd.f32 %v11590_v28, %v3623_v20  ;;  %v3870_v28 = vld [vmem:[%s18568_s6 + $0x110] sm:$0xff]  ;;  %v3844_v20 = vld [vmem:[%s18568_s6 + $0x40] sm:$0xff] }
 0x72d   :  { %v13388_v40 = vpack.c.bf16 %v3870_v28, %v3861_v37  ;;  %v4394_v28 = vld [vmem:[%s18567_s14 + $0x140] sm:$0xff] }
 0x746   :  { %v11623_v38 = vpop.f32.mrb[38].mxu1 }
 0x747   :  { %v11624_v13 = vpop.f32.mrb[39].mxu1 }
 0x748   :  { %v11625_v46 = vadd.f32 %v11624_v13, %v11623_v38  ;;  %v3862_v13 = vld [vmem:[%s18568_s6 + $0xd0] sm:$0xff] }
 0x749   :  { %v3832_v49 = vpop.f32.mrb[26].mxu0 }
 0x74a   :  { %v3763_v55 = vadd.f32 %v11625_v46, %v3693_v45  ;;  %v3834_v56 = vpop.f32.mrb[27].mxu0  ;;  %v3853_v45 = vld [vmem:[%s18568_s6 + $0x88] sm:$0xff]  ;;  %v3871_v46 = vld [vmem:[%s18568_s6 + $0x118] sm:$0xff]  ;;  %s18595_s6 = sld [smem:[#allocation74_spill]] }
 0x74b   :  { %v13393_v38 = vpack.c.bf16 %v3853_v45, %v3844_v20  ;;  %v4396_v20 = vld [vmem:[%s18567_s14 + $0x150] sm:$0xff]  ;;  %v4397_v45 = vld [vmem:[%s18567_s14 + $0x158] sm:$0xff] }
 0x74c   :  { %v16726_v61 = vadd.f32 %v3832_v49, %v3763_v55  ;;  %v13396_v49 = vpack.c.bf16 %v3871_v46, %v3862_v13  ;;  %v4387_v55 = vld [vmem:[%s18567_s14 + $0x108] sm:$0xff]  ;;  %v13452_v46 = vpack.c.bf16 %v4397_v45, %v4396_v20  ;;  %v4466_v45 = vld [vmem:[%s18567_s14 + $0x380] sm:$0xff] }
 0x74d   :  { %v13432_v0 = vpack.c.bf16 %v4387_v55, %v4386_v54  ;;  %v4415_v13 = vld [vmem:[%s18567_s14 + $0x1e8] sm:$0xff]  ;;  %v4417_v54 = vld [vmem:[%s18567_s14 + $0x1f8] sm:$0xff] }
 0x74e   :  { %11138 = vmatmul.mubr.msk.f32.vlgmr.msra.gmra.mrb[40].mxu1 %vm1314_vm6, %v16726_v61 }
 0x74f   :  { %13371 = vmatpush1.bf16.msra.mxu1 %v13370_v53  ;;  %4059 = vmatprep.mubr.f32.mxu1 %v15268_v1  ;;  %v4404_v53 = vld [vmem:[%s18567_s14 + $0x190] sm:$0xff] }
 0x750   :  { %13373 = vmatprep.subr.bf16.mxu1 %v13372_v62  ;;  %v4405_v62 = vld [vmem:[%s18567_s14 + $0x198] sm:$0xff] }
 0x751   :  { %v13434_v3 = vpack.c.bf16 %v4405_v62, %v4404_v53  ;;  %v4400_v53 = vld [vmem:[%s18567_s14 + $0x170] sm:$0xff]  ;;  %v4401_v62 = vld [vmem:[%s18567_s14 + $0x178] sm:$0xff] }
 0x753   :  { %13375 = vmatpush1.bf16.msra.mxu1 %v13374_v4  ;;  %v4388_v4 = vld [vmem:[%s18567_s14 + $0x110] sm:$0xff] }
 0x754   :  { %13377 = vmatprep.subr.bf16.mxu1 %v13376_v6  ;;  %v4389_v6 = vld [vmem:[%s18567_s14 + $0x118] sm:$0xff] }
 0x755   :  { %v13436_v11 = vpack.c.bf16 %v4389_v6, %v4388_v4 }
 0x756   :  { %11139 = vmatmul.mubr.msk.f32.vlgmr.msra.gmra.mrb[42].mxu1 %vm1314_vm6, %v16726_v61 }
 0x757   :  { %13379 = vmatpush1.bf16.msra.mxu1 %v13378_v17  ;;  %4130 = vmatprep.mubr.f32.mxu1 %v15268_v1  ;;  %v4390_v17 = vld [vmem:[%s18567_s14 + $0x120] sm:$0xff] }
 0x758   :  { %13381 = vmatprep.subr.bf16.mxu1 %v13380_v19  ;;  %v4391_v19 = vld [vmem:[%s18567_s14 + $0x128] sm:$0xff] }
 0x759   :  { %v13440_v23 = vpack.c.bf16 %v4391_v19, %v4390_v17  ;;  %v4454_v19 = vld [vmem:[%s18567_s14 + $0x320] sm:$0xff] }
 0x75b   :  { %13383 = vmatpush1.bf16.msra.mxu1 %v13382_v25  ;;  %v4393_v25 = vld [vmem:[%s18567_s14 + $0x138] sm:$0xff] }
 0x75c   :  { %13385 = vmatprep.subr.bf16.mxu1 %v13384_v26  ;;  %v4410_v26 = vld [vmem:[%s18567_s14 + $0x1c0] sm:$0xff]  ;;  %v13444_v34 = vpack.c.bf16 %v4393_v25, %v4392_v24 }
 0x75d   :  { %v13446_v37 = vpack.c.bf16 %v4411_v36, %v4410_v26  ;;  %v4458_v25 = vld [vmem:[%s18567_s14 + $0x340] sm:$0xff]  ;;  %v4459_v26 = vld [vmem:[%s18567_s14 + $0x348] sm:$0xff] }
 0x75e   :  { %11140 = vmatmul.mubr.msk.f32.vlgmr.msra.gmra.mrb[44].mxu1 %vm1314_vm6, %v16726_v61  ;;  %v13507_v36 = vpack.c.bf16 %v4459_v26, %v4458_v25  ;;  %v5280_v25 = vld [vmem:[%s18571_s20 + $0x10] sm:$0xff]  ;;  %v5281_v26 = vld [vmem:[%s18571_s20 + $0x18] sm:$0xff] }
 0x75f   :  { %13387 = vmatpush1.bf16.msra.mxu1 %v13386_v39  ;;  %4201 = vmatprep.mubr.f32.mxu1 %v15268_v1  ;;  %v4395_v39 = vld [vmem:[%s18567_s14 + $0x148] sm:$0xff] }
 0x760   :  { %13389 = vmatprep.subr.bf16.mxu1 %v13388_v40  ;;  %v4412_v40 = vld [vmem:[%s18567_s14 + $0x1d0] sm:$0xff]  ;;  %v13448_v42 = vpack.c.bf16 %v4395_v39, %v4394_v28  ;;  %v4462_v39 = vld [vmem:[%s18567_s14 + $0x360] sm:$0xff] }
 0x763   :  { %13391 = vmatpush1.bf16.msra.mxu1 %v13390_v44  ;;  %v13450_v44 = vpack.c.bf16 %v4413_v41, %v4412_v40  ;;  %v4463_v40 = vld [vmem:[%s18567_s14 + $0x368] sm:$0xff] }
 0x764   :  { %13392 = vmatprep.subr.bf16.mxu1 %v15270_v9  ;;  %v13513_v41 = vpack.c.bf16 %v4463_v40, %v4462_v39  ;;  %v5282_v39 = vld [vmem:[%s18571_s20 + $0x20] sm:$0xff]  ;;  %v5283_v40 = vld [vmem:[%s18571_s20 + $0x28] sm:$0xff] }
 0x766   :  { %11141 = vmatmul.mubr.msk.f32.vlgmr.msra.gmra.mrb[46].mxu1 %vm1314_vm6, %v16726_v61 }
 0x767   :  { %13394 = vmatpush3.bf16.msra.mxu1 %v13393_v38  ;;  %12546 = vmatprep.mubr.msk.f32.mxu1 %vm15269_vm0, %v15268_v1  ;;  %v4414_v38 = vld [vmem:[%s18567_s14 + $0x1e0] sm:$0xff] }
 0x768   :  { %13395 = vmatprep.subr.bf16.mxu1 %v15270_v9  ;;  %v13454_v48 = vpack.c.bf16 %v4415_v13, %v4414_v38  ;;  %v4467_v38 = vld [vmem:[%s18567_s14 + $0x388] sm:$0xff] }
 0x769   :  { %v11663_v56 = vpop.f32.mrb[28].mxu0  ;;  %v13519_v13 = vpack.c.bf16 %v4467_v38, %v4466_v45  ;;  %v5284_v45 = vld [vmem:[%s18571_s20 + $0x30] sm:$0xff]  ;;  %v5285_v38 = vld [vmem:[%s18571_s20 + $0x38] sm:$0xff] }
 0x76a   :  { %v11664_v60 = vpop.f32.mrb[29].mxu0 }
 0x76b   :  { %v16771_v63 = vadd.f32 %v11664_v60, %v11663_v56  ;;  %13397 = vmatpush3.bf16.msra.mxu1 %v13396_v49  ;;  %v4399_v49 = vld [vmem:[%s18567_s14 + $0x168] sm:$0xff]  ;;  %v13460_v60 = vpack.c.bf16 %v4401_v62, %v4400_v53  ;;  %v4474_v62 = vld [vmem:[%s18567_s14 + $0x3c0] sm:$0xff] }
 0x76c   :  { %13431 = vmatprep.subr.bf16.mxu1 %v13430_v52  ;;  %v4416_v52 = vld [vmem:[%s18567_s14 + $0x1f0] sm:$0xff]  ;;  %v13456_v55 = vpack.c.bf16 %v4399_v49, %v4398_v51  ;;  %v4470_v49 = vld [vmem:[%s18567_s14 + $0x3a0] sm:$0xff] }
 0x76d   :  { %v13458_v56 = vpack.c.bf16 %v4417_v54, %v4416_v52  ;;  %v4471_v52 = vld [vmem:[%s18567_s14 + $0x3a8] sm:$0xff] }
 0x76e   :  { %12547 = vmatmul.mubr.msk.f32.vlgmr.msra.gmra.mrb[48].mxu1 %vm1314_vm6, %v16726_v61  ;;  %v13442_v61 = vpack.c.bf16 %v4409_v22, %v4408_v21  ;;  %v4455_v21 = vld [vmem:[%s18567_s14 + $0x328] sm:$0xff]  ;;  %v13525_v54 = vpack.c.bf16 %v4471_v52, %v4470_v49  ;;  %v5286_v49 = vld [vmem:[%s18571_s20 + $0x40] sm:$0xff] }
 0x76f   :  { %13433 = vmatpush3.bf16.msra.mxu1 %v13432_v0  ;;  %4614 = vmatprep.mubr.f32.mxu1 %v15910_v30  ;;  %v4450_v0 = vld [vmem:[%s18567_s14 + $0x300] sm:$0xff]  ;;  %v13501_v22 = vpack.c.bf16 %v4455_v21, %v4454_v19  ;;  %v5296_v19 = vld [vmem:[%s18571_s20 + $0x90] sm:$0xff]  ;;  %v5297_v21 = vld [vmem:[%s18571_s20 + $0x98] sm:$0xff] }
 0x770   :  { %13435 = vmatprep.subr.bf16.mxu1 %v13434_v3  ;;  %v4451_v3 = vld [vmem:[%s18567_s14 + $0x308] sm:$0xff] }
 0x771   :  { %v13495_v16 = vpack.c.bf16 %v4451_v3, %v4450_v0  ;;  %v4476_v3 = vld [vmem:[%s18567_s14 + $0x3d0] sm:$0xff]  ;;  %v5287_v52 = vld [vmem:[%s18571_s20 + $0x48] sm:$0xff] }
 0x773   :  { %13437 = vmatpush3.bf16.msra.mxu1 %v13436_v11  ;;  %v4452_v11 = vld [vmem:[%s18567_s14 + $0x310] sm:$0xff] }
 0x774   :  { %13439 = vmatprep.subr.bf16.mxu1 %v13438_v8  ;;  %v4453_v8 = vld [vmem:[%s18567_s14 + $0x318] sm:$0xff] }
 0x775   :  { %v13498_v17 = vpack.c.bf16 %v4453_v8, %v4452_v11  ;;  %v5295_v11 = vld [vmem:[%s18571_s20 + $0x88] sm:$0xff]  ;;  %v5278_v8 = vld [vmem:[%s18571_s20] sm:$0xff] }
 0x777   :  { %13441 = vmatpush3.bf16.msra.mxu1 %v13440_v23  ;;  %v4456_v23 = vld [vmem:[%s18567_s14 + $0x330] sm:$0xff] }
 0x778   :  { %13443 = vmatprep.subr.bf16.mxu1 %v13442_v61  ;;  %v4457_v61 = vld [vmem:[%s18567_s14 + $0x338] sm:$0xff] }
 0x779   :  { %v13504_v24 = vpack.c.bf16 %v4457_v61, %v4456_v23 }
 0x77b   :  { %13445 = vmatpush3.bf16.msra.mxu1 %v13444_v34  ;;  %v4460_v34 = vld [vmem:[%s18567_s14 + $0x350] sm:$0xff] }
 0x77c   :  { %13447 = vmatprep.subr.bf16.mxu1 %v13446_v37  ;;  %v4461_v37 = vld [vmem:[%s18567_s14 + $0x358] sm:$0xff] }
 0x77d   :  { %v13510_v28 = vpack.c.bf16 %v4461_v37, %v4460_v34  ;;  %v5299_v34 = vld [vmem:[%s18571_s20 + $0xa8] sm:$0xff]  ;;  %v13580_v37 = vpack.c.bf16 %v5281_v26, %v5280_v25 }
 0x77f   :  { %13449 = vmatpush3.bf16.msra.mxu1 %v13448_v42  ;;  %v4464_v42 = vld [vmem:[%s18567_s14 + $0x370] sm:$0xff] }
 0x780   :  { %13451 = vmatprep.subr.bf16.mxu1 %v13450_v44  ;;  %v4465_v44 = vld [vmem:[%s18567_s14 + $0x378] sm:$0xff] }
 0x781   :  { %v13516_v20 = vpack.c.bf16 %v4465_v44, %v4464_v42  ;;  %v5301_v42 = vld [vmem:[%s18571_s20 + $0xb8] sm:$0xff]  ;;  %v13584_v44 = vpack.c.bf16 %v5283_v40, %v5282_v39  ;;  %v5344_v39 = vld [vmem:[%s18571_s20 + $0x210] sm:$0xff] }
 0x782   :  { %v5345_v40 = vld [vmem:[%s18571_s20 + $0x218] sm:$0xff] }
 0x783   :  { %13453 = vmatpush3.bf16.msra.mxu1 %v13452_v46  ;;  %v4468_v46 = vld [vmem:[%s18567_s14 + $0x390] sm:$0xff] }
 0x784   :  { %13455 = vmatprep.subr.bf16.mxu1 %v13454_v48  ;;  %v4469_v48 = vld [vmem:[%s18567_s14 + $0x398] sm:$0xff] }
 0x785   :  { %v13522_v51 = vpack.c.bf16 %v4469_v48, %v4468_v46  ;;  %v5303_v46 = vld [vmem:[%s18571_s20 + $0xc8] sm:$0xff]  ;;  %v13588_v48 = vpack.c.bf16 %v5285_v38, %v5284_v45  ;;  %v4760_v45 = vld [vmem:[%s18572_s30] sm:$0xff] }
 0x787   :  { %13457 = vmatpush3.bf16.msra.mxu1 %v13456_v55  ;;  %v4472_v55 = vld [vmem:[%s18567_s14 + $0x3b0] sm:$0xff] }
 0x788   :  { %13459 = vmatprep.subr.bf16.mxu1 %v13458_v56  ;;  %v4473_v56 = vld [vmem:[%s18567_s14 + $0x3b8] sm:$0xff] }
 0x789   :  { %v11733_v4 = vpop.f32.mrb[30].mxu0  ;;  %v13528_v53 = vpack.c.bf16 %v4473_v56, %v4472_v55  ;;  %v5305_v55 = vld [vmem:[%s18571_s20 + $0xd8] sm:$0xff]  ;;  %v13592_v56 = vpack.c.bf16 %v5287_v52, %v5286_v49  ;;  %v5363_v49 = vld [vmem:[%s18571_s20 + $0x2a8] sm:$0xff] }
 0x78a   :  { %v11734_v6 = vpop.f32.mrb[31].mxu0 }
 0x78b   :  { %v16804_v7 = vadd.f32 %v11734_v6, %v11733_v4  ;;  %13461 = vmatpush3.bf16.msra.mxu1 %v13460_v60  ;;  %v4475_v60 = vld [vmem:[%s18567_s14 + $0x3c8] sm:$0xff]  ;;  %v4477_v4 = vld [vmem:[%s18567_s14 + $0x3d8] sm:$0xff] }
 0x78c   :  { %13494 = vmatprep.subr.bf16.mxu1 %v15270_v9  ;;  %v13531_v0 = vpack.c.bf16 %v4475_v60, %v4474_v62  ;;  %v13534_v6 = vpack.c.bf16 %v4477_v4, %v4476_v3  ;;  %v5288_v62 = vld [vmem:[%s18571_s20 + $0x50] sm:$0xff]  ;;  %v5289_v60 = vld [vmem:[%s18571_s20 + $0x58] sm:$0xff]  ;;  %v5307_v3 = vld [vmem:[%s18571_s20 + $0xe8] sm:$0xff] }
 0x78d   :  { %v13596_v4 = vpack.c.bf16 %v5289_v60, %v5288_v62  ;;  %v5346_v60 = vld [vmem:[%s18571_s20 + $0x220] sm:$0xff] }
 0x78e   :  { %4615 = vmatmul.mubr.f32.vlgmr.msra.gmra.mrb[50].mxu1 %v15912_v33 }
 0x78f   :  { %13496 = vmatpush1.bf16.msra.mxu1 %v13495_v16  ;;  %11143 = vmatprep.mubr.msk.f32.mxu1 %vm983_vm5, %v15946_v2  ;;  %v5294_v16 = vld [vmem:[%s18571_s20 + $0x80] sm:$0xff] }
 0x790   :  { %13497 = vmatprep.subr.bf16.mxu1 %v15270_v9  ;;  %v13574_v23 = vpack.c.bf16 %v5295_v11, %v5294_v16  ;;  %v5290_v16 = vld [vmem:[%s18571_s20 + $0x60] sm:$0xff]  ;;  %v5291_v11 = vld [vmem:[%s18571_s20 + $0x68] sm:$0xff] }
 0x793   :  { %13499 = vmatpush1.bf16.msra.mxu1 %v13498_v17  ;;  %v5279_v17 = vld [vmem:[%s18571_s20 + $0x8] sm:$0xff] }
 0x794   :  { %13500 = vmatprep.subr.bf16.mxu1 %v15270_v9  ;;  %v13576_v61 = vpack.c.bf16 %v5279_v17, %v5278_v8  ;;  %v5308_v8 = vld [vmem:[%s18571_s20 + $0xf0] sm:$0xff]  ;;  %v5309_v17 = vld [vmem:[%s18571_s20 + $0xf8] sm:$0xff] }
 0x797   :  { %13502 = vmatpush1.bf16.msra.mxu1 %v13501_v22  ;;  %v4478_v22 = vld [vmem:[%s18567_s14 + $0x3e0] sm:$0xff]  ;;  %s18594_s14 = sld [smem:[#allocation71_spill]] }
 0x798   :  { %13503 = vmatprep.subr.bf16.mxu1 %v15270_v9 }
 0x79b   :  { %13505 = vmatpush1.bf16.msra.mxu1 %v13504_v24  ;;  %v13578_v24 = vpack.c.bf16 %v5297_v21, %v5296_v19  ;;  %v13600_v19 = vpack.c.bf16 %v5291_v11, %v5290_v16  ;;  %v13602_v21 = vpack.c.bf16 %v5309_v17, %v5308_v8  ;;  %v5348_v8 = vld [vmem:[%s18571_s20 + $0x230] sm:$0xff]  ;;  %v5349_v17 = vld [vmem:[%s18571_s20 + $0x238] sm:$0xff] }
 0x79c   :  { %13506 = vmatprep.subr.bf16.mxu1 %v15270_v9 }
 0x79f   :  { %13508 = vmatpush1.bf16.msra.mxu1 %v13507_v36  ;;  %v5298_v36 = vld [vmem:[%s18571_s20 + $0xa0] sm:$0xff] }
 0x7a0   :  { %13509 = vmatprep.subr.bf16.mxu1 %v15270_v9 }
 0x7a3   :  { %13511 = vmatpush1.bf16.msra.mxu1 %v13510_v28  ;;  %v13582_v28 = vpack.c.bf16 %v5299_v34, %v5298_v36  ;;  %v5342_v36 = vld [vmem:[%s18571_s20 + $0x200] sm:$0xff]  ;;  %v5343_v34 = vld [vmem:[%s18571_s20 + $0x208] sm:$0xff] }
 0x7a4   :  { %13512 = vmatprep.subr.bf16.mxu1 %v15270_v9 }
 0x7a7   :  { %13514 = vmatpush1.bf16.msra.mxu1 %v13513_v41  ;;  %v5300_v41 = vld [vmem:[%s18571_s20 + $0xb0] sm:$0xff] }
 0x7a8   :  { %13515 = vmatprep.subr.bf16.mxu1 %v15270_v9 }
 0x7ab   :  { %13517 = vmatpush1.bf16.msra.mxu1 %v13516_v20  ;;  %v13586_v20 = vpack.c.bf16 %v5301_v42, %v5300_v41  ;;  %v13640_v41 = vpack.c.bf16 %v5343_v34, %v5342_v36  ;;  %v5362_v42 = vld [vmem:[%s18571_s20 + $0x2a0] sm:$0xff] }
 0x7ac   :  { %13518 = vmatprep.subr.bf16.mxu1 %v15270_v9  ;;  %v13646_v62 = vpack.c.bf16 %v5363_v49, %v5362_v42 }
 0x7af   :  { %13520 = vmatpush1.bf16.msra.mxu1 %v13519_v13  ;;  %v5302_v13 = vld [vmem:[%s18571_s20 + $0xc0] sm:$0xff] }
 0x7b0   :  { %13521 = vmatprep.subr.bf16.mxu1 %v15270_v9 }
 0x7b3   :  { %13523 = vmatpush1.bf16.msra.mxu1 %v13522_v51  ;;  %v13590_v51 = vpack.c.bf16 %v5303_v46, %v5302_v13  ;;  %v4769_v46 = vld [vmem:[%s18572_s30 + $0x48] sm:$0xff] }
 0x7b4   :  { %13524 = vmatprep.subr.bf16.mxu1 %v15270_v9  ;;  %v13538_v52 = vpack.c.bf16 %v4769_v46, %v4760_v45  ;;  %v5372_v45 = vld [vmem:[%s18571_s20 + $0x2f0] sm:$0xff] }
 0x7b7   :  { %13526 = vmatpush1.bf16.msra.mxu1 %v13525_v54  ;;  %v5304_v54 = vld [vmem:[%s18571_s20 + $0xd0] sm:$0xff] }
 0x7b8   :  { %13527 = vmatprep.subr.bf16.mxu1 %v15270_v9 }
 0x7bb   :  { %13529 = vmatpush1.bf16.msra.mxu1 %v13528_v53  ;;  %v13594_v53 = vpack.c.bf16 %v5305_v55, %v5304_v54  ;;  %v4778_v55 = vld [vmem:[%s18572_s30 + $0x90] sm:$0xff] }
 0x7bc   :  { %13530 = vmatprep.subr.bf16.mxu1 %v15270_v9 }
 0x7bf   :  { %13532 = vmatpush1.bf16.msra.mxu1 %v13531_v0  ;;  %v5306_v0 = vld [vmem:[%s18571_s20 + $0xe0] sm:$0xff] }
 0x7c0   :  { %13533 = vmatprep.subr.bf16.mxu1 %v15270_v9 }
 0x7c3   :  { %13535 = vmatpush1.bf16.msra.mxu1 %v13534_v6  ;;  %v13598_v6 = vpack.c.bf16 %v5307_v3, %v5306_v0  ;;  %v5347_v0 = vld [vmem:[%s18571_s20 + $0x228] sm:$0xff] }
 0x7c4   :  { %4746 = vmatprep.subr.mxu1 %v15268_v1  ;;  %v13648_v16 = vpack.c.bf16 %v5347_v0, %v5346_v60 }
 0x7c7   :  { %4747 = vmatpush1.msra.mxu1 %v4478_v22  ;;  %v5292_v22 = vld [vmem:[%s18571_s20 + $0x70] sm:$0xff] }
 0x7c8   :  { %4755 = vmatmul.mubr.f32.vlgmr.msra.gmra.mrb[52].mxu1 %v15982_v47  ;;  %13575 = vmatprep.subr.bf16.mxu1 %v13574_v23  ;;  %v5293_v23 = vld [vmem:[%s18571_s20 + $0x78] sm:$0xff] }
 0x7c9   :  { %13577 = vmatpush3.bf16.msra.mxu1 %v13576_v61  ;;  %5468 = vmatprep.mubr.f32.mxu1 %v15858_v29  ;;  %v5358_v61 = vld [vmem:[%s18571_s20 + $0x280] sm:$0xff]  ;;  %v13604_v25 = vpack.c.bf16 %v5293_v23, %v5292_v22  ;;  %v13652_v22 = vpack.c.bf16 %v5349_v17, %v5348_v8 }
 0x7ca   :  { %13579 = vmatprep.subr.bf16.mxu1 %v13578_v24  ;;  %v5359_v24 = vld [vmem:[%s18571_s20 + $0x288] sm:$0xff] }
 0x7cb   :  { %v13638_v26 = vpack.c.bf16 %v5359_v24, %v5358_v61  ;;  %v5350_v61 = vld [vmem:[%s18571_s20 + $0x240] sm:$0xff]  ;;  %v5351_v24 = vld [vmem:[%s18571_s20 + $0x248] sm:$0xff] }
 0x7cc   :  { %v13656_v36 = vpack.c.bf16 %v5351_v24, %v5350_v61 }
 0x7cd   :  { %13581 = vmatpush3.bf16.msra.mxu1 %v13580_v37  ;;  %v5360_v37 = vld [vmem:[%s18571_s20 + $0x290] sm:$0xff] }
 0x7ce   :  { %13583 = vmatprep.subr.bf16.mxu1 %v13582_v28  ;;  %v5361_v28 = vld [vmem:[%s18571_s20 + $0x298] sm:$0xff] }
 0x7cf   :  { %v13642_v38 = vpack.c.bf16 %v5361_v28, %v5360_v37  ;;  %v5352_v37 = vld [vmem:[%s18571_s20 + $0x250] sm:$0xff]  ;;  %v5353_v28 = vld [vmem:[%s18571_s20 + $0x258] sm:$0xff] }
 0x7d1   :  { %13585 = vmatpush3.bf16.msra.mxu1 %v13584_v44  ;;  %v4761_v44 = vld [vmem:[%s18572_s30 + $0x8] sm:$0xff] }
 0x7d2   :  { %13587 = vmatprep.subr.bf16.mxu1 %v13586_v20  ;;  %v4770_v20 = vld [vmem:[%s18572_s30 + $0x50] sm:$0xff] }
 0x7d3   :  { %v13536_v13 = vpack.c.bf16 %v4770_v20, %v4761_v44  ;;  %v5354_v44 = vld [vmem:[%s18571_s20 + $0x260] sm:$0xff]  ;;  %v5355_v20 = vld [vmem:[%s18571_s20 + $0x268] sm:$0xff] }
 0x7d5   :  { %13589 = vmatpush3.bf16.msra.mxu1 %v13588_v48  ;;  %v4779_v48 = vld [vmem:[%s18572_s30 + $0x98] sm:$0xff]  ;;  %13537 = vmatprep.subr.bf16.mxu0 %v13536_v13  ;;  %v13664_v13 = vpack.c.bf16 %v5355_v20, %v5354_v44 }
 0x7d6   :  { %13591 = vmatprep.subr.bf16.mxu1 %v13590_v51  ;;  %v4788_v51 = vld [vmem:[%s18572_s30 + $0xe0] sm:$0xff]  ;;  %13539 = vmatpush1.bf16.msra.mxu0 %v13538_v52  ;;  %v4763_v52 = vld [vmem:[%s18572_s30 + $0x18] sm:$0xff] }
 0x7d7   :  { %v13540_v54 = vpack.c.bf16 %v4788_v51, %v4779_v48  ;;  %v5356_v48 = vld [vmem:[%s18571_s20 + $0x270] sm:$0xff]  ;;  %v5357_v51 = vld [vmem:[%s18571_s20 + $0x278] sm:$0xff] }
 0x7d8   :  { %v13668_v49 = vpack.c.bf16 %v5357_v51, %v5356_v48  ;;  %v11137_v48 = vld [vmem:[%s18573_s22 + $0x8] ss:$0 sm:$0xff] }
 0x7d9   :  { %13593 = vmatpush3.bf16.msra.mxu1 %v13592_v56  ;;  %v4787_v56 = vld [vmem:[%s18572_s30 + $0xd8] sm:$0xff]  ;;  %13541 = vmatprep.subr.bf16.mxu0 %v13540_v54  ;;  %v4772_v54 = vld [vmem:[%s18572_s30 + $0x60] sm:$0xff] }
 0x7da   :  { %13595 = vmatprep.subr.bf16.mxu1 %v13594_v53  ;;  %v13644_v53 = vpack.c.bf16 %v5345_v40, %v5344_v39  ;;  %v13542_v3 = vpack.c.bf16 %v4787_v56, %v4778_v55  ;;  %v5370_v39 = vld [vmem:[%s18571_s20 + $0x2e0] sm:$0xff]  ;;  %v5371_v40 = vld [vmem:[%s18571_s20 + $0x2e8] sm:$0xff]  ;;  %v13544_v56 = vpack.c.bf16 %v4772_v54, %v4763_v52 }
 0x7db   :  { %v13662_v42 = vpack.c.bf16 %v5371_v40, %v5370_v39  ;;  %v3872_v55 = vld [vmem:[%s18573_s22] sm:$0xff] }
 0x7dc   :  { %13543 = vmatpush1.bf16.msra.mxu0 %v13542_v3  ;;  %v3903_v40 = vrot.slane %v3872_v55, %v15966_v27 }
 0x7dd   :  { %13597 = vmatpush3.bf16.msra.mxu1 %v13596_v4  ;;  %v5364_v4 = vld [vmem:[%s18571_s20 + $0x2b0] sm:$0xff]  ;;  %13545 = vmatprep.subr.bf16.mxu0 %v13544_v56 }
 0x7de   :  { %13599 = vmatprep.subr.bf16.mxu1 %v13598_v6  ;;  %v5365_v6 = vld [vmem:[%s18571_s20 + $0x2b8] sm:$0xff] }
 0x7df   :  { %v13650_v11 = vpack.c.bf16 %v5365_v6, %v5364_v4 }
 0x7e1   :  { %13601 = vmatpush3.bf16.msra.mxu1 %v13600_v19  ;;  %v5366_v19 = vld [vmem:[%s18571_s20 + $0x2c0] sm:$0xff] }
 0x7e2   :  { %13603 = vmatprep.subr.bf16.mxu1 %v13602_v21  ;;  %v5367_v21 = vld [vmem:[%s18571_s20 + $0x2c8] sm:$0xff] }
 0x7e3   :  { %v13654_v23 = vpack.c.bf16 %v5367_v21, %v5366_v19 }
 0x7e5   :  { %13605 = vmatpush3.bf16.msra.mxu1 %v13604_v25  ;;  %v5368_v25 = vld [vmem:[%s18571_s20 + $0x2d0] sm:$0xff] }
 0x7e6   :  { %13639 = vmatprep.subr.bf16.mxu1 %v13638_v26  ;;  %v5369_v26 = vld [vmem:[%s18571_s20 + $0x2d8] sm:$0xff] }
 0x7e7   :  { %v13658_v34 = vpack.c.bf16 %v5369_v26, %v5368_v25  ;;  %v3899_v25 = vrot.slane %v3872_v55, %v15844_v15 }
 0x7e8   :  { %5469 = vmatmul.mubr.f32.vlgmr.msra.gmra.mrb[54].mxu1 %v15860_v31 }
 0x7e9   :  { %13641 = vmatpush3.bf16.msra.mxu1 %v13640_v41  ;;  %5608 = vmatprep.mubr.f32.mxu1 %v15864_v35  ;;  %v13660_v41 = vpack.c.bf16 %v5353_v28, %v5352_v37 }
 0x7ea   :  { %13643 = vmatprep.subr.bf16.mxu1 %v13642_v38  ;;  %v5373_v38 = vld [vmem:[%s18571_s20 + $0x2f8] sm:$0xff] }
 0x7eb   :  { %v13666_v46 = vpack.c.bf16 %v5373_v38, %v5372_v45 }
 0x7ed   :  { %13645 = vmatpush3.bf16.msra.mxu1 %v13644_v53  ;;  %v3879_v53 = vrot.slane %v3872_v55, %v15835_v12 }
 0x7ee   :  { %13647 = vmatprep.subr.bf16.mxu1 %v13646_v62  ;;  %v3883_v62 = vrot.slane %v3872_v55, %v15841_v14 }
 0x7f1   :  { %13649 = vmatpush3.bf16.msra.mxu1 %v13648_v16  ;;  %v3887_v16 = vrot.slane %v3872_v55, %v15884_v57 }
 0x7f2   :  { %13651 = vmatprep.subr.bf16.mxu1 %v13650_v11  ;;  %v3891_v11 = vrot.slane %v3872_v55, %v15887_v59 }
 0x7f5   :  { %13653 = vmatpush3.bf16.msra.mxu1 %v13652_v22 }
 0x7f6   :  { %13655 = vmatprep.subr.bf16.mxu1 %v13654_v23  ;;  %v3895_v23 = vrot.slane %v3872_v55, %v15898_v5 }
 0x7f9   :  { %13657 = vmatpush3.bf16.msra.mxu1 %v13656_v36 }
 0x7fa   :  { %13659 = vmatprep.subr.bf16.mxu1 %v13658_v34 }
 0x7fd   :  { %13661 = vmatpush3.bf16.msra.mxu1 %v13660_v41  ;;  %v3907_v41 = vrot.slane %v3872_v55, %v15933_v50 }
 0x7fe   :  { %13663 = vmatprep.subr.bf16.mxu1 %v13662_v42 }
 0x801   :  { %13665 = vmatpush3.bf16.msra.mxu1 %v13664_v13 }
 0x802   :  { %13667 = vmatprep.subr.bf16.mxu1 %v13666_v46 }
 0x805   :  { %13669 = vmatpush3.bf16.msra.mxu1 %v13668_v49 }
 0x808   :  { %5609 = vmatmul.mubr.f32.vlgmr.msra.gmra.mrb[56].mxu1 %v15922_v43 }
 0x809   :  { %5872 = vmatprep.mubr.f32.mxu1 %v15268_v1 }
 0x821   :  { %v3990_v60 = vpop.f32.mrb[40].mxu1 }
 0x822   :  { %v3991_v0 = vadd.f32 %v3990_v60, %v3879_v53  ;;  %v3992_v3 = vpop.f32.mrb[41].mxu1 }
 0x823   :  { %v3993_v4 = vadd.f32 %v3992_v3, %v3883_v62 }
 0x825   :  { %v4287_v6 = vcombine.low %v3991_v0, %v3993_v4  ;;  %v4479_v0 = vld [vmem:[%s18574_s26] sm:$0x1] }
 0x827   :  { %v4297_v61 = vrot.slane %v4287_v6, %v16188_v58  ;;  %v4547_v6 = vadd.f32 %v16771_v63, %v4479_v0  ;;  %v4780_v63 = vld [vmem:[%s18572_s30 + $0xa0] sm:$0xff] }
 0x829   :  { %v4061_v8 = vpop.f32.mrb[42].mxu1 }
 0x82a   :  { %v4062_v17 = vadd.f32 %v4061_v8, %v3887_v16  ;;  %v4063_v19 = vpop.f32.mrb[43].mxu1 }
 0x82b   :  { %v4064_v21 = vadd.f32 %v4063_v19, %v3891_v11  ;;  %v4771_v19 = vld [vmem:[%s18572_s30 + $0x58] sm:$0xff] }
 0x82d   :  { %v4288_v22 = vcombine.low %v4062_v17, %v4064_v21  ;;  %v4762_v17 = vld [vmem:[%s18572_s30 + $0x10] sm:$0xff]  ;;  %v4781_v21 = vld [vmem:[%s18572_s30 + $0xa8] sm:$0xff] }
 0x82f   :  { %v4304_v24 = vrot.slane %v4288_v22, %v16188_v58  ;;  %v4790_v22 = vld [vmem:[%s18572_s30 + $0xf0] sm:$0xff] }
 0x831   :  { %v4319_v26 = vcombine.low %v4297_v61, %v4304_v24  ;;  %v4132_v36 = vpop.f32.mrb[44].mxu1  ;;  %v13546_v61 = vpack.c.bf16 %v4771_v19, %v4762_v17  ;;  %v5327_v17 = vld [vmem:[%s18571_s20 + $0x188] sm:$0xff] }
 0x832   :  { %v4133_v34 = vadd.f32 %v4132_v36, %v3895_v23  ;;  %v4134_v37 = vpop.f32.mrb[45].mxu1  ;;  %v4789_v36 = vld [vmem:[%s18572_s30 + $0xe8] sm:$0xff] }
 0x833   :  { %v4135_v28 = vadd.f32 %v4134_v37, %v3899_v25  ;;  %v4327_v56 = vrot.slane %v4319_v26, %v16188_v58  ;;  %v13548_v26 = vpack.c.bf16 %v4790_v22, %v4781_v21  ;;  %v4774_v37 = vld [vmem:[%s18572_s30 + $0x70] sm:$0xff]  ;;  %v5310_v22 = vld [vmem:[%s18571_s20 + $0x100] sm:$0xff] }
 0x835   :  { %v4289_v39 = vcombine.low %v4133_v34, %v4135_v28  ;;  %v4765_v34 = vld [vmem:[%s18572_s30 + $0x28] sm:$0xff] }
 0x836   :  { %v13552_v28 = vpack.c.bf16 %v4774_v37, %v4765_v34  ;;  %v5312_v37 = vld [vmem:[%s18571_s20 + $0x110] sm:$0xff] }
 0x837   :  { %v4311_v13 = vrot.slane %v4289_v39, %v16188_v58  ;;  %v4764_v39 = vld [vmem:[%s18572_s30 + $0x20] sm:$0xff] }
 0x839   :  { %v4203_v42 = vpop.f32.mrb[46].mxu1 }
 0x83a   :  { %v4204_v44 = vadd.f32 %v4203_v42, %v3903_v40  ;;  %v4205_v20 = vpop.f32.mrb[47].mxu1  ;;  %v4773_v40 = vld [vmem:[%s18572_s30 + $0x68] sm:$0xff]  ;;  %v4792_v42 = vld [vmem:[%s18572_s30 + $0x100] sm:$0xff] }
 0x83b   :  { %v4206_v45 = vadd.f32 %v4205_v20, %v3907_v41  ;;  %v4783_v41 = vld [vmem:[%s18572_s30 + $0xb8] sm:$0xff] }
 0x83c   :  { %v13556_v20 = vpack.c.bf16 %v4792_v42, %v4783_v41 }
 0x83d   :  { %v4290_v38 = vcombine.low %v4204_v44, %v4206_v45  ;;  %v13554_v44 = vpack.c.bf16 %v4773_v40, %v4764_v39  ;;  %v4782_v45 = vld [vmem:[%s18572_s30 + $0xb0] sm:$0xff]  ;;  %v5330_v39 = vld [vmem:[%s18571_s20 + $0x1a0] sm:$0xff]  ;;  %v5331_v40 = vld [vmem:[%s18571_s20 + $0x1a8] sm:$0xff] }
 0x83e   :  { %v13614_v42 = vpack.c.bf16 %v5331_v40, %v5330_v39  ;;  %v5376_v40 = vld [vmem:[%s18571_s20 + $0x310] sm:$0xff] }
 0x83f   :  { %v4318_v46 = vrot.slane %v4290_v38, %v16188_v58  ;;  %v4791_v38 = vld [vmem:[%s18572_s30 + $0xf8] sm:$0xff] }
 0x841   :  { %v4320_v51 = vcombine.low %v4311_v13, %v4318_v46  ;;  %v4274_v49 = vpop.f32.mrb[48].mxu1  ;;  %v4767_v13 = vld [vmem:[%s18572_s30 + $0x38] sm:$0xff]  ;;  %v4776_v46 = vld [vmem:[%s18572_s30 + $0x80] sm:$0xff] }
 0x842   :  { %v4275_v52 = vadd.f32 %v11137_v48, %v4274_v49  ;;  %v12548_v54 = vpop.f32.mrb[49].mxu1  ;;  %v13558_v48 = vpack.c.bf16 %v4791_v38, %v4782_v45  ;;  %v4766_v49 = vld [vmem:[%s18572_s30 + $0x30] sm:$0xff]  ;;  %v5333_v38 = vld [vmem:[%s18571_s20 + $0x1b8] sm:$0xff] }
 0x843   :  { %v4334_v55 = vrot.slane %v4320_v51, %v16188_v58  ;;  %v13560_v51 = vpack.c.bf16 %v4776_v46, %v4767_v13  ;;  %v4785_v54 = vld [vmem:[%s18572_s30 + $0xc8] sm:$0xff]  ;;  %v5332_v45 = vld [vmem:[%s18571_s20 + $0x1b0] sm:$0xff] }
 0x844   :  { %v4342_v53 = vrot.slane %v4275_v52, %v16188_v58  ;;  %v4775_v52 = vld [vmem:[%s18572_s30 + $0x78] sm:$0xff]  ;;  %v5316_v46 = vld [vmem:[%s18571_s20 + $0x130] sm:$0xff] }
 0x845   :  { %v4335_v62 = vcombine.low %v4327_v56, %v4334_v55  ;;  %v4794_v56 = vld [vmem:[%s18572_s30 + $0x110] sm:$0xff]  ;;  %v13562_v55 = vpack.c.bf16 %v4775_v52, %v4766_v49  ;;  %v5335_v49 = vld [vmem:[%s18571_s20 + $0x1c8] sm:$0xff] }
 0x846   :  { %v4349_v60 = vrot.slane %v4342_v53, %v16188_v58  ;;  %v13564_v53 = vpack.c.bf16 %v4794_v56, %v4785_v54  ;;  %v5318_v56 = vld [vmem:[%s18571_s20 + $0x140] sm:$0xff] }
 0x847   :  { %4352 = vst [vmem:[#allocation16] sm:$0xff] %v4335_v62  ;;  %v4784_v62 = vld [vmem:[%s18572_s30 + $0xc0] sm:$0xff] }
 0x848   :  { %4353 = vst.msk [vmem:[#allocation16 + $0x8] sm:$0x1] %vm16417_vm8, %v4349_v60  ;;  %v4793_v60 = vld [vmem:[%s18572_s30 + $0x108] sm:$0xff] }
 0x849   :  { %v13566_v0 = vpack.c.bf16 %v4793_v60, %v4784_v62  ;;  %v5337_v62 = vld [vmem:[%s18571_s20 + $0x1d8] sm:$0xff] }
 0x861   :  { %v11698_v3 = vpop.f32.mrb[50].mxu1 }
 0x862   :  { %v11699_v4 = vpop.f32.mrb[51].mxu1 }
 0x863   :  { %v11700_v16 = vadd.f32 %v11699_v4, %v11698_v3  ;;  %v4768_v3 = vld [vmem:[%s18572_s30 + $0x40] sm:$0xff]  ;;  %v4777_v4 = vld [vmem:[%s18572_s30 + $0x88] sm:$0xff] }
 0x865   :  { %v4617_v11 = vadd.f32 %v11700_v16, %v4547_v6  ;;  %v13569_v6 = vpack.c.bf16 %v4777_v4, %v4768_v3  ;;  %v4786_v16 = vld [vmem:[%s18572_s30 + $0xd0] sm:$0xff]  ;;  %v5321_v4 = vld [vmem:[%s18571_s20 + $0x158] sm:$0xff] }
 0x866   :  { %v5320_v3 = vld [vmem:[%s18571_s20 + $0x150] sm:$0xff] }
 0x867   :  { %v4687_v8 = vadd.f32 %v16804_v7, %v4617_v11  ;;  %v13550_v7 = vpack.c.bf16 %v4789_v36, %v4780_v63  ;;  %v4795_v11 = vld [vmem:[%s18572_s30 + $0x118] sm:$0xff]  ;;  %s15273_s30 = smov [#allocation16]  }
 0x868   :  { %v13572_v19 = vpack.c.bf16 %v4795_v11, %v4786_v16  ;;  %v5339_v16 = vld [vmem:[%s18571_s20 + $0x1e8] sm:$0xff]  ;;  %v13628_v11 = vpack.c.bf16 %v5321_v4, %v5320_v3  ;;  %v5390_v4 = vld [vmem:[%s18571_s20 + $0x380] sm:$0xff]  ;;  %s10910_s22 = sshll.u32 %s15273_s30, 4  ;;  %s10911_s22 = int_to_ptr.vmem [resolvable:$true] %s10910_s22 }
 0x89b   :  { %v4756_v23 = vpop.f32.mrb[52].mxu1 }
 0x89c   :  { %v16958_v24 = vadd.f32 %v4756_v23, %v4687_v8  ;;  %v4758_v25 = vpop.f32.mrb[53].mxu1  ;;  %v5326_v8 = vld [vmem:[%s18571_s20 + $0x180] sm:$0xff]  ;;  %v5311_v23 = vld [vmem:[%s18571_s20 + $0x108] sm:$0xff] }
 0x89d   :  { %v13606_v21 = vpack.c.bf16 %v5327_v17, %v5326_v8  ;;  %v5329_v25 = vld [vmem:[%s18571_s20 + $0x198] sm:$0xff]  ;;  %v13608_v63 = vpack.c.bf16 %v5311_v23, %v5310_v22  ;;  %v5322_v17 = vld [vmem:[%s18571_s20 + $0x160] sm:$0xff] }
 0x89e   :  { %11145 = vmatmul.mubr.msk.f32.vlgmr.msra.gmra.mrb[32].mxu0 %vm1314_vm6, %v16958_v24  ;;  %v5341_v22 = vld [vmem:[%s18571_s20 + $0x1f8] sm:$0xff] }
 0x89f   :  { %13547 = vmatpush1.bf16.msra.mxu0 %v13546_v61  ;;  %4983 = vmatprep.mubr.f32.mxu0 %v15268_v1  ;;  %v5328_v61 = vld [vmem:[%s18571_s20 + $0x190] sm:$0xff] }
 0x8a0   :  { %13549 = vmatprep.subr.bf16.mxu0 %v13548_v26  ;;  %v13610_v34 = vpack.c.bf16 %v5329_v25, %v5328_v61  ;;  %v5324_v25 = vld [vmem:[%s18571_s20 + $0x170] sm:$0xff] }
 0x8a3   :  { %13551 = vmatpush1.bf16.msra.mxu0 %v13550_v7  ;;  %v5313_v7 = vld [vmem:[%s18571_s20 + $0x118] sm:$0xff] }
 0x8a4   :  { %13553 = vmatprep.subr.bf16.mxu0 %v13552_v28  ;;  %v13612_v41 = vpack.c.bf16 %v5313_v7, %v5312_v37 }
 0x8a6   :  { %11146 = vmatmul.mubr.msk.f32.vlgmr.msra.gmra.mrb[34].mxu0 %vm1314_vm6, %v16958_v24 }
 0x8a7   :  { %13555 = vmatpush1.bf16.msra.mxu0 %v13554_v44  ;;  %5054 = vmatprep.mubr.f32.mxu0 %v15268_v1  ;;  %v5314_v44 = vld [vmem:[%s18571_s20 + $0x120] sm:$0xff] }
 0x8a8   :  { %13557 = vmatprep.subr.bf16.mxu0 %v13556_v20  ;;  %v5315_v20 = vld [vmem:[%s18571_s20 + $0x128] sm:$0xff] }
 0x8a9   :  { %v13616_v13 = vpack.c.bf16 %v5315_v20, %v5314_v44  ;;  %v5378_v20 = vld [vmem:[%s18571_s20 + $0x320] sm:$0xff] }
 0x8ab   :  { %13559 = vmatpush1.bf16.msra.mxu0 %v13558_v48  ;;  %v5317_v48 = vld [vmem:[%s18571_s20 + $0x138] sm:$0xff] }
 0x8ac   :  { %13561 = vmatprep.subr.bf16.mxu0 %v13560_v51  ;;  %v5334_v51 = vld [vmem:[%s18571_s20 + $0x1c0] sm:$0xff]  ;;  %v13620_v52 = vpack.c.bf16 %v5317_v48, %v5316_v46 }
 0x8ad   :  { %v13622_v54 = vpack.c.bf16 %v5335_v49, %v5334_v51  ;;  %v5382_v48 = vld [vmem:[%s18571_s20 + $0x340] sm:$0xff]  ;;  %v5383_v51 = vld [vmem:[%s18571_s20 + $0x348] sm:$0xff] }
 0x8ae   :  { %11147 = vmatmul.mubr.msk.f32.vlgmr.msra.gmra.mrb[36].mxu0 %vm1314_vm6, %v16958_v24  ;;  %v13683_v49 = vpack.c.bf16 %v5383_v51, %v5382_v48  ;;  %v5694_v48 = vld [vmem:[%s18575_s7 + $0x50] sm:$0xff]  ;;  %v5707_v51 = vld [vmem:[%s18575_s7 + $0xb8] sm:$0xff] }
 0x8af   :  { %13563 = vmatpush1.bf16.msra.mxu0 %v13562_v55  ;;  %5125 = vmatprep.mubr.f32.mxu0 %v15268_v1  ;;  %v5319_v55 = vld [vmem:[%s18571_s20 + $0x148] sm:$0xff] }
 0x8b0   :  { %13565 = vmatprep.subr.bf16.mxu0 %v13564_v53  ;;  %v5336_v53 = vld [vmem:[%s18571_s20 + $0x1d0] sm:$0xff]  ;;  %v13624_v60 = vpack.c.bf16 %v5319_v55, %v5318_v56  ;;  %v5386_v55 = vld [vmem:[%s18571_s20 + $0x360] sm:$0xff] }
 0x8b3   :  { %13567 = vmatpush1.bf16.msra.mxu0 %v13566_v0  ;;  %v13626_v0 = vpack.c.bf16 %v5337_v62, %v5336_v53  ;;  %v5387_v53 = vld [vmem:[%s18571_s20 + $0x368] sm:$0xff] }
 0x8b4   :  { %13568 = vmatprep.subr.bf16.mxu0 %v15270_v9  ;;  %v13689_v62 = vpack.c.bf16 %v5387_v53, %v5386_v55  ;;  %v5734_v55 = vld [vmem:[%s18575_s7 + $0x190] sm:$0xff] }
 0x8b6   :  { %11148 = vmatmul.mubr.msk.f32.vlgmr.msra.gmra.mrb[38].mxu0 %vm1314_vm6, %v16958_v24 }
 0x8b7   :  { %13570 = vmatpush3.bf16.msra.mxu0 %v13569_v6  ;;  %12557 = vmatprep.mubr.msk.f32.mxu0 %vm15269_vm0, %v15268_v1  ;;  %v5338_v6 = vld [vmem:[%s18571_s20 + $0x1e0] sm:$0xff] }
 0x8b8   :  { %13571 = vmatprep.subr.bf16.mxu0 %v15270_v9  ;;  %v13630_v8 = vpack.c.bf16 %v5339_v16, %v5338_v6  ;;  %v5391_v6 = vld [vmem:[%s18571_s20 + $0x388] sm:$0xff] }
 0x8b9   :  { %v13695_v16 = vpack.c.bf16 %v5391_v6, %v5390_v4  ;;  %v5733_v6 = vld [vmem:[%s18575_s7 + $0x188] sm:$0xff] }
 0x8bb   :  { %13573 = vmatpush3.bf16.msra.mxu0 %v13572_v19  ;;  %v11773_v26 = vpop.f32.mrb[54].mxu1  ;;  %v5323_v19 = vld [vmem:[%s18571_s20 + $0x168] sm:$0xff] }
 0x8bc   :  { %v11774_v36 = vpop.f32.mrb[55].mxu1  ;;  %13607 = vmatprep.subr.bf16.mxu0 %v13606_v21  ;;  %v5340_v21 = vld [vmem:[%s18571_s20 + $0x1f0] sm:$0xff]  ;;  %v13632_v23 = vpack.c.bf16 %v5323_v19, %v5322_v17  ;;  %v5394_v19 = vld [vmem:[%s18571_s20 + $0x3a0] sm:$0xff] }
 0x8bd   :  { %v17005_v28 = vadd.f32 %v11774_v36, %v11773_v26  ;;  %v13634_v61 = vpack.c.bf16 %v5341_v22, %v5340_v21  ;;  %v5325_v26 = vld [vmem:[%s18571_s20 + $0x178] sm:$0xff]  ;;  %v5374_v36 = vld [vmem:[%s18571_s20 + $0x300] sm:$0xff]  ;;  %v5395_v21 = vld [vmem:[%s18571_s20 + $0x3a8] sm:$0xff] }
 0x8be   :  { %12558 = vmatmul.mubr.msk.f32.vlgmr.msra.gmra.mrb[40].mxu0 %vm1314_vm6, %v16958_v24  ;;  %v13618_v24 = vpack.c.bf16 %v5333_v38, %v5332_v45  ;;  %v5379_v45 = vld [vmem:[%s18571_s20 + $0x328] sm:$0xff]  ;;  %v13701_v22 = vpack.c.bf16 %v5395_v21, %v5394_v19  ;;  %v4796_v19 = vld [vmem:[%s18577_s2] sm:$0xff] }
 0x8bf   :  { %13609 = vmatpush3.bf16.msra.mxu0 %v13608_v63  ;;  %5538 = vmatprep.mubr.f32.mxu0 %v15910_v30  ;;  %v13636_v63 = vpack.c.bf16 %v5325_v26, %v5324_v25  ;;  %v13677_v38 = vpack.c.bf16 %v5379_v45, %v5378_v20  ;;  %v5398_v26 = vld [vmem:[%s18571_s20 + $0x3c0] sm:$0xff] }
 0x8c0   :  { %13611 = vmatprep.subr.bf16.mxu0 %v13610_v34  ;;  %v5375_v34 = vld [vmem:[%s18571_s20 + $0x308] sm:$0xff]  ;;  %v5708_v45 = vld [vmem:[%s18575_s7 + $0xc0] sm:$0xff] }
 0x8c1   :  { %v13671_v7 = vpack.c.bf16 %v5375_v34, %v5374_v36  ;;  %v5400_v34 = vld [vmem:[%s18571_s20 + $0x3d0] sm:$0xff] }
 0x8c3   :  { %13613 = vmatpush3.bf16.msra.mxu0 %v13612_v41  ;;  %v5377_v41 = vld [vmem:[%s18571_s20 + $0x318] sm:$0xff] }
 0x8c4   :  { %13615 = vmatprep.subr.bf16.mxu0 %v13614_v42  ;;  %v13674_v44 = vpack.c.bf16 %v5377_v41, %v5376_v40  ;;  %v5685_v40 = vld [vmem:[%s18575_s7 + $0x8] sm:$0xff]  ;;  %v5698_v41 = vld [vmem:[%s18575_s7 + $0x70] sm:$0xff] }
 0x8c5   :  { %v13712_v20 = vpack.c.bf16 %v5698_v41, %v5685_v40 }
 0x8c7   :  { %13617 = vmatpush3.bf16.msra.mxu0 %v13616_v13  ;;  %v5380_v13 = vld [vmem:[%s18571_s20 + $0x330] sm:$0xff]  ;;  %13713 = vmatprep.subr.bf16.mxu1 %v13712_v20 }
 0x8c8   :  { %13619 = vmatprep.subr.bf16.mxu0 %v13618_v24  ;;  %v5381_v24 = vld [vmem:[%s18571_s20 + $0x338] sm:$0xff] }
 0x8c9   :  { %v13680_v46 = vpack.c.bf16 %v5381_v24, %v5380_v13  ;;  %v5697_v13 = vld [vmem:[%s18575_s7 + $0x68] sm:$0xff] }
 0x8cb   :  { %13621 = vmatpush3.bf16.msra.mxu0 %v13620_v52  ;;  %v5384_v52 = vld [vmem:[%s18571_s20 + $0x350] sm:$0xff] }
 0x8cc   :  { %13623 = vmatprep.subr.bf16.mxu0 %v13622_v54  ;;  %v5385_v54 = vld [vmem:[%s18571_s20 + $0x358] sm:$0xff] }
 0x8cd   :  { %v13686_v56 = vpack.c.bf16 %v5385_v54, %v5384_v52  ;;  %v13754_v52 = vpack.c.bf16 %v5707_v51, %v5694_v48  ;;  %v5724_v54 = vld [vmem:[%s18575_s7 + $0x140] sm:$0xff] }
 0x8cf   :  { %13625 = vmatpush3.bf16.msra.mxu0 %v13624_v60  ;;  %v5388_v60 = vld [vmem:[%s18571_s20 + $0x370] sm:$0xff] }
 0x8d0   :  { %13627 = vmatprep.subr.bf16.mxu0 %v13626_v0  ;;  %v5389_v0 = vld [vmem:[%s18571_s20 + $0x378] sm:$0xff] }
 0x8d1   :  { %v13692_v3 = vpack.c.bf16 %v5389_v0, %v5388_v60  ;;  %v5710_v60 = vld [vmem:[%s18575_s7 + $0xd0] sm:$0xff]  ;;  %v5723_v0 = vld [vmem:[%s18575_s7 + $0x138] sm:$0xff] }
 0x8d2   :  { %v13718_v4 = vpack.c.bf16 %v5723_v0, %v5710_v60 }
 0x8d3   :  { %13629 = vmatpush3.bf16.msra.mxu0 %v13628_v11  ;;  %v5392_v11 = vld [vmem:[%s18571_s20 + $0x390] sm:$0xff] }
 0x8d4   :  { %13631 = vmatprep.subr.bf16.mxu0 %v13630_v8  ;;  %v5393_v8 = vld [vmem:[%s18571_s20 + $0x398] sm:$0xff] }
 0x8d5   :  { %v13698_v17 = vpack.c.bf16 %v5393_v8, %v5392_v11  ;;  %v5687_v11 = vld [vmem:[%s18575_s7 + $0x18] sm:$0xff]  ;;  %v5700_v8 = vld [vmem:[%s18575_s7 + $0x80] sm:$0xff] }
 0x8d6   :  { %v13720_v21 = vpack.c.bf16 %v5700_v8, %v5687_v11  ;;  %v11144_v11 = vld [vmem:[%s18577_s2 + $0x8] ss:$0 sm:$0xff] }
 0x8d7   :  { %13633 = vmatpush3.bf16.msra.mxu0 %v13632_v23  ;;  %v5396_v23 = vld [vmem:[%s18571_s20 + $0x3b0] sm:$0xff] }
 0x8d8   :  { %13635 = vmatprep.subr.bf16.mxu0 %v13634_v61  ;;  %v5397_v61 = vld [vmem:[%s18571_s20 + $0x3b8] sm:$0xff] }
 0x8d9   :  { %v13704_v25 = vpack.c.bf16 %v5397_v61, %v5396_v23  ;;  %v4803_v61 = vrot.slane %v4796_v19, %v15835_v12 }
 0x8db   :  { %13637 = vmatpush3.bf16.msra.mxu0 %v13636_v63  ;;  %v11843_v37 = vpop.f32.mrb[56].mxu1  ;;  %v5399_v63 = vld [vmem:[%s18571_s20 + $0x3c8] sm:$0xff] }
 0x8dc   :  { %v11844_v39 = vpop.f32.mrb[57].mxu1  ;;  %13670 = vmatprep.subr.bf16.mxu0 %v15270_v9  ;;  %v13707_v36 = vpack.c.bf16 %v5399_v63, %v5398_v26 }
 0x8dd   :  { %v17039_v42 = vadd.f32 %v11844_v39, %v11843_v37  ;;  %v5401_v37 = vld [vmem:[%s18571_s20 + $0x3d8] sm:$0xff]  ;;  %v5402_v39 = vld [vmem:[%s18571_s20 + $0x3e0] sm:$0xff]  ;;  %s10890_s20 = sshll.u32 %s15272_s18, 4  ;;  %s10891_s20 = int_to_ptr.vmem [resolvable:$true] %s10890_s20 }
 0x8de   :  { %5539 = vmatmul.mubr.f32.vlgmr.msra.gmra.mrb[42].mxu0 %v15912_v33  ;;  %s14915_s26 = scalar_lea.vmem %s10891_s20, 144  ;;  %p14920_p13 = scmp.lt.s32.totalorder %s10891_s20, %s10891_s20 }
 0x8df   :  { %13672 = vmatpush1.bf16.msra.mxu0 %v13671_v7  ;;  %11150 = vmatprep.mubr.msk.f32.mxu0 %vm983_vm5, %v15946_v2  ;;  %v13710_v7 = vpack.c.bf16 %v5401_v37, %v5400_v34  ;;  %p14916_p12 = scmp.ne.s32.totalorder %s10891_s20, %s14915_s26 }
 0x8e0   :  { %13673 = vmatprep.subr.bf16.mxu0 %v15270_v9 }
 0x8e3   :  { %13675 = vmatpush1.bf16.msra.mxu0 %v13674_v44  ;;  %v5695_v44 = vld [vmem:[%s18575_s7 + $0x58] sm:$0xff] }
 0x8e4   :  { %13676 = vmatprep.subr.bf16.mxu0 %v15270_v9  ;;  %v13752_v24 = vpack.c.bf16 %v5708_v45, %v5695_v44 }
 0x8e7   :  { %13678 = vmatpush1.bf16.msra.mxu0 %v13677_v38  ;;  %v5684_v38 = vld [vmem:[%s18575_s7] sm:$0xff] }
 0x8e8   :  { %13679 = vmatprep.subr.bf16.mxu0 %v15270_v9 }
 0x8eb   :  { %13681 = vmatpush1.bf16.msra.mxu0 %v13680_v46  ;;  %v13714_v46 = vpack.c.bf16 %v5697_v13, %v5684_v38  ;;  %v4819_v38 = vrot.slane %v4796_v19, %v15898_v5 }
 0x8ec   :  { %13682 = vmatprep.subr.bf16.mxu0 %v15270_v9 }
 0x8ed   :  { %13715 = vmatpush1.bf16.msra.mxu1 %v13714_v46  ;;  %v4823_v46 = vrot.slane %v4796_v19, %v15844_v15 }
 0x8ef   :  { %13684 = vmatpush1.bf16.msra.mxu0 %v13683_v49  ;;  %v5711_v49 = vld [vmem:[%s18575_s7 + $0xd8] sm:$0xff] }
 0x8f0   :  { %13685 = vmatprep.subr.bf16.mxu0 %v15270_v9  ;;  %v13716_v53 = vpack.c.bf16 %v5724_v54, %v5711_v49 }
 0x8f2   :  { %13717 = vmatprep.subr.bf16.mxu1 %v13716_v53  ;;  %v4831_v53 = vrot.slane %v4796_v19, %v15933_v50 }
 0x8f3   :  { %13687 = vmatpush1.bf16.msra.mxu0 %v13686_v56  ;;  %v5721_v56 = vld [vmem:[%s18575_s7 + $0x128] sm:$0xff]  ;;  %13719 = vmatpush1.bf16.msra.mxu1 %v13718_v4 }
 0x8f4   :  { %13688 = vmatprep.subr.bf16.mxu0 %v15270_v9  ;;  %13721 = vmatprep.subr.bf16.mxu1 %v13720_v21 }
 0x8f7   :  { %13690 = vmatpush1.bf16.msra.mxu0 %v13689_v62  ;;  %v13756_v62 = vpack.c.bf16 %v5734_v55, %v5721_v56  ;;  %v4827_v55 = vrot.slane %v4796_v19, %v15966_v27 }
 0x8f8   :  { %13691 = vmatprep.subr.bf16.mxu0 %v15270_v9 }
 0x8fb   :  { %13693 = vmatpush1.bf16.msra.mxu0 %v13692_v3  ;;  %v5720_v3 = vld [vmem:[%s18575_s7 + $0x120] sm:$0xff] }
 0x8fc   :  { %13694 = vmatprep.subr.bf16.mxu0 %v15270_v9 }
 0x8ff   :  { %13696 = vmatpush1.bf16.msra.mxu0 %v13695_v16  ;;  %v13758_v16 = vpack.c.bf16 %v5733_v6, %v5720_v3 }
 0x900   :  { %13697 = vmatprep.subr.bf16.mxu0 %v15270_v9 }
 0x903   :  { %13699 = vmatpush1.bf16.msra.mxu0 %v13698_v17  ;;  %v6425_v17 = vld [vmem:[%s18576_s1 + $0x80] sm:$0xff] }
 0x904   :  { %13700 = vmatprep.subr.bf16.mxu0 %v15270_v9 }
 0x907   :  { %13702 = vmatpush1.bf16.msra.mxu0 %v13701_v22  ;;  %v6426_v22 = vld [vmem:[%s18576_s1 + $0x88] sm:$0xff] }
 0x908   :  { %13703 = vmatprep.subr.bf16.mxu0 %v15270_v9  ;;  %v13766_v23 = vpack.c.bf16 %v6426_v22, %v6425_v17 }
 0x90b   :  { %13705 = vmatpush1.bf16.msra.mxu0 %v13704_v25  ;;  %v4807_v25 = vrot.slane %v4796_v19, %v15841_v14 }
 0x90c   :  { %13706 = vmatprep.subr.bf16.mxu0 %v15270_v9 }
 0x90f   :  { %13708 = vmatpush1.bf16.msra.mxu0 %v13707_v36 }
 0x910   :  { %13709 = vmatprep.subr.bf16.mxu0 %v15270_v9 }
 0x913   :  { %13711 = vmatpush1.bf16.msra.mxu0 %v13710_v7  ;;  %v4811_v7 = vrot.slane %v4796_v19, %v15884_v57 }
 0x914   :  { %5670 = vmatprep.subr.mxu0 %v15268_v1 }
 0x917   :  { %5671 = vmatpush1.msra.mxu0 %v5402_v39  ;;  %v4815_v39 = vrot.slane %v4796_v19, %v15887_v59 }
 0x918   :  { %5679 = vmatmul.mubr.f32.vlgmr.msra.gmra.mrb[44].mxu0 %v15982_v47  ;;  %13753 = vmatprep.subr.bf16.mxu0 %v13752_v24 }
 0x919   :  { %6227 = vmatprep.mubr.f32.mxu0 %v15268_v1  ;;  %13755 = vmatpush1.bf16.msra.mxu0 %v13754_v52 }
 0x91a   :  { %13757 = vmatprep.subr.bf16.mxu0 %v13756_v62 }
 0x91d   :  { %13759 = vmatpush1.bf16.msra.mxu0 %v13758_v16 }
 0x91e   :  { %13767 = vmatprep.subr.bf16.mxu0 %v13766_v23 }
 0x971   :  { %v4914_v26 = vpop.f32.mrb[32].mxu0 }
 0x972   :  { %v4915_v63 = vadd.f32 %v4914_v26, %v4803_v61  ;;  %v4916_v36 = vpop.f32.mrb[33].mxu0 }
 0x973   :  { %v4917_v34 = vadd.f32 %v4916_v36, %v4807_v25 }
 0x975   :  { %v5211_v37 = vcombine.low %v4915_v63, %v4917_v34  ;;  %v5403_v63 = vld [vmem:[%s18578_s19] sm:$0x1] }
 0x977   :  { %v5221_v13 = vrot.slane %v5211_v37, %v16188_v58  ;;  %v5471_v37 = vadd.f32 %v17005_v28, %v5403_v63 }
 0x979   :  { %v4985_v40 = vpop.f32.mrb[34].mxu0 }
 0x97a   :  { %v4986_v41 = vadd.f32 %v4985_v40, %v4811_v7  ;;  %v4987_v44 = vpop.f32.mrb[35].mxu0 }
 0x97b   :  { %v4988_v20 = vadd.f32 %v4987_v44, %v4815_v39  ;;  %v5699_v44 = vld [vmem:[%s18575_s7 + $0x78] sm:$0xff] }
 0x97d   :  { %v5212_v45 = vcombine.low %v4986_v41, %v4988_v20  ;;  %v5686_v41 = vld [vmem:[%s18575_s7 + $0x10] sm:$0xff]  ;;  %v6409_v20 = vld [vmem:[%s18576_s1] sm:$0xff] }
 0x97f   :  { %v5228_v24 = vrot.slane %v5212_v45, %v16188_v58  ;;  %v6410_v45 = vld [vmem:[%s18576_s1 + $0x8] sm:$0xff] }
 0x981   :  { %v5243_v48 = vcombine.low %v5221_v13, %v5228_v24  ;;  %v5056_v51 = vpop.f32.mrb[36].mxu0  ;;  %v5726_v13 = vld [vmem:[%s18575_s7 + $0x150] sm:$0xff] }
 0x982   :  { %v5057_v49 = vadd.f32 %v5056_v51, %v4819_v38  ;;  %v5058_v52 = vpop.f32.mrb[37].mxu0  ;;  %v5713_v38 = vld [vmem:[%s18575_s7 + $0xe8] sm:$0xff]  ;;  %v6427_v24 = vld [vmem:[%s18576_s1 + $0x90] sm:$0xff]  ;;  %v13768_v51 = vpack.c.bf16 %v6410_v45, %v6409_v20  ;;  %v5704_v20 = vld [vmem:[%s18575_s7 + $0xa0] sm:$0xff] }
 0x983   :  { %v5059_v54 = vadd.f32 %v5058_v52, %v4823_v46  ;;  %v5251_v23 = vrot.slane %v5243_v48, %v16188_v58  ;;  %v6428_v46 = vld [vmem:[%s18576_s1 + $0x98] sm:$0xff]  ;;  %v13722_v48 = vpack.c.bf16 %v5699_v44, %v5686_v41  ;;  %v5725_v52 = vld [vmem:[%s18575_s7 + $0x148] sm:$0xff]  ;;  %v6433_v45 = vld [vmem:[%s18576_s1 + $0xc0] sm:$0xff] }
 0x984   :  { %v6416_v41 = vld [vmem:[%s18576_s1 + $0x38] sm:$0xff] }
 0x985   :  { %v5213_v56 = vcombine.low %v5057_v49, %v5059_v54  ;;  %v5712_v49 = vld [vmem:[%s18575_s7 + $0xe0] sm:$0xff]  ;;  %v5691_v44 = vld [vmem:[%s18575_s7 + $0x38] sm:$0xff] }
 0x987   :  { %v5235_v6 = vrot.slane %v5213_v56, %v16188_v58  ;;  %v13724_v56 = vpack.c.bf16 %v5726_v13, %v5713_v38  ;;  %v6434_v38 = vld [vmem:[%s18576_s1 + $0xc8] sm:$0xff] }
 0x989   :  { %v5127_v62 = vpop.f32.mrb[38].mxu0 }
 0x98a   :  { %v5128_v60 = vadd.f32 %v5127_v62, %v4827_v55  ;;  %v5129_v0 = vpop.f32.mrb[39].mxu0  ;;  %v6411_v55 = vld [vmem:[%s18576_s1 + $0x10] sm:$0xff]  ;;  %v5689_v62 = vld [vmem:[%s18575_s7 + $0x28] sm:$0xff] }
 0x98b   :  { %v5130_v3 = vadd.f32 %v5129_v0, %v4831_v53  ;;  %v6412_v53 = vld [vmem:[%s18576_s1 + $0x18] sm:$0xff]  ;;  %v5702_v0 = vld [vmem:[%s18575_s7 + $0x90] sm:$0xff] }
 0x98d   :  { %v5214_v4 = vcombine.low %v5128_v60, %v5130_v3  ;;  %v13770_v60 = vpack.c.bf16 %v6428_v46, %v6427_v24  ;;  %v6429_v3 = vld [vmem:[%s18576_s1 + $0xa0] sm:$0xff]  ;;  %v5690_v46 = vld [vmem:[%s18575_s7 + $0x30] sm:$0xff] }
 0x98f   :  { %v5242_v16 = vrot.slane %v5214_v4, %v16188_v58  ;;  %v6430_v4 = vld [vmem:[%s18576_s1 + $0xa8] sm:$0xff] }
 0x991   :  { %v5244_v8 = vcombine.low %v5235_v6, %v5242_v16  ;;  %v5198_v17 = vpop.f32.mrb[40].mxu0  ;;  %v13726_v6 = vpack.c.bf16 %v5725_v52, %v5712_v49  ;;  %v13772_v16 = vpack.c.bf16 %v6412_v53, %v6411_v55  ;;  %v6417_v49 = vld [vmem:[%s18576_s1 + $0x40] sm:$0xff]  ;;  %v6418_v52 = vld [vmem:[%s18576_s1 + $0x48] sm:$0xff]  ;;  %v6435_v55 = vld [vmem:[%s18576_s1 + $0xd0] sm:$0xff] }
 0x992   :  { %v5199_v21 = vadd.f32 %v11144_v11, %v5198_v17  ;;  %v12559_v22 = vpop.f32.mrb[41].mxu0  ;;  %v5688_v11 = vld [vmem:[%s18575_s7 + $0x20] sm:$0xff]  ;;  %v13728_v17 = vpack.c.bf16 %v5702_v0, %v5689_v62  ;;  %v6436_v53 = vld [vmem:[%s18576_s1 + $0xd8] sm:$0xff] }
 0x993   :  { %v5258_v19 = vrot.slane %v5244_v8, %v16188_v58  ;;  %v5701_v8 = vld [vmem:[%s18575_s7 + $0x88] sm:$0xff]  ;;  %v6413_v22 = vld [vmem:[%s18576_s1 + $0x20] sm:$0xff] }
 0x994   :  { %v5266_v61 = vrot.slane %v5199_v21, %v16188_v58  ;;  %v13774_v21 = vpack.c.bf16 %v6430_v4, %v6429_v3  ;;  %v13730_v63 = vpack.c.bf16 %v5701_v8, %v5688_v11  ;;  %v5716_v0 = vld [vmem:[%s18575_s7 + $0x100] sm:$0xff]  ;;  %v5729_v3 = vld [vmem:[%s18575_s7 + $0x168] sm:$0xff]  ;;  %v6420_v11 = vld [vmem:[%s18576_s1 + $0x58] sm:$0xff] }
 0x995   :  { %v5259_v25 = vcombine.low %v5251_v23, %v5258_v19  ;;  %v6414_v23 = vld [vmem:[%s18576_s1 + $0x28] sm:$0xff]  ;;  %v5715_v19 = vld [vmem:[%s18575_s7 + $0xf8] sm:$0xff] }
 0x996   :  { %v5273_v26 = vrot.slane %v5266_v61, %v16188_v58  ;;  %v5728_v61 = vld [vmem:[%s18575_s7 + $0x160] sm:$0xff]  ;;  %v5693_v8 = vld [vmem:[%s18575_s7 + $0x48] sm:$0xff] }
 0x997   :  { %5276 = vst [vmem:[#allocation18] sm:$0xff] %v5259_v25  ;;  %v6431_v25 = vld [vmem:[%s18576_s1 + $0xb0] sm:$0xff] }
 0x998   :  { %5277 = vst.msk [vmem:[#allocation18 + $0x8] sm:$0x1] %vm16417_vm8, %v5273_v26  ;;  %v6432_v26 = vld [vmem:[%s18576_s1 + $0xb8] sm:$0xff] }
 0x9b1   :  { %v11808_v36 = vpop.f32.mrb[42].mxu0 }
 0x9b2   :  { %v11809_v34 = vpop.f32.mrb[43].mxu0 }
 0x9b3   :  { %v11810_v7 = vadd.f32 %v11809_v34, %v11808_v36  ;;  %v13776_v36 = vpack.c.bf16 %v6414_v23, %v6413_v22  ;;  %v5714_v34 = vld [vmem:[%s18575_s7 + $0xf0] sm:$0xff]  ;;  %v6438_v22 = vld [vmem:[%s18576_s1 + $0xe8] sm:$0xff]  ;;  %v13742_v23 = vpack.c.bf16 %v5729_v3, %v5716_v0 }
 0x9b5   :  { %v5541_v39 = vadd.f32 %v11810_v7, %v5471_v37  ;;  %v5727_v37 = vld [vmem:[%s18575_s7 + $0x158] sm:$0xff]  ;;  %v13732_v7 = vpack.c.bf16 %v5728_v61, %v5715_v19  ;;  %v5692_v61 = vld [vmem:[%s18575_s7 + $0x40] sm:$0xff] }
 0x9b6   :  { %v13734_v13 = vpack.c.bf16 %v5727_v37, %v5714_v34  ;;  %v6422_v34 = vld [vmem:[%s18576_s1 + $0x68] sm:$0xff]  ;;  %v5719_v37 = vld [vmem:[%s18575_s7 + $0x118] sm:$0xff] }
 0x9b7   :  { %v5611_v40 = vadd.f32 %v17039_v42, %v5541_v39  ;;  %v13778_v39 = vpack.c.bf16 %v6432_v26, %v6431_v25  ;;  %v5705_v25 = vld [vmem:[%s18575_s7 + $0xa8] sm:$0xff] }
 0x9eb   :  { %v5680_v28 = vpop.f32.mrb[44].mxu0 }
 0x9ec   :  { %v17138_v42 = vadd.f32 %v5680_v28, %v5611_v40  ;;  %v5682_v54 = vpop.f32.mrb[45].mxu0  ;;  %v6415_v40 = vld [vmem:[%s18576_s1 + $0x30] sm:$0xff]  ;;  %v5703_v28 = vld [vmem:[%s18575_s7 + $0x98] sm:$0xff] }
 0x9ed   :  { %v13780_v24 = vpack.c.bf16 %v6416_v41, %v6415_v40  ;;  %v5717_v54 = vld [vmem:[%s18575_s7 + $0x108] sm:$0xff]  ;;  %v13738_v62 = vpack.c.bf16 %v5703_v28, %v5690_v46  ;;  %v6440_v40 = vld [vmem:[%s18576_s1 + $0xf8] sm:$0xff]  ;;  %v13746_v41 = vpack.c.bf16 %v5705_v25, %v5692_v61  ;;  %v6489_v28 = vld [vmem:[%s18576_s1 + $0x280] sm:$0xff] }
 0x9ee   :  { %11151 = vmatmul.mubr.msk.f32.vlgmr.msra.gmra.mrb[58].mxu1 %vm1314_vm6, %v17138_v42  ;;  %11156 = vmatmul.mubr.msk.f32.vlgmr.msra.gmra.mrb[46].mxu0 %vm1314_vm6, %v17138_v42  ;;  %v6424_v46 = vld [vmem:[%s18576_s1 + $0x78] sm:$0xff] }
 0x9ef   :  { %13723 = vmatpush1.bf16.msra.mxu1 %v13722_v48  ;;  %13769 = vmatpush3.bf16.msra.mxu0 %v13768_v51  ;;  %v13736_v48 = vpack.c.bf16 %v5704_v20, %v5691_v44  ;;  %v13782_v51 = vpack.c.bf16 %v6434_v38, %v6433_v45  ;;  %v5718_v20 = vld [vmem:[%s18575_s7 + $0x110] sm:$0xff] }
 0x9f0   :  { %6599 = vmatprep.mubr.f32.mxu0 %v15858_v29  ;;  %13725 = vmatprep.subr.bf16.mxu1 %v13724_v56  ;;  %v5730_v56 = vld [vmem:[%s18575_s7 + $0x170] sm:$0xff] }
 0x9f1   :  { %13771 = vmatprep.subr.bf16.mxu0 %v13770_v60  ;;  %5943 = vmatprep.mubr.f32.mxu1 %v15268_v1  ;;  %v13784_v60 = vpack.c.bf16 %v6418_v52, %v6417_v49  ;;  %v13740_v4 = vpack.c.bf16 %v5730_v56, %v5717_v54  ;;  %v5696_v52 = vld [vmem:[%s18575_s7 + $0x60] sm:$0xff]  ;;  %v5709_v56 = vld [vmem:[%s18575_s7 + $0xc8] sm:$0xff] }
 0x9f2   :  { %v13761_v0 = vpack.c.bf16 %v5709_v56, %v5696_v52  ;;  %v6498_v52 = vld [vmem:[%s18576_s1 + $0x2c8] sm:$0xff] }
 0x9f3   :  { %13727 = vmatpush1.bf16.msra.mxu1 %v13726_v6  ;;  %13773 = vmatpush3.bf16.msra.mxu0 %v13772_v16  ;;  %v13786_v6 = vpack.c.bf16 %v6436_v53, %v6435_v55  ;;  %v6419_v16 = vld [vmem:[%s18576_s1 + $0x50] sm:$0xff]  ;;  %v6473_v55 = vld [vmem:[%s18576_s1 + $0x200] sm:$0xff]  ;;  %v6474_v53 = vld [vmem:[%s18576_s1 + $0x208] sm:$0xff] }
 0x9f4   :  { %13729 = vmatprep.subr.bf16.mxu1 %v13728_v17  ;;  %13775 = vmatprep.subr.bf16.mxu0 %v13774_v21  ;;  %v5706_v17 = vld [vmem:[%s18575_s7 + $0xb0] sm:$0xff]  ;;  %v6437_v21 = vld [vmem:[%s18576_s1 + $0xe0] sm:$0xff]  ;;  %v13788_v19 = vpack.c.bf16 %v6420_v11, %v6419_v16  ;;  %v13832_v3 = vpack.c.bf16 %v6474_v53, %v6473_v55  ;;  %v6476_v11 = vld [vmem:[%s18576_s1 + $0x218] sm:$0xff] }
 0x9f5   :  { %v13744_v26 = vpack.c.bf16 %v5706_v17, %v5693_v8  ;;  %v6475_v16 = vld [vmem:[%s18576_s1 + $0x210] sm:$0xff]  ;;  %v6457_v8 = vld [vmem:[%s18576_s1 + $0x180] sm:$0xff] }
 0x9f6   :  { %11152 = vmatmul.mubr.msk.f32.vlgmr.msra.gmra.mrb[60].mxu1 %vm1314_vm6, %v17138_v42  ;;  %v13836_v61 = vpack.c.bf16 %v6476_v11, %v6475_v16  ;;  %v6445_v53 = vld [vmem:[%s18576_s1 + $0x120] sm:$0xff]  ;;  %v6500_v16 = vld [vmem:[%s18576_s1 + $0x2d8] sm:$0xff] }
 0x9f7   :  { %13731 = vmatpush1.bf16.msra.mxu1 %v13730_v63  ;;  %13777 = vmatpush3.bf16.msra.mxu0 %v13776_v36  ;;  %v13790_v63 = vpack.c.bf16 %v6438_v22, %v6437_v21  ;;  %v6421_v36 = vld [vmem:[%s18576_s1 + $0x60] sm:$0xff]  ;;  %v6458_v21 = vld [vmem:[%s18576_s1 + $0x188] sm:$0xff] }
 0x9f8   :  { %13733 = vmatprep.subr.bf16.mxu1 %v13732_v7  ;;  %13779 = vmatprep.subr.bf16.mxu0 %v13778_v39  ;;  %v5732_v7 = vld [vmem:[%s18575_s7 + $0x180] sm:$0xff]  ;;  %v6439_v39 = vld [vmem:[%s18576_s1 + $0xf0] sm:$0xff]  ;;  %v13792_v44 = vpack.c.bf16 %v6422_v34, %v6421_v36  ;;  %v13798_v25 = vpack.c.bf16 %v6458_v21, %v6457_v8  ;;  %v6442_v36 = vld [vmem:[%s18576_s1 + $0x108] sm:$0xff] }
 0x9f9   :  { %6014 = vmatprep.mubr.f32.mxu1 %v15268_v1  ;;  %v13748_v45 = vpack.c.bf16 %v5732_v7, %v5719_v37  ;;  %v13794_v38 = vpack.c.bf16 %v6440_v40, %v6439_v39  ;;  %v6493_v22 = vld [vmem:[%s18576_s1 + $0x2a0] sm:$0xff]  ;;  %v6478_v37 = vld [vmem:[%s18576_s1 + $0x228] sm:$0xff]  ;;  %v6459_v7 = vld [vmem:[%s18576_s1 + $0x190] sm:$0xff] }
 0x9fa   :  { %v6477_v34 = vld [vmem:[%s18576_s1 + $0x220] sm:$0xff]  ;;  %v6460_v39 = vld [vmem:[%s18576_s1 + $0x198] sm:$0xff]  ;;  %v6495_v40 = vld [vmem:[%s18576_s1 + $0x2b0] sm:$0xff] }
 0x9fb   :  { %13735 = vmatpush1.bf16.msra.mxu1 %v13734_v13  ;;  %13781 = vmatpush3.bf16.msra.mxu0 %v13780_v24  ;;  %v5731_v13 = vld [vmem:[%s18575_s7 + $0x178] sm:$0xff]  ;;  %v6423_v24 = vld [vmem:[%s18576_s1 + $0x70] sm:$0xff] }
 0x9fc   :  { %13737 = vmatprep.subr.bf16.mxu1 %v13736_v48  ;;  %13783 = vmatprep.subr.bf16.mxu0 %v13782_v51  ;;  %v6490_v48 = vld [vmem:[%s18576_s1 + $0x288] sm:$0xff]  ;;  %v13750_v51 = vpack.c.bf16 %v5731_v13, %v5718_v20  ;;  %v13796_v49 = vpack.c.bf16 %v6424_v46, %v6423_v24  ;;  %v13840_v20 = vpack.c.bf16 %v6478_v37, %v6477_v34  ;;  %v6444_v13 = vld [vmem:[%s18576_s1 + $0x118] sm:$0xff]  ;;  %v6479_v24 = vld [vmem:[%s18576_s1 + $0x230] sm:$0xff] }
 0x9fd   :  { %v13830_v54 = vpack.c.bf16 %v6490_v48, %v6489_v28  ;;  %v6480_v28 = vld [vmem:[%s18576_s1 + $0x238] sm:$0xff]  ;;  %v6461_v48 = vld [vmem:[%s18576_s1 + $0x1a0] sm:$0xff]  ;;  %v6447_v21 = vld [vmem:[%s18576_s1 + $0x130] sm:$0xff] }
 0x9fe   :  { %11153 = vmatmul.mubr.msk.f32.vlgmr.msra.gmra.mrb[62].mxu1 %vm1314_vm6, %v17138_v42  ;;  %v13844_v56 = vpack.c.bf16 %v6480_v28, %v6479_v24  ;;  %v6504_v24 = vld [vmem:[%s18576_s1 + $0x2f8] sm:$0xff] }
 0x9ff   :  { %13739 = vmatpush1.bf16.msra.mxu1 %v13738_v62  ;;  %13785 = vmatpush3.bf16.msra.mxu0 %v13784_v60  ;;  %v6491_v62 = vld [vmem:[%s18576_s1 + $0x290] sm:$0xff]  ;;  %v6492_v60 = vld [vmem:[%s18576_s1 + $0x298] sm:$0xff] }
 0xa00   :  { %13741 = vmatprep.subr.bf16.mxu1 %v13740_v4  ;;  %13787 = vmatprep.subr.bf16.mxu0 %v13786_v6  ;;  %v5722_v4 = vld [vmem:[%s18575_s7 + $0x130] sm:$0xff]  ;;  %v5735_v6 = vld [vmem:[%s18575_s7 + $0x198] sm:$0xff]  ;;  %v13834_v17 = vpack.c.bf16 %v6492_v60, %v6491_v62  ;;  %v6446_v62 = vld [vmem:[%s18576_s1 + $0x128] sm:$0xff]  ;;  %s14919_s7 = scalar_lea.vmem %s10891_s20, 160 }
 0xa01   :  { %6085 = vmatprep.mubr.f32.mxu1 %v15268_v1  ;;  %v6481_v60 = vld [vmem:[%s18576_s1 + $0x240] sm:$0xff]  ;;  %v13808_v11 = vpack.c.bf16 %v6446_v62, %v6445_v53  ;;  %v6470_v53 = vld [vmem:[%s18576_s1 + $0x1e8] sm:$0xff]  ;;  %p14921_p0 = scmp.lt.s32.totalorder %s14919_s7, %s14915_s26 }
 0xa03   :  { %13743 = vmatpush1.bf16.msra.mxu1 %v13742_v23  ;;  %13789 = vmatpush3.bf16.msra.mxu0 %v13788_v19  ;;  %v6494_v23 = vld [vmem:[%s18576_s1 + $0x2a8] sm:$0xff]  ;;  %v13764_v19 = vpack.c.bf16 %v5735_v6, %v5722_v4  ;;  %v6464_v4 = vld [vmem:[%s18576_s1 + $0x1b8] sm:$0xff]  ;;  %v6499_v6 = vld [vmem:[%s18576_s1 + $0x2d0] sm:$0xff]  ;;  %p14922_p1 = por %p14921_p0, %p14920_p13 }
 0xa04   :  { %13745 = vmatprep.subr.bf16.mxu1 %v13744_v26  ;;  %13791 = vmatprep.subr.bf16.mxu0 %v13790_v63  ;;  %v13838_v26 = vpack.c.bf16 %v6494_v23, %v6493_v22  ;;  %v6441_v63 = vld [vmem:[%s18576_s1 + $0x100] sm:$0xff]  ;;  %v6448_v22 = vld [vmem:[%s18576_s1 + $0x138] sm:$0xff]  ;;  %v6483_v23 = vld [vmem:[%s18576_s1 + $0x250] sm:$0xff] }
 0xa05   :  { %v13812_v34 = vpack.c.bf16 %v6448_v22, %v6447_v21  ;;  %v6505_v22 = vld [vmem:[%s18576_s1 + $0x300] sm:$0xff]  ;;  %p14923_p2 = pnand %p14922_p1, %p14916_p12 }
 0xa06   :  { %11154 = vmatmul.mubr.msk.f32.vlgmr.msra.gmra.mrb[64].mxu1 %vm1314_vm6, %v17138_v42 }
 0xa07   :  { %13747 = vmatpush1.bf16.msra.mxu1 %v13746_v41  ;;  %13793 = vmatpush3.bf16.msra.mxu0 %v13792_v44  ;;  %v6496_v41 = vld [vmem:[%s18576_s1 + $0x2b8] sm:$0xff]  ;;  %v13800_v44 = vpack.c.bf16 %v6442_v36, %v6441_v63  ;;  %v6501_v63 = vld [vmem:[%s18576_s1 + $0x2e0] sm:$0xff]  ;;  %v6502_v36 = vld [vmem:[%s18576_s1 + $0x2e8] sm:$0xff] }
 0xa08   :  { %13749 = vmatprep.subr.bf16.mxu1 %v13748_v45  ;;  %13795 = vmatprep.subr.bf16.mxu0 %v13794_v38  ;;  %v13802_v45 = vpack.c.bf16 %v6460_v39, %v6459_v7  ;;  %v6443_v38 = vld [vmem:[%s18576_s1 + $0x110] sm:$0xff]  ;;  %v13842_v46 = vpack.c.bf16 %v6496_v41, %v6495_v40  ;;  %v6449_v39 = vld [vmem:[%s18576_s1 + $0x140] sm:$0xff]  ;;  %v6450_v40 = vld [vmem:[%s18576_s1 + $0x148] sm:$0xff] }
 0xa09   :  { %6156 = vmatprep.mubr.f32.mxu1 %v15268_v1  ;;  %v6485_v41 = vld [vmem:[%s18576_s1 + $0x260] sm:$0xff] }
 0xa0b   :  { %13751 = vmatpush1.bf16.msra.mxu1 %v13750_v51  ;;  %13797 = vmatpush3.bf16.msra.mxu0 %v13796_v49  ;;  %v6462_v51 = vld [vmem:[%s18576_s1 + $0x1a8] sm:$0xff]  ;;  %v6497_v49 = vld [vmem:[%s18576_s1 + $0x2c0] sm:$0xff] }
 0xa0c   :  { %13760 = vmatprep.subr.bf16.mxu1 %v15270_v9  ;;  %13831 = vmatprep.subr.bf16.mxu0 %v13830_v54  ;;  %v13804_v54 = vpack.c.bf16 %v6444_v13, %v6443_v38  ;;  %v13806_v55 = vpack.c.bf16 %v6462_v51, %v6461_v48  ;;  %v6468_v38 = vld [vmem:[%s18576_s1 + $0x1d8] sm:$0xff]  ;;  %v6503_v13 = vld [vmem:[%s18576_s1 + $0x2f0] sm:$0xff] }
 0xa0d   :  { %v6451_v51 = vld [vmem:[%s18576_s1 + $0x150] sm:$0xff] }
 0xa0e   :  { %11155 = vmatmul.mubr.msk.f32.vlgmr.msra.gmra.mrb[66].mxu1 %vm1314_vm6, %v17138_v42  ;;  %6600 = vmatmul.mubr.f32.vlgmr.msra.gmra.mrb[48].mxu0 %v15860_v31 }
 0xa0f   :  { %13762 = vmatpush3.bf16.msra.mxu1 %v13761_v0  ;;  %13833 = vmatpush3.bf16.msra.mxu0 %v13832_v3  ;;  %v6482_v0 = vld [vmem:[%s18576_s1 + $0x248] sm:$0xff]  ;;  %v6463_v3 = vld [vmem:[%s18576_s1 + $0x1b0] sm:$0xff] }
 0xa10   :  { %6739 = vmatprep.mubr.f32.mxu0 %v15864_v35  ;;  %13763 = vmatprep.subr.bf16.mxu1 %v15270_v9  ;;  %v13848_v8 = vpack.c.bf16 %v6482_v0, %v6481_v60  ;;  %v6453_v0 = vld [vmem:[%s18576_s1 + $0x160] sm:$0xff] }
 0xa11   :  { %13835 = vmatprep.subr.bf16.mxu0 %v13834_v17  ;;  %12568 = vmatprep.mubr.msk.f32.mxu1 %vm15269_vm0, %v15268_v1  ;;  %v13810_v17 = vpack.c.bf16 %v6464_v4, %v6463_v3  ;;  %v6454_v3 = vld [vmem:[%s18576_s1 + $0x168] sm:$0xff]  ;;  %v6471_v4 = vld [vmem:[%s18576_s1 + $0x1f0] sm:$0xff] }
 0xa13   :  { %13765 = vmatpush3.bf16.msra.mxu1 %v13764_v19  ;;  %13837 = vmatpush3.bf16.msra.mxu0 %v13836_v61  ;;  %v13850_v19 = vpack.c.bf16 %v6500_v16, %v6499_v6  ;;  %v6484_v61 = vld [vmem:[%s18576_s1 + $0x258] sm:$0xff]  ;;  %v13824_v16 = vpack.c.bf16 %v6454_v3, %v6453_v0  ;;  %v6527_v0 = vld [vmem:[%s18576_s1 + $0x3b0] sm:$0xff] }
 0xa14   :  { %13799 = vmatprep.subr.bf16.mxu1 %v13798_v25  ;;  %13839 = vmatprep.subr.bf16.mxu0 %v13838_v26  ;;  %v6465_v25 = vld [vmem:[%s18576_s1 + $0x1c0] sm:$0xff]  ;;  %v6466_v26 = vld [vmem:[%s18576_s1 + $0x1c8] sm:$0xff]  ;;  %v13852_v37 = vpack.c.bf16 %v6484_v61, %v6483_v23  ;;  %v6472_v6 = vld [vmem:[%s18576_s1 + $0x1f8] sm:$0xff] }
 0xa15   :  { %v13814_v7 = vpack.c.bf16 %v6466_v26, %v6465_v25  ;;  %v6506_v23 = vld [vmem:[%s18576_s1 + $0x308] sm:$0xff]  ;;  %v6507_v61 = vld [vmem:[%s18576_s1 + $0x310] sm:$0xff]  ;;  %v6508_v25 = vld [vmem:[%s18576_s1 + $0x318] sm:$0xff] }
 0xa16   :  { %12569 = vmatmul.mubr.msk.f32.vlgmr.msra.gmra.mrb[68].mxu1 %vm1314_vm6, %v17138_v42  ;;  %v13846_v42 = vpack.c.bf16 %v6498_v52, %v6497_v49  ;;  %v6452_v49 = vld [vmem:[%s18576_s1 + $0x158] sm:$0xff]  ;;  %v6487_v52 = vld [vmem:[%s18576_s1 + $0x270] sm:$0xff]  ;;  %v13866_v26 = vpack.c.bf16 %v6508_v25, %v6507_v61  ;;  %v7334_v61 = vld [vmem:[%s18579_s4 + $0x8] sm:$0xff] }
 0xa17   :  { %13801 = vmatpush3.bf16.msra.mxu1 %v13800_v44  ;;  %6669 = vmatprep.mubr.f32.mxu1 %v15910_v30  ;;  %v13854_v44 = vpack.c.bf16 %v6502_v36, %v6501_v63  ;;  %v13820_v62 = vpack.c.bf16 %v6452_v49, %v6451_v51  ;;  %v6509_v63 = vld [vmem:[%s18576_s1 + $0x320] sm:$0xff]  ;;  %v6510_v36 = vld [vmem:[%s18576_s1 + $0x328] sm:$0xff]  ;;  %v6528_v3 = vld [vmem:[%s18576_s1 + $0x3b8] sm:$0xff] }
 0xa18   :  { %13841 = vmatpush3.bf16.msra.mxu0 %v13840_v20  ;;  %13803 = vmatprep.subr.bf16.mxu1 %v13802_v45  ;;  %v6486_v20 = vld [vmem:[%s18576_s1 + $0x268] sm:$0xff]  ;;  %v6467_v45 = vld [vmem:[%s18576_s1 + $0x1d0] sm:$0xff]  ;;  %v6521_v49 = vld [vmem:[%s18576_s1 + $0x380] sm:$0xff] }
 0xa19   :  { %13843 = vmatprep.subr.bf16.mxu0 %v13842_v46  ;;  %v13816_v46 = vpack.c.bf16 %v6450_v40, %v6449_v39  ;;  %v13856_v28 = vpack.c.bf16 %v6486_v20, %v6485_v41  ;;  %v13818_v48 = vpack.c.bf16 %v6468_v38, %v6467_v45  ;;  %v6513_v40 = vld [vmem:[%s18576_s1 + $0x340] sm:$0xff]  ;;  %v6514_v41 = vld [vmem:[%s18576_s1 + $0x348] sm:$0xff]  ;;  %v6515_v20 = vld [vmem:[%s18576_s1 + $0x350] sm:$0xff] }
 0xa1a   :  { %v6516_v45 = vld [vmem:[%s18576_s1 + $0x358] sm:$0xff]  ;;  %v7351_v25 = vld [vmem:[%s18579_s4 + $0x90] sm:$0xff] }
 0xa1b   :  { %13805 = vmatpush3.bf16.msra.mxu1 %v13804_v54  ;;  %v13858_v54 = vpack.c.bf16 %v6504_v24, %v6503_v13  ;;  %v13878_v38 = vpack.c.bf16 %v6516_v45, %v6515_v20  ;;  %v6517_v13 = vld [vmem:[%s18576_s1 + $0x360] sm:$0xff]  ;;  %v6518_v24 = vld [vmem:[%s18576_s1 + $0x368] sm:$0xff] }
 0xa1c   :  { %13845 = vmatpush3.bf16.msra.mxu0 %v13844_v56  ;;  %13807 = vmatprep.subr.bf16.mxu1 %v13806_v55  ;;  %v6488_v56 = vld [vmem:[%s18576_s1 + $0x278] sm:$0xff]  ;;  %v6469_v55 = vld [vmem:[%s18576_s1 + $0x1e0] sm:$0xff] }
 0xa1d   :  { %13847 = vmatprep.subr.bf16.mxu0 %v13846_v42  ;;  %v13860_v60 = vpack.c.bf16 %v6488_v56, %v6487_v52  ;;  %v13822_v42 = vpack.c.bf16 %v6470_v53, %v6469_v55  ;;  %v6522_v52 = vld [vmem:[%s18576_s1 + $0x388] sm:$0xff]  ;;  %v6523_v56 = vld [vmem:[%s18576_s1 + $0x390] sm:$0xff]  ;;  %v6524_v55 = vld [vmem:[%s18576_s1 + $0x398] sm:$0xff] }
 0xa1e   :  { %v13890_v53 = vpack.c.bf16 %v6524_v55, %v6523_v56  ;;  %v7337_v45 = vld [vmem:[%s18579_s4 + $0x20] sm:$0xff] }
 0xa1f   :  { %13809 = vmatpush3.bf16.msra.mxu1 %v13808_v11  ;;  %v13826_v11 = vpack.c.bf16 %v6472_v6, %v6471_v4  ;;  %v13896_v4 = vpack.c.bf16 %v6528_v3, %v6527_v0  ;;  %v6529_v6 = vld [vmem:[%s18576_s1 + $0x3c0] sm:$0xff]  ;;  %v7343_v3 = vld [vmem:[%s18579_s4 + $0x50] sm:$0xff] }
 0xa20   :  { %13849 = vmatpush3.bf16.msra.mxu0 %v13848_v8  ;;  %13811 = vmatprep.subr.bf16.mxu1 %v13810_v17  ;;  %v6455_v8 = vld [vmem:[%s18576_s1 + $0x170] sm:$0xff]  ;;  %v6456_v17 = vld [vmem:[%s18576_s1 + $0x178] sm:$0xff]  ;;  %v7341_v55 = vld [vmem:[%s18579_s4 + $0x40] sm:$0xff] }
 0xa21   :  { %13851 = vmatprep.subr.bf16.mxu0 %v13850_v19  ;;  %v13828_v21 = vpack.c.bf16 %v6456_v17, %v6455_v8  ;;  %v13863_v19 = vpack.c.bf16 %v6506_v23, %v6505_v22  ;;  %v6531_v8 = vld [vmem:[%s18576_s1 + $0x3d0] sm:$0xff]  ;;  %v6532_v17 = vld [vmem:[%s18576_s1 + $0x3d8] sm:$0xff]  ;;  %v7349_v22 = vld [vmem:[%s18579_s4 + $0x80] sm:$0xff] }
 0xa22   :  { %v7350_v23 = vld [vmem:[%s18579_s4 + $0x88] sm:$0xff] }
 0xa23   :  { %13813 = vmatpush3.bf16.msra.mxu1 %v13812_v34  ;;  %v13869_v34 = vpack.c.bf16 %v6510_v36, %v6509_v63  ;;  %v6533_v63 = vld [vmem:[%s18576_s1 + $0x3e0] sm:$0xff]  ;;  %v13942_v36 = vpack.c.bf16 %v7350_v23, %v7349_v22  ;;  %v7363_v22 = vld [vmem:[%s18579_s4 + $0xf0] sm:$0xff]  ;;  %v7364_v23 = vld [vmem:[%s18579_s4 + $0xf8] sm:$0xff] }
 0xa24   :  { %13853 = vmatpush3.bf16.msra.mxu0 %v13852_v37  ;;  %13815 = vmatprep.subr.bf16.mxu1 %v13814_v7  ;;  %v6511_v37 = vld [vmem:[%s18576_s1 + $0x330] sm:$0xff]  ;;  %v6512_v7 = vld [vmem:[%s18576_s1 + $0x338] sm:$0xff] }
 0xa25   :  { %13855 = vmatprep.subr.bf16.mxu0 %v13854_v44  ;;  %v13872_v39 = vpack.c.bf16 %v6512_v7, %v6511_v37  ;;  %v13875_v44 = vpack.c.bf16 %v6514_v41, %v6513_v40  ;;  %v7335_v7 = vld [vmem:[%s18579_s4 + $0x10] sm:$0xff]  ;;  %v7353_v40 = vld [vmem:[%s18579_s4 + $0xa0] sm:$0xff]  ;;  %v7354_v41 = vld [vmem:[%s18579_s4 + $0xa8] sm:$0xff] }
 0xa26   :  { %v13950_v20 = vpack.c.bf16 %v7354_v41, %v7353_v40  ;;  %v7415_v40 = vld [vmem:[%s18579_s4 + $0x290] sm:$0xff]  ;;  %v7416_v41 = vld [vmem:[%s18579_s4 + $0x298] sm:$0xff] }
 0xa27   :  { %13817 = vmatpush3.bf16.msra.mxu1 %v13816_v46  ;;  %v13881_v46 = vpack.c.bf16 %v6518_v24, %v6517_v13  ;;  %v7355_v13 = vld [vmem:[%s18579_s4 + $0xb0] sm:$0xff]  ;;  %v7356_v24 = vld [vmem:[%s18579_s4 + $0xb8] sm:$0xff] }
 0xa28   :  { %13857 = vmatpush3.bf16.msra.mxu0 %v13856_v28  ;;  %13819 = vmatprep.subr.bf16.mxu1 %v13818_v48  ;;  %v6519_v28 = vld [vmem:[%s18576_s1 + $0x370] sm:$0xff]  ;;  %v6520_v48 = vld [vmem:[%s18576_s1 + $0x378] sm:$0xff] }
 0xa29   :  { %13859 = vmatprep.subr.bf16.mxu0 %v13858_v54  ;;  %v13884_v51 = vpack.c.bf16 %v6520_v48, %v6519_v28  ;;  %v13887_v54 = vpack.c.bf16 %v6522_v52, %v6521_v49  ;;  %v13954_v28 = vpack.c.bf16 %v7356_v24, %v7355_v13  ;;  %v7339_v48 = vld [vmem:[%s18579_s4 + $0x30] sm:$0xff]  ;;  %v7357_v49 = vld [vmem:[%s18579_s4 + $0xc0] sm:$0xff]  ;;  %v7358_v52 = vld [vmem:[%s18579_s4 + $0xc8] sm:$0xff] }
 0xa2a   :  { %v13958_v56 = vpack.c.bf16 %v7358_v52, %v7357_v49  ;;  %v6816_v13 = vld [vmem:[%s18580_s0 + $0x8] sm:$0xff]  ;;  %v6825_v24 = vld [vmem:[%s18580_s0 + $0x50] sm:$0xff]  ;;  %v6834_v49 = vld [vmem:[%s18580_s0 + $0x98] sm:$0xff] }
 0xa2b   :  { %13821 = vmatpush3.bf16.msra.mxu1 %v13820_v62  ;;  %v6525_v62 = vld [vmem:[%s18576_s1 + $0x3a0] sm:$0xff] }
 0xa2c   :  { %13861 = vmatpush3.bf16.msra.mxu0 %v13860_v60  ;;  %13823 = vmatprep.subr.bf16.mxu1 %v13822_v42  ;;  %v6526_v60 = vld [vmem:[%s18576_s1 + $0x3a8] sm:$0xff]  ;;  %v6843_v52 = vld [vmem:[%s18580_s0 + $0xe0] sm:$0xff] }
 0xa2d   :  { %v13893_v42 = vpack.c.bf16 %v6526_v60, %v6525_v62  ;;  %v7359_v62 = vld [vmem:[%s18579_s4 + $0xd0] sm:$0xff]  ;;  %v7360_v60 = vld [vmem:[%s18579_s4 + $0xd8] sm:$0xff] }
 0xa2e   :  { %v13962_v0 = vpack.c.bf16 %v7360_v60, %v7359_v62  ;;  %v6842_v62 = vld [vmem:[%s18580_s0 + $0xd8] sm:$0xff] }
 0xa2f   :  { %6740 = vmatmul.mubr.f32.vlgmr.msra.gmra.mrb[50].mxu0 %v15922_v43  ;;  %13825 = vmatpush3.bf16.msra.mxu1 %v13824_v16  ;;  %v6530_v16 = vld [vmem:[%s18576_s1 + $0x3c8] sm:$0xff] }
 0xa30   :  { %13827 = vmatprep.subr.bf16.mxu1 %v13826_v11  ;;  %6967 = vmatprep.mubr.f32.mxu0 %v15268_v1  ;;  %v13899_v11 = vpack.c.bf16 %v6530_v16, %v6529_v6  ;;  %v7361_v6 = vld [vmem:[%s18579_s4 + $0xe0] sm:$0xff]  ;;  %v7362_v16 = vld [vmem:[%s18579_s4 + $0xe8] sm:$0xff] }
 0xa33   :  { %13829 = vmatpush3.bf16.msra.mxu1 %v13828_v21  ;;  %v13902_v21 = vpack.c.bf16 %v6532_v17, %v6531_v8  ;;  %v13966_v8 = vpack.c.bf16 %v7362_v16, %v7361_v6  ;;  %v7345_v17 = vld [vmem:[%s18579_s4 + $0x60] sm:$0xff]  ;;  %v7419_v6 = vld [vmem:[%s18579_s4 + $0x2b0] sm:$0xff]  ;;  %v7420_v16 = vld [vmem:[%s18579_s4 + $0x2b8] sm:$0xff] }
 0xa34   :  { %13862 = vmatprep.subr.bf16.mxu1 %v15270_v9 }
 0xa36   :  { %6670 = vmatmul.mubr.f32.vlgmr.msra.gmra.mrb[70].mxu1 %v15912_v33 }
 0xa37   :  { %13864 = vmatpush1.bf16.msra.mxu1 %v13863_v19  ;;  %11158 = vmatprep.mubr.msk.f32.mxu1 %vm983_vm5, %v15946_v2  ;;  %v7333_v19 = vld [vmem:[%s18579_s4] sm:$0xff] }
 0xa38   :  { %13865 = vmatprep.subr.bf16.mxu1 %v15270_v9 }
 0xa3b   :  { %13867 = vmatpush1.bf16.msra.mxu1 %v13866_v26  ;;  %v7352_v26 = vld [vmem:[%s18579_s4 + $0x98] sm:$0xff] }
 0xa3c   :  { %13868 = vmatprep.subr.bf16.mxu1 %v15270_v9  ;;  %v13946_v37 = vpack.c.bf16 %v7352_v26, %v7351_v25  ;;  %v7347_v25 = vld [vmem:[%s18579_s4 + $0x70] sm:$0xff]  ;;  %v7348_v26 = vld [vmem:[%s18579_s4 + $0x78] sm:$0xff] }
 0xa3f   :  { %13870 = vmatpush1.bf16.msra.mxu1 %v13869_v34  ;;  %v13944_v34 = vpack.c.bf16 %v7334_v61, %v7333_v19  ;;  %v13970_v61 = vpack.c.bf16 %v7364_v23, %v7363_v22  ;;  %v7421_v22 = vld [vmem:[%s18579_s4 + $0x2c0] sm:$0xff]  ;;  %v7422_v23 = vld [vmem:[%s18579_s4 + $0x2c8] sm:$0xff] }
 0xa40   :  { %13871 = vmatprep.subr.bf16.mxu1 %v15270_v9 }
 0xa43   :  { %13873 = vmatpush1.bf16.msra.mxu1 %v13872_v39  ;;  %v7336_v39 = vld [vmem:[%s18579_s4 + $0x18] sm:$0xff] }
 0xa44   :  { %13874 = vmatprep.subr.bf16.mxu1 %v15270_v9 }
 0xa47   :  { %13876 = vmatpush1.bf16.msra.mxu1 %v13875_v44  ;;  %v13948_v44 = vpack.c.bf16 %v7336_v39, %v7335_v7  ;;  %v7397_v7 = vld [vmem:[%s18579_s4 + $0x200] sm:$0xff]  ;;  %v7398_v39 = vld [vmem:[%s18579_s4 + $0x208] sm:$0xff] }
 0xa48   :  { %13877 = vmatprep.subr.bf16.mxu1 %v15270_v9 }
 0xa4b   :  { %13879 = vmatpush1.bf16.msra.mxu1 %v13878_v38  ;;  %v7338_v38 = vld [vmem:[%s18579_s4 + $0x28] sm:$0xff] }
 0xa4c   :  { %13880 = vmatprep.subr.bf16.mxu1 %v15270_v9 }
 0xa4f   :  { %13882 = vmatpush1.bf16.msra.mxu1 %v13881_v46  ;;  %v13952_v46 = vpack.c.bf16 %v7338_v38, %v7337_v45  ;;  %v14008_v45 = vpack.c.bf16 %v7398_v39, %v7397_v7  ;;  %v7417_v38 = vld [vmem:[%s18579_s4 + $0x2a0] sm:$0xff]  ;;  %v7407_v7 = vld [vmem:[%s18579_s4 + $0x250] sm:$0xff]  ;;  %v7408_v39 = vld [vmem:[%s18579_s4 + $0x258] sm:$0xff] }
 0xa50   :  { %13883 = vmatprep.subr.bf16.mxu1 %v15270_v9 }
 0xa53   :  { %13885 = vmatpush1.bf16.msra.mxu1 %v13884_v51  ;;  %v7340_v51 = vld [vmem:[%s18579_s4 + $0x38] sm:$0xff] }
 0xa54   :  { %13886 = vmatprep.subr.bf16.mxu1 %v15270_v9 }
 0xa57   :  { %13888 = vmatpush1.bf16.msra.mxu1 %v13887_v54  ;;  %v13956_v54 = vpack.c.bf16 %v7340_v51, %v7339_v48  ;;  %v13904_v48 = vpack.c.bf16 %v6825_v24, %v6816_v13  ;;  %v6824_v51 = vld [vmem:[%s18580_s0 + $0x48] sm:$0xff]  ;;  %v7427_v13 = vld [vmem:[%s18579_s4 + $0x2f0] sm:$0xff]  ;;  %v7428_v24 = vld [vmem:[%s18579_s4 + $0x2f8] sm:$0xff] }
 0xa58   :  { %13889 = vmatprep.subr.bf16.mxu1 %v15270_v9 }
 0xa59   :  { %13905 = vmatprep.subr.bf16.mxu0 %v13904_v48  ;;  %v7411_v48 = vld [vmem:[%s18579_s4 + $0x270] sm:$0xff] }
 0xa5b   :  { %13891 = vmatpush1.bf16.msra.mxu1 %v13890_v53  ;;  %v7342_v53 = vld [vmem:[%s18579_s4 + $0x48] sm:$0xff] }
 0xa5c   :  { %13892 = vmatprep.subr.bf16.mxu1 %v15270_v9 }
 0xa5f   :  { %13894 = vmatpush1.bf16.msra.mxu1 %v13893_v42  ;;  %v13960_v42 = vpack.c.bf16 %v7342_v53, %v7341_v55  ;;  %v13908_v55 = vpack.c.bf16 %v6843_v52, %v6834_v49  ;;  %v6833_v53 = vld [vmem:[%s18580_s0 + $0x90] sm:$0xff]  ;;  %v5736_v52 = vld [vmem:[%s18581_s10] sm:$0xff] }
 0xa60   :  { %13895 = vmatprep.subr.bf16.mxu1 %v15270_v9 }
 0xa63   :  { %13897 = vmatpush1.bf16.msra.mxu1 %v13896_v4  ;;  %v7344_v4 = vld [vmem:[%s18579_s4 + $0x58] sm:$0xff] }
 0xa64   :  { %13898 = vmatprep.subr.bf16.mxu1 %v15270_v9 }
 0xa67   :  { %13900 = vmatpush1.bf16.msra.mxu1 %v13899_v11  ;;  %v13964_v11 = vpack.c.bf16 %v7344_v4, %v7343_v3  ;;  %v7402_v3 = vld [vmem:[%s18579_s4 + $0x228] sm:$0xff]  ;;  %v13910_v4 = vpack.c.bf16 %v6842_v62, %v6833_v53  ;;  %v5747_v53 = vrot.slane %v5736_v52, %v15841_v14 }
 0xa68   :  { %13901 = vmatprep.subr.bf16.mxu1 %v15270_v9 }
 0xa6b   :  { %13903 = vmatpush1.bf16.msra.mxu1 %v13902_v21  ;;  %v7346_v21 = vld [vmem:[%s18579_s4 + $0x68] sm:$0xff] }
 0xa6c   :  { %6801 = vmatprep.subr.mxu1 %v15268_v1  ;;  %v13968_v19 = vpack.c.bf16 %v7346_v21, %v7345_v17  ;;  %v7403_v17 = vld [vmem:[%s18579_s4 + $0x230] sm:$0xff]  ;;  %v7404_v21 = vld [vmem:[%s18579_s4 + $0x238] sm:$0xff] }
 0xa6f   :  { %6802 = vmatpush1.msra.mxu1 %v6533_v63  ;;  %v7413_v63 = vld [vmem:[%s18579_s4 + $0x280] sm:$0xff] }
 0xa70   :  { %6810 = vmatmul.mubr.f32.vlgmr.msra.gmra.mrb[72].mxu1 %v15982_v47  ;;  %13943 = vmatprep.subr.bf16.mxu1 %v13942_v36  ;;  %v7414_v36 = vld [vmem:[%s18579_s4 + $0x288] sm:$0xff] }
 0xa71   :  { %13945 = vmatpush3.bf16.msra.mxu1 %v13944_v34  ;;  %7523 = vmatprep.mubr.f32.mxu1 %v15858_v29  ;;  %v13972_v34 = vpack.c.bf16 %v7348_v26, %v7347_v25  ;;  %v7405_v25 = vld [vmem:[%s18579_s4 + $0x240] sm:$0xff]  ;;  %v7406_v26 = vld [vmem:[%s18579_s4 + $0x248] sm:$0xff] }
 0xa72   :  { %13947 = vmatprep.subr.bf16.mxu1 %v13946_v37  ;;  %v14006_v37 = vpack.c.bf16 %v7414_v36, %v7413_v63  ;;  %v7423_v63 = vld [vmem:[%s18579_s4 + $0x2d0] sm:$0xff]  ;;  %v7424_v36 = vld [vmem:[%s18579_s4 + $0x2d8] sm:$0xff] }
 0xa75   :  { %13949 = vmatpush3.bf16.msra.mxu1 %v13948_v44  ;;  %v7399_v44 = vld [vmem:[%s18579_s4 + $0x210] sm:$0xff] }
 0xa76   :  { %13951 = vmatprep.subr.bf16.mxu1 %v13950_v20  ;;  %v7400_v20 = vld [vmem:[%s18579_s4 + $0x218] sm:$0xff] }
 0xa77   :  { %v14012_v60 = vpack.c.bf16 %v7400_v20, %v7399_v44  ;;  %v14028_v44 = vpack.c.bf16 %v7408_v39, %v7407_v7 }
 0xa79   :  { %13953 = vmatpush3.bf16.msra.mxu1 %v13952_v46  ;;  %v6815_v46 = vld [vmem:[%s18580_s0] sm:$0xff] }
 0xa7a   :  { %13955 = vmatprep.subr.bf16.mxu1 %v13954_v28  ;;  %v14010_v28 = vpack.c.bf16 %v7416_v41, %v7415_v40  ;;  %v7425_v40 = vld [vmem:[%s18579_s4 + $0x2e0] sm:$0xff]  ;;  %v7426_v41 = vld [vmem:[%s18579_s4 + $0x2e8] sm:$0xff] }
 0xa7b   :  { %v14030_v20 = vpack.c.bf16 %v7426_v41, %v7425_v40  ;;  %v5763_v40 = vrot.slane %v5736_v52, %v15844_v15 }
 0xa7d   :  { %13957 = vmatpush3.bf16.msra.mxu1 %v13956_v54  ;;  %v7418_v54 = vld [vmem:[%s18579_s4 + $0x2a8] sm:$0xff] }
 0xa7e   :  { %13959 = vmatprep.subr.bf16.mxu1 %v13958_v56  ;;  %v13906_v56 = vpack.c.bf16 %v6824_v51, %v6815_v46  ;;  %v7412_v51 = vld [vmem:[%s18579_s4 + $0x278] sm:$0xff] }
 0xa7f   :  { %v14036_v49 = vpack.c.bf16 %v7412_v51, %v7411_v48 }
 0xa80   :  { %13907 = vmatpush1.bf16.msra.mxu0 %v13906_v56  ;;  %v5743_v56 = vrot.slane %v5736_v52, %v15835_v12 }
 0xa81   :  { %13961 = vmatpush3.bf16.msra.mxu1 %v13960_v42  ;;  %v14014_v42 = vpack.c.bf16 %v7418_v54, %v7417_v38  ;;  %13909 = vmatprep.subr.bf16.mxu0 %v13908_v55  ;;  %v7410_v38 = vld [vmem:[%s18579_s4 + $0x268] sm:$0xff] }
 0xa82   :  { %13963 = vmatprep.subr.bf16.mxu1 %v13962_v0  ;;  %v7401_v0 = vld [vmem:[%s18579_s4 + $0x220] sm:$0xff]  ;;  %v17413_v54 = vld [vmem:[%s18581_s10 + $0x8] sm:$0x1f] }
 0xa83   :  { %v5783_v55 = vrot.slane %v17413_v54, %v15884_v57  ;;  %v5787_v62 = vrot.slane %v17413_v54, %v15887_v59 }
 0xa84   :  { %13911 = vmatpush1.bf16.msra.mxu0 %v13910_v4 }
 0xa85   :  { %13965 = vmatpush3.bf16.msra.mxu1 %v13964_v11  ;;  %v14016_v11 = vpack.c.bf16 %v7402_v3, %v7401_v0 }
 0xa86   :  { %13967 = vmatprep.subr.bf16.mxu1 %v13966_v8  ;;  %v14018_v8 = vpack.c.bf16 %v7420_v16, %v7419_v6 }
 0xa89   :  { %13969 = vmatpush3.bf16.msra.mxu1 %v13968_v19  ;;  %v14020_v19 = vpack.c.bf16 %v7404_v21, %v7403_v17  ;;  %v6827_v17 = vld [vmem:[%s18580_s0 + $0x60] sm:$0xff] }
 0xa8a   :  { %13971 = vmatprep.subr.bf16.mxu1 %v13970_v61  ;;  %v14022_v61 = vpack.c.bf16 %v7422_v23, %v7421_v22 }
 0xa8d   :  { %13973 = vmatpush3.bf16.msra.mxu1 %v13972_v34  ;;  %v14024_v34 = vpack.c.bf16 %v7406_v26, %v7405_v25 }
 0xa8e   :  { %14007 = vmatprep.subr.bf16.mxu1 %v14006_v37  ;;  %v14026_v37 = vpack.c.bf16 %v7424_v36, %v7423_v63 }
 0xa90   :  { %7524 = vmatmul.mubr.f32.vlgmr.msra.gmra.mrb[74].mxu1 %v15860_v31 }
 0xa91   :  { %14009 = vmatpush3.bf16.msra.mxu1 %v14008_v45  ;;  %7663 = vmatprep.mubr.f32.mxu1 %v15864_v35  ;;  %v7409_v45 = vld [vmem:[%s18579_s4 + $0x260] sm:$0xff] }
 0xa92   :  { %14011 = vmatprep.subr.bf16.mxu1 %v14010_v28  ;;  %v14032_v46 = vpack.c.bf16 %v7410_v38, %v7409_v45  ;;  %v14034_v28 = vpack.c.bf16 %v7428_v24, %v7427_v13  ;;  %v5767_v24 = vrot.slane %v5736_v52, %v15966_v27 }
 0xa95   :  { %14013 = vmatpush3.bf16.msra.mxu1 %v14012_v60 }
 0xa96   :  { %14015 = vmatprep.subr.bf16.mxu1 %v14014_v42 }
 0xa99   :  { %14017 = vmatpush3.bf16.msra.mxu1 %v14016_v11 }
 0xa9a   :  { %14019 = vmatprep.subr.bf16.mxu1 %v14018_v8  ;;  %v6818_v8 = vld [vmem:[%s18580_s0 + $0x18] sm:$0xff] }
 0xa9b   :  { %v13912_v21 = vpack.c.bf16 %v6827_v17, %v6818_v8 }
 0xa9d   :  { %14021 = vmatpush3.bf16.msra.mxu1 %v14020_v19  ;;  %v5751_v19 = vrot.slane %v5736_v52, %v15884_v57  ;;  %13913 = vmatprep.subr.bf16.mxu0 %v13912_v21 }
 0xa9e   :  { %14023 = vmatprep.subr.bf16.mxu1 %v14022_v61  ;;  %v5755_v61 = vrot.slane %v5736_v52, %v15887_v59 }
 0xaa1   :  { %14025 = vmatpush3.bf16.msra.mxu1 %v14024_v34 }
 0xaa2   :  { %14027 = vmatprep.subr.bf16.mxu1 %v14026_v37  ;;  %v5759_v37 = vrot.slane %v5736_v52, %v15898_v5 }
 0xaa5   :  { %14029 = vmatpush3.bf16.msra.mxu1 %v14028_v44 }
 0xaa6   :  { %14031 = vmatprep.subr.bf16.mxu1 %v14030_v20 }
 0xaa9   :  { %14033 = vmatpush3.bf16.msra.mxu1 %v14032_v46  ;;  %v5771_v46 = vrot.slane %v5736_v52, %v15933_v50 }
 0xaaa   :  { %14035 = vmatprep.subr.bf16.mxu1 %v14034_v28 }
 0xaad   :  { %14037 = vmatpush3.bf16.msra.mxu1 %v14036_v49 }
 0xab0   :  { %7664 = vmatmul.mubr.f32.vlgmr.msra.gmra.mrb[76].mxu1 %v15922_v43 }
 0xab1   :  { %7891 = vmatprep.mubr.f32.mxu1 %v15268_v1 }
 0xac1   :  { %v5874_v60 = vpop.f32.mrb[58].mxu1  ;;  %v6229_v42 = vpop.f32.mrb[46].mxu0 }
 0xac2   :  { %v5875_v0 = vadd.f32 %v5874_v60, %v5743_v56  ;;  %v6230_v3 = vadd.f32 %v6229_v42, %v5783_v55  ;;  %v5876_v4 = vpop.f32.mrb[59].mxu1  ;;  %v6231_v6 = vpop.f32.mrb[47].mxu0  ;;  %v5775_v55 = vrot.slane %v17413_v54, %v15835_v12  ;;  %v5779_v60 = vrot.slane %v17413_v54, %v15841_v14 }
 0xac3   :  { %v5877_v16 = vadd.f32 %v5876_v4, %v5747_v53  ;;  %v6232_v11 = vadd.f32 %v6231_v6, %v5787_v62 }
 0xac5   :  { %v6317_v22 = vcombine.low %v5875_v0, %v5877_v16  ;;  %v6367_v23 = vcombine.low %v6230_v3, %v6232_v11 }
 0xac7   :  { %v6327_v7 = vrot.slane %v6317_v22, %v16188_v58 }
 0xac9   :  { %v5945_v25 = vpop.f32.mrb[60].mxu1 }
 0xaca   :  { %v5946_v26 = vadd.f32 %v5945_v25, %v5751_v19  ;;  %v5947_v63 = vpop.f32.mrb[61].mxu1  ;;  %v5791_v19 = vrot.slane %v17413_v54, %v15898_v5 }
 0xacb   :  { %v5948_v36 = vadd.f32 %v5947_v63, %v5755_v61  ;;  %v6381_v61 = vrot.slane %v6367_v23, %v16188_v58 }
 0xacd   :  { %v6318_v34 = vcombine.low %v5946_v26, %v5948_v36 }
 0xacf   :  { %v6334_v39 = vrot.slane %v6318_v34, %v16188_v58 }
 0xad1   :  { %v6349_v41 = vcombine.low %v6327_v7, %v6334_v39  ;;  %v6016_v44 = vpop.f32.mrb[62].mxu1 }
 0xad2   :  { %v6017_v20 = vadd.f32 %v6016_v44, %v5759_v37  ;;  %v6018_v45 = vpop.f32.mrb[63].mxu1  ;;  %v6534_v44 = vld [vmem:[%s18582_s12] sm:$0x1] }
 0xad3   :  { %v6019_v38 = vadd.f32 %v6018_v45, %v5763_v40  ;;  %v6357_v8 = vrot.slane %v6349_v41, %v16188_v58 }
 0xad5   :  { %v6319_v13 = vcombine.low %v6017_v20, %v6019_v38 }
 0xad7   :  { %v6341_v53 = vrot.slane %v6319_v13, %v16188_v58 }
 0xad9   :  { %v6087_v28 = vpop.f32.mrb[64].mxu1 }
 0xada   :  { %v6088_v48 = vadd.f32 %v6087_v28, %v5767_v24  ;;  %v6089_v51 = vpop.f32.mrb[65].mxu1  ;;  %v6817_v28 = vld [vmem:[%s18580_s0 + $0x10] sm:$0xff] }
 0xadb   :  { %v6090_v49 = vadd.f32 %v6089_v51, %v5771_v46  ;;  %v6836_v51 = vld [vmem:[%s18580_s0 + $0xa8] sm:$0xff] }
 0xadd   :  { %v6320_v56 = vcombine.low %v6088_v48, %v6090_v49  ;;  %v6826_v48 = vld [vmem:[%s18580_s0 + $0x58] sm:$0xff]  ;;  %v6845_v49 = vld [vmem:[%s18580_s0 + $0xf0] sm:$0xff] }
 0xadf   :  { %v6348_v62 = vrot.slane %v6320_v56, %v16188_v58  ;;  %v13914_v56 = vpack.c.bf16 %v6826_v48, %v6817_v28 }
 0xae1   :  { %v6350_v42 = vcombine.low %v6341_v53, %v6348_v62  ;;  %v6158_v0 = vpop.f32.mrb[66].mxu1  ;;  %v11883_v3 = vpop.f32.mrb[48].mxu0  ;;  %v13916_v62 = vpack.c.bf16 %v6845_v49, %v6836_v51  ;;  %v7365_v51 = vld [vmem:[%s18579_s4 + $0x100] sm:$0xff]  ;;  %v7366_v49 = vld [vmem:[%s18579_s4 + $0x108] sm:$0xff] }
 0xae2   :  { %v6159_v4 = vadd.f32 %v6158_v0, %v5775_v55  ;;  %v6160_v52 = vpop.f32.mrb[67].mxu1  ;;  %v11884_v6 = vpop.f32.mrb[49].mxu0  ;;  %v6820_v0 = vld [vmem:[%s18580_s0 + $0x28] sm:$0xff] }
 0xae3   :  { %v6161_v16 = vadd.f32 %v6160_v52, %v5779_v60  ;;  %v11885_v11 = vadd.f32 %v11884_v6, %v11883_v3  ;;  %v6364_v17 = vrot.slane %v6350_v42, %v16188_v58  ;;  %v6835_v60 = vld [vmem:[%s18580_s0 + $0xa0] sm:$0xff]  ;;  %v6844_v42 = vld [vmem:[%s18580_s0 + $0xe8] sm:$0xff]  ;;  %v6829_v3 = vld [vmem:[%s18580_s0 + $0x70] sm:$0xff] }
 0xae4   :  { %v13920_v52 = vpack.c.bf16 %v6829_v3, %v6820_v0  ;;  %v6819_v6 = vld [vmem:[%s18580_s0 + $0x20] sm:$0xff]  ;;  %v7367_v0 = vld [vmem:[%s18579_s4 + $0x110] sm:$0xff]  ;;  %v7368_v3 = vld [vmem:[%s18579_s4 + $0x118] sm:$0xff] }
 0xae5   :  { %v6366_v21 = vcombine.low %v6159_v4, %v6161_v16  ;;  %v6365_v22 = vcombine.low %v6357_v8, %v6364_v17  ;;  %v6602_v38 = vadd.f32 %v11885_v11, %v6534_v44  ;;  %v13918_v4 = vpack.c.bf16 %v6844_v42, %v6835_v60  ;;  %v6828_v16 = vld [vmem:[%s18580_s0 + $0x68] sm:$0xff]  ;;  %v6838_v11 = vld [vmem:[%s18580_s0 + $0xb8] sm:$0xff]  ;;  %v6847_v8 = vld [vmem:[%s18580_s0 + $0x100] sm:$0xff] }
 0xae6   :  { %v13922_v17 = vpack.c.bf16 %v6828_v16, %v6819_v6  ;;  %v6823_v44 = vld [vmem:[%s18580_s0 + $0x40] sm:$0xff]  ;;  %v7386_v6 = vld [vmem:[%s18579_s4 + $0x1a8] sm:$0xff]  ;;  %v13980_v16 = vpack.c.bf16 %v7368_v3, %v7367_v0 }
 0xae7   :  { %v6374_v25 = vrot.slane %v6366_v21, %v16188_v58  ;;  %6407 = vst [vmem:[#allocation19] sm:$0xff] %v6365_v22  ;;  %v13924_v21 = vpack.c.bf16 %v6847_v8, %v6838_v11  ;;  %v6837_v22 = vld [vmem:[%s18580_s0 + $0xb0] sm:$0xff]  ;;  %v7369_v8 = vld [vmem:[%s18579_s4 + $0x120] sm:$0xff] }
 0xae9   :  { %v6389_v26 = vcombine.low %v6374_v25, %v6381_v61  ;;  %v6300_v63 = vpop.f32.mrb[68].mxu1  ;;  %v6822_v61 = vld [vmem:[%s18580_s0 + $0x38] sm:$0xff]  ;;  %v6831_v25 = vld [vmem:[%s18580_s0 + $0x80] sm:$0xff] }
 0xaea   :  { %v6301_v36 = vadd.f32 %v6300_v63, %v5791_v19  ;;  %v12570_v34 = vpop.f32.mrb[69].mxu1  ;;  %v6846_v19 = vld [vmem:[%s18580_s0 + $0xf8] sm:$0xff]  ;;  %v13928_v63 = vpack.c.bf16 %v6831_v25, %v6822_v61  ;;  %v7371_v61 = vld [vmem:[%s18579_s4 + $0x130] sm:$0xff] }
 0xaeb   :  { %v6396_v7 = vrot.slane %v6389_v26, %v16188_v58  ;;  %v13926_v26 = vpack.c.bf16 %v6846_v19, %v6837_v22  ;;  %v6830_v34 = vld [vmem:[%s18580_s0 + $0x78] sm:$0xff] }
 0xaec   :  { %v6388_v37 = vrot.slane %v6301_v36, %v16188_v58  ;;  %v6821_v36 = vld [vmem:[%s18580_s0 + $0x30] sm:$0xff]  ;;  %v7388_v22 = vld [vmem:[%s18579_s4 + $0x1b8] sm:$0xff] }
 0xaed   :  { %v7372_v25 = vld [vmem:[%s18579_s4 + $0x138] sm:$0xff] }
 0xaee   :  { %v6403_v39 = vrot.slane %v6388_v37, %v16188_v58  ;;  %v6840_v37 = vld [vmem:[%s18580_s0 + $0xc8] sm:$0xff] }
 0xaf0   :  { %v6404_v54 = vcombine.low %v6396_v7, %v6403_v39  ;;  %v6849_v7 = vld [vmem:[%s18580_s0 + $0x110] sm:$0xff]  ;;  %v13930_v39 = vpack.c.bf16 %v6830_v34, %v6821_v36  ;;  %v13988_v36 = vpack.c.bf16 %v7372_v25, %v7371_v61  ;;  %v7437_v61 = vld [vmem:[%s18579_s4 + $0x340] sm:$0xff]  ;;  %v7438_v25 = vld [vmem:[%s18579_s4 + $0x348] sm:$0xff] }
 0xaf2   :  { %6408 = vst.msk [vmem:[#allocation19 + $0x8] sm:$0x1f] %vm16197_vm7, %v6404_v54  ;;  %v13932_v54 = vpack.c.bf16 %v6849_v7, %v6840_v37  ;;  %v7373_v37 = vld [vmem:[%s18579_s4 + $0x140] sm:$0xff]  ;;  %v7374_v7 = vld [vmem:[%s18579_s4 + $0x148] sm:$0xff] }
 0xb02   :  { %v11953_v23 = vpop.f32.mrb[50].mxu0 }
 0xb03   :  { %v11954_v40 = vpop.f32.mrb[51].mxu0 }
 0xb04   :  { %v11955_v41 = vadd.f32 %v11954_v40, %v11953_v23  ;;  %v6839_v23 = vld [vmem:[%s18580_s0 + $0xc0] sm:$0xff]  ;;  %v6848_v40 = vld [vmem:[%s18580_s0 + $0x108] sm:$0xff] }
 0xb09   :  { %v11918_v20 = vpop.f32.mrb[70].mxu1 }
 0xb0a   :  { %v11919_v45 = vpop.f32.mrb[71].mxu1 }
 0xb0b   :  { %v11920_v13 = vadd.f32 %v11919_v45, %v11918_v20  ;;  %v6832_v20 = vld [vmem:[%s18580_s0 + $0x88] sm:$0xff] }
 0xb0c   :  { %v13937_v45 = vpack.c.bf16 %v6832_v20, %v6823_v44  ;;  %v7376_v44 = vld [vmem:[%s18579_s4 + $0x158] sm:$0xff]  ;;  %v7393_v20 = vld [vmem:[%s18579_s4 + $0x1e0] sm:$0xff] }
 0xb0d   :  { %v6672_v24 = vadd.f32 %v11920_v13, %v6602_v38  ;;  %v6841_v38 = vld [vmem:[%s18580_s0 + $0xd0] sm:$0xff]  ;;  %v6850_v13 = vld [vmem:[%s18580_s0 + $0x118] sm:$0xff] }
 0xb0e   :  { %v13940_v28 = vpack.c.bf16 %v6850_v13, %v6841_v38 }
 0xb0f   :  { %v6742_v46 = vadd.f32 %v11955_v41, %v6672_v24  ;;  %v13934_v41 = vpack.c.bf16 %v6848_v40, %v6839_v23  ;;  %v7381_v24 = vld [vmem:[%s18579_s4 + $0x180] sm:$0xff]  ;;  %v13992_v23 = vpack.c.bf16 %v7374_v7, %v7373_v37  ;;  %v7442_v7 = vld [vmem:[%s18579_s4 + $0x368] sm:$0xff] }
 0xb10   :  { %v7441_v37 = vld [vmem:[%s18579_s4 + $0x360] sm:$0xff] }
 0xb43   :  { %v6811_v18 = vpop.f32.mrb[72].mxu1 }
 0xb44   :  { %v17453_v55 = vadd.f32 %v6811_v18, %v6742_v46  ;;  %v6813_v53 = vpop.f32.mrb[73].mxu1  ;;  %v7382_v46 = vld [vmem:[%s18579_s4 + $0x188] sm:$0xff]  ;;  %v7383_v18 = vld [vmem:[%s18579_s4 + $0x190] sm:$0xff] }
 0xb45   :  { %v13974_v48 = vpack.c.bf16 %v7382_v46, %v7381_v24  ;;  %v7377_v24 = vld [vmem:[%s18579_s4 + $0x160] sm:$0xff]  ;;  %v7378_v46 = vld [vmem:[%s18579_s4 + $0x168] sm:$0xff] }
 0xb46   :  { %11160 = vmatmul.mubr.msk.f32.vlgmr.msra.gmra.mrb[52].mxu0 %vm1314_vm6, %v17453_v55 }
 0xb47   :  { %13915 = vmatpush1.bf16.msra.mxu0 %v13914_v56  ;;  %7038 = vmatprep.mubr.f32.mxu0 %v15268_v1  ;;  %v7384_v56 = vld [vmem:[%s18579_s4 + $0x198] sm:$0xff] }
 0xb48   :  { %13917 = vmatprep.subr.bf16.mxu0 %v13916_v62  ;;  %v13976_v62 = vpack.c.bf16 %v7366_v49, %v7365_v51  ;;  %v13978_v42 = vpack.c.bf16 %v7384_v56, %v7383_v18  ;;  %v14000_v51 = vpack.c.bf16 %v7378_v46, %v7377_v24  ;;  %v7379_v18 = vld [vmem:[%s18579_s4 + $0x170] sm:$0xff]  ;;  %v7380_v56 = vld [vmem:[%s18579_s4 + $0x178] sm:$0xff]  ;;  %v7449_v24 = vld [vmem:[%s18579_s4 + $0x3a0] sm:$0xff] }
 0xb49   :  { %v7450_v46 = vld [vmem:[%s18579_s4 + $0x3a8] sm:$0xff] }
 0xb4b   :  { %13919 = vmatpush1.bf16.msra.mxu0 %v13918_v4 }
 0xb4c   :  { %13921 = vmatprep.subr.bf16.mxu0 %v13920_v52  ;;  %v7385_v52 = vld [vmem:[%s18579_s4 + $0x1a0] sm:$0xff] }
 0xb4d   :  { %v13982_v11 = vpack.c.bf16 %v7386_v6, %v7385_v52  ;;  %v7431_v52 = vld [vmem:[%s18579_s4 + $0x310] sm:$0xff]  ;;  %v7432_v6 = vld [vmem:[%s18579_s4 + $0x318] sm:$0xff] }
 0xb4e   :  { %11161 = vmatmul.mubr.msk.f32.vlgmr.msra.gmra.mrb[54].mxu0 %vm1314_vm6, %v17453_v55 }
 0xb4f   :  { %13923 = vmatpush1.bf16.msra.mxu0 %v13922_v17  ;;  %7109 = vmatprep.mubr.f32.mxu0 %v15268_v1  ;;  %v7370_v17 = vld [vmem:[%s18579_s4 + $0x128] sm:$0xff] }
 0xb50   :  { %13925 = vmatprep.subr.bf16.mxu0 %v13924_v21  ;;  %v7387_v21 = vld [vmem:[%s18579_s4 + $0x1b0] sm:$0xff]  ;;  %v13984_v19 = vpack.c.bf16 %v7370_v17, %v7369_v8  ;;  %v7433_v8 = vld [vmem:[%s18579_s4 + $0x320] sm:$0xff]  ;;  %v7434_v17 = vld [vmem:[%s18579_s4 + $0x328] sm:$0xff] }
 0xb53   :  { %13927 = vmatpush1.bf16.msra.mxu0 %v13926_v26  ;;  %v7389_v26 = vld [vmem:[%s18579_s4 + $0x1c0] sm:$0xff] }
 0xb54   :  { %13929 = vmatprep.subr.bf16.mxu0 %v13928_v63  ;;  %v7390_v63 = vld [vmem:[%s18579_s4 + $0x1c8] sm:$0xff] }
 0xb55   :  { %v13990_v34 = vpack.c.bf16 %v7390_v63, %v7389_v26  ;;  %v14051_v26 = vpack.c.bf16 %v7438_v25, %v7437_v61  ;;  %v7439_v63 = vld [vmem:[%s18579_s4 + $0x350] sm:$0xff]  ;;  %v8260_v61 = vld [vmem:[%s18583_s11 + $0x18] sm:$0xff]  ;;  %v8277_v25 = vld [vmem:[%s18583_s11 + $0xa0] sm:$0xff] }
 0xb56   :  { %11162 = vmatmul.mubr.msk.f32.vlgmr.msra.gmra.mrb[56].mxu0 %vm1314_vm6, %v17453_v55 }
 0xb57   :  { %13931 = vmatpush1.bf16.msra.mxu0 %v13930_v39  ;;  %7180 = vmatprep.mubr.f32.mxu0 %v15268_v1  ;;  %v7391_v39 = vld [vmem:[%s18579_s4 + $0x1d0] sm:$0xff] }
 0xb58   :  { %13933 = vmatprep.subr.bf16.mxu0 %v13932_v54  ;;  %v7392_v54 = vld [vmem:[%s18579_s4 + $0x1d8] sm:$0xff] }
 0xb59   :  { %v13994_v40 = vpack.c.bf16 %v7392_v54, %v7391_v39  ;;  %v14057_v39 = vpack.c.bf16 %v7442_v7, %v7441_v37  ;;  %v7443_v54 = vld [vmem:[%s18579_s4 + $0x370] sm:$0xff]  ;;  %v8262_v37 = vld [vmem:[%s18583_s11 + $0x28] sm:$0xff] }
 0xb5a   :  { %v8279_v7 = vld [vmem:[%s18583_s11 + $0xb0] sm:$0xff] }
 0xb5b   :  { %13935 = vmatpush1.bf16.msra.mxu0 %v13934_v41  ;;  %v7375_v41 = vld [vmem:[%s18579_s4 + $0x150] sm:$0xff] }
 0xb5c   :  { %13936 = vmatprep.subr.bf16.mxu0 %v15270_v9  ;;  %v13996_v38 = vpack.c.bf16 %v7376_v44, %v7375_v41  ;;  %v7445_v41 = vld [vmem:[%s18579_s4 + $0x380] sm:$0xff]  ;;  %v7446_v44 = vld [vmem:[%s18579_s4 + $0x388] sm:$0xff] }
 0xb5e   :  { %11163 = vmatmul.mubr.msk.f32.vlgmr.msra.gmra.mrb[58].mxu0 %vm1314_vm6, %v17453_v55 }
 0xb5f   :  { %13938 = vmatpush3.bf16.msra.mxu0 %v13937_v45  ;;  %12579 = vmatprep.mubr.msk.f32.mxu0 %vm15269_vm0, %v15268_v1  ;;  %v7394_v45 = vld [vmem:[%s18579_s4 + $0x1e8] sm:$0xff] }
 0xb60   :  { %13939 = vmatprep.subr.bf16.mxu0 %v15270_v9  ;;  %v13998_v13 = vpack.c.bf16 %v7394_v45, %v7393_v20  ;;  %v14063_v20 = vpack.c.bf16 %v7446_v44, %v7445_v41  ;;  %v7447_v45 = vld [vmem:[%s18579_s4 + $0x390] sm:$0xff]  ;;  %v8264_v41 = vld [vmem:[%s18583_s11 + $0x38] sm:$0xff]  ;;  %v8281_v44 = vld [vmem:[%s18583_s11 + $0xc0] sm:$0xff] }
 0xb63   :  { %13941 = vmatpush3.bf16.msra.mxu0 %v13940_v28  ;;  %v11993_v53 = vpop.f32.mrb[74].mxu1  ;;  %v7395_v28 = vld [vmem:[%s18579_s4 + $0x1f0] sm:$0xff] }
 0xb64   :  { %v11994_v60 = vpop.f32.mrb[75].mxu1  ;;  %13975 = vmatprep.subr.bf16.mxu0 %v13974_v48  ;;  %v7396_v48 = vld [vmem:[%s18579_s4 + $0x1f8] sm:$0xff] }
 0xb65   :  { %v17500_v4 = vadd.f32 %v11994_v60, %v11993_v53  ;;  %v14002_v49 = vpack.c.bf16 %v7396_v48, %v7395_v28  ;;  %v14004_v53 = vpack.c.bf16 %v7380_v56, %v7379_v18  ;;  %v7430_v60 = vld [vmem:[%s18579_s4 + $0x308] sm:$0xff]  ;;  %v14069_v28 = vpack.c.bf16 %v7450_v46, %v7449_v24  ;;  %v7451_v48 = vld [vmem:[%s18579_s4 + $0x3b0] sm:$0xff]  ;;  %v7453_v18 = vld [vmem:[%s18579_s4 + $0x3c0] sm:$0xff] }
 0xb66   :  { %12580 = vmatmul.mubr.msk.f32.vlgmr.msra.gmra.mrb[60].mxu0 %vm1314_vm6, %v17453_v55  ;;  %v13986_v55 = vpack.c.bf16 %v7388_v22, %v7387_v21  ;;  %v14045_v21 = vpack.c.bf16 %v7434_v17, %v7433_v8  ;;  %v7435_v22 = vld [vmem:[%s18579_s4 + $0x330] sm:$0xff]  ;;  %v7454_v56 = vld [vmem:[%s18579_s4 + $0x3c8] sm:$0xff]  ;;  %v8276_v8 = vld [vmem:[%s18583_s11 + $0x98] sm:$0xff] }
 0xb67   :  { %13977 = vmatpush3.bf16.msra.mxu0 %v13976_v62  ;;  %7593 = vmatprep.mubr.f32.mxu0 %v15910_v30  ;;  %v7429_v62 = vld [vmem:[%s18579_s4 + $0x300] sm:$0xff]  ;;  %v8266_v24 = vld [vmem:[%s18583_s11 + $0x48] sm:$0xff]  ;;  %v8283_v46 = vld [vmem:[%s18583_s11 + $0xd0] sm:$0xff] }
 0xb68   :  { %13979 = vmatprep.subr.bf16.mxu0 %v13978_v42  ;;  %v14039_v0 = vpack.c.bf16 %v7430_v60, %v7429_v62  ;;  %v7455_v62 = vld [vmem:[%s18579_s4 + $0x3d0] sm:$0xff]  ;;  %v7456_v60 = vld [vmem:[%s18579_s4 + $0x3d8] sm:$0xff]  ;;  %v7457_v17 = vld [vmem:[%s18579_s4 + $0x3e0] sm:$0xff] }
 0xb6b   :  { %13981 = vmatpush3.bf16.msra.mxu0 %v13980_v16 }
 0xb6c   :  { %13983 = vmatprep.subr.bf16.mxu0 %v13982_v11  ;;  %v14042_v11 = vpack.c.bf16 %v7432_v6, %v7431_v52  ;;  %v8257_v52 = vld [vmem:[%s18583_s11] sm:$0xff]  ;;  %v8258_v6 = vld [vmem:[%s18583_s11 + $0x8] sm:$0xff] }
 0xb6f   :  { %13985 = vmatpush3.bf16.msra.mxu0 %v13984_v19  ;;  %v7436_v19 = vld [vmem:[%s18579_s4 + $0x338] sm:$0xff] }
 0xb70   :  { %13987 = vmatprep.subr.bf16.mxu0 %v13986_v55  ;;  %v14048_v55 = vpack.c.bf16 %v7436_v19, %v7435_v22  ;;  %v14120_v22 = vpack.c.bf16 %v8258_v6, %v8257_v52  ;;  %v8288_v52 = vld [vmem:[%s18583_s11 + $0xf8] sm:$0xff] }
 0xb73   :  { %13989 = vmatpush3.bf16.msra.mxu0 %v13988_v36  ;;  %v7440_v36 = vld [vmem:[%s18579_s4 + $0x358] sm:$0xff] }
 0xb74   :  { %13991 = vmatprep.subr.bf16.mxu0 %v13990_v34  ;;  %v14054_v34 = vpack.c.bf16 %v7440_v36, %v7439_v63 }
 0xb77   :  { %13993 = vmatpush3.bf16.msra.mxu0 %v13992_v23  ;;  %v7444_v23 = vld [vmem:[%s18579_s4 + $0x378] sm:$0xff] }
 0xb78   :  { %13995 = vmatprep.subr.bf16.mxu0 %v13994_v40  ;;  %v14060_v40 = vpack.c.bf16 %v7444_v23, %v7443_v54 }
 0xb7b   :  { %13997 = vmatpush3.bf16.msra.mxu0 %v13996_v38  ;;  %v7448_v38 = vld [vmem:[%s18579_s4 + $0x398] sm:$0xff] }
 0xb7c   :  { %13999 = vmatprep.subr.bf16.mxu0 %v13998_v13  ;;  %v14066_v13 = vpack.c.bf16 %v7448_v38, %v7447_v45 }
 0xb7f   :  { %14001 = vmatpush3.bf16.msra.mxu0 %v14000_v51  ;;  %v7452_v51 = vld [vmem:[%s18579_s4 + $0x3b8] sm:$0xff] }
 0xb80   :  { %14003 = vmatprep.subr.bf16.mxu0 %v14002_v49  ;;  %v14072_v49 = vpack.c.bf16 %v7452_v51, %v7451_v48 }
 0xb83   :  { %14005 = vmatpush3.bf16.msra.mxu0 %v14004_v53  ;;  %v12063_v42 = vpop.f32.mrb[76].mxu1  ;;  %v14075_v53 = vpack.c.bf16 %v7454_v56, %v7453_v18  ;;  %v8268_v18 = vld [vmem:[%s18583_s11 + $0x58] sm:$0xff]  ;;  %v8285_v56 = vld [vmem:[%s18583_s11 + $0xe0] sm:$0xff] }
 0xb84   :  { %v12064_v3 = vpop.f32.mrb[77].mxu1  ;;  %14038 = vmatprep.subr.bf16.mxu0 %v15270_v9 }
 0xb85   :  { %v17534_v16 = vadd.f32 %v12064_v3, %v12063_v42  ;;  %v14078_v42 = vpack.c.bf16 %v7456_v60, %v7455_v62  ;;  %v8274_v3 = vld [vmem:[%s18583_s11 + $0x88] sm:$0xff] }
 0xb86   :  { %7594 = vmatmul.mubr.f32.vlgmr.msra.gmra.mrb[62].mxu0 %v15912_v33 }
 0xb87   :  { %14040 = vmatpush1.bf16.msra.mxu0 %v14039_v0  ;;  %11165 = vmatprep.mubr.msk.f32.mxu0 %vm983_vm5, %v15946_v2  ;;  %v8273_v0 = vld [vmem:[%s18583_s11 + $0x80] sm:$0xff] }
 0xb88   :  { %14041 = vmatprep.subr.bf16.mxu0 %v15270_v9 }
 0xb8b   :  { %14043 = vmatpush1.bf16.msra.mxu0 %v14042_v11  ;;  %v8275_v11 = vld [vmem:[%s18583_s11 + $0x90] sm:$0xff] }
 0xb8c   :  { %14044 = vmatprep.subr.bf16.mxu0 %v15270_v9  ;;  %v14122_v19 = vpack.c.bf16 %v8276_v8, %v8275_v11  ;;  %v8271_v8 = vld [vmem:[%s18583_s11 + $0x70] sm:$0xff] }
 0xb8f   :  { %14046 = vmatpush1.bf16.msra.mxu0 %v14045_v21  ;;  %v14118_v21 = vpack.c.bf16 %v8274_v3, %v8273_v0  ;;  %v8270_v0 = vld [vmem:[%s18583_s11 + $0x68] sm:$0xff]  ;;  %v8287_v3 = vld [vmem:[%s18583_s11 + $0xf0] sm:$0xff] }
 0xb90   :  { %14047 = vmatprep.subr.bf16.mxu0 %v15270_v9  ;;  %v14146_v11 = vpack.c.bf16 %v8288_v52, %v8287_v3  ;;  %v8328_v3 = vld [vmem:[%s18583_s11 + $0x238] sm:$0xff]  ;;  %v8345_v52 = vld [vmem:[%s18583_s11 + $0x2c0] sm:$0xff] }
 0xb93   :  { %14049 = vmatpush1.bf16.msra.mxu0 %v14048_v55  ;;  %v8259_v55 = vld [vmem:[%s18583_s11 + $0x10] sm:$0xff] }
 0xb94   :  { %14050 = vmatprep.subr.bf16.mxu0 %v15270_v9  ;;  %v14124_v63 = vpack.c.bf16 %v8260_v61, %v8259_v55  ;;  %v8321_v61 = vld [vmem:[%s18583_s11 + $0x200] sm:$0xff] }
 0xb97   :  { %14052 = vmatpush1.bf16.msra.mxu0 %v14051_v26  ;;  %v8278_v26 = vld [vmem:[%s18583_s11 + $0xa8] sm:$0xff] }
 0xb98   :  { %14053 = vmatprep.subr.bf16.mxu0 %v15270_v9  ;;  %v14126_v36 = vpack.c.bf16 %v8278_v26, %v8277_v25  ;;  %v8322_v25 = vld [vmem:[%s18583_s11 + $0x208] sm:$0xff]  ;;  %v8339_v26 = vld [vmem:[%s18583_s11 + $0x290] sm:$0xff] }
 0xb9b   :  { %14055 = vmatpush1.bf16.msra.mxu0 %v14054_v34  ;;  %v8261_v34 = vld [vmem:[%s18583_s11 + $0x20] sm:$0xff] }
 0xb9c   :  { %14056 = vmatprep.subr.bf16.mxu0 %v15270_v9  ;;  %v14128_v54 = vpack.c.bf16 %v8262_v37, %v8261_v34  ;;  %v8324_v34 = vld [vmem:[%s18583_s11 + $0x218] sm:$0xff]  ;;  %v14184_v37 = vpack.c.bf16 %v8322_v25, %v8321_v61  ;;  %v8331_v25 = vld [vmem:[%s18583_s11 + $0x250] sm:$0xff] }
 0xb9f   :  { %14058 = vmatpush1.bf16.msra.mxu0 %v14057_v39  ;;  %v8280_v39 = vld [vmem:[%s18583_s11 + $0xb8] sm:$0xff] }
 0xba0   :  { %14059 = vmatprep.subr.bf16.mxu0 %v15270_v9  ;;  %v14130_v23 = vpack.c.bf16 %v8280_v39, %v8279_v7  ;;  %v8341_v7 = vld [vmem:[%s18583_s11 + $0x2a0] sm:$0xff]  ;;  %v7740_v39 = vld [vmem:[%s18584_s8 + $0x8] sm:$0xff] }
 0xba3   :  { %14061 = vmatpush1.bf16.msra.mxu0 %v14060_v40  ;;  %v8263_v40 = vld [vmem:[%s18583_s11 + $0x30] sm:$0xff] }
 0xba4   :  { %14062 = vmatprep.subr.bf16.mxu0 %v15270_v9  ;;  %v14132_v45 = vpack.c.bf16 %v8264_v41, %v8263_v40 }
 0xba7   :  { %14064 = vmatpush1.bf16.msra.mxu0 %v14063_v20  ;;  %v8282_v20 = vld [vmem:[%s18583_s11 + $0xc8] sm:$0xff] }
 0xba8   :  { %14065 = vmatprep.subr.bf16.mxu0 %v15270_v9  ;;  %v14134_v38 = vpack.c.bf16 %v8282_v20, %v8281_v44  ;;  %v7748_v44 = vld [vmem:[%s18584_s8 + $0x48] sm:$0xff]  ;;  %v7758_v20 = vld [vmem:[%s18584_s8 + $0x98] sm:$0xff] }
 0xbab   :  { %14067 = vmatpush1.bf16.msra.mxu0 %v14066_v13  ;;  %v8265_v13 = vld [vmem:[%s18583_s11 + $0x40] sm:$0xff] }
 0xbac   :  { %14068 = vmatprep.subr.bf16.mxu0 %v15270_v9  ;;  %v14136_v48 = vpack.c.bf16 %v8266_v24, %v8265_v13 }
 0xbaf   :  { %14070 = vmatpush1.bf16.msra.mxu0 %v14069_v28  ;;  %v8284_v28 = vld [vmem:[%s18583_s11 + $0xd8] sm:$0xff] }
 0xbb0   :  { %14071 = vmatprep.subr.bf16.mxu0 %v15270_v9  ;;  %v14138_v51 = vpack.c.bf16 %v8284_v28, %v8283_v46  ;;  %v7757_v46 = vld [vmem:[%s18584_s8 + $0x90] sm:$0xff]  ;;  %v7766_v28 = vld [vmem:[%s18584_s8 + $0xd8] sm:$0xff] }
 0xbb3   :  { %14073 = vmatpush1.bf16.msra.mxu0 %v14072_v49  ;;  %v8267_v49 = vld [vmem:[%s18583_s11 + $0x50] sm:$0xff] }
 0xbb4   :  { %14074 = vmatprep.subr.bf16.mxu0 %v15270_v9  ;;  %v14140_v62 = vpack.c.bf16 %v8268_v18, %v8267_v49  ;;  %v8325_v49 = vld [vmem:[%s18583_s11 + $0x220] sm:$0xff]  ;;  %v8326_v18 = vld [vmem:[%s18583_s11 + $0x228] sm:$0xff] }
 0xbb7   :  { %14076 = vmatpush1.bf16.msra.mxu0 %v14075_v53  ;;  %v8286_v53 = vld [vmem:[%s18583_s11 + $0xe8] sm:$0xff] }
 0xbb8   :  { %14077 = vmatprep.subr.bf16.mxu0 %v15270_v9  ;;  %v14142_v60 = vpack.c.bf16 %v8286_v53, %v8285_v56  ;;  %v14086_v56 = vpack.c.bf16 %v7766_v28, %v7757_v46  ;;  %v8343_v53 = vld [vmem:[%s18583_s11 + $0x2b0] sm:$0xff] }
 0xbbb   :  { %14079 = vmatpush1.bf16.msra.mxu0 %v14078_v42  ;;  %v8269_v42 = vld [vmem:[%s18583_s11 + $0x60] sm:$0xff] }
 0xbbc   :  { %7725 = vmatprep.subr.mxu0 %v15268_v1  ;;  %v14144_v6 = vpack.c.bf16 %v8270_v0, %v8269_v42  ;;  %v8327_v0 = vld [vmem:[%s18583_s11 + $0x230] sm:$0xff] }
 0xbbf   :  { %7726 = vmatpush1.msra.mxu0 %v7457_v17  ;;  %v8272_v17 = vld [vmem:[%s18583_s11 + $0x78] sm:$0xff] }
 0xbc0   :  { %7734 = vmatmul.mubr.f32.vlgmr.msra.gmra.mrb[64].mxu0 %v15982_v47  ;;  %14119 = vmatprep.subr.bf16.mxu0 %v14118_v21  ;;  %v8337_v21 = vld [vmem:[%s18583_s11 + $0x280] sm:$0xff] }
 0xbc1   :  { %14121 = vmatpush3.bf16.msra.mxu0 %v14120_v22  ;;  %8447 = vmatprep.mubr.f32.mxu0 %v15858_v29  ;;  %v8338_v22 = vld [vmem:[%s18583_s11 + $0x288] sm:$0xff] }
 0xbc2   :  { %14123 = vmatprep.subr.bf16.mxu0 %v14122_v19  ;;  %v14148_v19 = vpack.c.bf16 %v8272_v17, %v8271_v8  ;;  %v14182_v55 = vpack.c.bf16 %v8338_v22, %v8337_v21  ;;  %v8329_v17 = vld [vmem:[%s18583_s11 + $0x240] sm:$0xff]  ;;  %v8330_v21 = vld [vmem:[%s18583_s11 + $0x248] sm:$0xff]  ;;  %v8347_v22 = vld [vmem:[%s18583_s11 + $0x2d0] sm:$0xff] }
 0xbc5   :  { %14125 = vmatpush3.bf16.msra.mxu0 %v14124_v63  ;;  %v8340_v63 = vld [vmem:[%s18583_s11 + $0x298] sm:$0xff] }
 0xbc6   :  { %14127 = vmatprep.subr.bf16.mxu0 %v14126_v36  ;;  %v8323_v36 = vld [vmem:[%s18583_s11 + $0x210] sm:$0xff]  ;;  %v14186_v40 = vpack.c.bf16 %v8340_v63, %v8339_v26  ;;  %v8332_v26 = vld [vmem:[%s18583_s11 + $0x258] sm:$0xff]  ;;  %v8349_v63 = vld [vmem:[%s18583_s11 + $0x2e0] sm:$0xff] }
 0xbc9   :  { %14129 = vmatpush3.bf16.msra.mxu0 %v14128_v54  ;;  %v7749_v54 = vld [vmem:[%s18584_s8 + $0x50] sm:$0xff] }
 0xbca   :  { %14131 = vmatprep.subr.bf16.mxu0 %v14130_v23  ;;  %v7739_v23 = vld [vmem:[%s18584_s8] sm:$0xff]  ;;  %v14080_v41 = vpack.c.bf16 %v7749_v54, %v7740_v39  ;;  %v8334_v39 = vld [vmem:[%s18583_s11 + $0x268] sm:$0xff]  ;;  %v8351_v54 = vld [vmem:[%s18583_s11 + $0x2f0] sm:$0xff] }
 0xbcb   :  { %v14082_v13 = vpack.c.bf16 %v7748_v44, %v7739_v23  ;;  %v8352_v23 = vld [vmem:[%s18583_s11 + $0x2f8] sm:$0xff]  ;;  %v8335_v44 = vld [vmem:[%s18583_s11 + $0x270] sm:$0xff] }
 0xbcc   :  { %14081 = vmatprep.subr.bf16.mxu1 %v14080_v41  ;;  %v14210_v41 = vpack.c.bf16 %v8352_v23, %v8351_v54 }
 0xbcd   :  { %14133 = vmatpush3.bf16.msra.mxu0 %v14132_v45  ;;  %v7767_v45 = vld [vmem:[%s18584_s8 + $0xe0] sm:$0xff]  ;;  %14083 = vmatpush1.bf16.msra.mxu1 %v14082_v13 }
 0xbce   :  { %14135 = vmatprep.subr.bf16.mxu0 %v14134_v38  ;;  %v8342_v38 = vld [vmem:[%s18583_s11 + $0x2a8] sm:$0xff]  ;;  %v14084_v24 = vpack.c.bf16 %v7767_v45, %v7758_v20  ;;  %v8336_v20 = vld [vmem:[%s18583_s11 + $0x278] sm:$0xff]  ;;  %v7751_v13 = vld [vmem:[%s18584_s8 + $0x60] sm:$0xff] }
 0xbcf   :  { %v14212_v45 = vpack.c.bf16 %v8336_v20, %v8335_v44 }
 0xbd0   :  { %14085 = vmatprep.subr.bf16.mxu1 %v14084_v24  ;;  %v6851_v24 = vld [vmem:[%s18585_s15] sm:$0xff] }
 0xbd1   :  { %14137 = vmatpush3.bf16.msra.mxu0 %v14136_v48  ;;  %v14188_v48 = vpack.c.bf16 %v8324_v34, %v8323_v36  ;;  %14087 = vmatpush1.bf16.msra.mxu1 %v14086_v56  ;;  %v8350_v36 = vld [vmem:[%s18583_s11 + $0x2e8] sm:$0xff]  ;;  %v14204_v34 = vpack.c.bf16 %v8332_v26, %v8331_v25  ;;  %v6858_v28 = vrot.slane %v6851_v24, %v15835_v12 }
 0xbd2   :  { %14139 = vmatprep.subr.bf16.mxu0 %v14138_v51  ;;  %v14190_v51 = vpack.c.bf16 %v8342_v38, %v8341_v7  ;;  %v8333_v7 = vld [vmem:[%s18583_s11 + $0x260] sm:$0xff]  ;;  %v7742_v38 = vld [vmem:[%s18584_s8 + $0x18] sm:$0xff] }
 0xbd3   :  { %v14088_v46 = vpack.c.bf16 %v7751_v13, %v7742_v38 }
 0xbd5   :  { %14141 = vmatpush3.bf16.msra.mxu0 %v14140_v62  ;;  %v8344_v62 = vld [vmem:[%s18583_s11 + $0x2b8] sm:$0xff]  ;;  %14089 = vmatprep.subr.bf16.mxu1 %v14088_v46 }
 0xbd6   :  { %14143 = vmatprep.subr.bf16.mxu0 %v14142_v60  ;;  %v14192_v60 = vpack.c.bf16 %v8326_v18, %v8325_v49  ;;  %v14194_v42 = vpack.c.bf16 %v8344_v62, %v8343_v53  ;;  %v6866_v62 = vrot.slane %v6851_v24, %v15884_v57 }
 0xbd9   :  { %14145 = vmatpush3.bf16.msra.mxu0 %v14144_v6  ;;  %v8346_v6 = vld [vmem:[%s18583_s11 + $0x2c8] sm:$0xff] }
 0xbda   :  { %14147 = vmatprep.subr.bf16.mxu0 %v14146_v11  ;;  %v14196_v11 = vpack.c.bf16 %v8328_v3, %v8327_v0  ;;  %v14198_v8 = vpack.c.bf16 %v8346_v6, %v8345_v52 }
 0xbdd   :  { %14149 = vmatpush3.bf16.msra.mxu0 %v14148_v19  ;;  %v8348_v19 = vld [vmem:[%s18583_s11 + $0x2d8] sm:$0xff] }
 0xbde   :  { %14183 = vmatprep.subr.bf16.mxu0 %v14182_v55  ;;  %v14200_v55 = vpack.c.bf16 %v8330_v21, %v8329_v17  ;;  %v14202_v61 = vpack.c.bf16 %v8348_v19, %v8347_v22  ;;  %v6878_v21 = vrot.slane %v6851_v24, %v15844_v15 }
 0xbe0   :  { %8448 = vmatmul.mubr.f32.vlgmr.msra.gmra.mrb[66].mxu0 %v15860_v31 }
 0xbe1   :  { %14185 = vmatpush3.bf16.msra.mxu0 %v14184_v37  ;;  %8587 = vmatprep.mubr.f32.mxu0 %v15864_v35  ;;  %v14206_v37 = vpack.c.bf16 %v8350_v36, %v8349_v63  ;;  %v6882_v63 = vrot.slane %v6851_v24, %v15966_v27  ;;  %v6886_v36 = vrot.slane %v6851_v24, %v15933_v50 }
 0xbe2   :  { %14187 = vmatprep.subr.bf16.mxu0 %v14186_v40  ;;  %v14208_v40 = vpack.c.bf16 %v8334_v39, %v8333_v7 }
 0xbe5   :  { %14189 = vmatpush3.bf16.msra.mxu0 %v14188_v48  ;;  %v6862_v48 = vrot.slane %v6851_v24, %v15841_v14 }
 0xbe6   :  { %14191 = vmatprep.subr.bf16.mxu0 %v14190_v51 }
 0xbe9   :  { %14193 = vmatpush3.bf16.msra.mxu0 %v14192_v60  ;;  %v6870_v60 = vrot.slane %v6851_v24, %v15887_v59 }
 0xbea   :  { %14195 = vmatprep.subr.bf16.mxu0 %v14194_v42 }
 0xbed   :  { %14197 = vmatpush3.bf16.msra.mxu0 %v14196_v11  ;;  %v6874_v11 = vrot.slane %v6851_v24, %v15898_v5 }
 0xbee   :  { %14199 = vmatprep.subr.bf16.mxu0 %v14198_v8 }
 0xbf1   :  { %14201 = vmatpush3.bf16.msra.mxu0 %v14200_v55 }
 0xbf2   :  { %14203 = vmatprep.subr.bf16.mxu0 %v14202_v61 }
 0xbf5   :  { %14205 = vmatpush3.bf16.msra.mxu0 %v14204_v34 }
 0xbf6   :  { %14207 = vmatprep.subr.bf16.mxu0 %v14206_v37 }
 0xbf9   :  { %14209 = vmatpush3.bf16.msra.mxu0 %v14208_v40 }
 0xbfa   :  { %14211 = vmatprep.subr.bf16.mxu0 %v14210_v41  ;;  %v11159_v41 = vld [vmem:[%s18585_s15 + $0x8] ss:$0 sm:$0xff] }
 0xbfd   :  { %14213 = vmatpush3.bf16.msra.mxu0 %v14212_v45 }
 0xc00   :  { %8588 = vmatmul.mubr.f32.vlgmr.msra.gmra.mrb[68].mxu0 %v15922_v43 }
 0xc01   :  { %8775 = vmatprep.mubr.f32.mxu0 %v15268_v1 }
 0xc19   :  { %v6969_v51 = vpop.f32.mrb[52].mxu0 }
 0xc1a   :  { %v6970_v49 = vadd.f32 %v6969_v51, %v6858_v28  ;;  %v6971_v18 = vpop.f32.mrb[53].mxu0  ;;  %v7458_v51 = vld [vmem:[%s18586_s5] sm:$0x1] }
 0xc1b   :  { %v6972_v56 = vadd.f32 %v6971_v18, %v6862_v48 }
 0xc1d   :  { %v7266_v53 = vcombine.low %v6970_v49, %v6972_v56  ;;  %v7526_v56 = vadd.f32 %v17500_v4, %v7458_v51  ;;  %v7759_v4 = vld [vmem:[%s18584_s8 + $0xa0] sm:$0xff] }
 0xc1e   :  { %v7747_v51 = vld [vmem:[%s18584_s8 + $0x40] sm:$0xff] }
 0xc1f   :  { %v7276_v8 = vrot.slane %v7266_v53, %v16188_v58 }
 0xc21   :  { %v7040_v42 = vpop.f32.mrb[54].mxu0 }
 0xc22   :  { %v7041_v0 = vadd.f32 %v7040_v42, %v6866_v62  ;;  %v7042_v3 = vpop.f32.mrb[55].mxu0  ;;  %v7741_v42 = vld [vmem:[%s18584_s8 + $0x10] sm:$0xff] }
 0xc23   :  { %v7043_v52 = vadd.f32 %v7042_v3, %v6870_v60  ;;  %v7760_v3 = vld [vmem:[%s18584_s8 + $0xa8] sm:$0xff] }
 0xc25   :  { %v7267_v6 = vcombine.low %v7041_v0, %v7043_v52  ;;  %v7750_v0 = vld [vmem:[%s18584_s8 + $0x58] sm:$0xff]  ;;  %v7769_v52 = vld [vmem:[%s18584_s8 + $0xf0] sm:$0xff] }
 0xc27   :  { %v7283_v17 = vrot.slane %v7267_v6, %v16188_v58 }
 0xc29   :  { %v7298_v22 = vcombine.low %v7276_v8, %v7283_v17  ;;  %v7111_v19 = vpop.f32.mrb[56].mxu0 }
 0xc2a   :  { %v7112_v55 = vadd.f32 %v7111_v19, %v6874_v11  ;;  %v7113_v61 = vpop.f32.mrb[57].mxu0  ;;  %v14090_v11 = vpack.c.bf16 %v7750_v0, %v7741_v42  ;;  %v7744_v19 = vld [vmem:[%s18584_s8 + $0x28] sm:$0xff] }
 0xc2b   :  { %v7114_v25 = vadd.f32 %v7113_v61, %v6878_v21  ;;  %v7306_v13 = vrot.slane %v7298_v22, %v16188_v58  ;;  %v14092_v21 = vpack.c.bf16 %v7769_v52, %v7760_v3  ;;  %v7768_v22 = vld [vmem:[%s18584_s8 + $0xe8] sm:$0xff]  ;;  %v8289_v3 = vld [vmem:[%s18583_s11 + $0x100] sm:$0xff] }
 0xc2c   :  { %v8290_v52 = vld [vmem:[%s18583_s11 + $0x108] sm:$0xff] }
 0xc2d   :  { %v7268_v26 = vcombine.low %v7112_v55, %v7114_v25  ;;  %v7753_v55 = vld [vmem:[%s18584_s8 + $0x70] sm:$0xff]  ;;  %v7743_v25 = vld [vmem:[%s18584_s8 + $0x20] sm:$0xff] }
 0xc2e   :  { %v14096_v61 = vpack.c.bf16 %v7753_v55, %v7744_v19  ;;  %v8291_v19 = vld [vmem:[%s18583_s11 + $0x110] sm:$0xff]  ;;  %v8292_v55 = vld [vmem:[%s18583_s11 + $0x118] sm:$0xff] }
 0xc2f   :  { %v7290_v23 = vrot.slane %v7268_v26, %v16188_v58  ;;  %v7752_v26 = vld [vmem:[%s18584_s8 + $0x68] sm:$0xff] }
 0xc31   :  { %v7182_v34 = vpop.f32.mrb[58].mxu0 }
 0xc32   :  { %v7183_v37 = vadd.f32 %v7182_v34, %v6882_v63  ;;  %v7184_v7 = vpop.f32.mrb[59].mxu0  ;;  %v7762_v63 = vld [vmem:[%s18584_s8 + $0xb8] sm:$0xff]  ;;  %v14098_v34 = vpack.c.bf16 %v7752_v26, %v7743_v25  ;;  %v8310_v25 = vld [vmem:[%s18583_s11 + $0x1a8] sm:$0xff]  ;;  %v14156_v26 = vpack.c.bf16 %v8292_v55, %v8291_v19 }
 0xc33   :  { %v7185_v39 = vadd.f32 %v7184_v7, %v6886_v36  ;;  %v7771_v36 = vld [vmem:[%s18584_s8 + $0x100] sm:$0xff]  ;;  %v7761_v7 = vld [vmem:[%s18584_s8 + $0xb0] sm:$0xff] }
 0xc35   :  { %v7269_v54 = vcombine.low %v7183_v37, %v7185_v39  ;;  %v14100_v37 = vpack.c.bf16 %v7771_v36, %v7762_v63  ;;  %v7770_v39 = vld [vmem:[%s18584_s8 + $0xf8] sm:$0xff]  ;;  %v8293_v36 = vld [vmem:[%s18583_s11 + $0x120] sm:$0xff] }
 0xc37   :  { %v7297_v40 = vrot.slane %v7269_v54, %v16188_v58  ;;  %v7746_v54 = vld [vmem:[%s18584_s8 + $0x38] sm:$0xff] }
 0xc39   :  { %v7299_v44 = vcombine.low %v7290_v23, %v7297_v40  ;;  %v7253_v20 = vpop.f32.mrb[60].mxu0  ;;  %v7755_v23 = vld [vmem:[%s18584_s8 + $0x80] sm:$0xff]  ;;  %v14102_v40 = vpack.c.bf16 %v7770_v39, %v7761_v7  ;;  %v8312_v7 = vld [vmem:[%s18583_s11 + $0x1b8] sm:$0xff] }
 0xc3a   :  { %v7254_v45 = vadd.f32 %v11159_v41, %v7253_v20  ;;  %v12581_v38 = vpop.f32.mrb[61].mxu0  ;;  %v14104_v41 = vpack.c.bf16 %v7755_v23, %v7746_v54  ;;  %v7754_v20 = vld [vmem:[%s18584_s8 + $0x78] sm:$0xff]  ;;  %v8295_v54 = vld [vmem:[%s18583_s11 + $0x130] sm:$0xff] }
 0xc3b   :  { %v7313_v24 = vrot.slane %v7299_v44, %v16188_v58  ;;  %v7745_v44 = vld [vmem:[%s18584_s8 + $0x30] sm:$0xff]  ;;  %v8296_v23 = vld [vmem:[%s18583_s11 + $0x138] sm:$0xff] }
 0xc3c   :  { %v7321_v46 = vrot.slane %v7254_v45, %v16188_v58  ;;  %v7764_v45 = vld [vmem:[%s18584_s8 + $0xc8] sm:$0xff]  ;;  %v7773_v38 = vld [vmem:[%s18584_s8 + $0x110] sm:$0xff] }
 0xc3d   :  { %v7314_v28 = vcombine.low %v7306_v13, %v7313_v24  ;;  %v14106_v13 = vpack.c.bf16 %v7754_v20, %v7745_v44  ;;  %v14108_v24 = vpack.c.bf16 %v7773_v38, %v7764_v45  ;;  %v14164_v44 = vpack.c.bf16 %v8296_v23, %v8295_v54  ;;  %v8297_v45 = vld [vmem:[%s18583_s11 + $0x140] sm:$0xff]  ;;  %v8298_v38 = vld [vmem:[%s18583_s11 + $0x148] sm:$0xff] }
 0xc3e   :  { %v7328_v48 = vrot.slane %v7321_v46, %v16188_v58  ;;  %v7763_v46 = vld [vmem:[%s18584_s8 + $0xc0] sm:$0xff]  ;;  %v8362_v23 = vld [vmem:[%s18583_s11 + $0x348] sm:$0xff] }
 0xc3f   :  { %7331 = vst [vmem:[#allocation21] sm:$0xff] %v7314_v28  ;;  %v7772_v28 = vld [vmem:[%s18584_s8 + $0x108] sm:$0xff]  ;;  %v8361_v54 = vld [vmem:[%s18583_s11 + $0x340] sm:$0xff] }
 0xc40   :  { %7332 = vst.msk [vmem:[#allocation21 + $0x8] sm:$0x1] %vm16417_vm8, %v7328_v48  ;;  %v14110_v48 = vpack.c.bf16 %v7772_v28, %v7763_v46  ;;  %v14168_v46 = vpack.c.bf16 %v8298_v38, %v8297_v45  ;;  %v8365_v45 = vld [vmem:[%s18583_s11 + $0x360] sm:$0xff]  ;;  %v8366_v38 = vld [vmem:[%s18583_s11 + $0x368] sm:$0xff] }
 0xc59   :  { %v12028_v49 = vpop.f32.mrb[62].mxu0 }
 0xc5a   :  { %v12029_v18 = vpop.f32.mrb[63].mxu0 }
 0xc5b   :  { %v12030_v53 = vadd.f32 %v12029_v18, %v12028_v49  ;;  %v7756_v49 = vld [vmem:[%s18584_s8 + $0x88] sm:$0xff] }
 0xc5c   :  { %v14113_v18 = vpack.c.bf16 %v7756_v49, %v7747_v51  ;;  %v8300_v51 = vld [vmem:[%s18583_s11 + $0x158] sm:$0xff]  ;;  %v8317_v49 = vld [vmem:[%s18583_s11 + $0x1e0] sm:$0xff] }
 0xc5d   :  { %v7596_v62 = vadd.f32 %v12030_v53, %v7526_v56  ;;  %v7765_v56 = vld [vmem:[%s18584_s8 + $0xd0] sm:$0xff]  ;;  %v7774_v53 = vld [vmem:[%s18584_s8 + $0x118] sm:$0xff] }
 0xc5e   :  { %v14116_v42 = vpack.c.bf16 %v7774_v53, %v7765_v56 }
 0xc5f   :  { %v7666_v60 = vadd.f32 %v17534_v16, %v7596_v62  ;;  %v14094_v16 = vpack.c.bf16 %v7768_v22, %v7759_v4  ;;  %v8305_v62 = vld [vmem:[%s18583_s11 + $0x180] sm:$0xff] }
 0xc93   :  { %v7735_v6 = vpop.f32.mrb[64].mxu0 }
 0xc94   :  { %v17685_v8 = vadd.f32 %v7735_v6, %v7666_v60  ;;  %v7737_v17 = vpop.f32.mrb[65].mxu0  ;;  %v8306_v60 = vld [vmem:[%s18583_s11 + $0x188] sm:$0xff]  ;;  %v8307_v6 = vld [vmem:[%s18583_s11 + $0x190] sm:$0xff] }
 0xc95   :  { %v14150_v0 = vpack.c.bf16 %v8306_v60, %v8305_v62  ;;  %v8301_v62 = vld [vmem:[%s18583_s11 + $0x160] sm:$0xff]  ;;  %v8302_v60 = vld [vmem:[%s18583_s11 + $0x168] sm:$0xff] }
 0xc96   :  { %11167 = vmatmul.mubr.msk.f32.vlgmr.msra.gmra.mrb[78].mxu1 %vm1314_vm6, %v17685_v8 }
 0xc97   :  { %14091 = vmatpush1.bf16.msra.mxu1 %v14090_v11  ;;  %7962 = vmatprep.mubr.f32.mxu1 %v15268_v1  ;;  %v8308_v11 = vld [vmem:[%s18583_s11 + $0x198] sm:$0xff] }
 0xc98   :  { %14093 = vmatprep.subr.bf16.mxu1 %v14092_v21  ;;  %v14152_v21 = vpack.c.bf16 %v8290_v52, %v8289_v3  ;;  %v14154_v22 = vpack.c.bf16 %v8308_v11, %v8307_v6  ;;  %v14176_v3 = vpack.c.bf16 %v8302_v60, %v8301_v62  ;;  %v8303_v6 = vld [vmem:[%s18583_s11 + $0x170] sm:$0xff]  ;;  %v8304_v11 = vld [vmem:[%s18583_s11 + $0x178] sm:$0xff]  ;;  %v8373_v62 = vld [vmem:[%s18583_s11 + $0x3a0] sm:$0xff] }
 0xc99   :  { %v8374_v60 = vld [vmem:[%s18583_s11 + $0x3a8] sm:$0xff] }
 0xc9b   :  { %14095 = vmatpush1.bf16.msra.mxu1 %v14094_v16 }
 0xc9c   :  { %14097 = vmatprep.subr.bf16.mxu1 %v14096_v61  ;;  %v8309_v61 = vld [vmem:[%s18583_s11 + $0x1a0] sm:$0xff] }
 0xc9d   :  { %v14158_v63 = vpack.c.bf16 %v8310_v25, %v8309_v61  ;;  %v8355_v61 = vld [vmem:[%s18583_s11 + $0x310] sm:$0xff]  ;;  %v8356_v25 = vld [vmem:[%s18583_s11 + $0x318] sm:$0xff] }
 0xc9e   :  { %11168 = vmatmul.mubr.msk.f32.vlgmr.msra.gmra.mrb[80].mxu1 %vm1314_vm6, %v17685_v8 }
 0xc9f   :  { %14099 = vmatpush1.bf16.msra.mxu1 %v14098_v34  ;;  %8033 = vmatprep.mubr.f32.mxu1 %v15268_v1  ;;  %v8294_v34 = vld [vmem:[%s18583_s11 + $0x128] sm:$0xff] }
 0xca0   :  { %14101 = vmatprep.subr.bf16.mxu1 %v14100_v37  ;;  %v8311_v37 = vld [vmem:[%s18583_s11 + $0x1b0] sm:$0xff]  ;;  %v14160_v39 = vpack.c.bf16 %v8294_v34, %v8293_v36  ;;  %v8357_v36 = vld [vmem:[%s18583_s11 + $0x320] sm:$0xff]  ;;  %v8358_v34 = vld [vmem:[%s18583_s11 + $0x328] sm:$0xff] }
 0xca3   :  { %14103 = vmatpush1.bf16.msra.mxu1 %v14102_v40  ;;  %v8313_v40 = vld [vmem:[%s18583_s11 + $0x1c0] sm:$0xff] }
 0xca4   :  { %14105 = vmatprep.subr.bf16.mxu1 %v14104_v41  ;;  %v8314_v41 = vld [vmem:[%s18583_s11 + $0x1c8] sm:$0xff] }
 0xca5   :  { %v14166_v20 = vpack.c.bf16 %v8314_v41, %v8313_v40  ;;  %v14227_v40 = vpack.c.bf16 %v8362_v23, %v8361_v54  ;;  %v8363_v41 = vld [vmem:[%s18583_s11 + $0x350] sm:$0xff]  ;;  %v9009_v54 = vld [vmem:[%s18587_s9 + $0x118] sm:$0xff]  ;;  %v9026_v23 = vld [vmem:[%s18587_s9 + $0x1a0] sm:$0xff] }
 0xca6   :  { %11169 = vmatmul.mubr.msk.f32.vlgmr.msra.gmra.mrb[82].mxu1 %vm1314_vm6, %v17685_v8 }
 0xca7   :  { %14107 = vmatpush1.bf16.msra.mxu1 %v14106_v13  ;;  %8104 = vmatprep.mubr.f32.mxu1 %v15268_v1  ;;  %v8315_v13 = vld [vmem:[%s18583_s11 + $0x1d0] sm:$0xff] }
 0xca8   :  { %14109 = vmatprep.subr.bf16.mxu1 %v14108_v24  ;;  %v8316_v24 = vld [vmem:[%s18583_s11 + $0x1d8] sm:$0xff] }
 0xca9   :  { %v14170_v28 = vpack.c.bf16 %v8316_v24, %v8315_v13  ;;  %v14233_v13 = vpack.c.bf16 %v8366_v38, %v8365_v45  ;;  %v8367_v24 = vld [vmem:[%s18583_s11 + $0x370] sm:$0xff]  ;;  %v9011_v45 = vld [vmem:[%s18587_s9 + $0x128] sm:$0xff] }
 0xcaa   :  { %v9028_v38 = vld [vmem:[%s18587_s9 + $0x1b0] sm:$0xff] }
 0xcab   :  { %14111 = vmatpush1.bf16.msra.mxu1 %v14110_v48  ;;  %v8299_v48 = vld [vmem:[%s18583_s11 + $0x150] sm:$0xff] }
 0xcac   :  { %14112 = vmatprep.subr.bf16.mxu1 %v15270_v9  ;;  %v14172_v56 = vpack.c.bf16 %v8300_v51, %v8299_v48  ;;  %v8369_v48 = vld [vmem:[%s18583_s11 + $0x380] sm:$0xff]  ;;  %v8370_v51 = vld [vmem:[%s18583_s11 + $0x388] sm:$0xff] }
 0xcae   :  { %11170 = vmatmul.mubr.msk.f32.vlgmr.msra.gmra.mrb[84].mxu1 %vm1314_vm6, %v17685_v8 }
 0xcaf   :  { %14114 = vmatpush3.bf16.msra.mxu1 %v14113_v18  ;;  %12590 = vmatprep.mubr.msk.f32.mxu1 %vm15269_vm0, %v15268_v1  ;;  %v8318_v18 = vld [vmem:[%s18583_s11 + $0x1e8] sm:$0xff] }
 0xcb0   :  { %14115 = vmatprep.subr.bf16.mxu1 %v15270_v9  ;;  %v14174_v53 = vpack.c.bf16 %v8318_v18, %v8317_v49  ;;  %v14239_v49 = vpack.c.bf16 %v8370_v51, %v8369_v48  ;;  %v8371_v18 = vld [vmem:[%s18583_s11 + $0x390] sm:$0xff]  ;;  %v9013_v48 = vld [vmem:[%s18587_s9 + $0x138] sm:$0xff]  ;;  %v9030_v51 = vld [vmem:[%s18587_s9 + $0x1c0] sm:$0xff] }
 0xcb3   :  { %14117 = vmatpush3.bf16.msra.mxu1 %v14116_v42  ;;  %v12103_v17 = vpop.f32.mrb[66].mxu0  ;;  %v8319_v42 = vld [vmem:[%s18583_s11 + $0x1f0] sm:$0xff] }
 0xcb4   :  { %v12104_v4 = vpop.f32.mrb[67].mxu0  ;;  %14151 = vmatprep.subr.bf16.mxu1 %v14150_v0  ;;  %v8320_v0 = vld [vmem:[%s18583_s11 + $0x1f8] sm:$0xff] }
 0xcb5   :  { %v17732_v16 = vadd.f32 %v12104_v4, %v12103_v17  ;;  %v14178_v52 = vpack.c.bf16 %v8320_v0, %v8319_v42  ;;  %v14180_v17 = vpack.c.bf16 %v8304_v11, %v8303_v6  ;;  %v8354_v4 = vld [vmem:[%s18583_s11 + $0x308] sm:$0xff]  ;;  %v14245_v42 = vpack.c.bf16 %v8374_v60, %v8373_v62  ;;  %v8375_v0 = vld [vmem:[%s18583_s11 + $0x3b0] sm:$0xff]  ;;  %v8377_v6 = vld [vmem:[%s18583_s11 + $0x3c0] sm:$0xff] }
 0xcb6   :  { %12591 = vmatmul.mubr.msk.f32.vlgmr.msra.gmra.mrb[86].mxu1 %vm1314_vm6, %v17685_v8  ;;  %v14162_v8 = vpack.c.bf16 %v8312_v7, %v8311_v37  ;;  %v14221_v37 = vpack.c.bf16 %v8358_v34, %v8357_v36  ;;  %v8359_v7 = vld [vmem:[%s18583_s11 + $0x330] sm:$0xff]  ;;  %v8378_v11 = vld [vmem:[%s18583_s11 + $0x3c8] sm:$0xff]  ;;  %v9025_v36 = vld [vmem:[%s18587_s9 + $0x198] sm:$0xff] }
 0xcb7   :  { %14153 = vmatpush3.bf16.msra.mxu1 %v14152_v21  ;;  %8517 = vmatprep.mubr.f32.mxu1 %v15910_v30  ;;  %v8353_v21 = vld [vmem:[%s18583_s11 + $0x300] sm:$0xff]  ;;  %v9015_v62 = vld [vmem:[%s18587_s9 + $0x148] sm:$0xff]  ;;  %v9032_v60 = vld [vmem:[%s18587_s9 + $0x1d0] sm:$0xff] }
 0xcb8   :  { %14155 = vmatprep.subr.bf16.mxu1 %v14154_v22  ;;  %v14215_v19 = vpack.c.bf16 %v8354_v4, %v8353_v21  ;;  %v8379_v21 = vld [vmem:[%s18583_s11 + $0x3d0] sm:$0xff]  ;;  %v8380_v4 = vld [vmem:[%s18583_s11 + $0x3d8] sm:$0xff]  ;;  %v8381_v34 = vld [vmem:[%s18583_s11 + $0x3e0] sm:$0xff] }
 0xcbb   :  { %14157 = vmatpush3.bf16.msra.mxu1 %v14156_v26 }
 0xcbc   :  { %14159 = vmatprep.subr.bf16.mxu1 %v14158_v63  ;;  %v14218_v63 = vpack.c.bf16 %v8356_v25, %v8355_v61  ;;  %v9006_v61 = vld [vmem:[%s18587_s9 + $0x100] sm:$0xff]  ;;  %v9007_v25 = vld [vmem:[%s18587_s9 + $0x108] sm:$0xff] }
 0xcbf   :  { %14161 = vmatpush3.bf16.msra.mxu1 %v14160_v39  ;;  %v8360_v39 = vld [vmem:[%s18583_s11 + $0x338] sm:$0xff] }
 0xcc0   :  { %14163 = vmatprep.subr.bf16.mxu1 %v14162_v8  ;;  %v14224_v8 = vpack.c.bf16 %v8360_v39, %v8359_v7  ;;  %v14302_v7 = vpack.c.bf16 %v9007_v25, %v9006_v61  ;;  %v9037_v61 = vld [vmem:[%s18587_s9 + $0x1f8] sm:$0xff] }
 0xcc3   :  { %14165 = vmatpush3.bf16.msra.mxu1 %v14164_v44  ;;  %v8364_v44 = vld [vmem:[%s18583_s11 + $0x358] sm:$0xff] }
 0xcc4   :  { %14167 = vmatprep.subr.bf16.mxu1 %v14166_v20  ;;  %v14230_v20 = vpack.c.bf16 %v8364_v44, %v8363_v41 }
 0xcc7   :  { %14169 = vmatpush3.bf16.msra.mxu1 %v14168_v46  ;;  %v8368_v46 = vld [vmem:[%s18583_s11 + $0x378] sm:$0xff] }
 0xcc8   :  { %14171 = vmatprep.subr.bf16.mxu1 %v14170_v28  ;;  %v14236_v28 = vpack.c.bf16 %v8368_v46, %v8367_v24 }
 0xccb   :  { %14173 = vmatpush3.bf16.msra.mxu1 %v14172_v56  ;;  %v8372_v56 = vld [vmem:[%s18583_s11 + $0x398] sm:$0xff] }
 0xccc   :  { %14175 = vmatprep.subr.bf16.mxu1 %v14174_v53  ;;  %v14242_v53 = vpack.c.bf16 %v8372_v56, %v8371_v18 }
 0xccf   :  { %14177 = vmatpush3.bf16.msra.mxu1 %v14176_v3  ;;  %v8376_v3 = vld [vmem:[%s18583_s11 + $0x3b8] sm:$0xff] }
 0xcd0   :  { %14179 = vmatprep.subr.bf16.mxu1 %v14178_v52  ;;  %v14248_v52 = vpack.c.bf16 %v8376_v3, %v8375_v0 }
 0xcd3   :  { %14181 = vmatpush3.bf16.msra.mxu1 %v14180_v17  ;;  %v12173_v22 = vpop.f32.mrb[68].mxu0  ;;  %v14251_v17 = vpack.c.bf16 %v8378_v11, %v8377_v6  ;;  %v9017_v6 = vld [vmem:[%s18587_s9 + $0x158] sm:$0xff]  ;;  %v9034_v11 = vld [vmem:[%s18587_s9 + $0x1e0] sm:$0xff] }
 0xcd4   :  { %v12174_v55 = vpop.f32.mrb[69].mxu0  ;;  %14214 = vmatprep.subr.bf16.mxu1 %v15270_v9 }
 0xcd5   :  { %v17766_v26 = vadd.f32 %v12174_v55, %v12173_v22  ;;  %v14254_v22 = vpack.c.bf16 %v8380_v4, %v8379_v21  ;;  %v9023_v55 = vld [vmem:[%s18587_s9 + $0x188] sm:$0xff] }
 0xcd6   :  { %8518 = vmatmul.mubr.f32.vlgmr.msra.gmra.mrb[88].mxu1 %v15912_v33 }
 0xcd7   :  { %14216 = vmatpush1.bf16.msra.mxu1 %v14215_v19  ;;  %11172 = vmatprep.mubr.msk.f32.mxu1 %vm983_vm5, %v15946_v2  ;;  %v9022_v19 = vld [vmem:[%s18587_s9 + $0x180] sm:$0xff] }
 0xcd8   :  { %14217 = vmatprep.subr.bf16.mxu1 %v15270_v9 }
 0xcdb   :  { %14219 = vmatpush1.bf16.msra.mxu1 %v14218_v63  ;;  %v9024_v63 = vld [vmem:[%s18587_s9 + $0x190] sm:$0xff] }
 0xcdc   :  { %14220 = vmatprep.subr.bf16.mxu1 %v15270_v9  ;;  %v14304_v39 = vpack.c.bf16 %v9025_v36, %v9024_v63  ;;  %v9020_v36 = vld [vmem:[%s18587_s9 + $0x170] sm:$0xff] }
 0xcdf   :  { %14222 = vmatpush1.bf16.msra.mxu1 %v14221_v37  ;;  %v14300_v37 = vpack.c.bf16 %v9023_v55, %v9022_v19  ;;  %v9019_v19 = vld [vmem:[%s18587_s9 + $0x168] sm:$0xff]  ;;  %v9036_v55 = vld [vmem:[%s18587_s9 + $0x1f0] sm:$0xff] }
 0xce0   :  { %14223 = vmatprep.subr.bf16.mxu1 %v15270_v9  ;;  %v14328_v63 = vpack.c.bf16 %v9037_v61, %v9036_v55  ;;  %v9093_v55 = vld [vmem:[%s18587_s9 + $0x3b8] sm:$0xff] }
 0xce3   :  { %14225 = vmatpush1.bf16.msra.mxu1 %v14224_v8  ;;  %v9008_v8 = vld [vmem:[%s18587_s9 + $0x110] sm:$0xff] }
 0xce4   :  { %14226 = vmatprep.subr.bf16.mxu1 %v15270_v9  ;;  %v14306_v41 = vpack.c.bf16 %v9009_v54, %v9008_v8  ;;  %v9072_v54 = vld [vmem:[%s18587_s9 + $0x310] sm:$0xff] }
 0xce7   :  { %14228 = vmatpush1.bf16.msra.mxu1 %v14227_v40  ;;  %v9027_v40 = vld [vmem:[%s18587_s9 + $0x1a8] sm:$0xff] }
 0xce8   :  { %14229 = vmatprep.subr.bf16.mxu1 %v15270_v9  ;;  %v14308_v44 = vpack.c.bf16 %v9027_v40, %v9026_v23  ;;  %v9073_v23 = vld [vmem:[%s18587_s9 + $0x318] sm:$0xff] }
 0xce9   :  { %v14368_v40 = vpack.c.bf16 %v9073_v23, %v9072_v54  ;;  %v8663_v54 = vld [vmem:[%s18588_s13] sm:$0xff]  ;;  %v8669_v23 = vld [vmem:[%s18588_s13 + $0x30] sm:$0xff] }
 0xceb   :  { %14231 = vmatpush1.bf16.msra.mxu1 %v14230_v20  ;;  %v9010_v20 = vld [vmem:[%s18587_s9 + $0x120] sm:$0xff] }
 0xcec   :  { %14232 = vmatprep.subr.bf16.mxu1 %v15270_v9  ;;  %v14310_v24 = vpack.c.bf16 %v9011_v45, %v9010_v20  ;;  %v9076_v45 = vld [vmem:[%s18587_s9 + $0x330] sm:$0xff] }
 0xcef   :  { %14234 = vmatpush1.bf16.msra.mxu1 %v14233_v13  ;;  %v9029_v13 = vld [vmem:[%s18587_s9 + $0x1b8] sm:$0xff] }
 0xcf0   :  { %14235 = vmatprep.subr.bf16.mxu1 %v15270_v9  ;;  %v14312_v46 = vpack.c.bf16 %v9029_v13, %v9028_v38  ;;  %v9077_v38 = vld [vmem:[%s18587_s9 + $0x338] sm:$0xff] }
 0xcf1   :  { %v14374_v13 = vpack.c.bf16 %v9077_v38, %v9076_v45  ;;  %v17896_v45 = vld [vmem:[%s18589_s17] sm:$0xff] }
 0xcf2   :  { %v9946_v38 = vld [vmem:[%s18590_s21 + $0x180] sm:$0xff] }
 0xcf3   :  { %14237 = vmatpush1.bf16.msra.mxu1 %v14236_v28  ;;  %v9012_v28 = vld [vmem:[%s18587_s9 + $0x130] sm:$0xff] }
 0xcf4   :  { %14238 = vmatprep.subr.bf16.mxu1 %v15270_v9  ;;  %v14314_v18 = vpack.c.bf16 %v9013_v48, %v9012_v28  ;;  %v9080_v48 = vld [vmem:[%s18587_s9 + $0x350] sm:$0xff] }
 0xcf7   :  { %14240 = vmatpush1.bf16.msra.mxu1 %v14239_v49  ;;  %v9031_v49 = vld [vmem:[%s18587_s9 + $0x1c8] sm:$0xff] }
 0xcf8   :  { %14241 = vmatprep.subr.bf16.mxu1 %v15270_v9  ;;  %v14316_v56 = vpack.c.bf16 %v9031_v49, %v9030_v51  ;;  %v9081_v51 = vld [vmem:[%s18587_s9 + $0x358] sm:$0xff] }
 0xcf9   :  { %v14380_v49 = vpack.c.bf16 %v9081_v51, %v9080_v48  ;;  %v9948_v48 = vld [vmem:[%s18590_s21 + $0x190] sm:$0xff]  ;;  %v9949_v51 = vld [vmem:[%s18590_s21 + $0x198] sm:$0xff] }
 0xcfb   :  { %14243 = vmatpush1.bf16.msra.mxu1 %v14242_v53  ;;  %v9014_v53 = vld [vmem:[%s18587_s9 + $0x140] sm:$0xff] }
 0xcfc   :  { %14244 = vmatprep.subr.bf16.mxu1 %v15270_v9  ;;  %v14318_v0 = vpack.c.bf16 %v9015_v62, %v9014_v53  ;;  %v9084_v62 = vld [vmem:[%s18587_s9 + $0x370] sm:$0xff] }
 0xcff   :  { %14246 = vmatpush1.bf16.msra.mxu1 %v14245_v42  ;;  %v9033_v42 = vld [vmem:[%s18587_s9 + $0x1d8] sm:$0xff] }
 0xd00   :  { %14247 = vmatprep.subr.bf16.mxu1 %v15270_v9  ;;  %v14320_v3 = vpack.c.bf16 %v9033_v42, %v9032_v60  ;;  %v9085_v60 = vld [vmem:[%s18587_s9 + $0x378] sm:$0xff] }
 0xd01   :  { %v14386_v42 = vpack.c.bf16 %v9085_v60, %v9084_v62  ;;  %v14480_v60 = vpack.c.bf16 %v9949_v51, %v9948_v48  ;;  %v9956_v48 = vld [vmem:[%s18590_s21 + $0x1d0] sm:$0xff]  ;;  %v9957_v51 = vld [vmem:[%s18590_s21 + $0x1d8] sm:$0xff] }
 0xd03   :  { %14249 = vmatpush1.bf16.msra.mxu1 %v14248_v52  ;;  %v9016_v52 = vld [vmem:[%s18587_s9 + $0x150] sm:$0xff] }
 0xd04   :  { %14250 = vmatprep.subr.bf16.mxu1 %v15270_v9  ;;  %v14322_v21 = vpack.c.bf16 %v9017_v6, %v9016_v52  ;;  %v9088_v6 = vld [vmem:[%s18587_s9 + $0x390] sm:$0xff] }
 0xd07   :  { %14252 = vmatpush1.bf16.msra.mxu1 %v14251_v17  ;;  %v9035_v17 = vld [vmem:[%s18587_s9 + $0x1e8] sm:$0xff] }
 0xd08   :  { %14253 = vmatprep.subr.bf16.mxu1 %v15270_v9  ;;  %v14324_v4 = vpack.c.bf16 %v9035_v17, %v9034_v11  ;;  %v9089_v11 = vld [vmem:[%s18587_s9 + $0x398] sm:$0xff] }
 0xd09   :  { %v14392_v17 = vpack.c.bf16 %v9089_v11, %v9088_v6  ;;  %v9951_v6 = vld [vmem:[%s18590_s21 + $0x1a8] sm:$0xff] }
 0xd0b   :  { %14255 = vmatpush1.bf16.msra.mxu1 %v14254_v22  ;;  %v9018_v22 = vld [vmem:[%s18587_s9 + $0x160] sm:$0xff] }
 0xd0c   :  { %8649 = vmatprep.subr.mxu1 %v15268_v1  ;;  %v14326_v25 = vpack.c.bf16 %v9019_v19, %v9018_v22  ;;  %v9092_v19 = vld [vmem:[%s18587_s9 + $0x3b0] sm:$0xff] }
 0xd0d   :  { %v14398_v61 = vpack.c.bf16 %v9093_v55, %v9092_v19  ;;  %v9934_v19 = vld [vmem:[%s18590_s21 + $0x120] sm:$0xff]  ;;  %v9935_v55 = vld [vmem:[%s18590_s21 + $0x128] sm:$0xff] }
 0xd0f   :  { %8650 = vmatpush1.msra.mxu1 %v8381_v34  ;;  %v9021_v34 = vld [vmem:[%s18587_s9 + $0x178] sm:$0xff] }
 0xd10   :  { %8658 = vmatmul.mubr.f32.vlgmr.msra.gmra.mrb[90].mxu1 %v15982_v47  ;;  %14301 = vmatprep.subr.bf16.mxu1 %v14300_v37  ;;  %v14330_v37 = vpack.c.bf16 %v9021_v34, %v9020_v36  ;;  %v9096_v34 = vld [vmem:[%s18587_s9 + $0x3d0] sm:$0xff] }
 0xd11   :  { %14303 = vmatpush3.bf16.msra.mxu1 %v14302_v7  ;;  %9234 = vmatprep.mubr.f32.mxu1 %v15910_v30  ;;  %v9070_v7 = vld [vmem:[%s18587_s9 + $0x300] sm:$0xff] }
 0xd12   :  { %14305 = vmatprep.subr.bf16.mxu1 %v14304_v39  ;;  %v9071_v39 = vld [vmem:[%s18587_s9 + $0x308] sm:$0xff] }
 0xd13   :  { %v14365_v8 = vpack.c.bf16 %v9071_v39, %v9070_v7  ;;  %v8664_v7 = vld [vmem:[%s18588_s13 + $0x8] sm:$0xff]  ;;  %v8670_v39 = vld [vmem:[%s18588_s13 + $0x38] sm:$0xff] }
 0xd15   :  { %14307 = vmatpush3.bf16.msra.mxu1 %v14306_v41  ;;  %v9074_v41 = vld [vmem:[%s18587_s9 + $0x320] sm:$0xff] }
 0xd16   :  { %14309 = vmatprep.subr.bf16.mxu1 %v14308_v44  ;;  %v9075_v44 = vld [vmem:[%s18587_s9 + $0x328] sm:$0xff] }
 0xd17   :  { %v14371_v20 = vpack.c.bf16 %v9075_v44, %v9074_v41  ;;  %v8666_v44 = vld [vmem:[%s18588_s13 + $0x18] sm:$0xff] }
 0xd19   :  { %14311 = vmatpush3.bf16.msra.mxu1 %v14310_v24  ;;  %v9078_v24 = vld [vmem:[%s18587_s9 + $0x340] sm:$0xff] }
 0xd1a   :  { %14313 = vmatprep.subr.bf16.mxu1 %v14312_v46  ;;  %v9079_v46 = vld [vmem:[%s18587_s9 + $0x348] sm:$0xff] }
 0xd1b   :  { %v14377_v28 = vpack.c.bf16 %v9079_v46, %v9078_v24  ;;  %v9930_v46 = vld [vmem:[%s18590_s21 + $0x100] sm:$0xff] }
 0xd1d   :  { %14315 = vmatpush3.bf16.msra.mxu1 %v14314_v18  ;;  %v9082_v18 = vld [vmem:[%s18587_s9 + $0x360] sm:$0xff] }
 0xd1e   :  { %14317 = vmatprep.subr.bf16.mxu1 %v14316_v56  ;;  %v9083_v56 = vld [vmem:[%s18587_s9 + $0x368] sm:$0xff] }
 0xd1f   :  { %v14383_v53 = vpack.c.bf16 %v9083_v56, %v9082_v18  ;;  %v7782_v18 = vrot.slane %v17896_v45, %v15835_v12 }
 0xd21   :  { %14319 = vmatpush3.bf16.msra.mxu1 %v14318_v0  ;;  %v9086_v0 = vld [vmem:[%s18587_s9 + $0x380] sm:$0xff] }
 0xd22   :  { %14321 = vmatprep.subr.bf16.mxu1 %v14320_v3  ;;  %v9087_v3 = vld [vmem:[%s18587_s9 + $0x388] sm:$0xff] }
 0xd23   :  { %v14389_v52 = vpack.c.bf16 %v9087_v3, %v9086_v0  ;;  %v9933_v0 = vld [vmem:[%s18590_s21 + $0x118] sm:$0xff] }
 0xd25   :  { %14323 = vmatpush3.bf16.msra.mxu1 %v14322_v21  ;;  %v9090_v21 = vld [vmem:[%s18587_s9 + $0x3a0] sm:$0xff] }
 0xd26   :  { %14325 = vmatprep.subr.bf16.mxu1 %v14324_v4  ;;  %v9091_v4 = vld [vmem:[%s18587_s9 + $0x3a8] sm:$0xff] }
 0xd27   :  { %v14395_v22 = vpack.c.bf16 %v9091_v4, %v9090_v21 }
 0xd29   :  { %14327 = vmatpush3.bf16.msra.mxu1 %v14326_v25  ;;  %v9094_v25 = vld [vmem:[%s18587_s9 + $0x3c0] sm:$0xff] }
 0xd2a   :  { %14329 = vmatprep.subr.bf16.mxu1 %v14328_v63  ;;  %v9095_v63 = vld [vmem:[%s18587_s9 + $0x3c8] sm:$0xff] }
 0xd2b   :  { %v14401_v36 = vpack.c.bf16 %v9095_v63, %v9094_v25  ;;  %v9952_v25 = vld [vmem:[%s18590_s21 + $0x1b0] sm:$0xff]  ;;  %v9953_v63 = vld [vmem:[%s18590_s21 + $0x1b8] sm:$0xff] }
 0xd2d   :  { %14331 = vmatpush3.bf16.msra.mxu1 %v14330_v37  ;;  %v9097_v37 = vld [vmem:[%s18587_s9 + $0x3d8] sm:$0xff] }
 0xd2e   :  { %14364 = vmatprep.subr.bf16.mxu1 %v15270_v9  ;;  %v14404_v41 = vpack.c.bf16 %v9097_v37, %v9096_v34  ;;  %v7794_v34 = vrot.slane %v17896_v45, %v15887_v59  ;;  %v14486_v37 = vpack.c.bf16 %v9935_v55, %v9934_v19  ;;  %v9942_v55 = vld [vmem:[%s18590_s21 + $0x160] sm:$0xff] }
 0xd30   :  { %9235 = vmatmul.mubr.f32.vlgmr.msra.gmra.mrb[92].mxu1 %v15912_v33 }
 0xd31   :  { %14366 = vmatpush1.bf16.msra.mxu1 %v14365_v8  ;;  %11176 = vmatprep.mubr.msk.f32.mxu1 %vm983_vm5, %v15946_v2  ;;  %v14256_v8 = vpack.c.bf16 %v8670_v39, %v8664_v7  ;;  %v14488_v7 = vpack.c.bf16 %v9953_v63, %v9952_v25  ;;  %v9936_v39 = vld [vmem:[%s18590_s21 + $0x130] sm:$0xff] }
 0xd32   :  { %14367 = vmatprep.subr.bf16.mxu1 %v15270_v9  ;;  %v9960_v63 = vld [vmem:[%s18590_s21 + $0x1f0] sm:$0xff] }
 0xd33   :  { %14257 = vmatprep.subr.bf16.mxu0 %v14256_v8  ;;  %v9937_v8 = vld [vmem:[%s18590_s21 + $0x138] sm:$0xff] }
 0xd35   :  { %14369 = vmatpush1.bf16.msra.mxu1 %v14368_v40  ;;  %v14258_v40 = vpack.c.bf16 %v8669_v23, %v8663_v54  ;;  %v9954_v23 = vld [vmem:[%s18590_s21 + $0x1c0] sm:$0xff] }
 0xd36   :  { %14370 = vmatprep.subr.bf16.mxu1 %v15270_v9 }
 0xd37   :  { %14259 = vmatpush1.bf16.msra.mxu0 %v14258_v40  ;;  %v9955_v40 = vld [vmem:[%s18590_s21 + $0x1c8] sm:$0xff] }
 0xd39   :  { %14372 = vmatpush1.bf16.msra.mxu1 %v14371_v20  ;;  %v8672_v20 = vld [vmem:[%s18588_s13 + $0x48] sm:$0xff] }
 0xd3a   :  { %14373 = vmatprep.subr.bf16.mxu1 %v15270_v9  ;;  %v14260_v24 = vpack.c.bf16 %v8672_v20, %v8666_v44 }
 0xd3c   :  { %14261 = vmatprep.subr.bf16.mxu0 %v14260_v24  ;;  %v9938_v24 = vld [vmem:[%s18590_s21 + $0x140] sm:$0xff] }
 0xd3d   :  { %14375 = vmatpush1.bf16.msra.mxu1 %v14374_v13  ;;  %v9947_v13 = vld [vmem:[%s18590_s21 + $0x188] sm:$0xff] }
 0xd3e   :  { %14376 = vmatprep.subr.bf16.mxu1 %v15270_v9  ;;  %v14476_v56 = vpack.c.bf16 %v9947_v13, %v9946_v38  ;;  %v14490_v38 = vpack.c.bf16 %v9937_v8, %v9936_v39  ;;  %v14492_v13 = vpack.c.bf16 %v9955_v40, %v9954_v23  ;;  %v9944_v8 = vld [vmem:[%s18590_s21 + $0x170] sm:$0xff] }
 0xd41   :  { %14378 = vmatpush1.bf16.msra.mxu1 %v14377_v28  ;;  %v9931_v28 = vld [vmem:[%s18590_s21 + $0x108] sm:$0xff] }
 0xd42   :  { %14379 = vmatprep.subr.bf16.mxu1 %v15270_v9  ;;  %v14478_v62 = vpack.c.bf16 %v9931_v28, %v9930_v46  ;;  %v9939_v46 = vld [vmem:[%s18590_s21 + $0x148] sm:$0xff] }
 0xd45   :  { %14381 = vmatpush1.bf16.msra.mxu1 %v14380_v49  ;;  %v9098_v49 = vld [vmem:[%s18587_s9 + $0x3e0] sm:$0xff] }
 0xd46   :  { %14382 = vmatprep.subr.bf16.mxu1 %v15270_v9 }
 0xd49   :  { %14384 = vmatpush1.bf16.msra.mxu1 %v14383_v53  ;;  %v7786_v53 = vrot.slane %v17896_v45, %v15841_v14 }
 0xd4a   :  { %14385 = vmatprep.subr.bf16.mxu1 %v15270_v9 }
 0xd4d   :  { %14387 = vmatpush1.bf16.msra.mxu1 %v14386_v42  ;;  %v9932_v42 = vld [vmem:[%s18590_s21 + $0x110] sm:$0xff] }
 0xd4e   :  { %14388 = vmatprep.subr.bf16.mxu1 %v15270_v9  ;;  %v14482_v4 = vpack.c.bf16 %v9933_v0, %v9932_v42  ;;  %v9940_v42 = vld [vmem:[%s18590_s21 + $0x150] sm:$0xff]  ;;  %v9941_v0 = vld [vmem:[%s18590_s21 + $0x158] sm:$0xff] }
 0xd51   :  { %14390 = vmatpush1.bf16.msra.mxu1 %v14389_v52  ;;  %v9950_v52 = vld [vmem:[%s18590_s21 + $0x1a0] sm:$0xff] }
 0xd52   :  { %14391 = vmatprep.subr.bf16.mxu1 %v15270_v9 }
 0xd55   :  { %14393 = vmatpush1.bf16.msra.mxu1 %v14392_v17 }
 0xd56   :  { %14394 = vmatprep.subr.bf16.mxu1 %v15270_v9 }
 0xd59   :  { %14396 = vmatpush1.bf16.msra.mxu1 %v14395_v22  ;;  %v14484_v22 = vpack.c.bf16 %v9951_v6, %v9950_v52  ;;  %v9958_v6 = vld [vmem:[%s18590_s21 + $0x1e0] sm:$0xff] }
 0xd5a   :  { %14397 = vmatprep.subr.bf16.mxu1 %v15270_v9 }
 0xd5d   :  { %14399 = vmatpush1.bf16.msra.mxu1 %v14398_v61 }
 0xd5e   :  { %14400 = vmatprep.subr.bf16.mxu1 %v15270_v9 }
 0xd61   :  { %14402 = vmatpush1.bf16.msra.mxu1 %v14401_v36  ;;  %v7790_v36 = vrot.slane %v17896_v45, %v15884_v57 }
 0xd62   :  { %14403 = vmatprep.subr.bf16.mxu1 %v15270_v9 }
 0xd65   :  { %14405 = vmatpush1.bf16.msra.mxu1 %v14404_v41 }
 0xd66   :  { %9366 = vmatprep.subr.mxu1 %v15268_v1 }
 0xd69   :  { %9367 = vmatpush1.msra.mxu1 %v9098_v49  ;;  %v7893_v3 = vpop.f32.mrb[78].mxu1  ;;  %v7798_v49 = vrot.slane %v17896_v45, %v15898_v5 }
 0xd6a   :  { %v7894_v11 = vadd.f32 %v7893_v3, %v7782_v18  ;;  %9375 = vmatmul.mubr.f32.vlgmr.msra.gmra.mrb[94].mxu1 %v15982_v47  ;;  %14477 = vmatprep.subr.bf16.mxu1 %v14476_v56  ;;  %v7895_v17 = vpop.f32.mrb[79].mxu1 }
 0xd6b   :  { %v7896_v21 = vadd.f32 %v7895_v17, %v7786_v53  ;;  %14479 = vmatpush3.bf16.msra.mxu1 %v14478_v62  ;;  %10158 = vmatprep.mubr.f32.mxu1 %v15910_v30  ;;  %v7802_v53 = vrot.slane %v17896_v45, %v15844_v15  ;;  %v14494_v62 = vpack.c.bf16 %v9939_v46, %v9938_v24 }
 0xd6c   :  { %14481 = vmatprep.subr.bf16.mxu1 %v14480_v60  ;;  %v14496_v60 = vpack.c.bf16 %v9957_v51, %v9956_v48  ;;  %v9996_v51 = vld [vmem:[%s18590_s21 + $0x310] sm:$0xff] }
 0xd6d   :  { %v8190_v61 = vcombine.low %v7894_v11, %v7896_v21  ;;  %v9959_v11 = vld [vmem:[%s18590_s21 + $0x1e8] sm:$0xff] }
 0xd6e   :  { %v14500_v19 = vpack.c.bf16 %v9959_v11, %v9958_v6  ;;  %v9998_v6 = vld [vmem:[%s18590_s21 + $0x320] sm:$0xff]  ;;  %v9999_v11 = vld [vmem:[%s18590_s21 + $0x328] sm:$0xff] }
 0xd6f   :  { %14483 = vmatpush3.bf16.msra.mxu1 %v14482_v4  ;;  %v8200_v18 = vrot.slane %v8190_v61, %v16188_v58  ;;  %v9943_v61 = vld [vmem:[%s18590_s21 + $0x168] sm:$0xff] }
 0xd70   :  { %14485 = vmatprep.subr.bf16.mxu1 %v14484_v22  ;;  %v14498_v22 = vpack.c.bf16 %v9941_v0, %v9940_v42 }
 0xd71   :  { %v7964_v54 = vpop.f32.mrb[80].mxu1 }
 0xd72   :  { %v7965_v41 = vadd.f32 %v7964_v54, %v7790_v36  ;;  %v7966_v44 = vpop.f32.mrb[81].mxu1  ;;  %v9961_v36 = vld [vmem:[%s18590_s21 + $0x1f8] sm:$0xff] }
 0xd73   :  { %v7967_v20 = vadd.f32 %v7966_v44, %v7794_v34  ;;  %14487 = vmatpush3.bf16.msra.mxu1 %v14486_v37  ;;  %v7806_v34 = vrot.slane %v17896_v45, %v15966_v27  ;;  %v7810_v37 = vrot.slane %v17896_v45, %v15933_v50  ;;  %v14504_v39 = vpack.c.bf16 %v9961_v36, %v9960_v63  ;;  %v9945_v54 = vld [vmem:[%s18590_s21 + $0x178] sm:$0xff]  ;;  %v10004_v63 = vld [vmem:[%s18590_s21 + $0x350] sm:$0xff] }
 0xd74   :  { %14489 = vmatprep.subr.bf16.mxu1 %v14488_v7  ;;  %v14502_v7 = vpack.c.bf16 %v9943_v61, %v9942_v55  ;;  %v10002_v55 = vld [vmem:[%s18590_s21 + $0x340] sm:$0xff]  ;;  %v10003_v61 = vld [vmem:[%s18590_s21 + $0x348] sm:$0xff]  ;;  %v10005_v36 = vld [vmem:[%s18590_s21 + $0x358] sm:$0xff] }
 0xd75   :  { %v8191_v28 = vcombine.low %v7965_v41, %v7967_v20  ;;  %v14506_v20 = vpack.c.bf16 %v9945_v54, %v9944_v8  ;;  %v10008_v8 = vld [vmem:[%s18590_s21 + $0x370] sm:$0xff]  ;;  %v10009_v54 = vld [vmem:[%s18590_s21 + $0x378] sm:$0xff] }
 0xd77   :  { %v8207_v56 = vrot.slane %v8191_v28, %v16188_v58  ;;  %14491 = vmatpush3.bf16.msra.mxu1 %v14490_v38  ;;  %v9994_v38 = vld [vmem:[%s18590_s21 + $0x300] sm:$0xff]  ;;  %v11166_v28 = vld [vmem:[%s18589_s17 + $0x8] ss:$0 sm:$0xff] }
 0xd78   :  { %14493 = vmatprep.subr.bf16.mxu1 %v14492_v13  ;;  %v9995_v13 = vld [vmem:[%s18590_s21 + $0x308] sm:$0xff] }
 0xd79   :  { %v8222_v3 = vcombine.low %v8200_v18, %v8207_v56  ;;  %v8035_v52 = vpop.f32.mrb[82].mxu1  ;;  %v14541_v48 = vpack.c.bf16 %v9995_v13, %v9994_v38  ;;  %v10012_v38 = vld [vmem:[%s18590_s21 + $0x390] sm:$0xff]  ;;  %v10013_v13 = vld [vmem:[%s18590_s21 + $0x398] sm:$0xff] }
 0xd7a   :  { %v8036_v17 = vadd.f32 %v8035_v52, %v7798_v49  ;;  %v8037_v21 = vpop.f32.mrb[83].mxu1  ;;  %v9997_v49 = vld [vmem:[%s18590_s21 + $0x318] sm:$0xff] }
 0xd7b   :  { %v8038_v4 = vadd.f32 %v8037_v21, %v7802_v53  ;;  %14495 = vmatpush3.bf16.msra.mxu1 %v14494_v62  ;;  %v8230_v42 = vrot.slane %v8222_v3, %v16188_v58  ;;  %v10000_v3 = vld [vmem:[%s18590_s21 + $0x330] sm:$0xff] }
 0xd7c   :  { %14497 = vmatprep.subr.bf16.mxu1 %v14496_v60  ;;  %v14544_v60 = vpack.c.bf16 %v9997_v49, %v9996_v51  ;;  %v10014_v51 = vld [vmem:[%s18590_s21 + $0x3a0] sm:$0xff]  ;;  %v10015_v49 = vld [vmem:[%s18590_s21 + $0x3a8] sm:$0xff] }
 0xd7d   :  { %v8192_v25 = vcombine.low %v8036_v17, %v8038_v4  ;;  %v14547_v4 = vpack.c.bf16 %v9999_v11, %v9998_v6  ;;  %v10021_v6 = vld [vmem:[%s18590_s21 + $0x3d8] sm:$0xff] }
 0xd7f   :  { %14499 = vmatpush3.bf16.msra.mxu1 %v14498_v22  ;;  %v8214_v45 = vrot.slane %v8192_v25, %v16188_v58  ;;  %v10001_v22 = vld [vmem:[%s18590_s21 + $0x338] sm:$0xff]  ;;  %v14553_v25 = vpack.c.bf16 %v10003_v61, %v10002_v55  ;;  %v10022_v55 = vld [vmem:[%s18590_s21 + $0x3e0] sm:$0xff] }
 0xd80   :  { %14501 = vmatprep.subr.bf16.mxu1 %v14500_v19  ;;  %v14550_v19 = vpack.c.bf16 %v10001_v22, %v10000_v3  ;;  %v10419_v3 = vld [vmem:[%s18592_s29 + $0x108] sm:$0xff]  ;;  %v10436_v22 = vld [vmem:[%s18592_s29 + $0x190] sm:$0xff] }
 0xd81   :  { %v8106_v23 = vpop.f32.mrb[84].mxu1 }
 0xd82   :  { %v8107_v40 = vadd.f32 %v8106_v23, %v7806_v34  ;;  %v8108_v41 = vpop.f32.mrb[85].mxu1  ;;  %v14556_v34 = vpack.c.bf16 %v10005_v36, %v10004_v63  ;;  %v14562_v23 = vpack.c.bf16 %v10009_v54, %v10008_v8  ;;  %v10420_v36 = vld [vmem:[%s18592_s29 + $0x110] sm:$0xff]  ;;  %v10422_v54 = vld [vmem:[%s18592_s29 + $0x120] sm:$0xff] }
 0xd83   :  { %v8109_v44 = vadd.f32 %v8108_v41, %v7810_v37  ;;  %14503 = vmatpush3.bf16.msra.mxu1 %v14502_v7  ;;  %v10006_v37 = vld [vmem:[%s18590_s21 + $0x360] sm:$0xff]  ;;  %v10007_v7 = vld [vmem:[%s18590_s21 + $0x368] sm:$0xff] }
 0xd84   :  { %14505 = vmatprep.subr.bf16.mxu1 %v14504_v39  ;;  %v14559_v39 = vpack.c.bf16 %v10007_v7, %v10006_v37  ;;  %v10011_v41 = vld [vmem:[%s18590_s21 + $0x388] sm:$0xff]  ;;  %v10438_v37 = vld [vmem:[%s18592_s29 + $0x1a0] sm:$0xff] }
 0xd85   :  { %v8193_v24 = vcombine.low %v8107_v40, %v8109_v44  ;;  %v10010_v40 = vld [vmem:[%s18590_s21 + $0x380] sm:$0xff]  ;;  %v10439_v7 = vld [vmem:[%s18592_s29 + $0x1a8] sm:$0xff] }
 0xd86   :  { %v14565_v44 = vpack.c.bf16 %v10011_v41, %v10010_v40  ;;  %v14622_v8 = vpack.c.bf16 %v10439_v7, %v10438_v37  ;;  %v10440_v40 = vld [vmem:[%s18592_s29 + $0x1b0] sm:$0xff]  ;;  %v10441_v41 = vld [vmem:[%s18592_s29 + $0x1b8] sm:$0xff] }
 0xd87   :  { %v8221_v46 = vrot.slane %v8193_v24, %v16188_v58  ;;  %14507 = vmatpush3.bf16.msra.mxu1 %v14506_v20  ;;  %v8382_v20 = vld [vmem:[%s18591_s25] sm:$0x1]  ;;  %v8674_v37 = vld [vmem:[%s18588_s13 + $0x58] sm:$0xff]  ;;  %v10484_v7 = vld [vmem:[%s18592_s29 + $0x310] sm:$0xff] }
 0xd88   :  { %14540 = vmatprep.subr.bf16.mxu1 %v15270_v9 }
 0xd89   :  { %v8223_v18 = vcombine.low %v8214_v45, %v8221_v46  ;;  %v8177_v56 = vpop.f32.mrb[86].mxu1  ;;  %v8450_v46 = vadd.f32 %v17732_v16, %v8382_v20  ;;  %v10016_v16 = vld [vmem:[%s18590_s21 + $0x3b0] sm:$0xff]  ;;  %v14626_v20 = vpack.c.bf16 %v10441_v41, %v10440_v40 }
 0xd8a   :  { %v8178_v53 = vadd.f32 %v11166_v28, %v8177_v56  ;;  %v12592_v62 = vpop.f32.mrb[87].mxu1  ;;  %10159 = vmatmul.mubr.f32.vlgmr.msra.gmra.mrb[96].mxu1 %v15912_v33  ;;  %v14571_v56 = vpack.c.bf16 %v10015_v49, %v10014_v51  ;;  %v10444_v51 = vld [vmem:[%s18592_s29 + $0x1d0] sm:$0xff]  ;;  %v10445_v49 = vld [vmem:[%s18592_s29 + $0x1d8] sm:$0xff] }
 0xd8b   :  { %14542 = vmatpush1.bf16.msra.mxu1 %v14541_v48  ;;  %11183 = vmatprep.mubr.msk.f32.mxu1 %vm983_vm5, %v15946_v2  ;;  %v8237_v0 = vrot.slane %v8223_v18, %v16188_v58  ;;  %v14568_v48 = vpack.c.bf16 %v10013_v13, %v10012_v38  ;;  %v10017_v62 = vld [vmem:[%s18590_s21 + $0x3b8] sm:$0xff]  ;;  %v10424_v38 = vld [vmem:[%s18592_s29 + $0x130] sm:$0xff] }
 0xd8c   :  { %v8245_v52 = vrot.slane %v8178_v53, %v16188_v58  ;;  %14543 = vmatprep.subr.bf16.mxu1 %v15270_v9  ;;  %v10425_v13 = vld [vmem:[%s18592_s29 + $0x138] sm:$0xff] }
 0xd8d   :  { %v8238_v17 = vcombine.low %v8230_v42, %v8237_v0  ;;  %v10018_v42 = vld [vmem:[%s18590_s21 + $0x3c0] sm:$0xff]  ;;  %v10019_v0 = vld [vmem:[%s18590_s21 + $0x3c8] sm:$0xff] }
 0xd8e   :  { %v8252_v21 = vrot.slane %v8245_v52, %v16188_v58  ;;  %v10020_v52 = vld [vmem:[%s18590_s21 + $0x3d0] sm:$0xff] }
 0xd8f   :  { %14545 = vmatpush1.bf16.msra.mxu1 %v14544_v60  ;;  %8255 = vst [vmem:[#allocation22] sm:$0xff] %v8238_v17  ;;  %v14574_v60 = vpack.c.bf16 %v10017_v62, %v10016_v16  ;;  %v14580_v11 = vpack.c.bf16 %v10021_v6, %v10020_v52  ;;  %v10434_v17 = vld [vmem:[%s18592_s29 + $0x180] sm:$0xff]  ;;  %v10428_v16 = vld [vmem:[%s18592_s29 + $0x150] sm:$0xff]  ;;  %v10429_v62 = vld [vmem:[%s18592_s29 + $0x158] sm:$0xff] }
 0xd90   :  { %14546 = vmatprep.subr.bf16.mxu1 %v15270_v9  ;;  %8256 = vst.msk [vmem:[#allocation22 + $0x8] sm:$0x1] %vm16417_vm8, %v8252_v21  ;;  %v10435_v21 = vld [vmem:[%s18592_s29 + $0x188] sm:$0xff]  ;;  %v10430_v52 = vld [vmem:[%s18592_s29 + $0x160] sm:$0xff] }
 0xd91   :  { %v14614_v61 = vpack.c.bf16 %v10435_v21, %v10434_v17  ;;  %v10431_v6 = vld [vmem:[%s18592_s29 + $0x168] sm:$0xff]  ;;  %v10449_v17 = vld [vmem:[%s18592_s29 + $0x1f8] sm:$0xff] }
 0xd92   :  { %v14640_v21 = vpack.c.bf16 %v10431_v6, %v10430_v52  ;;  %v10490_v52 = vld [vmem:[%s18592_s29 + $0x340] sm:$0xff]  ;;  %v10491_v6 = vld [vmem:[%s18592_s29 + $0x348] sm:$0xff] }
 0xd93   :  { %14548 = vmatpush1.bf16.msra.mxu1 %v14547_v4  ;;  %v10418_v4 = vld [vmem:[%s18592_s29 + $0x100] sm:$0xff] }
 0xd94   :  { %14549 = vmatprep.subr.bf16.mxu1 %v15270_v9 }
 0xd97   :  { %14551 = vmatpush1.bf16.msra.mxu1 %v14550_v19  ;;  %v10437_v19 = vld [vmem:[%s18592_s29 + $0x198] sm:$0xff] }
 0xd98   :  { %14552 = vmatprep.subr.bf16.mxu1 %v15270_v9  ;;  %v14618_v63 = vpack.c.bf16 %v10437_v19, %v10436_v22  ;;  %v10433_v22 = vld [vmem:[%s18592_s29 + $0x178] sm:$0xff] }
 0xd9b   :  { %14554 = vmatpush1.bf16.msra.mxu1 %v14553_v25  ;;  %v14616_v25 = vpack.c.bf16 %v10419_v3, %v10418_v4  ;;  %v10432_v3 = vld [vmem:[%s18592_s29 + $0x170] sm:$0xff] }
 0xd9c   :  { %14555 = vmatprep.subr.bf16.mxu1 %v15270_v9  ;;  %v14644_v19 = vpack.c.bf16 %v10433_v22, %v10432_v3  ;;  %v14691_v3 = vpack.c.bf16 %v10491_v6, %v10490_v52  ;;  %v8996_v22 = vld [vmem:[%s18587_s9 + $0xb0] sm:$0xff]  ;;  %v10501_v52 = vld [vmem:[%s18592_s29 + $0x398] sm:$0xff] }
 0xd9f   :  { %14557 = vmatpush1.bf16.msra.mxu1 %v14556_v34  ;;  %v10421_v34 = vld [vmem:[%s18592_s29 + $0x118] sm:$0xff] }
 0xda0   :  { %14558 = vmatprep.subr.bf16.mxu1 %v15270_v9 }
 0xda3   :  { %14560 = vmatpush1.bf16.msra.mxu1 %v14559_v39  ;;  %v14620_v39 = vpack.c.bf16 %v10421_v34, %v10420_v36  ;;  %v8668_v34 = vld [vmem:[%s18588_s13 + $0x28] sm:$0xff] }
 0xda4   :  { %14561 = vmatprep.subr.bf16.mxu1 %v15270_v9  ;;  %v14264_v41 = vpack.c.bf16 %v8674_v37, %v8668_v34  ;;  %v8981_v34 = vld [vmem:[%s18587_s9 + $0x38] sm:$0xff] }
 0xda7   :  { %14563 = vmatpush1.bf16.msra.mxu1 %v14562_v23  ;;  %v10423_v23 = vld [vmem:[%s18592_s29 + $0x128] sm:$0xff] }
 0xda8   :  { %14564 = vmatprep.subr.bf16.mxu1 %v15270_v9 }
 0xda9   :  { %v12138_v24 = vpop.f32.mrb[88].mxu1 }
 0xdaa   :  { %v12139_v45 = vpop.f32.mrb[89].mxu1 }
 0xdab   :  { %v12140_v28 = vadd.f32 %v12139_v45, %v12138_v24  ;;  %14566 = vmatpush1.bf16.msra.mxu1 %v14565_v44  ;;  %v14624_v44 = vpack.c.bf16 %v10423_v23, %v10422_v54  ;;  %v10443_v24 = vld [vmem:[%s18592_s29 + $0x1c8] sm:$0xff]  ;;  %v14628_v45 = vpack.c.bf16 %v10425_v13, %v10424_v38  ;;  %v8990_v13 = vld [vmem:[%s18587_s9 + $0x80] sm:$0xff] }
 0xdac   :  { %14567 = vmatprep.subr.bf16.mxu1 %v15270_v9 }
 0xdad   :  { %v8520_v18 = vadd.f32 %v12140_v28, %v8450_v46  ;;  %v10426_v28 = vld [vmem:[%s18592_s29 + $0x140] sm:$0xff] }
 0xdaf   :  { %14569 = vmatpush1.bf16.msra.mxu1 %v14568_v48  ;;  %v17999_v53 = vadd.f32 %v17766_v26, %v8520_v18  ;;  %v14577_v26 = vpack.c.bf16 %v10019_v0, %v10018_v42  ;;  %v10427_v48 = vld [vmem:[%s18592_s29 + $0x148] sm:$0xff]  ;;  %v14636_v0 = vpack.c.bf16 %v10429_v62, %v10428_v16  ;;  %v8976_v62 = vld [vmem:[%s18587_s9 + $0x10] sm:$0xff] }
 0xdb0   :  { %14570 = vmatprep.subr.bf16.mxu1 %v15270_v9  ;;  %v14632_v18 = vpack.c.bf16 %v10427_v48, %v10426_v28  ;;  %v10447_v42 = vld [vmem:[%s18592_s29 + $0x1e8] sm:$0xff]  ;;  %v8992_v48 = vld [vmem:[%s18587_s9 + $0x90] sm:$0xff] }
 0xdb3   :  { %14572 = vmatpush1.bf16.msra.mxu1 %v14571_v56  ;;  %v14634_v56 = vpack.c.bf16 %v10445_v49, %v10444_v51  ;;  %v8993_v51 = vld [vmem:[%s18587_s9 + $0x98] sm:$0xff]  ;;  %v10488_v49 = vld [vmem:[%s18592_s29 + $0x330] sm:$0xff] }
 0xdb4   :  { %14573 = vmatprep.subr.bf16.mxu1 %v15270_v9  ;;  %v14272_v16 = vpack.c.bf16 %v8993_v51, %v8992_v48  ;;  %v9003_v48 = vld [vmem:[%s18587_s9 + $0xe8] sm:$0xff]  ;;  %v10498_v51 = vld [vmem:[%s18592_s29 + $0x380] sm:$0xff] }
 0xdb7   :  { %14575 = vmatpush1.bf16.msra.mxu1 %v14574_v60  ;;  %v10446_v60 = vld [vmem:[%s18592_s29 + $0x1e0] sm:$0xff] }
 0xdb8   :  { %14576 = vmatprep.subr.bf16.mxu1 %v15270_v9 }
 0xdbb   :  { %14578 = vmatpush1.bf16.msra.mxu1 %v14577_v26  ;;  %v14638_v26 = vpack.c.bf16 %v10447_v42, %v10446_v60  ;;  %v8977_v60 = vld [vmem:[%s18587_s9 + $0x18] sm:$0xff] }
 0xdbc   :  { %14579 = vmatprep.subr.bf16.mxu1 %v15270_v9 }
 0xdbf   :  { %14581 = vmatpush1.bf16.msra.mxu1 %v14580_v11  ;;  %v10448_v11 = vld [vmem:[%s18592_s29 + $0x1f0] sm:$0xff] }
 0xdc0   :  { %10290 = vmatprep.subr.mxu1 %v15268_v1  ;;  %v14642_v4 = vpack.c.bf16 %v10449_v17, %v10448_v11  ;;  %v14274_v11 = vpack.c.bf16 %v8977_v60, %v8976_v62  ;;  %v8987_v62 = vld [vmem:[%s18587_s9 + $0x68] sm:$0xff] }
 0xdc3   :  { %10291 = vmatpush1.msra.mxu1 %v10022_v55  ;;  %v10482_v55 = vld [vmem:[%s18592_s29 + $0x300] sm:$0xff] }
 0xdc4   :  { %10299 = vmatmul.mubr.f32.vlgmr.msra.gmra.mrb[98].mxu1 %v15982_v47  ;;  %14615 = vmatprep.subr.bf16.mxu1 %v14614_v61  ;;  %v10483_v61 = vld [vmem:[%s18592_s29 + $0x308] sm:$0xff] }
 0xdc5   :  { %14617 = vmatpush3.bf16.msra.mxu1 %v14616_v25  ;;  %10646 = vmatprep.mubr.f32.mxu1 %v15910_v30  ;;  %v10442_v30 = vld [vmem:[%s18592_s29 + $0x1c0] sm:$0xff]  ;;  %v8665_v25 = vld [vmem:[%s18588_s13 + $0x10] sm:$0xff]  ;;  %v14679_v36 = vpack.c.bf16 %v10483_v61, %v10482_v55  ;;  %v10493_v61 = vld [vmem:[%s18592_s29 + $0x358] sm:$0xff] }
 0xdc6   :  { %14619 = vmatprep.subr.bf16.mxu1 %v14618_v63  ;;  %v14630_v46 = vpack.c.bf16 %v10443_v24, %v10442_v30  ;;  %v8671_v63 = vld [vmem:[%s18588_s13 + $0x40] sm:$0xff]  ;;  %v8991_v30 = vld [vmem:[%s18587_s9 + $0x88] sm:$0xff]  ;;  %v10492_v55 = vld [vmem:[%s18592_s29 + $0x350] sm:$0xff] }
 0xdc7   :  { %v14262_v54 = vpack.c.bf16 %v8671_v63, %v8665_v25  ;;  %v14694_v37 = vpack.c.bf16 %v10493_v61, %v10492_v55  ;;  %v9054_v55 = vld [vmem:[%s18587_s9 + $0x280] sm:$0xff]  ;;  %v9055_v61 = vld [vmem:[%s18587_s9 + $0x288] sm:$0xff] }
 0xdc9   :  { %14621 = vmatpush3.bf16.msra.mxu1 %v14620_v39  ;;  %v10485_v39 = vld [vmem:[%s18592_s29 + $0x318] sm:$0xff] }
 0xdca   :  { %14623 = vmatprep.subr.bf16.mxu1 %v14622_v8  ;;  %v14682_v38 = vpack.c.bf16 %v10485_v39, %v10484_v7  ;;  %v8998_v7 = vld [vmem:[%s18587_s9 + $0xc0] sm:$0xff]  ;;  %v8999_v39 = vld [vmem:[%s18587_s9 + $0xc8] sm:$0xff] }
 0xdcd   :  { %14625 = vmatpush3.bf16.msra.mxu1 %v14624_v44  ;;  %v8667_v44 = vld [vmem:[%s18588_s13 + $0x20] sm:$0xff] }
 0xdce   :  { %14627 = vmatprep.subr.bf16.mxu1 %v14626_v20  ;;  %v8673_v20 = vld [vmem:[%s18588_s13 + $0x50] sm:$0xff] }
 0xdcf   :  { %v14266_v24 = vpack.c.bf16 %v8673_v20, %v8667_v44  ;;  %v8983_v44 = vld [vmem:[%s18587_s9 + $0x48] sm:$0xff] }
 0xdd1   :  { %14629 = vmatpush3.bf16.msra.mxu1 %v14628_v45  ;;  %v14268_v45 = vpack.c.bf16 %v8991_v30, %v8990_v13  ;;  %v9001_v13 = vld [vmem:[%s18587_s9 + $0xd8] sm:$0xff]  ;;  %v10496_v30 = vld [vmem:[%s18592_s29 + $0x370] sm:$0xff] }
 0xdd2   :  { %14631 = vmatprep.subr.bf16.mxu1 %v14630_v46  ;;  %v8975_v46 = vld [vmem:[%s18587_s9 + $0x8] sm:$0xff] }
 0xdd5   :  { %14633 = vmatpush3.bf16.msra.mxu1 %v14632_v18  ;;  %v10489_v18 = vld [vmem:[%s18592_s29 + $0x338] sm:$0xff] }
 0xdd6   :  { %14635 = vmatprep.subr.bf16.mxu1 %v14634_v56  ;;  %v14688_v42 = vpack.c.bf16 %v10489_v18, %v10488_v49  ;;  %v10499_v49 = vld [vmem:[%s18592_s29 + $0x388] sm:$0xff] }
 0xdd7   :  { %v14703_v60 = vpack.c.bf16 %v10499_v49, %v10498_v51  ;;  %v9060_v51 = vld [vmem:[%s18587_s9 + $0x2b0] sm:$0xff]  ;;  %v9061_v49 = vld [vmem:[%s18587_s9 + $0x2b8] sm:$0xff] }
 0xdd9   :  { %14637 = vmatpush3.bf16.msra.mxu1 %v14636_v0  ;;  %v8994_v0 = vld [vmem:[%s18587_s9 + $0xa0] sm:$0xff] }
 0xdda   :  { %14639 = vmatprep.subr.bf16.mxu1 %v14638_v26  ;;  %v8995_v26 = vld [vmem:[%s18587_s9 + $0xa8] sm:$0xff] }
 0xddb   :  { %v14276_v17 = vpack.c.bf16 %v8995_v26, %v8994_v0  ;;  %v9005_v0 = vld [vmem:[%s18587_s9 + $0xf8] sm:$0xff]  ;;  %v10500_v26 = vld [vmem:[%s18592_s29 + $0x390] sm:$0xff] }
 0xddd   :  { %14641 = vmatpush3.bf16.msra.mxu1 %v14640_v21  ;;  %v8978_v21 = vld [vmem:[%s18587_s9 + $0x20] sm:$0xff] }
 0xdde   :  { %14643 = vmatprep.subr.bf16.mxu1 %v14642_v4  ;;  %v8979_v4 = vld [vmem:[%s18587_s9 + $0x28] sm:$0xff] }
 0xddf   :  { %v14278_v25 = vpack.c.bf16 %v8979_v4, %v8978_v21  ;;  %v8988_v4 = vld [vmem:[%s18587_s9 + $0x70] sm:$0xff] }
 0xde1   :  { %14645 = vmatpush3.bf16.msra.mxu1 %v14644_v19  ;;  %v8997_v19 = vld [vmem:[%s18587_s9 + $0xb8] sm:$0xff] }
 0xde2   :  { %14678 = vmatprep.subr.bf16.mxu1 %v15270_v9  ;;  %v14280_v63 = vpack.c.bf16 %v8997_v19, %v8996_v22  ;;  %v14706_v19 = vpack.c.bf16 %v10501_v52, %v10500_v26  ;;  %v9062_v26 = vld [vmem:[%s18587_s9 + $0x2c0] sm:$0xff]  ;;  %v9063_v52 = vld [vmem:[%s18587_s9 + $0x2c8] sm:$0xff] }
 0xde3   :  { %v8659_v8 = vpop.f32.mrb[90].mxu1 }
 0xde4   :  { %v8660_v23 = vadd.f32 %v8659_v8, %v17999_v53  ;;  %v8661_v40 = vpop.f32.mrb[91].mxu1  ;;  %10647 = vmatmul.mubr.f32.vlgmr.msra.gmra.mrb[100].mxu1 %v15912_v33  ;;  %v10486_v33 = vld [vmem:[%s18592_s29 + $0x320] sm:$0xff]  ;;  %v10487_v53 = vld [vmem:[%s18592_s29 + $0x328] sm:$0xff] }
 0xde5   :  { %14680 = vmatpush1.bf16.msra.mxu1 %v14679_v36  ;;  %11186 = vmatprep.mubr.msk.f32.mxu1 %vm983_vm5, %v15946_v2  ;;  %v8974_v2 = vld [vmem:[%s18587_s9] sm:$0xff]  ;;  %v14685_v28 = vpack.c.bf16 %v10487_v53, %v10486_v33  ;;  %v8980_v36 = vld [vmem:[%s18587_s9 + $0x30] sm:$0xff]  ;;  %v14284_v40 = vpack.c.bf16 %v8999_v39, %v8998_v7  ;;  %v10497_v33 = vld [vmem:[%s18592_s29 + $0x378] sm:$0xff] }
 0xde6   :  { %11173 = vmatmul.mubr.msk.f32.vlgmr.msra.gmra.mrb[70].mxu0 %vm8707_vm9, %v8660_v23  ;;  %14681 = vmatprep.subr.bf16.mxu1 %v15270_v9  ;;  %v14270_v56 = vpack.c.bf16 %v8975_v46, %v8974_v2  ;;  %v10494_v8 = vld [vmem:[%s18592_s29 + $0x360] sm:$0xff]  ;;  %v8985_v2 = vld [vmem:[%s18587_s9 + $0x58] sm:$0xff]  ;;  %v14700_v46 = vpack.c.bf16 %v10497_v33, %v10496_v30  ;;  %v9039_v7 = vld [vmem:[%s18587_s9 + $0x208] sm:$0xff] }
 0xde7   :  { %14263 = vmatpush1.bf16.msra.mxu0 %v14262_v54  ;;  %8846 = vmatprep.mubr.f32.mxu0 %v15268_v1  ;;  %v10495_v54 = vld [vmem:[%s18592_s29 + $0x368] sm:$0xff]  ;;  %v9058_v30 = vld [vmem:[%s18587_s9 + $0x2a0] sm:$0xff] }
 0xde8   :  { %14265 = vmatprep.subr.bf16.mxu0 %v14264_v41  ;;  %v8982_v41 = vld [vmem:[%s18587_s9 + $0x40] sm:$0xff]  ;;  %v14697_v20 = vpack.c.bf16 %v10495_v54, %v10494_v8  ;;  %v9056_v8 = vld [vmem:[%s18587_s9 + $0x290] sm:$0xff]  ;;  %v9057_v54 = vld [vmem:[%s18587_s9 + $0x298] sm:$0xff] }
 0xde9   :  { %14683 = vmatpush1.bf16.msra.mxu1 %v14682_v38  ;;  %v9000_v38 = vld [vmem:[%s18587_s9 + $0xd0] sm:$0xff]  ;;  %v14286_v53 = vpack.c.bf16 %v8983_v44, %v8982_v41  ;;  %v14336_v44 = vpack.c.bf16 %v9057_v54, %v9056_v8  ;;  %v9059_v33 = vld [vmem:[%s18587_s9 + $0x2a8] sm:$0xff] }
 0xdea   :  { %11174 = vmatmul.mubr.msk.f32.vlgmr.msra.gmra.mrb[72].mxu0 %vm8707_vm9, %v8660_v23  ;;  %14684 = vmatprep.subr.bf16.mxu1 %v15270_v9  ;;  %v9051_v8 = vld [vmem:[%s18587_s9 + $0x268] sm:$0xff]  ;;  %v9068_v54 = vld [vmem:[%s18587_s9 + $0x2f0] sm:$0xff] }
 0xdeb   :  { %14267 = vmatpush1.bf16.msra.mxu0 %v14266_v24  ;;  %8917 = vmatprep.mubr.f32.mxu0 %v15268_v1  ;;  %v14288_v24 = vpack.c.bf16 %v9001_v13, %v9000_v38  ;;  %v9041_v38 = vld [vmem:[%s18587_s9 + $0x218] sm:$0xff] }
 0xdec   :  { %14269 = vmatprep.subr.bf16.mxu0 %v14268_v45  ;;  %v8984_v45 = vld [vmem:[%s18587_s9 + $0x50] sm:$0xff] }
 0xded   :  { %14686 = vmatpush1.bf16.msra.mxu1 %v14685_v28  ;;  %v9002_v28 = vld [vmem:[%s18587_s9 + $0xe0] sm:$0xff]  ;;  %v14290_v18 = vpack.c.bf16 %v8985_v2, %v8984_v45  ;;  %v14340_v2 = vpack.c.bf16 %v9059_v33, %v9058_v30 }
 0xdee   :  { %11175 = vmatmul.mubr.msk.f32.vlgmr.msra.gmra.mrb[74].mxu0 %vm8707_vm9, %v8660_v23  ;;  %14687 = vmatprep.subr.bf16.mxu1 %v15270_v9  ;;  %v14282_v23 = vpack.c.bf16 %v8981_v34, %v8980_v36  ;;  %v14332_v34 = vpack.c.bf16 %v9055_v61, %v9054_v55 }
 0xdef   :  { %14271 = vmatpush3.bf16.msra.mxu0 %v14270_v56  ;;  %9164 = vmatprep.mubr.f32.mxu0 %v15858_v29  ;;  %v14292_v56 = vpack.c.bf16 %v9003_v48, %v9002_v28  ;;  %v9043_v28 = vld [vmem:[%s18587_s9 + $0x228] sm:$0xff] }
 0xdf0   :  { %14273 = vmatprep.subr.bf16.mxu0 %v14272_v16  ;;  %v8986_v16 = vld [vmem:[%s18587_s9 + $0x60] sm:$0xff] }
 0xdf1   :  { %14689 = vmatpush1.bf16.msra.mxu1 %v14688_v42  ;;  %v9004_v42 = vld [vmem:[%s18587_s9 + $0xf0] sm:$0xff] }
 0xdf2   :  { %14690 = vmatprep.subr.bf16.mxu1 %v15270_v9  ;;  %v14296_v21 = vpack.c.bf16 %v9005_v0, %v9004_v42  ;;  %v9045_v42 = vld [vmem:[%s18587_s9 + $0x238] sm:$0xff] }
 0xdf3   :  { %14275 = vmatpush3.bf16.msra.mxu0 %v14274_v11  ;;  %v14294_v11 = vpack.c.bf16 %v8987_v62, %v8986_v16  ;;  %v14344_v62 = vpack.c.bf16 %v9061_v49, %v9060_v51  ;;  %v9399_v51 = vld [vmem:[%s18593_s3 + $0x98] sm:$0xff]  ;;  %v9408_v49 = vld [vmem:[%s18593_s3 + $0xe0] sm:$0xff] }
 0xdf4   :  { %14277 = vmatprep.subr.bf16.mxu0 %v14276_v17 }
 0xdf5   :  { %14692 = vmatpush1.bf16.msra.mxu1 %v14691_v3  ;;  %v8989_v3 = vld [vmem:[%s18587_s9 + $0x78] sm:$0xff] }
 0xdf6   :  { %14693 = vmatprep.subr.bf16.mxu1 %v15270_v9  ;;  %v14298_v36 = vpack.c.bf16 %v8989_v3, %v8988_v4  ;;  %v9064_v4 = vld [vmem:[%s18587_s9 + $0x2d0] sm:$0xff]  ;;  %v9065_v3 = vld [vmem:[%s18587_s9 + $0x2d8] sm:$0xff] }
 0xdf7   :  { %14279 = vmatpush3.bf16.msra.mxu0 %v14278_v25  ;;  %v10502_v25 = vld [vmem:[%s18592_s29 + $0x3a0] sm:$0xff]  ;;  %v14352_v61 = vpack.c.bf16 %v9065_v3, %v9064_v4 }
 0xdf8   :  { %14281 = vmatprep.subr.bf16.mxu0 %v14280_v63  ;;  %v10503_v63 = vld [vmem:[%s18592_s29 + $0x3a8] sm:$0xff] }
 0xdf9   :  { %14695 = vmatpush1.bf16.msra.mxu1 %v14694_v37  ;;  %v9038_v37 = vld [vmem:[%s18587_s9 + $0x200] sm:$0xff]  ;;  %v14709_v39 = vpack.c.bf16 %v10503_v63, %v10502_v25  ;;  %v9048_v25 = vld [vmem:[%s18587_s9 + $0x250] sm:$0xff]  ;;  %v9049_v63 = vld [vmem:[%s18587_s9 + $0x258] sm:$0xff] }
 0xdfa   :  { %14696 = vmatprep.subr.bf16.mxu1 %v15270_v9  ;;  %v14334_v41 = vpack.c.bf16 %v9039_v7, %v9038_v37  ;;  %v14354_v37 = vpack.c.bf16 %v9049_v63, %v9048_v25 }
 0xdfb   :  { %14283 = vmatpush3.bf16.msra.mxu0 %v14282_v23  ;;  %v10504_v23 = vld [vmem:[%s18592_s29 + $0x3b0] sm:$0xff] }
 0xdfc   :  { %14285 = vmatprep.subr.bf16.mxu0 %v14284_v40  ;;  %v10505_v40 = vld [vmem:[%s18592_s29 + $0x3b8] sm:$0xff] }
 0xdfd   :  { %14698 = vmatpush1.bf16.msra.mxu1 %v14697_v20  ;;  %v9040_v20 = vld [vmem:[%s18587_s9 + $0x210] sm:$0xff]  ;;  %v14712_v13 = vpack.c.bf16 %v10505_v40, %v10504_v23  ;;  %v9069_v23 = vld [vmem:[%s18587_s9 + $0x2f8] sm:$0xff] }
 0xdfe   :  { %14699 = vmatprep.subr.bf16.mxu1 %v15270_v9  ;;  %v14338_v45 = vpack.c.bf16 %v9041_v38, %v9040_v20  ;;  %v9053_v20 = vld [vmem:[%s18587_s9 + $0x278] sm:$0xff] }
 0xdff   :  { %14287 = vmatpush3.bf16.msra.mxu0 %v14286_v53  ;;  %v10506_v53 = vld [vmem:[%s18592_s29 + $0x3c0] sm:$0xff] }
 0xe00   :  { %14289 = vmatprep.subr.bf16.mxu0 %v14288_v24  ;;  %v10507_v24 = vld [vmem:[%s18592_s29 + $0x3c8] sm:$0xff] }
 0xe01   :  { %14701 = vmatpush1.bf16.msra.mxu1 %v14700_v46  ;;  %v9042_v46 = vld [vmem:[%s18587_s9 + $0x220] sm:$0xff]  ;;  %v14715_v48 = vpack.c.bf16 %v10507_v24, %v10506_v53  ;;  %v9381_v24 = vld [vmem:[%s18593_s3 + $0x8] sm:$0xff] }
 0xe02   :  { %14702 = vmatprep.subr.bf16.mxu1 %v15270_v9  ;;  %v14342_v16 = vpack.c.bf16 %v9043_v28, %v9042_v46  ;;  %v9380_v46 = vld [vmem:[%s18593_s3] sm:$0xff]  ;;  %v9389_v28 = vld [vmem:[%s18593_s3 + $0x48] sm:$0xff] }
 0xe03   :  { %14291 = vmatpush3.bf16.msra.mxu0 %v14290_v18  ;;  %v12243_v6 = vpop.f32.mrb[92].mxu1  ;;  %v10508_v18 = vld [vmem:[%s18592_s29 + $0x3d0] sm:$0xff] }
 0xe04   :  { %v12244_v17 = vpop.f32.mrb[93].mxu1  ;;  %14293 = vmatprep.subr.bf16.mxu0 %v14292_v56  ;;  %v10509_v56 = vld [vmem:[%s18592_s29 + $0x3d8] sm:$0xff] }
 0xe05   :  { %v18124_v22 = vadd.f32 %v12244_v17, %v12243_v6  ;;  %14704 = vmatpush1.bf16.msra.mxu1 %v14703_v60  ;;  %v9044_v60 = vld [vmem:[%s18587_s9 + $0x230] sm:$0xff]  ;;  %v14718_v0 = vpack.c.bf16 %v10509_v56, %v10508_v18  ;;  %v9046_v17 = vld [vmem:[%s18587_s9 + $0x240] sm:$0xff]  ;;  %v14410_v18 = vpack.c.bf16 %v9408_v49, %v9399_v51 }
 0xe06   :  { %14705 = vmatprep.subr.bf16.mxu1 %v15270_v9  ;;  %v14346_v6 = vpack.c.bf16 %v9045_v42, %v9044_v60  ;;  %v9398_v56 = vld [vmem:[%s18593_s3 + $0x90] sm:$0xff]  ;;  %v9383_v60 = vld [vmem:[%s18593_s3 + $0x18] sm:$0xff]  ;;  %v9392_v42 = vld [vmem:[%s18593_s3 + $0x60] sm:$0xff] }
 0xe07   :  { %14295 = vmatpush3.bf16.msra.mxu0 %v14294_v11  ;;  %v14348_v11 = vpack.c.bf16 %v9063_v52, %v9062_v26  ;;  %v9099_v51 = vld [vmem:[#allocation3] sm:$0x1] }
 0xe08   :  { %14297 = vmatprep.subr.bf16.mxu0 %v14296_v21  ;;  %v9047_v21 = vld [vmem:[%s18587_s9 + $0x248] sm:$0xff] }
 0xe09   :  { %14707 = vmatpush1.bf16.msra.mxu1 %v14706_v19  ;;  %v10510_v19 = vld [vmem:[%s18592_s29 + $0x3e0] sm:$0xff]  ;;  %v14350_v55 = vpack.c.bf16 %v9047_v21, %v9046_v17 }
 0xe0a   :  { %14708 = vmatprep.subr.bf16.mxu1 %v15270_v9 }
 0xe0b   :  { %14299 = vmatpush3.bf16.msra.mxu0 %v14298_v36  ;;  %v9066_v36 = vld [vmem:[%s18587_s9 + $0x2e0] sm:$0xff] }
 0xe0c   :  { %14333 = vmatprep.subr.bf16.mxu0 %v14332_v34  ;;  %v9067_v34 = vld [vmem:[%s18587_s9 + $0x2e8] sm:$0xff] }
 0xe0d   :  { %14710 = vmatpush1.bf16.msra.mxu1 %v14709_v39  ;;  %v14356_v7 = vpack.c.bf16 %v9067_v34, %v9066_v36  ;;  %v9050_v39 = vld [vmem:[%s18587_s9 + $0x260] sm:$0xff] }
 0xe0e   :  { %9165 = vmatmul.mubr.f32.vlgmr.msra.gmra.mrb[76].mxu0 %v15860_v31  ;;  %14711 = vmatprep.subr.bf16.mxu1 %v15270_v9  ;;  %v14358_v40 = vpack.c.bf16 %v9051_v8, %v9050_v39 }
 0xe0f   :  { %14335 = vmatpush3.bf16.msra.mxu0 %v14334_v41  ;;  %9304 = vmatprep.mubr.f32.mxu0 %v15864_v35  ;;  %v14360_v41 = vpack.c.bf16 %v9069_v23, %v9068_v54 }
 0xe10   :  { %14337 = vmatprep.subr.bf16.mxu0 %v14336_v44  ;;  %v9052_v44 = vld [vmem:[%s18587_s9 + $0x270] sm:$0xff] }
 0xe11   :  { %14713 = vmatpush1.bf16.msra.mxu1 %v14712_v13 }
 0xe12   :  { %14714 = vmatprep.subr.bf16.mxu1 %v15270_v9 }
 0xe13   :  { %14339 = vmatpush3.bf16.msra.mxu0 %v14338_v45  ;;  %v9390_v45 = vld [vmem:[%s18593_s3 + $0x50] sm:$0xff] }
 0xe14   :  { %14341 = vmatprep.subr.bf16.mxu0 %v14340_v2  ;;  %v14406_v2 = vpack.c.bf16 %v9390_v45, %v9381_v24 }
 0xe15   :  { %14716 = vmatpush1.bf16.msra.mxu1 %v14715_v48  ;;  %v14408_v48 = vpack.c.bf16 %v9389_v28, %v9380_v46 }
 0xe16   :  { %14717 = vmatprep.subr.bf16.mxu1 %v15270_v9 }
 0xe17   :  { %14343 = vmatpush3.bf16.msra.mxu0 %v14342_v16  ;;  %v9407_v16 = vld [vmem:[%s18593_s3 + $0xd8] sm:$0xff] }
 0xe18   :  { %14345 = vmatprep.subr.bf16.mxu0 %v14344_v62  ;;  %v14412_v62 = vpack.c.bf16 %v9407_v16, %v9398_v56 }
 0xe19   :  { %14719 = vmatpush1.bf16.msra.mxu1 %v14718_v0  ;;  %v14414_v0 = vpack.c.bf16 %v9392_v42, %v9383_v60 }
 0xe1a   :  { %10778 = vmatprep.subr.mxu1 %v15268_v1 }
 0xe1b   :  { %14347 = vmatpush3.bf16.msra.mxu0 %v14346_v6  ;;  %v8675_v6 = vld [vmem:[%s18594_s14] sm:$0x3f] }
 0xe1c   :  { %14349 = vmatprep.subr.bf16.mxu0 %v14348_v11  ;;  %v8680_v11 = vrot.slane %v8675_v6, %v15835_v12  ;;  %v8684_v21 = vrot.slane %v8675_v6, %v15841_v14  ;;  %v8688_v25 = vrot.slane %v8675_v6, %v15884_v57  ;;  %v8692_v36 = vrot.slane %v8675_v6, %v15887_v59 }
 0xe1d   :  { %10779 = vmatpush1.msra.mxu1 %v10510_v19  ;;  %v8696_v8 = vrot.slane %v8675_v6, %v15898_v5  ;;  %v8700_v23 = vrot.slane %v8675_v6, %v15844_v15  ;;  %v9391_v6 = vld [vmem:[%s18593_s3 + $0x58] sm:$0xff] }
 0xe1e   :  { %10787 = vmatmul.mubr.f32.vlgmr.msra.gmra.mrb[102].mxu1 %v15982_v47  ;;  %v14362_v47 = vpack.c.bf16 %v9053_v20, %v9052_v44 }
 0xe1f   :  { %14351 = vmatpush3.bf16.msra.mxu0 %v14350_v55 }
 0xe20   :  { %14353 = vmatprep.subr.bf16.mxu0 %v14352_v61 }
 0xe23   :  { %14355 = vmatpush3.bf16.msra.mxu0 %v14354_v37 }
 0xe24   :  { %14357 = vmatprep.subr.bf16.mxu0 %v14356_v7 }
 0xe27   :  { %14359 = vmatpush3.bf16.msra.mxu0 %v14358_v40 }
 0xe28   :  { %14361 = vmatprep.subr.bf16.mxu0 %v14360_v41 }
 0xe2b   :  { %14363 = vmatpush3.bf16.msra.mxu0 %v14362_v47 }
 0xe2c   :  { %14407 = vmatprep.subr.bf16.mxu0 %v14406_v2 }
 0xe2e   :  { %9305 = vmatmul.mubr.f32.vlgmr.msra.gmra.mrb[78].mxu0 %v15922_v43 }
 0xe2f   :  { %9532 = vmatprep.mubr.f32.mxu0 %v15268_v1  ;;  %14409 = vmatpush1.bf16.msra.mxu0 %v14408_v48 }
 0xe30   :  { %14411 = vmatprep.subr.bf16.mxu0 %v14410_v18 }
 0xe33   :  { %14413 = vmatpush1.bf16.msra.mxu0 %v14412_v62 }
 0xe34   :  { %14415 = vmatprep.subr.bf16.mxu0 %v14414_v0 }
 0xe3d   :  { %v18178_v38 = vpop.f32.mrb[94].mxu1 }
 0xe3e   :  { %v9378_v13 = vpop.f32.mrb[95].mxu1 }
 0xe5d   :  { %v12353_v30 = vpop.f32.mrb[96].mxu1 }
 0xe5e   :  { %v12354_v33 = vpop.f32.mrb[97].mxu1 }
 0xe5f   :  { %v18180_v53 = vadd.f32 %v12354_v33, %v12353_v30 }
 0xe97   :  { %v18192_v26 = vpop.f32.mrb[98].mxu1 }
 0xe98   :  { %v10302_v52 = vpop.f32.mrb[99].mxu1 }
 0xe99   :  { %v9382_v52 = vld [vmem:[%s18593_s3 + $0x10] sm:$0xff] }
 0xeb7   :  { %v12460_v17 = vpop.f32.mrb[100].mxu1 }
 0xeb8   :  { %v12461_v4 = vpop.f32.mrb[101].mxu1 }
 0xeb9   :  { %v18197_v3 = vadd.f32 %v12461_v4, %v12460_v17  ;;  %v8777_v19 = vpop.f32.mrb[70].mxu0  ;;  %v9410_v17 = vld [vmem:[%s18593_s3 + $0xf0] sm:$0xff]  ;;  %v14416_v4 = vpack.c.bf16 %v9391_v6, %v9382_v52  ;;  %v9898_v52 = vld [vmem:[%s18590_s21] sm:$0xff]  ;;  %v9899_v6 = vld [vmem:[%s18590_s21 + $0x8] sm:$0xff] }
 0xeba   :  { %v8778_v55 = vadd.f32 %v8777_v19, %v8680_v11  ;;  %v8779_v61 = vpop.f32.mrb[71].mxu0  ;;  %v9401_v11 = vld [vmem:[%s18593_s3 + $0xa8] sm:$0xff] }
 0xebb   :  { %v8780_v63 = vadd.f32 %v8779_v61, %v8684_v21  ;;  %v14418_v19 = vpack.c.bf16 %v9410_v17, %v9401_v11  ;;  %v9409_v61 = vld [vmem:[%s18593_s3 + $0xe8] sm:$0xff]  ;;  %v9916_v11 = vld [vmem:[%s18590_s21 + $0x90] sm:$0xff]  ;;  %v9917_v17 = vld [vmem:[%s18590_s21 + $0x98] sm:$0xff] }
 0xebd   :  { %v8930_v34 = vcombine.low %v8778_v55, %v8780_v63  ;;  %v8848_v37 = vpop.f32.mrb[72].mxu0  ;;  %v9400_v55 = vld [vmem:[%s18593_s3 + $0xa0] sm:$0xff]  ;;  %v9394_v63 = vld [vmem:[%s18593_s3 + $0x70] sm:$0xff] }
 0xebe   :  { %v8849_v7 = vadd.f32 %v8848_v37, %v8688_v25  ;;  %v8850_v39 = vpop.f32.mrb[73].mxu0  ;;  %v9385_v25 = vld [vmem:[%s18593_s3 + $0x28] sm:$0xff] }
 0xebf   :  { %v8851_v54 = vadd.f32 %v8850_v39, %v8692_v36  ;;  %v8939_v47 = vrot.slane %v8930_v34, %v16188_v58  ;;  %v14420_v36 = vpack.c.bf16 %v9409_v61, %v9400_v55  ;;  %v14422_v34 = vpack.c.bf16 %v9394_v63, %v9385_v25  ;;  %v9393_v37 = vld [vmem:[%s18593_s3 + $0x68] sm:$0xff]  ;;  %v9412_v39 = vld [vmem:[%s18593_s3 + $0x100] sm:$0xff]  ;;  %v9901_v55 = vld [vmem:[%s18590_s21 + $0x18] sm:$0xff] }
 0xec0   :  { %v9918_v61 = vld [vmem:[%s18590_s21 + $0xa0] sm:$0xff]  ;;  %v9919_v25 = vld [vmem:[%s18590_s21 + $0xa8] sm:$0xff] }
 0xec1   :  { %v8931_v40 = vcombine.low %v8849_v7, %v8851_v54  ;;  %v8919_v41 = vpop.f32.mrb[74].mxu0  ;;  %v9403_v7 = vld [vmem:[%s18593_s3 + $0xb8] sm:$0xff]  ;;  %v14452_v63 = vpack.c.bf16 %v9919_v25, %v9918_v61  ;;  %v9964_v25 = vld [vmem:[%s18590_s21 + $0x210] sm:$0xff] }
 0xec2   :  { %v8920_v44 = vadd.f32 %v8919_v41, %v8696_v8  ;;  %v8921_v20 = vpop.f32.mrb[75].mxu0  ;;  %v14426_v54 = vpack.c.bf16 %v9412_v39, %v9403_v7  ;;  %v9387_v41 = vld [vmem:[%s18593_s3 + $0x38] sm:$0xff]  ;;  %v9904_v39 = vld [vmem:[%s18590_s21 + $0x30] sm:$0xff] }
 0xec3   :  { %v8946_v13 = vrot.slane %v8931_v40, %v16188_v58  ;;  %v8922_v30 = vadd.f32 %v8921_v20, %v8700_v23  ;;  %v9402_v23 = vld [vmem:[%s18593_s3 + $0xb0] sm:$0xff]  ;;  %v9411_v40 = vld [vmem:[%s18593_s3 + $0xf8] sm:$0xff] }
 0xec4   :  { %v14428_v20 = vpack.c.bf16 %v9411_v40, %v9402_v23  ;;  %v9923_v23 = vld [vmem:[%s18590_s21 + $0xc8] sm:$0xff] }
 0xec5   :  { %v8954_v33 = vcombine.low %v8939_v47, %v8946_v13  ;;  %v8932_v24 = vcombine.low %v8920_v44, %v8922_v30  ;;  %v9396_v44 = vld [vmem:[%s18593_s3 + $0x80] sm:$0xff]  ;;  %v9386_v13 = vld [vmem:[%s18593_s3 + $0x30] sm:$0xff]  ;;  %v9395_v30 = vld [vmem:[%s18593_s3 + $0x78] sm:$0xff] }
 0xec6   :  { %v14430_v47 = vpack.c.bf16 %v9396_v44, %v9387_v41  ;;  %v9906_v44 = vld [vmem:[%s18590_s21 + $0x40] sm:$0xff] }
 0xec7   :  { %v8953_v45 = vrot.slane %v8932_v24, %v16188_v58  ;;  %v8961_v2 = vrot.slane %v8954_v33, %v16188_v58  ;;  %v9405_v33 = vld [vmem:[%s18593_s3 + $0xc8] sm:$0xff]  ;;  %v9414_v24 = vld [vmem:[%s18593_s3 + $0x110] sm:$0xff] }
 0xec9   :  { %v8968_v46 = vrot.slane %v8953_v45, %v16188_v58  ;;  %v14432_v45 = vpack.c.bf16 %v9395_v30, %v9386_v13  ;;  %v9925_v13 = vld [vmem:[%s18590_s21 + $0xd8] sm:$0xff] }
 0xecb   :  { %v8969_v28 = vcombine.low %v8961_v2, %v8968_v46  ;;  %v14434_v2 = vpack.c.bf16 %v9414_v24, %v9405_v33  ;;  %v9404_v46 = vld [vmem:[%s18593_s3 + $0xc0] sm:$0xff]  ;;  %v9908_v24 = vld [vmem:[%s18590_s21 + $0x50] sm:$0xff] }
 0xecd   :  { %8973 = vst.msk [vmem:[#allocation24] sm:$0x3f] %vm8971_vm10, %v8969_v28  ;;  %v9413_v28 = vld [vmem:[%s18593_s3 + $0x108] sm:$0xff] }
 0xee1   :  { %v12208_v48 = vpop.f32.mrb[76].mxu0 }
 0xee2   :  { %v12209_v49 = vpop.f32.mrb[77].mxu0 }
 0xee3   :  { %v12210_v18 = vadd.f32 %v12209_v49, %v12208_v48  ;;  %v14436_v48 = vpack.c.bf16 %v9413_v28, %v9404_v46  ;;  %v9397_v49 = vld [vmem:[%s18593_s3 + $0x88] sm:$0xff] }
 0xee4   :  { %v9927_v46 = vld [vmem:[%s18590_s21 + $0xe8] sm:$0xff] }
 0xee5   :  { %v9167_v56 = vadd.f32 %v12210_v18, %v9099_v51  ;;  %v9388_v51 = vld [vmem:[%s18593_s3 + $0x40] sm:$0xff] }
 0xee6   :  { %v14439_v18 = vpack.c.bf16 %v9397_v49, %v9388_v51  ;;  %v9910_v51 = vld [vmem:[%s18590_s21 + $0x60] sm:$0xff]  ;;  %v9911_v49 = vld [vmem:[%s18590_s21 + $0x68] sm:$0xff] }
 0xee7   :  { %v9237_v16 = vadd.f32 %v18124_v22, %v9167_v56  ;;  %v9406_v56 = vld [vmem:[%s18593_s3 + $0xd0] sm:$0xff] }
 0xef1   :  { %v18210_v62 = vpop.f32.mrb[102].mxu1 }
 0xef2   :  { %v10790_v60 = vpop.f32.mrb[103].mxu1 }
 0xef3   :  { %v9914_v60 = vld [vmem:[%s18590_s21 + $0x80] sm:$0xff] }
 0xf01   :  { %v12278_v42 = vpop.f32.mrb[78].mxu0 }
 0xf02   :  { %v12279_v10 = vpop.f32.mrb[79].mxu0 }
 0xf03   :  { %v12280_v0 = vadd.f32 %v12279_v10, %v12278_v42  ;;  %v9915_v42 = vld [vmem:[%s18590_s21 + $0x88] sm:$0xff] }
 0xf05   :  { %v9307_v21 = vadd.f32 %v12280_v0, %v9237_v16  ;;  %v9415_v16 = vld [vmem:[%s18593_s3 + $0x118] sm:$0xff]  ;;  %v14444_v0 = vpack.c.bf16 %v9915_v42, %v9914_v60  ;;  %v9912_v42 = vld [vmem:[%s18590_s21 + $0x70] sm:$0xff] }
 0xf06   :  { %v14442_v10 = vpack.c.bf16 %v9415_v16, %v9406_v56  ;;  %v9929_v56 = vld [vmem:[%s18590_s21 + $0xf8] sm:$0xff]  ;;  %v14470_v16 = vpack.c.bf16 %v9911_v49, %v9910_v51  ;;  %v9991_v51 = vld [vmem:[%s18590_s21 + $0x2e8] sm:$0xff] }
 0xf07   :  { %v18217_v22 = vadd.f32 %v18178_v38, %v9307_v21  ;;  %v9384_v38 = vld [vmem:[%s18593_s3 + $0x20] sm:$0xff]  ;;  %v14446_v21 = vpack.c.bf16 %v9899_v6, %v9898_v52  ;;  %v9979_v52 = vld [vmem:[%s18590_s21 + $0x288] sm:$0xff] }
 0xf08   :  { %v14424_v8 = vpack.c.bf16 %v9393_v37, %v9384_v38  ;;  %v9920_v38 = vld [vmem:[%s18590_s21 + $0xb0] sm:$0xff]  ;;  %v9921_v37 = vld [vmem:[%s18590_s21 + $0xb8] sm:$0xff] }
 0xf09   :  { %11178 = vmatmul.mubr.msk.f32.vlgmr.msra.gmra.mrb[80].mxu0 %vm1314_vm6, %v18217_v22 }
 0xf0a   :  { %14417 = vmatpush1.bf16.msra.mxu0 %v14416_v4  ;;  %9603 = vmatprep.mubr.f32.mxu0 %v15268_v1  ;;  %v14448_v4 = vpack.c.bf16 %v9917_v17, %v9916_v11  ;;  %v9962_v17 = vld [vmem:[%s18590_s21 + $0x200] sm:$0xff] }
 0xf0b   :  { %14419 = vmatprep.subr.bf16.mxu0 %v14418_v19  ;;  %v9900_v19 = vld [vmem:[%s18590_s21 + $0x10] sm:$0xff] }
 0xf0e   :  { %14421 = vmatpush1.bf16.msra.mxu0 %v14420_v36  ;;  %v9902_v36 = vld [vmem:[%s18590_s21 + $0x20] sm:$0xff] }
 0xf0f   :  { %14423 = vmatprep.subr.bf16.mxu0 %v14422_v34  ;;  %v9903_v34 = vld [vmem:[%s18590_s21 + $0x28] sm:$0xff] }
 0xf10   :  { %v14454_v7 = vpack.c.bf16 %v9903_v34, %v9902_v36  ;;  %v9983_v36 = vld [vmem:[%s18590_s21 + $0x2a8] sm:$0xff] }
 0xf11   :  { %11179 = vmatmul.mubr.msk.f32.vlgmr.msra.gmra.mrb[82].mxu0 %vm1314_vm6, %v18217_v22 }
 0xf12   :  { %14425 = vmatpush1.bf16.msra.mxu0 %v14424_v8  ;;  %9674 = vmatprep.mubr.f32.mxu0 %v15268_v1  ;;  %v9905_v8 = vld [vmem:[%s18590_s21 + $0x38] sm:$0xff] }
 0xf13   :  { %14427 = vmatprep.subr.bf16.mxu0 %v14426_v54  ;;  %v9922_v54 = vld [vmem:[%s18590_s21 + $0xc0] sm:$0xff]  ;;  %v14458_v40 = vpack.c.bf16 %v9905_v8, %v9904_v39  ;;  %v9985_v39 = vld [vmem:[%s18590_s21 + $0x2b8] sm:$0xff] }
 0xf14   :  { %v14460_v41 = vpack.c.bf16 %v9923_v23, %v9922_v54  ;;  %v9968_v23 = vld [vmem:[%s18590_s21 + $0x230] sm:$0xff] }
 0xf16   :  { %14429 = vmatpush1.bf16.msra.mxu0 %v14428_v20  ;;  %v9907_v20 = vld [vmem:[%s18590_s21 + $0x48] sm:$0xff] }
 0xf17   :  { %14431 = vmatprep.subr.bf16.mxu0 %v14430_v47  ;;  %v9924_v47 = vld [vmem:[%s18590_s21 + $0xd0] sm:$0xff]  ;;  %v14462_v30 = vpack.c.bf16 %v9907_v20, %v9906_v44  ;;  %v9987_v44 = vld [vmem:[%s18590_s21 + $0x2c8] sm:$0xff] }
 0xf18   :  { %v14464_v33 = vpack.c.bf16 %v9925_v13, %v9924_v47  ;;  %v9970_v13 = vld [vmem:[%s18590_s21 + $0x240] sm:$0xff] }
 0xf19   :  { %11180 = vmatmul.mubr.msk.f32.vlgmr.msra.gmra.mrb[84].mxu0 %vm1314_vm6, %v18217_v22 }
 0xf1a   :  { %14433 = vmatpush1.bf16.msra.mxu0 %v14432_v45  ;;  %9745 = vmatprep.mubr.f32.mxu0 %v15268_v1  ;;  %v9909_v45 = vld [vmem:[%s18590_s21 + $0x58] sm:$0xff] }
 0xf1b   :  { %14435 = vmatprep.subr.bf16.mxu0 %v14434_v2  ;;  %v9926_v2 = vld [vmem:[%s18590_s21 + $0xe0] sm:$0xff]  ;;  %v14466_v28 = vpack.c.bf16 %v9909_v45, %v9908_v24  ;;  %v9989_v24 = vld [vmem:[%s18590_s21 + $0x2d8] sm:$0xff] }
 0xf1e   :  { %14437 = vmatpush1.bf16.msra.mxu0 %v14436_v48  ;;  %v14468_v48 = vpack.c.bf16 %v9927_v46, %v9926_v2  ;;  %v9972_v46 = vld [vmem:[%s18590_s21 + $0x250] sm:$0xff] }
 0xf1f   :  { %14438 = vmatprep.subr.bf16.mxu0 %v15270_v9 }
 0xf21   :  { %11181 = vmatmul.mubr.msk.f32.vlgmr.msra.gmra.mrb[86].mxu0 %vm1314_vm6, %v18217_v22 }
 0xf22   :  { %14440 = vmatpush3.bf16.msra.mxu0 %v14439_v18  ;;  %12601 = vmatprep.mubr.msk.f32.mxu0 %vm15269_vm0, %v15268_v1  ;;  %v9928_v18 = vld [vmem:[%s18590_s21 + $0xf0] sm:$0xff] }
 0xf23   :  { %14441 = vmatprep.subr.bf16.mxu0 %v15270_v9  ;;  %v14450_v9 = vpack.c.bf16 %v9901_v55, %v9900_v19  ;;  %v14472_v60 = vpack.c.bf16 %v9929_v56, %v9928_v18  ;;  %v9981_v19 = vld [vmem:[%s18590_s21 + $0x298] sm:$0xff]  ;;  %v9974_v56 = vld [vmem:[%s18590_s21 + $0x260] sm:$0xff] }
 0xf26   :  { %14443 = vmatpush3.bf16.msra.mxu0 %v14442_v10  ;;  %v9913_v10 = vld [vmem:[%s18590_s21 + $0x78] sm:$0xff] }
 0xf27   :  { %14445 = vmatprep.subr.bf16.mxu0 %v14444_v0  ;;  %v9978_v0 = vld [vmem:[%s18590_s21 + $0x280] sm:$0xff]  ;;  %v14474_v6 = vpack.c.bf16 %v9913_v10, %v9912_v42  ;;  %v9993_v42 = vld [vmem:[%s18590_s21 + $0x2f8] sm:$0xff] }
 0xf28   :  { %v14508_v11 = vpack.c.bf16 %v9979_v52, %v9978_v0  ;;  %v9976_v52 = vld [vmem:[%s18590_s21 + $0x270] sm:$0xff] }
 0xf29   :  { %12602 = vmatmul.mubr.msk.f32.vlgmr.msra.gmra.mrb[88].mxu0 %vm1314_vm6, %v18217_v22  ;;  %v14456_v22 = vpack.c.bf16 %v9921_v37, %v9920_v38  ;;  %v9966_v37 = vld [vmem:[%s18590_s21 + $0x220] sm:$0xff] }
 0xf2a   :  { %14447 = vmatpush3.bf16.msra.mxu0 %v14446_v21  ;;  %10088 = vmatprep.mubr.f32.mxu0 %v15858_v29  ;;  %v9963_v21 = vld [vmem:[%s18590_s21 + $0x208] sm:$0xff] }
 0xf2b   :  { %14449 = vmatprep.subr.bf16.mxu0 %v14448_v4  ;;  %v9980_v4 = vld [vmem:[%s18590_s21 + $0x290] sm:$0xff]  ;;  %v14510_v55 = vpack.c.bf16 %v9963_v21, %v9962_v17  ;;  %v10402_v17 = vld [vmem:[%s18592_s29 + $0x80] sm:$0xff]  ;;  %v10403_v21 = vld [vmem:[%s18592_s29 + $0x88] sm:$0xff] }
 0xf2c   :  { %v14512_v61 = vpack.c.bf16 %v9981_v19, %v9980_v4  ;;  %v10304_v4 = vld [vmem:[#allocation6] sm:$0x1]  ;;  %v14582_v19 = vpack.c.bf16 %v10403_v21, %v10402_v17 }
 0xf2e   :  { %14451 = vmatpush3.bf16.msra.mxu0 %v14450_v9  ;;  %v9965_v9 = vld [vmem:[%s18590_s21 + $0x218] sm:$0xff] }
 0xf2f   :  { %14453 = vmatprep.subr.bf16.mxu0 %v14452_v63  ;;  %v9982_v63 = vld [vmem:[%s18590_s21 + $0x2a0] sm:$0xff]  ;;  %v14514_v34 = vpack.c.bf16 %v9965_v9, %v9964_v25 }
 0xf30   :  { %v14516_v38 = vpack.c.bf16 %v9983_v36, %v9982_v63 }
 0xf32   :  { %14455 = vmatpush3.bf16.msra.mxu0 %v14454_v7  ;;  %v9967_v7 = vld [vmem:[%s18590_s21 + $0x228] sm:$0xff] }
 0xf33   :  { %14457 = vmatprep.subr.bf16.mxu0 %v14456_v22  ;;  %v9984_v22 = vld [vmem:[%s18590_s21 + $0x2b0] sm:$0xff]  ;;  %v14518_v8 = vpack.c.bf16 %v9967_v7, %v9966_v37 }
 0xf34   :  { %v14520_v54 = vpack.c.bf16 %v9985_v39, %v9984_v22 }
 0xf36   :  { %14459 = vmatpush3.bf16.msra.mxu0 %v14458_v40  ;;  %v9969_v40 = vld [vmem:[%s18590_s21 + $0x238] sm:$0xff] }
 0xf37   :  { %14461 = vmatprep.subr.bf16.mxu0 %v14460_v41  ;;  %v9986_v41 = vld [vmem:[%s18590_s21 + $0x2c0] sm:$0xff]  ;;  %v14522_v20 = vpack.c.bf16 %v9969_v40, %v9968_v23 }
 0xf38   :  { %v14524_v47 = vpack.c.bf16 %v9987_v44, %v9986_v41 }
 0xf3a   :  { %14463 = vmatpush3.bf16.msra.mxu0 %v14462_v30  ;;  %v9971_v30 = vld [vmem:[%s18590_s21 + $0x248] sm:$0xff] }
 0xf3b   :  { %14465 = vmatprep.subr.bf16.mxu0 %v14464_v33  ;;  %v9988_v33 = vld [vmem:[%s18590_s21 + $0x2d0] sm:$0xff]  ;;  %v14526_v45 = vpack.c.bf16 %v9971_v30, %v9970_v13 }
 0xf3c   :  { %v14528_v2 = vpack.c.bf16 %v9989_v24, %v9988_v33 }
 0xf3e   :  { %14467 = vmatpush3.bf16.msra.mxu0 %v14466_v28  ;;  %v9973_v28 = vld [vmem:[%s18590_s21 + $0x258] sm:$0xff] }
 0xf3f   :  { %14469 = vmatprep.subr.bf16.mxu0 %v14468_v48  ;;  %v9990_v48 = vld [vmem:[%s18590_s21 + $0x2e0] sm:$0xff]  ;;  %v14530_v49 = vpack.c.bf16 %v9973_v28, %v9972_v46 }
 0xf40   :  { %v14532_v18 = vpack.c.bf16 %v9991_v51, %v9990_v48  ;;  %v11177_v48 = vld [vmem:[%s18595_s6 + $0x8] ss:$0 sm:$0xff] }
 0xf42   :  { %14471 = vmatpush3.bf16.msra.mxu0 %v14470_v16  ;;  %v9975_v16 = vld [vmem:[%s18590_s21 + $0x268] sm:$0xff] }
 0xf43   :  { %14473 = vmatprep.subr.bf16.mxu0 %v14472_v60  ;;  %v9992_v60 = vld [vmem:[%s18590_s21 + $0x2f0] sm:$0xff]  ;;  %v14534_v10 = vpack.c.bf16 %v9975_v16, %v9974_v56 }
 0xf44   :  { %v14536_v0 = vpack.c.bf16 %v9993_v42, %v9992_v60 }
 0xf46   :  { %14475 = vmatpush3.bf16.msra.mxu0 %v14474_v6  ;;  %v9977_v6 = vld [vmem:[%s18590_s21 + $0x278] sm:$0xff] }
 0xf47   :  { %14509 = vmatprep.subr.bf16.mxu0 %v14508_v11  ;;  %v14538_v11 = vpack.c.bf16 %v9977_v6, %v9976_v52 }
 0xf49   :  { %10089 = vmatmul.mubr.f32.vlgmr.msra.gmra.mrb[90].mxu0 %v15860_v31 }
 0xf4a   :  { %14511 = vmatpush3.bf16.msra.mxu0 %v14510_v55  ;;  %10228 = vmatprep.mubr.f32.mxu0 %v15864_v35  ;;  %v9416_v55 = vld [vmem:[%s18595_s6] sm:$0xff] }
 0xf4b   :  { %14513 = vmatprep.subr.bf16.mxu0 %v14512_v61  ;;  %v9423_v61 = vrot.slane %v9416_v55, %v15835_v12  ;;  %v9427_v25 = vrot.slane %v9416_v55, %v15841_v14  ;;  %v9431_v37 = vrot.slane %v9416_v55, %v15884_v57  ;;  %v9435_v7 = vrot.slane %v9416_v55, %v15887_v59 }
 0xf4c   :  { %v9439_v40 = vrot.slane %v9416_v55, %v15898_v5  ;;  %v9443_v41 = vrot.slane %v9416_v55, %v15844_v15  ;;  %v9447_v30 = vrot.slane %v9416_v55, %v15966_v27  ;;  %v9451_v33 = vrot.slane %v9416_v55, %v15933_v50  ;;  %v10386_v55 = vld [vmem:[%s18592_s29] sm:$0xff] }
 0xf4e   :  { %14515 = vmatpush3.bf16.msra.mxu0 %v14514_v34 }
 0xf4f   :  { %14517 = vmatprep.subr.bf16.mxu0 %v14516_v38 }
 0xf52   :  { %14519 = vmatpush3.bf16.msra.mxu0 %v14518_v8 }
 0xf53   :  { %14521 = vmatprep.subr.bf16.mxu0 %v14520_v54 }
 0xf56   :  { %14523 = vmatpush3.bf16.msra.mxu0 %v14522_v20 }
 0xf57   :  { %14525 = vmatprep.subr.bf16.mxu0 %v14524_v47 }
 0xf5a   :  { %14527 = vmatpush3.bf16.msra.mxu0 %v14526_v45 }
 0xf5b   :  { %14529 = vmatprep.subr.bf16.mxu0 %v14528_v2 }
 0xf5e   :  { %14531 = vmatpush3.bf16.msra.mxu0 %v14530_v49 }
 0xf5f   :  { %14533 = vmatprep.subr.bf16.mxu0 %v14532_v18 }
 0xf62   :  { %14535 = vmatpush3.bf16.msra.mxu0 %v14534_v10 }
 0xf63   :  { %14537 = vmatprep.subr.bf16.mxu0 %v14536_v0  ;;  %v10023_v0 = vld [vmem:[#allocation2] sm:$0x1] }
 0xf66   :  { %14539 = vmatpush3.bf16.msra.mxu0 %v14538_v11 }
 0xf67   :  { %12604 = vmatprep.subr.mxu0 %v15268_v1 }
 0xf69   :  { %10229 = vmatmul.mubr.f32.vlgmr.msra.gmra.mrb[92].mxu0 %v15922_v43 }
 0xf6a   :  { %12606 = vmatprep.mubr.msk.f32.mxu0 %vm15269_vm0, %v15268_v1  ;;  %12605 = vmatpush3.msk.msra.mxu0 %vm10310_vm11, %v10304_v4 }
 0xf6b   :  { %14583 = vmatprep.subr.bf16.mxu0 %v14582_v19 }
 0xfdc   :  { %v9534_v9 = vpop.f32.mrb[80].mxu0 }
 0xfdd   :  { %v9535_v63 = vadd.f32 %v9534_v9, %v9423_v61  ;;  %v9536_v36 = vpop.f32.mrb[81].mxu0  ;;  %v10404_v61 = vld [vmem:[%s18592_s29 + $0x90] sm:$0xff] }
 0xfde   :  { %v9537_v34 = vadd.f32 %v9536_v36, %v9427_v25  ;;  %v10405_v25 = vld [vmem:[%s18592_s29 + $0x98] sm:$0xff] }
 0xfdf   :  { %v14586_v36 = vpack.c.bf16 %v10405_v25, %v10404_v61 }
 0xfe0   :  { %v9831_v38 = vcombine.low %v9535_v63, %v9537_v34  ;;  %v10388_v34 = vld [vmem:[%s18592_s29 + $0x10] sm:$0xff] }
 0xfe2   :  { %v9841_v12 = vrot.slane %v9831_v38, %v16188_v58  ;;  %v10406_v38 = vld [vmem:[%s18592_s29 + $0xa0] sm:$0xff] }
 0xfe4   :  { %v9605_v22 = vpop.f32.mrb[82].mxu0 }
 0xfe5   :  { %v9606_v39 = vadd.f32 %v9605_v22, %v9431_v37  ;;  %v9607_v8 = vpop.f32.mrb[83].mxu0  ;;  %v10407_v37 = vld [vmem:[%s18592_s29 + $0xa8] sm:$0xff] }
 0xfe6   :  { %v9608_v54 = vadd.f32 %v9607_v8, %v9435_v7  ;;  %v14590_v22 = vpack.c.bf16 %v10407_v37, %v10406_v38  ;;  %v10391_v8 = vld [vmem:[%s18592_s29 + $0x28] sm:$0xff]  ;;  %v10457_v38 = vld [vmem:[%s18592_s29 + $0x238] sm:$0xff] }
 0xfe7   :  { %v10475_v37 = vld [vmem:[%s18592_s29 + $0x2c8] sm:$0xff] }
 0xfe8   :  { %v9832_v23 = vcombine.low %v9606_v39, %v9608_v54  ;;  %v10390_v39 = vld [vmem:[%s18592_s29 + $0x20] sm:$0xff]  ;;  %v10409_v54 = vld [vmem:[%s18592_s29 + $0xb8] sm:$0xff] }
 0xfea   :  { %v9848_v14 = vrot.slane %v9832_v23, %v16188_v58  ;;  %v14592_v23 = vpack.c.bf16 %v10391_v8, %v10390_v39  ;;  %v10458_v39 = vld [vmem:[%s18592_s29 + $0x240] sm:$0xff]  ;;  %v10459_v8 = vld [vmem:[%s18592_s29 + $0x248] sm:$0xff] }
 0xfec   :  { %v9863_v44 = vcombine.low %v9841_v12, %v9848_v14  ;;  %v9676_v20 = vpop.f32.mrb[84].mxu0  ;;  %v10392_v12 = vld [vmem:[%s18592_s29 + $0x30] sm:$0xff]  ;;  %v10393_v14 = vld [vmem:[%s18592_s29 + $0x38] sm:$0xff] }
 0xfed   :  { %v9677_v47 = vadd.f32 %v9676_v20, %v9439_v40  ;;  %v9678_v57 = vpop.f32.mrb[85].mxu0 }
 0xfee   :  { %v9679_v13 = vadd.f32 %v9678_v57, %v9443_v41  ;;  %v9871_v16 = vrot.slane %v9863_v44, %v16188_v58  ;;  %v10411_v41 = vld [vmem:[%s18592_s29 + $0xc8] sm:$0xff]  ;;  %v14596_v44 = vpack.c.bf16 %v10393_v14, %v10392_v12  ;;  %v10460_v12 = vld [vmem:[%s18592_s29 + $0x250] sm:$0xff]  ;;  %v10461_v14 = vld [vmem:[%s18592_s29 + $0x258] sm:$0xff] }
 0xfef   :  { %v10395_v57 = vld [vmem:[%s18592_s29 + $0x48] sm:$0xff] }
 0xff0   :  { %v9833_v59 = vcombine.low %v9677_v47, %v9679_v13  ;;  %v10394_v47 = vld [vmem:[%s18592_s29 + $0x40] sm:$0xff]  ;;  %v10412_v13 = vld [vmem:[%s18592_s29 + $0xd0] sm:$0xff] }
 0xff2   :  { %v9855_v28 = vrot.slane %v9833_v59, %v16188_v58  ;;  %v10413_v59 = vld [vmem:[%s18592_s29 + $0xd8] sm:$0xff] }
 0xff4   :  { %v9747_v24 = vpop.f32.mrb[86].mxu0 }
 0xff5   :  { %v9748_v45 = vadd.f32 %v9747_v24, %v9447_v30  ;;  %v9749_v5 = vpop.f32.mrb[87].mxu0  ;;  %v14600_v30 = vpack.c.bf16 %v10395_v57, %v10394_v47  ;;  %v10396_v24 = vld [vmem:[%s18592_s29 + $0x50] sm:$0xff]  ;;  %v10462_v47 = vld [vmem:[%s18592_s29 + $0x260] sm:$0xff]  ;;  %v10463_v57 = vld [vmem:[%s18592_s29 + $0x268] sm:$0xff] }
 0xff6   :  { %v9750_v2 = vadd.f32 %v9749_v5, %v9451_v33  ;;  %v14602_v33 = vpack.c.bf16 %v10413_v59, %v10412_v13  ;;  %v10414_v5 = vld [vmem:[%s18592_s29 + $0xe0] sm:$0xff]  ;;  %v10480_v13 = vld [vmem:[%s18592_s29 + $0x2f0] sm:$0xff]  ;;  %v10481_v59 = vld [vmem:[%s18592_s29 + $0x2f8] sm:$0xff] }
 0xff8   :  { %v9834_v46 = vcombine.low %v9748_v45, %v9750_v2  ;;  %v10397_v45 = vld [vmem:[%s18592_s29 + $0x58] sm:$0xff]  ;;  %v10415_v2 = vld [vmem:[%s18592_s29 + $0xe8] sm:$0xff] }
 0xffa   :  { %v9862_v15 = vrot.slane %v9834_v46, %v16188_v58  ;;  %v14604_v46 = vpack.c.bf16 %v10397_v45, %v10396_v24  ;;  %v10464_v24 = vld [vmem:[%s18592_s29 + $0x270] sm:$0xff]  ;;  %v10465_v45 = vld [vmem:[%s18592_s29 + $0x278] sm:$0xff] }
 0xffc   :  { %v9864_v51 = vcombine.low %v9855_v28, %v9862_v15  ;;  %v9818_v49 = vpop.f32.mrb[88].mxu0  ;;  %v14606_v28 = vpack.c.bf16 %v10415_v2, %v10414_v5  ;;  %v10398_v15 = vld [vmem:[%s18592_s29 + $0x60] sm:$0xff]  ;;  %v14676_v5 = vpack.c.bf16 %v10465_v45, %v10464_v24 }
 0xffd   :  { %v9819_v18 = vadd.f32 %v11177_v48, %v9818_v49  ;;  %v12603_v56 = vpop.f32.mrb[89].mxu0  ;;  %v10399_v48 = vld [vmem:[%s18592_s29 + $0x68] sm:$0xff]  ;;  %v10417_v49 = vld [vmem:[%s18592_s29 + $0xf8] sm:$0xff]  ;;  %v10792_v2 = vld [vmem:[%s18596_s27] sm:$0x7] }
 0xffe   :  { %v9878_v27 = vrot.slane %v9864_v51, %v16188_v58  ;;  %v10416_v51 = vld [vmem:[%s18592_s29 + $0xf0] sm:$0xff] }
 0xfff   :  { %v9886_v50 = vrot.slane %v9819_v18, %v16188_v58  ;;  %v14608_v18 = vpack.c.bf16 %v10399_v48, %v10398_v15  ;;  %v14610_v56 = vpack.c.bf16 %v10417_v49, %v10416_v51  ;;  %v10511_v49 = vld [vmem:[#allocation9] sm:$0x1] }
0x1000   :  { %v9879_v60 = vcombine.low %v9871_v16, %v9878_v27  ;;  %v10400_v16 = vld [vmem:[%s18592_s29 + $0x70] sm:$0xff]  ;;  %v10401_v27 = vld [vmem:[%s18592_s29 + $0x78] sm:$0xff] }
0x1001   :  { %v9893_v42 = vrot.slane %v9886_v50, %v16188_v58  ;;  %v10387_v58 = vld [vmem:[%s18592_s29 + $0x8] sm:$0xff]  ;;  %v10466_v50 = vld [vmem:[%s18592_s29 + $0x280] sm:$0xff] }
0x1002   :  { %9896 = vst [vmem:[#allocation25] sm:$0xff] %v9879_v60  ;;  %v14584_v9 = vpack.c.bf16 %v10387_v58, %v10386_v55  ;;  %v10467_v60 = vld [vmem:[%s18592_s29 + $0x288] sm:$0xff]  ;;  %v10470_v55 = vld [vmem:[%s18592_s29 + $0x2a0] sm:$0xff] }
0x1003   :  { %9897 = vst.msk [vmem:[#allocation25 + $0x8] sm:$0x1] %vm16417_vm8, %v9893_v42  ;;  %v14612_v42 = vpack.c.bf16 %v10401_v27, %v10400_v16  ;;  %v10471_v58 = vld [vmem:[%s18592_s29 + $0x2a8] sm:$0xff] }
0x1004   :  { %v14654_v25 = vpack.c.bf16 %v10471_v58, %v10470_v55 }
0x101c   :  { %v12318_v10 = vpop.f32.mrb[90].mxu0 }
0x101d   :  { %v12319_v52 = vpop.f32.mrb[91].mxu0 }
0x101e   :  { %v12320_v6 = vadd.f32 %v12319_v52, %v12318_v10  ;;  %v14646_v10 = vpack.c.bf16 %v10467_v60, %v10466_v50  ;;  %v10451_v52 = vld [vmem:[%s18592_s29 + $0x208] sm:$0xff] }
0x1020   :  { %v10091_v11 = vadd.f32 %v12320_v6, %v10023_v0  ;;  %v10450_v0 = vld [vmem:[%s18592_s29 + $0x200] sm:$0xff]  ;;  %v10468_v6 = vld [vmem:[%s18592_s29 + $0x290] sm:$0xff] }
0x1022   :  { %v10161_v17 = vadd.f32 %v18180_v53, %v10091_v11  ;;  %v10389_v53 = vld [vmem:[%s18592_s29 + $0x18] sm:$0xff] }
0x1023   :  { %v14588_v7 = vpack.c.bf16 %v10389_v53, %v10388_v34  ;;  %v10469_v11 = vld [vmem:[%s18592_s29 + $0x298] sm:$0xff]  ;;  %v10456_v53 = vld [vmem:[%s18592_s29 + $0x230] sm:$0xff] }
0x103c   :  { %v12388_v21 = vpop.f32.mrb[92].mxu0 }
0x103d   :  { %v12389_v4 = vpop.f32.mrb[93].mxu0 }
0x103e   :  { %v12390_v19 = vadd.f32 %v12389_v4, %v12388_v21  ;;  %v14650_v21 = vpack.c.bf16 %v10469_v11, %v10468_v6  ;;  %v10452_v4 = vld [vmem:[%s18592_s29 + $0x210] sm:$0xff] }
0x1040   :  { %v10231_v32 = vadd.f32 %v12390_v19, %v10161_v17  ;;  %v14648_v17 = vpack.c.bf16 %v10451_v52, %v10450_v0  ;;  %v10453_v19 = vld [vmem:[%s18592_s29 + $0x218] sm:$0xff] }
0x1041   :  { %v14652_v61 = vpack.c.bf16 %v10453_v19, %v10452_v4 }
0x1042   :  { %v10301_v63 = vadd.f32 %v18192_v26, %v10231_v32  ;;  %v10408_v26 = vld [vmem:[%s18592_s29 + $0xb0] sm:$0xff]  ;;  %v10454_v32 = vld [vmem:[%s18592_s29 + $0x220] sm:$0xff] }
0x1043   :  { %v14594_v40 = vpack.c.bf16 %v10409_v54, %v10408_v26  ;;  %v10476_v26 = vld [vmem:[%s18592_s29 + $0x2d0] sm:$0xff]  ;;  %v10477_v54 = vld [vmem:[%s18592_s29 + $0x2d8] sm:$0xff] }
0x1044   :  { %12607 = vmatmul.mubr.msk.f32.vlgmr.msra.gmra.mrb[94].mxu0 %vm10306_vm12, %v10301_v63  ;;  %v10472_v63 = vld [vmem:[%s18592_s29 + $0x2b0] sm:$0xff] }
0x1045   :  { %14585 = vmatpush3.bf16.msra.mxu0 %v14584_v9  ;;  %10576 = vmatprep.mubr.f32.mxu0 %v15858_v29  ;;  %v10410_v29 = vld [vmem:[%s18592_s29 + $0xc0] sm:$0xff]  ;;  %v10455_v9 = vld [vmem:[%s18592_s29 + $0x228] sm:$0xff] }
0x1046   :  { %14587 = vmatprep.subr.bf16.mxu0 %v14586_v36  ;;  %v14598_v20 = vpack.c.bf16 %v10411_v41, %v10410_v29  ;;  %v10473_v36 = vld [vmem:[%s18592_s29 + $0x2b8] sm:$0xff]  ;;  %v14656_v34 = vpack.c.bf16 %v10455_v9, %v10454_v32  ;;  %v10478_v29 = vld [vmem:[%s18592_s29 + $0x2e0] sm:$0xff]  ;;  %v10479_v41 = vld [vmem:[%s18592_s29 + $0x2e8] sm:$0xff] }
0x1049   :  { %14589 = vmatpush3.bf16.msra.mxu0 %v14588_v7  ;;  %v14660_v7 = vpack.c.bf16 %v10457_v38, %v10456_v53 }
0x104a   :  { %14591 = vmatprep.subr.bf16.mxu0 %v14590_v22 }
0x104d   :  { %14593 = vmatpush3.bf16.msra.mxu0 %v14592_v23  ;;  %v14664_v23 = vpack.c.bf16 %v10459_v8, %v10458_v39 }
0x104e   :  { %14595 = vmatprep.subr.bf16.mxu0 %v14594_v40  ;;  %v14666_v40 = vpack.c.bf16 %v10477_v54, %v10476_v26 }
0x1051   :  { %14597 = vmatpush3.bf16.msra.mxu0 %v14596_v44  ;;  %v14668_v44 = vpack.c.bf16 %v10461_v14, %v10460_v12 }
0x1052   :  { %14599 = vmatprep.subr.bf16.mxu0 %v14598_v20  ;;  %v14670_v20 = vpack.c.bf16 %v10479_v41, %v10478_v29 }
0x1055   :  { %14601 = vmatpush3.bf16.msra.mxu0 %v14600_v30  ;;  %v14672_v30 = vpack.c.bf16 %v10463_v57, %v10462_v47 }
0x1056   :  { %14603 = vmatprep.subr.bf16.mxu0 %v14602_v33  ;;  %v14674_v33 = vpack.c.bf16 %v10481_v59, %v10480_v13 }
0x1059   :  { %14605 = vmatpush3.bf16.msra.mxu0 %v14604_v46  ;;  %v10305_v46 = vld [vmem:[#allocation8] sm:$0x1] }
0x105a   :  { %14607 = vmatprep.subr.bf16.mxu0 %v14606_v28 }
0x105d   :  { %14609 = vmatpush3.bf16.msra.mxu0 %v14608_v18 }
0x105e   :  { %14611 = vmatprep.subr.bf16.mxu0 %v14610_v56 }
0x1061   :  { %14613 = vmatpush3.bf16.msra.mxu0 %v14612_v42 }
0x1062   :  { %14647 = vmatprep.subr.bf16.mxu0 %v14646_v10 }
0x1064   :  { %10577 = vmatmul.mubr.f32.vlgmr.msra.gmra.mrb[96].mxu0 %v15860_v31  ;;  %v14658_v31 = vpack.c.bf16 %v10473_v36, %v10472_v63 }
0x1065   :  { %14649 = vmatpush3.bf16.msra.mxu0 %v14648_v17  ;;  %10716 = vmatprep.mubr.f32.mxu0 %v15864_v35  ;;  %v10474_v35 = vld [vmem:[%s18592_s29 + $0x2c0] sm:$0xff] }
0x1066   :  { %14651 = vmatprep.subr.bf16.mxu0 %v14650_v21  ;;  %v14662_v22 = vpack.c.bf16 %v10475_v37, %v10474_v35 }
0x1069   :  { %14653 = vmatpush3.bf16.msra.mxu0 %v14652_v61 }
0x106a   :  { %14655 = vmatprep.subr.bf16.mxu0 %v14654_v25 }
0x106d   :  { %14657 = vmatpush3.bf16.msra.mxu0 %v14656_v34 }
0x106e   :  { %14659 = vmatprep.subr.bf16.mxu0 %v14658_v31 }
0x1071   :  { %14661 = vmatpush3.bf16.msra.mxu0 %v14660_v7 }
0x1072   :  { %14663 = vmatprep.subr.bf16.mxu0 %v14662_v22 }
0x1075   :  { %14665 = vmatpush3.bf16.msra.mxu0 %v14664_v23 }
0x1076   :  { %14667 = vmatprep.subr.bf16.mxu0 %v14666_v40 }
0x1079   :  { %14669 = vmatpush3.bf16.msra.mxu0 %v14668_v44 }
0x107a   :  { %14671 = vmatprep.subr.bf16.mxu0 %v14670_v20 }
0x107d   :  { %14673 = vmatpush3.bf16.msra.mxu0 %v14672_v30 }
0x107e   :  { %14675 = vmatprep.subr.bf16.mxu0 %v14674_v33 }
0x1081   :  { %14677 = vmatpush3.bf16.msra.mxu0 %v14676_v5 }
0x1082   :  { %12609 = vmatprep.subr.mxu0 %v15268_v1 }
0x1084   :  { %10717 = vmatmul.mubr.f32.vlgmr.msra.gmra.mrb[98].mxu0 %v15922_v43 }
0x1085   :  { %12611 = vmatprep.mubr.msk.f32.mxu0 %vm15269_vm0, %v15268_v1  ;;  %12610 = vmatpush3.msk.msra.mxu0 %vm10798_vm13, %v10792_v2 }
0x1117   :  { %v10380_v28 = vpop.f32.mrb[94].mxu0 }
0x1118   :  { %v10381_v15 = vadd.f32 %v10380_v28, %v10305_v46  ;;  %v12608_v48 = vpop.f32.mrb[95].mxu0 }
0x111a   :  { %10385 = vst.msk [vmem:[#allocation27] sm:$0x1] %vm10384_vm14, %v10381_v15 }
0x1137   :  { %v12425_v51 = vpop.f32.mrb[96].mxu0 }
0x1138   :  { %v12426_v18 = vpop.f32.mrb[97].mxu0 }
0x1139   :  { %v12427_v56 = vadd.f32 %v12426_v18, %v12425_v51 }
0x113b   :  { %v10579_v16 = vadd.f32 %v12427_v56, %v10511_v49 }
0x113d   :  { %v10649_v27 = vadd.f32 %v18197_v3, %v10579_v16 }
0x1157   :  { %v12495_v43 = vpop.f32.mrb[98].mxu0 }
0x1158   :  { %v12496_v50 = vpop.f32.mrb[99].mxu0 }
0x1159   :  { %v12497_v60 = vadd.f32 %v12496_v50, %v12495_v43 }
0x115b   :  { %v10719_v1 = vadd.f32 %v12497_v60, %v10649_v27 }
0x115d   :  { %v10789_v42 = vadd.f32 %v18210_v62, %v10719_v1 }
0x115f   :  { %12612 = vmatmul.mubr.msk.f32.vlgmr.msra.gmra.mrb[100].mxu0 %vm10794_vm15, %v10789_v42 }
0x1160   :  { %14926 = shalt.err (!%p14923_p2)
}
0x1161   :  { %s18597_s1 = sld [smem:[#allocation79_spill]] }
0x1167   :  { %s14927_s2 = scalar_lea.hbm %s18597_s1, 144 }
0x1168   :  { %p14928_p3 = scmp.ne.s32.totalorder %s18597_s1, %s14927_s2  ;;  %p14931_p4 = scmp.lt.u32.totalorder %s14927_s2, %s18597_s1 }
0x116a   :  { %p14933_p5 = pnand %p14931_p4, %p14928_p3 }
0x116c   :  { %14936 = shalt.err (!%p14933_p5)
}
0x116d   :  { %10893 = dma.vmem_to_hbm [thread:$0]  %s10891_s20, 144, %s18597_s1, [#allocation14]  }
0x116e   :  { %s14937_s19 = scalar_lea.vmem %s10911_s22, 144  ;;  %s14941_s4 = scalar_lea.vmem %s10911_s22, 160 }
0x116f   :  { %p14938_p6 = scmp.ne.s32.totalorder %s10911_s22, %s14937_s19  ;;  %p14942_p7 = scmp.lt.s32.totalorder %s10911_s22, %s10911_s22 }
0x1170   :  { %p14943_p8 = scmp.lt.s32.totalorder %s14941_s4, %s14937_s19 }
0x1172   :  { %p14944_p9 = por %p14943_p8, %p14942_p7 }
0x1174   :  { %p14945_p10 = pnand %p14944_p9, %p14938_p6 }
0x1176   :  { %14948 = shalt.err (!%p14945_p10)
}
0x1177   :  { %s18598_s0 = sld [smem:[#allocation81_spill]] }
0x117d   :  { %s14949_s10 = scalar_lea.hbm %s18598_s0, 144 }
0x117e   :  { %p14950_p11 = scmp.ne.s32.totalorder %s18598_s0, %s14949_s10  ;;  %p14953_p12 = scmp.lt.u32.totalorder %s14949_s10, %s18598_s0 }
0x1180   :  { %p14955_p13 = pnand %p14953_p12, %p14950_p11 }
0x1182   :  { %14958 = shalt.err (!%p14955_p13)
}
0x1183   :  { %10913 = dma.vmem_to_hbm [thread:$0]  %s10911_s22, 144, %s18598_s0, [#allocation17]  }
0x1184   :  { %s15274_s12 = smov [#allocation19]   ;;  %s15275_s8 = smov [#allocation22]  }
0x1185   :  { %s10930_s11 = sshll.u32 %s15274_s12, 4  ;;  %s10950_s15 = sshll.u32 %s15275_s8, 4  ;;  %s10931_s11 = int_to_ptr.vmem [resolvable:$true] %s10930_s11  ;;  %s10951_s15 = int_to_ptr.vmem [resolvable:$true] %s10950_s15 }
0x1186   :  { %s14959_s5 = scalar_lea.vmem %s10931_s11, 208  ;;  %s14963_s9 = scalar_lea.vmem %s10931_s11, 224 }
0x1187   :  { %p14960_p0 = scmp.ne.s32.totalorder %s10931_s11, %s14959_s5  ;;  %p14964_p1 = scmp.lt.s32.totalorder %s10931_s11, %s10931_s11 }
0x1188   :  { %p14965_p2 = scmp.lt.s32.totalorder %s14963_s9, %s14959_s5 }
0x118a   :  { %p14966_p3 = por %p14965_p2, %p14964_p1 }
0x118c   :  { %p14967_p4 = pnand %p14966_p3, %p14960_p0 }
0x118e   :  { %14970 = shalt.err (!%p14967_p4)
}
0x118f   :  { %s18599_s13 = sld [smem:[#allocation83_spill]] }
0x1195   :  { %s14971_s17 = scalar_lea.hbm %s18599_s13, 208 }
0x1196   :  { %p14972_p5 = scmp.ne.s32.totalorder %s18599_s13, %s14971_s17  ;;  %p14975_p6 = scmp.lt.u32.totalorder %s14971_s17, %s18599_s13 }
0x1198   :  { %p14977_p7 = pnand %p14975_p6, %p14972_p5 }
0x119a   :  { %14980 = shalt.err (!%p14977_p7)
}
0x119b   :  { %10933 = dma.vmem_to_hbm [thread:$0]  %s10931_s11, 208, %s18599_s13, [#allocation20]  }
0x119c   :  { %s14981_s21 = scalar_lea.vmem %s10951_s15, 144  ;;  %s14985_s25 = scalar_lea.vmem %s10951_s15, 160 }
0x119d   :  { %p14982_p8 = scmp.ne.s32.totalorder %s10951_s15, %s14981_s21  ;;  %p14986_p9 = scmp.lt.s32.totalorder %s10951_s15, %s10951_s15 }
0x119e   :  { %p14987_p10 = scmp.lt.s32.totalorder %s14985_s25, %s14981_s21 }
0x11a0   :  { %p14988_p11 = por %p14987_p10, %p14986_p9 }
0x11a2   :  { %p14989_p12 = pnand %p14988_p11, %p14982_p8 }
0x11a4   :  { %14992 = shalt.err (!%p14989_p12)
}
0x11a5   :  { %s18600_s29 = sld [smem:[#allocation85_spill]] }
0x11ab   :  { %s14993_s3 = scalar_lea.hbm %s18600_s29, 144 }
0x11ac   :  { %p14994_p13 = scmp.ne.s32.totalorder %s18600_s29, %s14993_s3  ;;  %p14997_p0 = scmp.lt.u32.totalorder %s14993_s3, %s18600_s29 }
0x11ae   :  { %p14999_p1 = pnand %p14997_p0, %p14994_p13 }
0x11b0   :  { %15002 = shalt.err (!%p14999_p1)
}
0x11b1   :  { %10953 = dma.vmem_to_hbm [thread:$0]  %s10951_s15, 144, %s18600_s29, [#allocation23]  }
0x11b2   :  { %s15276_s14 = smov [#allocation25]   ;;  %s15277_s27 = smov [#allocation12]  }
0x11b3   :  { %s10970_s6 = sshll.u32 %s15276_s14, 4  ;;  %s10880_s18 = sshll.u32 %s15277_s27, 4  ;;  %s10971_s6 = int_to_ptr.vmem [resolvable:$true] %s10970_s6  ;;  %s10881_s18 = int_to_ptr.vmem [resolvable:$true] %s10880_s18 }
0x11b4   :  { %s15003_s20 = scalar_lea.vmem %s10971_s6, 144  ;;  %s15007_s30 = scalar_lea.vmem %s10971_s6, 160 }
0x11b5   :  { %p15004_p2 = scmp.ne.s32.totalorder %s10971_s6, %s15003_s20  ;;  %p15008_p3 = scmp.lt.s32.totalorder %s10971_s6, %s10971_s6 }
0x11b6   :  { %p15009_p4 = scmp.lt.s32.totalorder %s15007_s30, %s15003_s20 }
0x11b8   :  { %p15010_p5 = por %p15009_p4, %p15008_p3 }
0x11ba   :  { %p15011_p6 = pnand %p15010_p5, %p15004_p2 }
0x11bc   :  { %15014 = shalt.err (!%p15011_p6)
}
0x11bd   :  { %s15015_s22 = scalar_lea.hbm %s15600_s16, 144 }
0x11be   :  { %p15016_p7 = scmp.ne.s32.totalorder %s15600_s16, %s15015_s22  ;;  %p15019_p8 = scmp.lt.u32.totalorder %s15015_s22, %s15600_s16 }
0x11c0   :  { %p15021_p9 = pnand %p15019_p8, %p15016_p7 }
0x11c2   :  { %15024 = shalt.err (!%p15021_p9)
}
0x11c3   :  { %10973 = dma.vmem_to_hbm [thread:$0]  %s10971_s6, 144, %s15600_s16, [#allocation26]  }
0x11c4   :  { %s15025_s26 = scalar_lea.vmem %s10881_s18, 80  ;;  %s15029_s7 = scalar_lea.vmem %s10881_s18, 96 }
0x11c5   :  { %p15026_p10 = scmp.ne.s32.totalorder %s10881_s18, %s15025_s26  ;;  %p15030_p11 = scmp.lt.s32.totalorder %s10881_s18, %s10881_s18 }
0x11c6   :  { %p15031_p12 = scmp.lt.s32.totalorder %s15029_s7, %s15025_s26 }
0x11c8   :  { %p15032_p13 = por %p15031_p12, %p15030_p11 }
0x11ca   :  { %p15033_p0 = pnand %p15032_p13, %p15026_p10 }
0x11cc   :  { %15036 = shalt.err (!%p15033_p0)
}
0x11cd   :  { %s18601_s1 = sld [smem:[#allocation78_spill]] }
0x11d3   :  { %s15037_s2 = scalar_lea.hbm %s18601_s1, 80 }
0x11d4   :  { %p15038_p1 = scmp.ne.s32.totalorder %s18601_s1, %s15037_s2  ;;  %p15041_p2 = scmp.lt.u32.totalorder %s15037_s2, %s18601_s1 }
0x11d6   :  { %p15043_p3 = pnand %p15041_p2, %p15038_p1 }
0x11d8   :  { %15046 = shalt.err (!%p15043_p3)
}
0x11d9   :  { %10883 = dma.vmem_to_hbm [thread:$0]  %s10881_s18, 80, %s18601_s1, [#allocation5]  }
0x11da   :  { %s15278_s19 = smov [#allocation15]   ;;  %s15279_s4 = smov [#allocation18]  }
0x11db   :  { %s10900_s16 = sshll.u32 %s15278_s19, 4  ;;  %s10920_s0 = sshll.u32 %s15279_s4, 4  ;;  %s10901_s16 = int_to_ptr.vmem [resolvable:$true] %s10900_s16  ;;  %s10921_s0 = int_to_ptr.vmem [resolvable:$true] %s10920_s0 }
0x11dc   :  { %s15047_s10 = scalar_lea.vmem %s10901_s16, 144  ;;  %s15051_s12 = scalar_lea.vmem %s10901_s16, 160 }
0x11dd   :  { %p15048_p4 = scmp.ne.s32.totalorder %s10901_s16, %s15047_s10  ;;  %p15052_p5 = scmp.lt.s32.totalorder %s10901_s16, %s10901_s16 }
0x11de   :  { %p15053_p6 = scmp.lt.s32.totalorder %s15051_s12, %s15047_s10 }
0x11e0   :  { %p15054_p7 = por %p15053_p6, %p15052_p5 }
0x11e2   :  { %p15055_p8 = pnand %p15054_p7, %p15048_p4 }
0x11e4   :  { %15058 = shalt.err (!%p15055_p8)
}
0x11e5   :  { %s18602_s11 = sld [smem:[#allocation80_spill]] }
0x11eb   :  { %s15059_s8 = scalar_lea.hbm %s18602_s11, 144 }
0x11ec   :  { %p15060_p9 = scmp.ne.s32.totalorder %s18602_s11, %s15059_s8  ;;  %p15063_p10 = scmp.lt.u32.totalorder %s15059_s8, %s18602_s11 }
0x11ee   :  { %p15065_p11 = pnand %p15063_p10, %p15060_p9 }
0x11f0   :  { %15068 = shalt.err (!%p15065_p11)
}
0x11f1   :  { %10903 = dma.vmem_to_hbm [thread:$0]  %s10901_s16, 144, %s18602_s11, [#allocation14]  }
0x11f2   :  { %s15069_s15 = scalar_lea.vmem %s10921_s0, 144  ;;  %s15073_s5 = scalar_lea.vmem %s10921_s0, 160 }
0x11f3   :  { %p15070_p12 = scmp.ne.s32.totalorder %s10921_s0, %s15069_s15  ;;  %p15074_p13 = scmp.lt.s32.totalorder %s10921_s0, %s10921_s0 }
0x11f4   :  { %p15075_p0 = scmp.lt.s32.totalorder %s15073_s5, %s15069_s15 }
0x11f6   :  { %p15076_p1 = por %p15075_p0, %p15074_p13 }
0x11f8   :  { %p15077_p2 = pnand %p15076_p1, %p15070_p12 }
0x11fa   :  { %15080 = shalt.err (!%p15077_p2)
}
0x11fb   :  { %s18603_s9 = sld [smem:[#allocation82_spill]] }
0x1201   :  { %s15081_s13 = scalar_lea.hbm %s18603_s9, 144 }
0x1202   :  { %p15082_p3 = scmp.ne.s32.totalorder %s18603_s9, %s15081_s13  ;;  %p15085_p4 = scmp.lt.u32.totalorder %s15081_s13, %s18603_s9 }
0x1204   :  { %p15087_p5 = pnand %p15085_p4, %p15082_p3 }
0x1206   :  { %15090 = shalt.err (!%p15087_p5)
}
0x1207   :  { %10923 = dma.vmem_to_hbm [thread:$0]  %s10921_s0, 144, %s18603_s9, [#allocation17]  }
0x1208   :  { %s15280_s17 = smov [#allocation21]   ;;  %s15281_s25 = smov [#allocation24]  }
0x1209   :  { %s10940_s21 = sshll.u32 %s15280_s17, 4  ;;  %s10960_s29 = sshll.u32 %s15281_s25, 4  ;;  %s10941_s21 = int_to_ptr.vmem [resolvable:$true] %s10940_s21  ;;  %s10961_s29 = int_to_ptr.vmem [resolvable:$true] %s10960_s29 }
0x120a   :  { %s15091_s3 = scalar_lea.vmem %s10941_s21, 144  ;;  %s15095_s14 = scalar_lea.vmem %s10941_s21, 160 }
0x120b   :  { %p15092_p6 = scmp.ne.s32.totalorder %s10941_s21, %s15091_s3  ;;  %p15096_p7 = scmp.lt.s32.totalorder %s10941_s21, %s10941_s21 }
0x120c   :  { %p15097_p8 = scmp.lt.s32.totalorder %s15095_s14, %s15091_s3 }
0x120e   :  { %p15098_p9 = por %p15097_p8, %p15096_p7 }
0x1210   :  { %p15099_p10 = pnand %p15098_p9, %p15092_p6 }
0x1212   :  { %15102 = shalt.err (!%p15099_p10)
}
0x1213   :  { %s18604_s6 = sld [smem:[#allocation84_spill]] }
0x1219   :  { %s15103_s27 = scalar_lea.hbm %s18604_s6, 144 }
0x121a   :  { %p15104_p11 = scmp.ne.s32.totalorder %s18604_s6, %s15103_s27  ;;  %p15107_p12 = scmp.lt.u32.totalorder %s15103_s27, %s18604_s6 }
0x121c   :  { %p15109_p13 = pnand %p15107_p12, %p15104_p11 }
0x121e   :  { %15112 = shalt.err (!%p15109_p13)
}
0x121f   :  { %10943 = dma.vmem_to_hbm [thread:$0]  %s10941_s21, 144, %s18604_s6, [#allocation20]  }
0x1220   :  { %s15113_s18 = scalar_lea.vmem %s10961_s29, 96  ;;  %p15118_p1 = scmp.lt.s32.totalorder %s10961_s29, %s10961_s29 }
0x1221   :  { %p15114_p0 = scmp.ne.s32.totalorder %s10961_s29, %s15113_s18  ;;  %p15119_p2 = scmp.lt.s32.totalorder %s15113_s18, %s15113_s18 }
0x1223   :  { %p15120_p3 = por %p15119_p2, %p15118_p1 }
0x1225   :  { %p15121_p4 = pnand %p15120_p3, %p15114_p0 }
0x1227   :  { %15124 = shalt.err (!%p15121_p4)
}
0x1228   :  { %s15125_s20 = scalar_lea.hbm %s15595_s24, 96 }
0x1229   :  { %p15126_p5 = scmp.ne.s32.totalorder %s15595_s24, %s15125_s20  ;;  %p15129_p6 = scmp.lt.u32.totalorder %s15125_s20, %s15595_s24 }
0x122b   :  { %p15131_p7 = pnand %p15129_p6, %p15126_p5 }
0x122d   :  { %15134 = shalt.err (!%p15131_p7)
}
0x122e   :  { %10963 = dma.vmem_to_hbm [thread:$0]  %s10961_s29, 96, %s15595_s24, [#allocation23]  }
0x122f   :  { %s15282_s30 = smov [#allocation27]  }
0x1230   :  { %s10980_s22 = sshll.u32 %s15282_s30, 4  ;;  %s10981_s22 = int_to_ptr.vmem [resolvable:$true] %s10980_s22 }
0x1231   :  { %s15135_s26 = scalar_lea.vmem %s10981_s22, 16  ;;  %s15139_s7 = scalar_lea.vmem %s10981_s22, 32 }
0x1232   :  { %p15136_p8 = scmp.ne.s32.totalorder %s10981_s22, %s15135_s26  ;;  %p15140_p9 = scmp.lt.s32.totalorder %s10981_s22, %s10981_s22 }
0x1233   :  { %p15141_p10 = scmp.lt.s32.totalorder %s15139_s7, %s15135_s26 }
0x1235   :  { %p15142_p11 = por %p15141_p10, %p15140_p9 }
0x1237   :  { %p15143_p12 = pnand %p15142_p11, %p15136_p8 }
0x1239   :  { %15146 = shalt.err (!%p15143_p12)
}
0x123a   :  { %s15147_s1 = scalar_lea.hbm %s15605_s23, 16 }
0x123b   :  { %p15148_p13 = scmp.ne.s32.totalorder %s15605_s23, %s15147_s1  ;;  %p15151_p0 = scmp.lt.u32.totalorder %s15147_s1, %s15605_s23 }
0x123d   :  { %p15153_p1 = pnand %p15151_p0, %p15148_p13 }
0x123f   :  { %15156 = shalt.err (!%p15153_p1)
}
0x1240   :  { %10983 = dma.vmem_to_hbm [thread:$0]  %s10981_s22, 16, %s15605_s23, [#allocation26]   ;;  %v10793_v3 = vld [vmem:[#allocation11] sm:$0x1]  ;;  %v10868_v62 = vpop.f32.mrb[100].mxu0  ;;  %vm10872_vm0 = vcmask 409600  }
0x1241   :  { %s15283_s24 = smov [#allocation28]   ;;  %v10869_v10 = vadd.f32 %v10868_v62, %v10793_v3  ;;  %v12613_v0 = vpop.f32.mrb[101].mxu0 }
0x1242   :  { %s10990_s2 = sshll.u32 %s15283_s24, 4  ;;  %s10991_s2 = int_to_ptr.vmem [resolvable:$true] %s10990_s2 }
0x1243   :  { %10873 = vst.msk [vmem:[#allocation28] sm:$0x1] %vm10872_vm0, %v10869_v10  ;;  %s15157_s19 = scalar_lea.vmem %s10991_s2, 16  ;;  %s15161_s16 = scalar_lea.vmem %s10991_s2, 32 }
0x1244   :  { %p15158_p2 = scmp.ne.s32.totalorder %s10991_s2, %s15157_s19  ;;  %p15162_p3 = scmp.lt.s32.totalorder %s10991_s2, %s10991_s2 }
0x1245   :  { %p15163_p4 = scmp.lt.s32.totalorder %s15161_s16, %s15157_s19 }
0x1247   :  { %p15164_p5 = por %p15163_p4, %p15162_p3 }
0x1249   :  { %p15165_p6 = pnand %p15164_p5, %p15158_p2 }
0x124b   :  { %15168 = shalt.err (!%p15165_p6)
}
0x124c   :  { %s15169_s23 = scalar_lea.hbm %s15610_s28, 16 }
0x124d   :  { %p15170_p7 = scmp.ne.s32.totalorder %s15610_s28, %s15169_s23  ;;  %p15173_p8 = scmp.lt.u32.totalorder %s15169_s23, %s15610_s28 }
0x124f   :  { %p15175_p9 = pnand %p15173_p8, %p15170_p7 }
0x1251   :  { %15178 = shalt.err (!%p15175_p9)
}
0x1252   :  { %10993 = dma.vmem_to_hbm [thread:$0]  %s10991_s2, 16, %s15610_s28, [#allocation29]  }
0x1253   :  { %15185 = dma.done.wait [#allocation5], 80  }
0x1254   :  { %15186 = vsyncadd [#allocation5], 4294967216 }
0x1255   :  { %15187 = dma.done.wait [#allocation14], 288  }
0x1256   :  { %15188 = vsyncadd [#allocation14], 4294967008 }
0x1257   :  { %15189 = dma.done.wait [#allocation17], 288  }
0x1258   :  { %15190 = vsyncadd [#allocation17], 4294967008 }
0x1259   :  { %15191 = dma.done.wait [#allocation20], 352  }
0x125a   :  { %15192 = vsyncadd [#allocation20], 4294966944 }
0x125b   :  { %15193 = dma.done.wait [#allocation23], 240  }
0x125c   :  { %15194 = vsyncadd [#allocation23], 4294967056 }
0x125d   :  { %15195 = dma.done.wait [#allocation26], 160  }
0x125e   :  { %15196 = vsyncadd [#allocation26], 4294967136 }
0x125f   :  { %15197 = dma.done.wait [#allocation29], 16  }
0x1260   :  { %15198 = vsyncadd [#allocation29], 4294967280 }
0x1261   :  { %11030 = vsyncpa [#allocation4], 1 }
0x1262   :  { %11031 = vsyncpa [#allocation7], 1 }
0x1263   :  { %11032 = vsyncpa [#allocation10], 1 }
0x1264   :  { %11033 = vsyncpa [#allocation5], 1 }
0x1265   :  { %11034 = vsyncpa [#allocation14], 1 }
0x1266   :  { %11035 = vsyncpa [#allocation17], 1 }
0x1267   :  { %11036 = vsyncpa [#allocation20], 1 }
0x1268   :  { %11037 = vsyncpa [#allocation23], 1 }
0x1269   :  { %11038 = vsyncpa [#allocation26], 1 }
0x126a   :  { %11039 = vsyncpa [#allocation29], 1 }

</bundles_post_ra>
